<compile_context>
chip_gen: v7x
topology: tpu7x:2x2x1
jax: 0.10.0
libtpu: 0.0.40
codegen_flags: <defaults>
</compile_context>

<pallas_src>
import functools

import jax
import jax.numpy as jnp
import numpy as np
from jax.experimental import pallas as pl
from jax.experimental.pallas import tpu as pltpu


def _round_up(v, m):
    return (v + m - 1) // m * m


# ---------------------------------------------------------------------------
# Fused kernel: conv3x3 + bias + ReLU -> conv3x3 + bias, Bt images per step.
#
# Layout (per image): zero-padded field of Hp=H+3 rows x Wp cols, row-major
# flattened to Mp = Hp*Wp lanes.  Output position j in [0, L), L = H*Wp, maps
# to padded flat index (Wp+1)+j; tap (dy,dx) of the 3x3 kernel reads flat index
# j + dy*Wp + dx, i.e. every tap is one contiguous static lane slice.
#
#   x_ref    : (Bt, cin_p, Mp)   bf16   padded flattened input images
#   w1_ref   : (nf, 9*cin_p)     bf16   conv1 weights, K index = tap*cin_p + c
#   w2_ref   : (cout, 9*nf)      bf16   conv2 weights, K index = tap*nf + f
#   b1_ref   : (nf, 1) f32,  b2_ref: (cout, 1) f32
#   mask_ref : (1, L) f32        1.0 on valid output columns, 0.0 on pad cols
#   o_ref    : (Bt*cout, L) f32  sublane/lane-dense output block
#   x9_ref   : (9*cin_p, Bt*L)   bf16 scratch  im2col-stacked conv1 operand
#   h32_ref  : (nf, Bt*L)        f32  scratch  conv1 matmul result
#   hpad_ref : (Bt, nf, Mp)      bf16 scratch  padded intermediate fields
#   h9_ref   : (9*nf, Bt*L)      bf16 scratch  im2col-stacked conv2 operand
# ---------------------------------------------------------------------------
def _fused_conv2_kernel(x_ref, w1_ref, w2_ref, b1_ref, b2_ref, mask_ref,
                        o_ref, x9_ref, h32_ref, hpad_ref, h9_ref,
                        *, H, W, Wp, bt, cin_p, n_feats, cout):
    L = H * Wp
    Mp = (H + 3) * Wp

    # ---- im2col-stacked conv1 operand: batch folded into the lane axis -----
    for b in range(bt):
        for dy in range(3):
            for dx in range(3):
                t = dy * 3 + dx
                off = dy * Wp + dx
                x9_ref[t * cin_p:(t + 1) * cin_p, b * L:(b + 1) * L] = \
                    x_ref[b, :, off:off + L]

    # ---- conv1: ONE MXU matmul (K = 9*cin_p, N = Bt*L), f32 accumulation ---
    h32_ref[...] = jnp.dot(w1_ref[...], x9_ref[...],
                           preferred_element_type=jnp.float32)

    b1v = b1_ref[...]                                   # (nf, 1)   hoisted
    msk = mask_ref[...]                                 # (1, L)    hoisted
    zpad_lo = jnp.zeros((n_feats, Wp + 1), hpad_ref.dtype)
    zpad_hi = jnp.zeros((n_feats, Mp - (Wp + 1 + L)), hpad_ref.dtype)

    # ---- bias + ReLU + pad-column mask, per image (small vreg working set) -
    # Pad ring columns would otherwise carry row-wrap garbage into conv2.
    for b in range(bt):
        h_b = jnp.maximum(h32_ref[:, b * L:(b + 1) * L] + b1v, 0.0) * msk
        # Zero only the two small pad regions of the field; the interior is
        # overwritten directly (no full-field zero store).
        hpad_ref[b, :, :Wp + 1] = zpad_lo
        hpad_ref[b, :, Wp + 1 + L:] = zpad_hi
        hpad_ref[b, :, Wp + 1:Wp + 1 + L] = h_b.astype(hpad_ref.dtype)

    # ---- im2col-stacked conv2 operand (VMEM only, never touches HBM) -------
    for b in range(bt):
        for dy in range(3):
            for dx in range(3):
                t = dy * 3 + dx
                off = dy * Wp + dx
                h9_ref[t * n_feats:(t + 1) * n_feats, b * L:(b + 1) * L] = \
                    hpad_ref[b, :, off:off + L]

    # ---- conv2: ONE MXU matmul (K = 9*nf, N = Bt*L) -------------------------
    y = jnp.dot(w2_ref[...], h9_ref[...],
                preferred_element_type=jnp.float32) + b2_ref[...]

    # ---- sublane/lane-dense output block (Bt*cout rows, L lanes) ------------
    for b in range(bt):
        o_ref[b * cout:(b + 1) * cout, :] = \
            y[:, b * L:(b + 1) * L].astype(o_ref.dtype)


# ---------------------------------------------------------------------------
# Wrapper: layout plumbing (channels-first, flattened padded spatial) + call.
# ---------------------------------------------------------------------------
def _fused_forward(x_nchw, w1, b1, w2, b2, *, bt=None):
    N, Cin, H, W = x_nchw.shape
    nf = w1.shape[0]
    Cout = w2.shape[0]
    assert nf % 8 == 0
    cin_p = _round_up(Cin, 8)          # pad contraction channels to sublanes

    # Per-row pad width: at least W+2 (SAME conv halo); round up, when cheap,
    # so L = H*Wp is a multiple of 128 -> lane-dense stores / aligned blocks.
    Wp = W + 2
    for cand in range(W + 2, W + 2 + 17):
        if (H * cand) % 128 == 0:
            Wp = cand
            break
    Hp = H + 3                          # 1 top pad row + 2 bottom slack rows
    L = H * Wp
    Mp = Hp * Wp

    # Batch tile: prefer Bt such that Bt*Cout is a multiple of 8 (dense rows).
    if bt is None:
        cands = [d for d in range(min(8, N), 0, -1) if N % d == 0]
        good = [d for d in cands if (d * Cout) % 8 == 0]
        bt = (good or cands)[0]
    assert N % bt == 0
    grid = N // bt
    if (bt * Cout) % 8 != 0 and grid > 1:
        bt, grid = N, 1                 # fall back to a full-batch block

    # Channels-first throughout: no NCHW<->NHWC transposes of activations.
    x_pad = jnp.pad(x_nchw, ((0, 0), (0, cin_p - Cin),
                             (1, Hp - 1 - H), (1, Wp - 1 - W)))
    x_flat = x_pad.reshape(N, cin_p, Mp).astype(jnp.bfloat16)

    # Tap-folded weight matrices: K index = tap*(channels) + channel.
    w1f = jnp.transpose(w1, (0, 2, 3, 1)).reshape(nf, 9, Cin)
    w1f = jnp.pad(w1f, ((0, 0), (0, 0), (0, cin_p - Cin)))
    w1f = w1f.reshape(nf, 9 * cin_p).astype(jnp.bfloat16)
    w2f = jnp.transpose(w2, (0, 2, 3, 1)).reshape(Cout, 9 * nf).astype(jnp.bfloat16)
    b1c = b1.reshape(nf, 1).astype(jnp.float32)
    b2c = b2.reshape(Cout, 1).astype(jnp.float32)

    # Precomputed valid-column mask: no integer modulo inside the kernel.
    col = np.arange(L, dtype=np.int64) % Wp
    mask = jnp.asarray((col < W).astype(np.float32).reshape(1, L))

    kernel = functools.partial(_fused_conv2_kernel, H=H, W=W, Wp=Wp, bt=bt,
                               cin_p=cin_p, n_feats=nf, cout=Cout)

    flops = 2 * N * H * W * 9 * (Cin * nf + nf * Cout)
    bytes_accessed = (x_flat.size * 2 + w1f.size * 2 + w2f.size * 2
                      + b1c.size * 4 + b2c.size * 4 + mask.size * 4
                      + N * Cout * L * 4)

    out = pl.pallas_call(
        kernel,
        out_shape=jax.ShapeDtypeStruct((N * Cout, L), jnp.float32),
        grid_spec=pltpu.PrefetchScalarGridSpec(
            num_scalar_prefetch=0,
            grid=(grid,),                               # batch-tile per step
            in_specs=[
                pl.BlockSpec((bt, cin_p, Mp), lambda i: (i, 0, 0)),
                pl.BlockSpec((nf, 9 * cin_p), lambda i: (0, 0)),
                pl.BlockSpec((Cout, 9 * nf), lambda i: (0, 0)),
                pl.BlockSpec((nf, 1), lambda i: (0, 0)),
                pl.BlockSpec((Cout, 1), lambda i: (0, 0)),
                pl.BlockSpec((1, L), lambda i: (0, 0)),
            ],
            out_specs=pl.BlockSpec((bt * Cout, L), lambda i: (i, 0)),
            scratch_shapes=[
                pltpu.VMEM((9 * cin_p, bt * L), jnp.bfloat16),   # conv1 im2col
                pltpu.VMEM((nf, bt * L), jnp.float32),           # conv1 result
                pltpu.VMEM((bt, nf, Mp), jnp.bfloat16),          # padded h
                pltpu.VMEM((9 * nf, bt * L), jnp.bfloat16),      # conv2 im2col
            ],
        ),
        compiler_params=pltpu.CompilerParams(
            dimension_semantics=("parallel",),          # shard batch on v7x TCs
        ),
        cost_estimate=pl.CostEstimate(flops=flops, transcendentals=0,
                                      bytes_accessed=bytes_accessed),
    )(x_flat, w1f, w2f, b1c, b2c, mask)

    # (N*Cout, L) -> NCHW; drop the per-row pad columns (no transpose needed).
    return out.reshape(N, Cout, H, Wp)[:, :, :, :W]


# ---------------------------------------------------------------------------
# The Model wrapper (forward(x) -> self.model(x)), NCHW in / NCHW out.
# ---------------------------------------------------------------------------
def make_params(cin=3, n_feats=32, seed=0):
    k = jax.random.PRNGKey(seed)
    k1, k2, k3, k4 = jax.random.split(k, 4)
    s1 = (2.0 / (cin * 9)) ** 0.5
    s2 = (2.0 / (n_feats * 9)) ** 0.5
    return {
        "w1": jax.random.normal(k1, (n_feats, cin, 3, 3), jnp.float32) * s1,
        "b1": jax.random.normal(k2, (n_feats,), jnp.float32) * 0.01,
        "w2": jax.random.normal(k3, (cin, n_feats, 3, 3), jnp.float32) * s2,
        "b2": jax.random.normal(k4, (cin,), jnp.float32) * 0.01,
    }


@jax.jit
def model_forward(params, x_nchw):
    return _fused_forward(x_nchw, params["w1"], params["b1"],
                          params["w2"], params["b2"])


# Pure-JAX reference (f32) for a correctness sanity check.
def _reference_forward(params, x):
    dn = ("NCHW", "OIHW", "NCHW")
    h = jax.lax.conv_general_dilated(x, params["w1"], (1, 1), "SAME",
                                     dimension_numbers=dn)
    h = jnp.maximum(h + params["b1"][None, :, None, None], 0.0)
    y = jax.lax.conv_general_dilated(h, params["w2"], (1, 1), "SAME",
                                     dimension_numbers=dn)
    return y + params["b2"][None, :, None, None]


if __name__ == "__main__":
    key = jax.random.PRNGKey(0)
    # Small NCHW input.  Batch 16 -> two grid steps of an 8-image tile each:
    # both v7x TensorCores get a step, Bt*Cout = 24 output rows per block
    # (sublane-dense), and the matmul lane extent is Bt*L = 3072.
    x = jax.random.normal(key, (16, 3, 16, 16), jnp.float32)
    params = make_params(cin=3, n_feats=32, seed=0)

    y = model_forward(params, x)
    jax.block_until_ready(y)
    assert y.shape == (16, 3, 16, 16), y.shape

    # Numerical sanity check (bf16 operands / f32 accumulation).
    y_ref = _reference_forward(params, x)
    np.testing.assert_allclose(np.asarray(y), np.asarray(y_ref),
                               atol=5e-2, rtol=5e-2)
    print("KERNEL_OK")
</pallas_src>

<mosaic_0001>
module attributes {stable_mosaic.version = 11 : i64} {
  func.func @_fused_conv2_kernel(%arg0: i32, %arg1: memref<8x8x456xbf16, #tpu.memory_space<vmem>>, %arg2: memref<32x72xbf16, #tpu.memory_space<vmem>>, %arg3: memref<3x288xbf16, #tpu.memory_space<vmem>>, %arg4: memref<32x1xf32, #tpu.memory_space<vmem>>, %arg5: memref<3x1xf32, #tpu.memory_space<vmem>>, %arg6: memref<1x384xf32, #tpu.memory_space<vmem>>, %arg7: memref<24x384xf32, #tpu.memory_space<vmem>>, %arg8: memref<72x3072xbf16, #tpu.memory_space<vmem>>, %arg9: memref<32x3072xf32, #tpu.memory_space<vmem>>, %arg10: memref<8x32x456xbf16, #tpu.memory_space<vmem>>, %arg11: memref<288x3072xbf16, #tpu.memory_space<vmem>>) attributes {dimension_semantics = [#tpu.dimension_semantics<parallel>], iteration_bounds = array<i64: 2>, scalar_prefetch = 0 : i64, scratch_operands = 4 : i64, tpu.core_type = #tpu.core_type<tc>, window_params = [{transform_indices = @transform_0, window_bounds = array<i64: 8, 8, 456>}, {pipeline_mode = #tpu.pipeline_mode<synchronous>, transform_indices = @transform_1, window_bounds = array<i64: 32, 72>}, {pipeline_mode = #tpu.pipeline_mode<synchronous>, transform_indices = @transform_2, window_bounds = array<i64: 3, 288>}, {pipeline_mode = #tpu.pipeline_mode<synchronous>, transform_indices = @transform_3, window_bounds = array<i64: 32, 1>}, {pipeline_mode = #tpu.pipeline_mode<synchronous>, transform_indices = @transform_4, window_bounds = array<i64: 3, 1>}, {pipeline_mode = #tpu.pipeline_mode<synchronous>, transform_indices = @transform_5, window_bounds = array<i64: 1, 384>}, {transform_indices = @transform_6, window_bounds = array<i64: 24, 384>}]} {
    %c0 = arith.constant 0 : index
    %c0_0 = arith.constant 0 : index
    %c0_1 = arith.constant 0 : index
    %0 = vector.load %arg1[%c0, %c0_0, %c0_1] : memref<8x8x456xbf16, #tpu.memory_space<vmem>>, vector<1x8x384xbf16>
    %1 = vector.shape_cast %0 : vector<1x8x384xbf16> to vector<8x384xbf16>
    %c0_2 = arith.constant 0 : index
    %c0_3 = arith.constant 0 : index
    %2 = vector.load %arg8[%c0_2, %c0_3] : memref<72x3072xbf16, #tpu.memory_space<vmem>>, vector<8x384xbf16>
    tpu.vector_store %arg8[%c0_2, %c0_3], %1 {strides = array<i32>} : memref<72x3072xbf16, #tpu.memory_space<vmem>>, vector<8x384xbf16>,
    %c0_4 = arith.constant 0 : index
    %c0_5 = arith.constant 0 : index
    %c1 = arith.constant 1 : index
    %3 = vector.load %arg1[%c0_4, %c0_5, %c1] : memref<8x8x456xbf16, #tpu.memory_space<vmem>>, vector<1x8x384xbf16>
    %4 = vector.shape_cast %3 : vector<1x8x384xbf16> to vector<8x384xbf16>
    %c8 = arith.constant 8 : index
    %c0_6 = arith.constant 0 : index
    %5 = vector.load %arg8[%c8, %c0_6] : memref<72x3072xbf16, #tpu.memory_space<vmem>>, vector<8x384xbf16>
    tpu.vector_store %arg8[%c8, %c0_6], %4 {strides = array<i32>} : memref<72x3072xbf16, #tpu.memory_space<vmem>>, vector<8x384xbf16>,
    %c0_7 = arith.constant 0 : index
    %c0_8 = arith.constant 0 : index
    %c2 = arith.constant 2 : index
    %6 = vector.load %arg1[%c0_7, %c0_8, %c2] : memref<8x8x456xbf16, #tpu.memory_space<vmem>>, vector<1x8x384xbf16>
    %7 = vector.shape_cast %6 : vector<1x8x384xbf16> to vector<8x384xbf16>
    %c16 = arith.constant 16 : index
    %c0_9 = arith.constant 0 : index
    %8 = vector.load %arg8[%c16, %c0_9] : memref<72x3072xbf16, #tpu.memory_space<vmem>>, vector<8x384xbf16>
    tpu.vector_store %arg8[%c16, %c0_9], %7 {strides = array<i32>} : memref<72x3072xbf16, #tpu.memory_space<vmem>>, vector<8x384xbf16>,
    %c0_10 = arith.constant 0 : index
    %c0_11 = arith.constant 0 : index
    %c24 = arith.constant 24 : index
    %9 = vector.load %arg1[%c0_10, %c0_11, %c24] : memref<8x8x456xbf16, #tpu.memory_space<vmem>>, vector<1x8x384xbf16>
    %10 = vector.shape_cast %9 : vector<1x8x384xbf16> to vector<8x384xbf16>
    %c24_12 = arith.constant 24 : index
    %c0_13 = arith.constant 0 : index
    %11 = vector.load %arg8[%c24_12, %c0_13] : memref<72x3072xbf16, #tpu.memory_space<vmem>>, vector<8x384xbf16>
    tpu.vector_store %arg8[%c24_12, %c0_13], %10 {strides = array<i32>} : memref<72x3072xbf16, #tpu.memory_space<vmem>>, vector<8x384xbf16>,
    %c0_14 = arith.constant 0 : index
    %c0_15 = arith.constant 0 : index
    %c25 = arith.constant 25 : index
    %12 = vector.load %arg1[%c0_14, %c0_15, %c25] : memref<8x8x456xbf16, #tpu.memory_space<vmem>>, vector<1x8x384xbf16>
    %13 = vector.shape_cast %12 : vector<1x8x384xbf16> to vector<8x384xbf16>
    %c32 = arith.constant 32 : index
    %c0_16 = arith.constant 0 : index
    %14 = vector.load %arg8[%c32, %c0_16] : memref<72x3072xbf16, #tpu.memory_space<vmem>>, vector<8x384xbf16>
    tpu.vector_store %arg8[%c32, %c0_16], %13 {strides = array<i32>} : memref<72x3072xbf16, #tpu.memory_space<vmem>>, vector<8x384xbf16>,
    %c0_17 = arith.constant 0 : index
    %c0_18 = arith.constant 0 : index
    %c26 = arith.constant 26 : index
    %15 = vector.load %arg1[%c0_17, %c0_18, %c26] : memref<8x8x456xbf16, #tpu.memory_space<vmem>>, vector<1x8x384xbf16>
    %16 = vector.shape_cast %15 : vector<1x8x384xbf16> to vector<8x384xbf16>
    %c40 = arith.constant 40 : index
    %c0_19 = arith.constant 0 : index
    %17 = vector.load %arg8[%c40, %c0_19] : memref<72x3072xbf16, #tpu.memory_space<vmem>>, vector<8x384xbf16>
    tpu.vector_store %arg8[%c40, %c0_19], %16 {strides = array<i32>} : memref<72x3072xbf16, #tpu.memory_space<vmem>>, vector<8x384xbf16>,
    %c0_20 = arith.constant 0 : index
    %c0_21 = arith.constant 0 : index
    %c48 = arith.constant 48 : index
    %18 = vector.load %arg1[%c0_20, %c0_21, %c48] : memref<8x8x456xbf16, #tpu.memory_space<vmem>>, vector<1x8x384xbf16>
    %19 = vector.shape_cast %18 : vector<1x8x384xbf16> to vector<8x384xbf16>
    %c48_22 = arith.constant 48 : index
    %c0_23 = arith.constant 0 : index
    %20 = vector.load %arg8[%c48_22, %c0_23] : memref<72x3072xbf16, #tpu.memory_space<vmem>>, vector<8x384xbf16>
    tpu.vector_store %arg8[%c48_22, %c0_23], %19 {strides = array<i32>} : memref<72x3072xbf16, #tpu.memory_space<vmem>>, vector<8x384xbf16>,
    %c0_24 = arith.constant 0 : index
    %c0_25 = arith.constant 0 : index
    %c49 = arith.constant 49 : index
    %21 = vector.load %arg1[%c0_24, %c0_25, %c49] : memref<8x8x456xbf16, #tpu.memory_space<vmem>>, vector<1x8x384xbf16>
    %22 = vector.shape_cast %21 : vector<1x8x384xbf16> to vector<8x384xbf16>
    %c56 = arith.constant 56 : index
    %c0_26 = arith.constant 0 : index
    %23 = vector.load %arg8[%c56, %c0_26] : memref<72x3072xbf16, #tpu.memory_space<vmem>>, vector<8x384xbf16>
    tpu.vector_store %arg8[%c56, %c0_26], %22 {strides = array<i32>} : memref<72x3072xbf16, #tpu.memory_space<vmem>>, vector<8x384xbf16>,
    %c0_27 = arith.constant 0 : index
    %c0_28 = arith.constant 0 : index
    %c50 = arith.constant 50 : index
    %24 = vector.load %arg1[%c0_27, %c0_28, %c50] : memref<8x8x456xbf16, #tpu.memory_space<vmem>>, vector<1x8x384xbf16>
    %25 = vector.shape_cast %24 : vector<1x8x384xbf16> to vector<8x384xbf16>
    %c64 = arith.constant 64 : index
    %c0_29 = arith.constant 0 : index
    %26 = vector.load %arg8[%c64, %c0_29] : memref<72x3072xbf16, #tpu.memory_space<vmem>>, vector<8x384xbf16>
    tpu.vector_store %arg8[%c64, %c0_29], %25 {strides = array<i32>} : memref<72x3072xbf16, #tpu.memory_space<vmem>>, vector<8x384xbf16>,
    %c1_30 = arith.constant 1 : index
    %c0_31 = arith.constant 0 : index
    %c0_32 = arith.constant 0 : index
    %27 = vector.load %arg1[%c1_30, %c0_31, %c0_32] : memref<8x8x456xbf16, #tpu.memory_space<vmem>>, vector<1x8x384xbf16>
    %28 = vector.shape_cast %27 : vector<1x8x384xbf16> to vector<8x384xbf16>
    %c0_33 = arith.constant 0 : index
    %c384 = arith.constant 384 : index
    %29 = vector.load %arg8[%c0_33, %c384] : memref<72x3072xbf16, #tpu.memory_space<vmem>>, vector<8x384xbf16>
    tpu.vector_store %arg8[%c0_33, %c384], %28 {strides = array<i32>} : memref<72x3072xbf16, #tpu.memory_space<vmem>>, vector<8x384xbf16>,
    %c1_34 = arith.constant 1 : index
    %c0_35 = arith.constant 0 : index
    %c1_36 = arith.constant 1 : index
    %30 = vector.load %arg1[%c1_34, %c0_35, %c1_36] : memref<8x8x456xbf16, #tpu.memory_space<vmem>>, vector<1x8x384xbf16>
    %31 = vector.shape_cast %30 : vector<1x8x384xbf16> to vector<8x384xbf16>
    %c8_37 = arith.constant 8 : index
    %c384_38 = arith.constant 384 : index
    %32 = vector.load %arg8[%c8_37, %c384_38] : memref<72x3072xbf16, #tpu.memory_space<vmem>>, vector<8x384xbf16>
    tpu.vector_store %arg8[%c8_37, %c384_38], %31 {strides = array<i32>} : memref<72x3072xbf16, #tpu.memory_space<vmem>>, vector<8x384xbf16>,
    %c1_39 = arith.constant 1 : index
    %c0_40 = arith.constant 0 : index
    %c2_41 = arith.constant 2 : index
    %33 = vector.load %arg1[%c1_39, %c0_40, %c2_41] : memref<8x8x456xbf16, #tpu.memory_space<vmem>>, vector<1x8x384xbf16>
    %34 = vector.shape_cast %33 : vector<1x8x384xbf16> to vector<8x384xbf16>
    %c16_42 = arith.constant 16 : index
    %c384_43 = arith.constant 384 : index
    %35 = vector.load %arg8[%c16_42, %c384_43] : memref<72x3072xbf16, #tpu.memory_space<vmem>>, vector<8x384xbf16>
    tpu.vector_store %arg8[%c16_42, %c384_43], %34 {strides = array<i32>} : memref<72x3072xbf16, #tpu.memory_space<vmem>>, vector<8x384xbf16>,
    %c1_44 = arith.constant 1 : index
    %c0_45 = arith.constant 0 : index
    %c24_46 = arith.constant 24 : index
    %36 = vector.load %arg1[%c1_44, %c0_45, %c24_46] : memref<8x8x456xbf16, #tpu.memory_space<vmem>>, vector<1x8x384xbf16>
    %37 = vector.shape_cast %36 : vector<1x8x384xbf16> to vector<8x384xbf16>
    %c24_47 = arith.constant 24 : index
    %c384_48 = arith.constant 384 : index
    %38 = vector.load %arg8[%c24_47, %c384_48] : memref<72x3072xbf16, #tpu.memory_space<vmem>>, vector<8x384xbf16>
    tpu.vector_store %arg8[%c24_47, %c384_48], %37 {strides = array<i32>} : memref<72x3072xbf16, #tpu.memory_space<vmem>>, vector<8x384xbf16>,
    %c1_49 = arith.constant 1 : index
    %c0_50 = arith.constant 0 : index
    %c25_51 = arith.constant 25 : index
    %39 = vector.load %arg1[%c1_49, %c0_50, %c25_51] : memref<8x8x456xbf16, #tpu.memory_space<vmem>>, vector<1x8x384xbf16>
    %40 = vector.shape_cast %39 : vector<1x8x384xbf16> to vector<8x384xbf16>
    %c32_52 = arith.constant 32 : index
    %c384_53 = arith.constant 384 : index
    %41 = vector.load %arg8[%c32_52, %c384_53] : memref<72x3072xbf16, #tpu.memory_space<vmem>>, vector<8x384xbf16>
    tpu.vector_store %arg8[%c32_52, %c384_53], %40 {strides = array<i32>} : memref<72x3072xbf16, #tpu.memory_space<vmem>>, vector<8x384xbf16>,
    %c1_54 = arith.constant 1 : index
    %c0_55 = arith.constant 0 : index
    %c26_56 = arith.constant 26 : index
    %42 = vector.load %arg1[%c1_54, %c0_55, %c26_56] : memref<8x8x456xbf16, #tpu.memory_space<vmem>>, vector<1x8x384xbf16>
    %43 = vector.shape_cast %42 : vector<1x8x384xbf16> to vector<8x384xbf16>
    %c40_57 = arith.constant 40 : index
    %c384_58 = arith.constant 384 : index
    %44 = vector.load %arg8[%c40_57, %c384_58] : memref<72x3072xbf16, #tpu.memory_space<vmem>>, vector<8x384xbf16>
    tpu.vector_store %arg8[%c40_57, %c384_58], %43 {strides = array<i32>} : memref<72x3072xbf16, #tpu.memory_space<vmem>>, vector<8x384xbf16>,
    %c1_59 = arith.constant 1 : index
    %c0_60 = arith.constant 0 : index
    %c48_61 = arith.constant 48 : index
    %45 = vector.load %arg1[%c1_59, %c0_60, %c48_61] : memref<8x8x456xbf16, #tpu.memory_space<vmem>>, vector<1x8x384xbf16>
    %46 = vector.shape_cast %45 : vector<1x8x384xbf16> to vector<8x384xbf16>
    %c48_62 = arith.constant 48 : index
    %c384_63 = arith.constant 384 : index
    %47 = vector.load %arg8[%c48_62, %c384_63] : memref<72x3072xbf16, #tpu.memory_space<vmem>>, vector<8x384xbf16>
    tpu.vector_store %arg8[%c48_62, %c384_63], %46 {strides = array<i32>} : memref<72x3072xbf16, #tpu.memory_space<vmem>>, vector<8x384xbf16>,
    %c1_64 = arith.constant 1 : index
    %c0_65 = arith.constant 0 : index
    %c49_66 = arith.constant 49 : index
    %48 = vector.load %arg1[%c1_64, %c0_65, %c49_66] : memref<8x8x456xbf16, #tpu.memory_space<vmem>>, vector<1x8x384xbf16>
    %49 = vector.shape_cast %48 : vector<1x8x384xbf16> to vector<8x384xbf16>
    %c56_67 = arith.constant 56 : index
    %c384_68 = arith.constant 384 : index
    %50 = vector.load %arg8[%c56_67, %c384_68] : memref<72x3072xbf16, #tpu.memory_space<vmem>>, vector<8x384xbf16>
    tpu.vector_store %arg8[%c56_67, %c384_68], %49 {strides = array<i32>} : memref<72x3072xbf16, #tpu.memory_space<vmem>>, vector<8x384xbf16>,
    %c1_69 = arith.constant 1 : index
    %c0_70 = arith.constant 0 : index
    %c50_71 = arith.constant 50 : index
    %51 = vector.load %arg1[%c1_69, %c0_70, %c50_71] : memref<8x8x456xbf16, #tpu.memory_space<vmem>>, vector<1x8x384xbf16>
    %52 = vector.shape_cast %51 : vector<1x8x384xbf16> to vector<8x384xbf16>
    %c64_72 = arith.constant 64 : index
    %c384_73 = arith.constant 384 : index
    %53 = vector.load %arg8[%c64_72, %c384_73] : memref<72x3072xbf16, #tpu.memory_space<vmem>>, vector<8x384xbf16>
    tpu.vector_store %arg8[%c64_72, %c384_73], %52 {strides = array<i32>} : memref<72x3072xbf16, #tpu.memory_space<vmem>>, vector<8x384xbf16>,
    %c2_74 = arith.constant 2 : index
    %c0_75 = arith.constant 0 : index
    %c0_76 = arith.constant 0 : index
    %54 = vector.load %arg1[%c2_74, %c0_75, %c0_76] : memref<8x8x456xbf16, #tpu.memory_space<vmem>>, vector<1x8x384xbf16>
    %55 = vector.shape_cast %54 : vector<1x8x384xbf16> to vector<8x384xbf16>
    %c0_77 = arith.constant 0 : index
    %c768 = arith.constant 768 : index
    %56 = vector.load %arg8[%c0_77, %c768] : memref<72x3072xbf16, #tpu.memory_space<vmem>>, vector<8x384xbf16>
    tpu.vector_store %arg8[%c0_77, %c768], %55 {strides = array<i32>} : memref<72x3072xbf16, #tpu.memory_space<vmem>>, vector<8x384xbf16>,
    %c2_78 = arith.constant 2 : index
    %c0_79 = arith.constant 0 : index
    %c1_80 = arith.constant 1 : index
    %57 = vector.load %arg1[%c2_78, %c0_79, %c1_80] : memref<8x8x456xbf16, #tpu.memory_space<vmem>>, vector<1x8x384xbf16>
    %58 = vector.shape_cast %57 : vector<1x8x384xbf16> to vector<8x384xbf16>
    %c8_81 = arith.constant 8 : index
    %c768_82 = arith.constant 768 : index
    %59 = vector.load %arg8[%c8_81, %c768_82] : memref<72x3072xbf16, #tpu.memory_space<vmem>>, vector<8x384xbf16>
    tpu.vector_store %arg8[%c8_81, %c768_82], %58 {strides = array<i32>} : memref<72x3072xbf16, #tpu.memory_space<vmem>>, vector<8x384xbf16>,
    %c2_83 = arith.constant 2 : index
    %c0_84 = arith.constant 0 : index
    %c2_85 = arith.constant 2 : index
    %60 = vector.load %arg1[%c2_83, %c0_84, %c2_85] : memref<8x8x456xbf16, #tpu.memory_space<vmem>>, vector<1x8x384xbf16>
    %61 = vector.shape_cast %60 : vector<1x8x384xbf16> to vector<8x384xbf16>
    %c16_86 = arith.constant 16 : index
    %c768_87 = arith.constant 768 : index
    %62 = vector.load %arg8[%c16_86, %c768_87] : memref<72x3072xbf16, #tpu.memory_space<vmem>>, vector<8x384xbf16>
    tpu.vector_store %arg8[%c16_86, %c768_87], %61 {strides = array<i32>} : memref<72x3072xbf16, #tpu.memory_space<vmem>>, vector<8x384xbf16>,
    %c2_88 = arith.constant 2 : index
    %c0_89 = arith.constant 0 : index
    %c24_90 = arith.constant 24 : index
    %63 = vector.load %arg1[%c2_88, %c0_89, %c24_90] : memref<8x8x456xbf16, #tpu.memory_space<vmem>>, vector<1x8x384xbf16>
    %64 = vector.shape_cast %63 : vector<1x8x384xbf16> to vector<8x384xbf16>
    %c24_91 = arith.constant 24 : index
    %c768_92 = arith.constant 768 : index
    %65 = vector.load %arg8[%c24_91, %c768_92] : memref<72x3072xbf16, #tpu.memory_space<vmem>>, vector<8x384xbf16>
    tpu.vector_store %arg8[%c24_91, %c768_92], %64 {strides = array<i32>} : memref<72x3072xbf16, #tpu.memory_space<vmem>>, vector<8x384xbf16>,
    %c2_93 = arith.constant 2 : index
    %c0_94 = arith.constant 0 : index
    %c25_95 = arith.constant 25 : index
    %66 = vector.load %arg1[%c2_93, %c0_94, %c25_95] : memref<8x8x456xbf16, #tpu.memory_space<vmem>>, vector<1x8x384xbf16>
    %67 = vector.shape_cast %66 : vector<1x8x384xbf16> to vector<8x384xbf16>
    %c32_96 = arith.constant 32 : index
    %c768_97 = arith.constant 768 : index
    %68 = vector.load %arg8[%c32_96, %c768_97] : memref<72x3072xbf16, #tpu.memory_space<vmem>>, vector<8x384xbf16>
    tpu.vector_store %arg8[%c32_96, %c768_97], %67 {strides = array<i32>} : memref<72x3072xbf16, #tpu.memory_space<vmem>>, vector<8x384xbf16>,
    %c2_98 = arith.constant 2 : index
    %c0_99 = arith.constant 0 : index
    %c26_100 = arith.constant 26 : index
    %69 = vector.load %arg1[%c2_98, %c0_99, %c26_100] : memref<8x8x456xbf16, #tpu.memory_space<vmem>>, vector<1x8x384xbf16>
    %70 = vector.shape_cast %69 : vector<1x8x384xbf16> to vector<8x384xbf16>
    %c40_101 = arith.constant 40 : index
    %c768_102 = arith.constant 768 : index
    %71 = vector.load %arg8[%c40_101, %c768_102] : memref<72x3072xbf16, #tpu.memory_space<vmem>>, vector<8x384xbf16>
    tpu.vector_store %arg8[%c40_101, %c768_102], %70 {strides = array<i32>} : memref<72x3072xbf16, #tpu.memory_space<vmem>>, vector<8x384xbf16>,
    %c2_103 = arith.constant 2 : index
    %c0_104 = arith.constant 0 : index
    %c48_105 = arith.constant 48 : index
    %72 = vector.load %arg1[%c2_103, %c0_104, %c48_105] : memref<8x8x456xbf16, #tpu.memory_space<vmem>>, vector<1x8x384xbf16>
    %73 = vector.shape_cast %72 : vector<1x8x384xbf16> to vector<8x384xbf16>
    %c48_106 = arith.constant 48 : index
    %c768_107 = arith.constant 768 : index
    %74 = vector.load %arg8[%c48_106, %c768_107] : memref<72x3072xbf16, #tpu.memory_space<vmem>>, vector<8x384xbf16>
    tpu.vector_store %arg8[%c48_106, %c768_107], %73 {strides = array<i32>} : memref<72x3072xbf16, #tpu.memory_space<vmem>>, vector<8x384xbf16>,
    %c2_108 = arith.constant 2 : index
    %c0_109 = arith.constant 0 : index
    %c49_110 = arith.constant 49 : index
    %75 = vector.load %arg1[%c2_108, %c0_109, %c49_110] : memref<8x8x456xbf16, #tpu.memory_space<vmem>>, vector<1x8x384xbf16>
    %76 = vector.shape_cast %75 : vector<1x8x384xbf16> to vector<8x384xbf16>
    %c56_111 = arith.constant 56 : index
    %c768_112 = arith.constant 768 : index
    %77 = vector.load %arg8[%c56_111, %c768_112] : memref<72x3072xbf16, #tpu.memory_space<vmem>>, vector<8x384xbf16>
    tpu.vector_store %arg8[%c56_111, %c768_112], %76 {strides = array<i32>} : memref<72x3072xbf16, #tpu.memory_space<vmem>>, vector<8x384xbf16>,
    %c2_113 = arith.constant 2 : index
    %c0_114 = arith.constant 0 : index
    %c50_115 = arith.constant 50 : index
    %78 = vector.load %arg1[%c2_113, %c0_114, %c50_115] : memref<8x8x456xbf16, #tpu.memory_space<vmem>>, vector<1x8x384xbf16>
    %79 = vector.shape_cast %78 : vector<1x8x384xbf16> to vector<8x384xbf16>
    %c64_116 = arith.constant 64 : index
    %c768_117 = arith.constant 768 : index
    %80 = vector.load %arg8[%c64_116, %c768_117] : memref<72x3072xbf16, #tpu.memory_space<vmem>>, vector<8x384xbf16>
    tpu.vector_store %arg8[%c64_116, %c768_117], %79 {strides = array<i32>} : memref<72x3072xbf16, #tpu.memory_space<vmem>>, vector<8x384xbf16>,
    %c3 = arith.constant 3 : index
    %c0_118 = arith.constant 0 : index
    %c0_119 = arith.constant 0 : index
    %81 = vector.load %arg1[%c3, %c0_118, %c0_119] : memref<8x8x456xbf16, #tpu.memory_space<vmem>>, vector<1x8x384xbf16>
    %82 = vector.shape_cast %81 : vector<1x8x384xbf16> to vector<8x384xbf16>
    %c0_120 = arith.constant 0 : index
    %c1152 = arith.constant 1152 : index
    %83 = vector.load %arg8[%c0_120, %c1152] : memref<72x3072xbf16, #tpu.memory_space<vmem>>, vector<8x384xbf16>
    tpu.vector_store %arg8[%c0_120, %c1152], %82 {strides = array<i32>} : memref<72x3072xbf16, #tpu.memory_space<vmem>>, vector<8x384xbf16>,
    %c3_121 = arith.constant 3 : index
    %c0_122 = arith.constant 0 : index
    %c1_123 = arith.constant 1 : index
    %84 = vector.load %arg1[%c3_121, %c0_122, %c1_123] : memref<8x8x456xbf16, #tpu.memory_space<vmem>>, vector<1x8x384xbf16>
    %85 = vector.shape_cast %84 : vector<1x8x384xbf16> to vector<8x384xbf16>
    %c8_124 = arith.constant 8 : index
    %c1152_125 = arith.constant 1152 : index
    %86 = vector.load %arg8[%c8_124, %c1152_125] : memref<72x3072xbf16, #tpu.memory_space<vmem>>, vector<8x384xbf16>
    tpu.vector_store %arg8[%c8_124, %c1152_125], %85 {strides = array<i32>} : memref<72x3072xbf16, #tpu.memory_space<vmem>>, vector<8x384xbf16>,
    %c3_126 = arith.constant 3 : index
    %c0_127 = arith.constant 0 : index
    %c2_128 = arith.constant 2 : index
    %87 = vector.load %arg1[%c3_126, %c0_127, %c2_128] : memref<8x8x456xbf16, #tpu.memory_space<vmem>>, vector<1x8x384xbf16>
    %88 = vector.shape_cast %87 : vector<1x8x384xbf16> to vector<8x384xbf16>
    %c16_129 = arith.constant 16 : index
    %c1152_130 = arith.constant 1152 : index
    %89 = vector.load %arg8[%c16_129, %c1152_130] : memref<72x3072xbf16, #tpu.memory_space<vmem>>, vector<8x384xbf16>
    tpu.vector_store %arg8[%c16_129, %c1152_130], %88 {strides = array<i32>} : memref<72x3072xbf16, #tpu.memory_space<vmem>>, vector<8x384xbf16>,
    %c3_131 = arith.constant 3 : index
    %c0_132 = arith.constant 0 : index
    %c24_133 = arith.constant 24 : index
    %90 = vector.load %arg1[%c3_131, %c0_132, %c24_133] : memref<8x8x456xbf16, #tpu.memory_space<vmem>>, vector<1x8x384xbf16>
    %91 = vector.shape_cast %90 : vector<1x8x384xbf16> to vector<8x384xbf16>
    %c24_134 = arith.constant 24 : index
    %c1152_135 = arith.constant 1152 : index
    %92 = vector.load %arg8[%c24_134, %c1152_135] : memref<72x3072xbf16, #tpu.memory_space<vmem>>, vector<8x384xbf16>
    tpu.vector_store %arg8[%c24_134, %c1152_135], %91 {strides = array<i32>} : memref<72x3072xbf16, #tpu.memory_space<vmem>>, vector<8x384xbf16>,
    %c3_136 = arith.constant 3 : index
    %c0_137 = arith.constant 0 : index
    %c25_138 = arith.constant 25 : index
    %93 = vector.load %arg1[%c3_136, %c0_137, %c25_138] : memref<8x8x456xbf16, #tpu.memory_space<vmem>>, vector<1x8x384xbf16>
    %94 = vector.shape_cast %93 : vector<1x8x384xbf16> to vector<8x384xbf16>
    %c32_139 = arith.constant 32 : index
    %c1152_140 = arith.constant 1152 : index
    %95 = vector.load %arg8[%c32_139, %c1152_140] : memref<72x3072xbf16, #tpu.memory_space<vmem>>, vector<8x384xbf16>
    tpu.vector_store %arg8[%c32_139, %c1152_140], %94 {strides = array<i32>} : memref<72x3072xbf16, #tpu.memory_space<vmem>>, vector<8x384xbf16>,
    %c3_141 = arith.constant 3 : index
    %c0_142 = arith.constant 0 : index
    %c26_143 = arith.constant 26 : index
    %96 = vector.load %arg1[%c3_141, %c0_142, %c26_143] : memref<8x8x456xbf16, #tpu.memory_space<vmem>>, vector<1x8x384xbf16>
    %97 = vector.shape_cast %96 : vector<1x8x384xbf16> to vector<8x384xbf16>
    %c40_144 = arith.constant 40 : index
    %c1152_145 = arith.constant 1152 : index
    %98 = vector.load %arg8[%c40_144, %c1152_145] : memref<72x3072xbf16, #tpu.memory_space<vmem>>, vector<8x384xbf16>
    tpu.vector_store %arg8[%c40_144, %c1152_145], %97 {strides = array<i32>} : memref<72x3072xbf16, #tpu.memory_space<vmem>>, vector<8x384xbf16>,
    %c3_146 = arith.constant 3 : index
    %c0_147 = arith.constant 0 : index
    %c48_148 = arith.constant 48 : index
    %99 = vector.load %arg1[%c3_146, %c0_147, %c48_148] : memref<8x8x456xbf16, #tpu.memory_space<vmem>>, vector<1x8x384xbf16>
    %100 = vector.shape_cast %99 : vector<1x8x384xbf16> to vector<8x384xbf16>
    %c48_149 = arith.constant 48 : index
    %c1152_150 = arith.constant 1152 : index
    %101 = vector.load %arg8[%c48_149, %c1152_150] : memref<72x3072xbf16, #tpu.memory_space<vmem>>, vector<8x384xbf16>
    tpu.vector_store %arg8[%c48_149, %c1152_150], %100 {strides = array<i32>} : memref<72x3072xbf16, #tpu.memory_space<vmem>>, vector<8x384xbf16>,
    %c3_151 = arith.constant 3 : index
    %c0_152 = arith.constant 0 : index
    %c49_153 = arith.constant 49 : index
    %102 = vector.load %arg1[%c3_151, %c0_152, %c49_153] : memref<8x8x456xbf16, #tpu.memory_space<vmem>>, vector<1x8x384xbf16>
    %103 = vector.shape_cast %102 : vector<1x8x384xbf16> to vector<8x384xbf16>
    %c56_154 = arith.constant 56 : index
    %c1152_155 = arith.constant 1152 : index
    %104 = vector.load %arg8[%c56_154, %c1152_155] : memref<72x3072xbf16, #tpu.memory_space<vmem>>, vector<8x384xbf16>
    tpu.vector_store %arg8[%c56_154, %c1152_155], %103 {strides = array<i32>} : memref<72x3072xbf16, #tpu.memory_space<vmem>>, vector<8x384xbf16>,
    %c3_156 = arith.constant 3 : index
    %c0_157 = arith.constant 0 : index
    %c50_158 = arith.constant 50 : index
    %105 = vector.load %arg1[%c3_156, %c0_157, %c50_158] : memref<8x8x456xbf16, #tpu.memory_space<vmem>>, vector<1x8x384xbf16>
    %106 = vector.shape_cast %105 : vector<1x8x384xbf16> to vector<8x384xbf16>
    %c64_159 = arith.constant 64 : index
    %c1152_160 = arith.constant 1152 : index
    %107 = vector.load %arg8[%c64_159, %c1152_160] : memref<72x3072xbf16, #tpu.memory_space<vmem>>, vector<8x384xbf16>
    tpu.vector_store %arg8[%c64_159, %c1152_160], %106 {strides = array<i32>} : memref<72x3072xbf16, #tpu.memory_space<vmem>>, vector<8x384xbf16>,
    %c4 = arith.constant 4 : index
    %c0_161 = arith.constant 0 : index
    %c0_162 = arith.constant 0 : index
    %108 = vector.load %arg1[%c4, %c0_161, %c0_162] : memref<8x8x456xbf16, #tpu.memory_space<vmem>>, vector<1x8x384xbf16>
    %109 = vector.shape_cast %108 : vector<1x8x384xbf16> to vector<8x384xbf16>
    %c0_163 = arith.constant 0 : index
    %c1536 = arith.constant 1536 : index
    %110 = vector.load %arg8[%c0_163, %c1536] : memref<72x3072xbf16, #tpu.memory_space<vmem>>, vector<8x384xbf16>
    tpu.vector_store %arg8[%c0_163, %c1536], %109 {strides = array<i32>} : memref<72x3072xbf16, #tpu.memory_space<vmem>>, vector<8x384xbf16>,
    %c4_164 = arith.constant 4 : index
    %c0_165 = arith.constant 0 : index
    %c1_166 = arith.constant 1 : index
    %111 = vector.load %arg1[%c4_164, %c0_165, %c1_166] : memref<8x8x456xbf16, #tpu.memory_space<vmem>>, vector<1x8x384xbf16>
    %112 = vector.shape_cast %111 : vector<1x8x384xbf16> to vector<8x384xbf16>
    %c8_167 = arith.constant 8 : index
    %c1536_168 = arith.constant 1536 : index
    %113 = vector.load %arg8[%c8_167, %c1536_168] : memref<72x3072xbf16, #tpu.memory_space<vmem>>, vector<8x384xbf16>
    tpu.vector_store %arg8[%c8_167, %c1536_168], %112 {strides = array<i32>} : memref<72x3072xbf16, #tpu.memory_space<vmem>>, vector<8x384xbf16>,
    %c4_169 = arith.constant 4 : index
    %c0_170 = arith.constant 0 : index
    %c2_171 = arith.constant 2 : index
    %114 = vector.load %arg1[%c4_169, %c0_170, %c2_171] : memref<8x8x456xbf16, #tpu.memory_space<vmem>>, vector<1x8x384xbf16>
    %115 = vector.shape_cast %114 : vector<1x8x384xbf16> to vector<8x384xbf16>
    %c16_172 = arith.constant 16 : index
    %c1536_173 = arith.constant 1536 : index
    %116 = vector.load %arg8[%c16_172, %c1536_173] : memref<72x3072xbf16, #tpu.memory_space<vmem>>, vector<8x384xbf16>
    tpu.vector_store %arg8[%c16_172, %c1536_173], %115 {strides = array<i32>} : memref<72x3072xbf16, #tpu.memory_space<vmem>>, vector<8x384xbf16>,
    %c4_174 = arith.constant 4 : index
    %c0_175 = arith.constant 0 : index
    %c24_176 = arith.constant 24 : index
    %117 = vector.load %arg1[%c4_174, %c0_175, %c24_176] : memref<8x8x456xbf16, #tpu.memory_space<vmem>>, vector<1x8x384xbf16>
    %118 = vector.shape_cast %117 : vector<1x8x384xbf16> to vector<8x384xbf16>
    %c24_177 = arith.constant 24 : index
    %c1536_178 = arith.constant 1536 : index
    %119 = vector.load %arg8[%c24_177, %c1536_178] : memref<72x3072xbf16, #tpu.memory_space<vmem>>, vector<8x384xbf16>
    tpu.vector_store %arg8[%c24_177, %c1536_178], %118 {strides = array<i32>} : memref<72x3072xbf16, #tpu.memory_space<vmem>>, vector<8x384xbf16>,
    %c4_179 = arith.constant 4 : index
    %c0_180 = arith.constant 0 : index
    %c25_181 = arith.constant 25 : index
    %120 = vector.load %arg1[%c4_179, %c0_180, %c25_181] : memref<8x8x456xbf16, #tpu.memory_space<vmem>>, vector<1x8x384xbf16>
    %121 = vector.shape_cast %120 : vector<1x8x384xbf16> to vector<8x384xbf16>
    %c32_182 = arith.constant 32 : index
    %c1536_183 = arith.constant 1536 : index
    %122 = vector.load %arg8[%c32_182, %c1536_183] : memref<72x3072xbf16, #tpu.memory_space<vmem>>, vector<8x384xbf16>
    tpu.vector_store %arg8[%c32_182, %c1536_183], %121 {strides = array<i32>} : memref<72x3072xbf16, #tpu.memory_space<vmem>>, vector<8x384xbf16>,
    %c4_184 = arith.constant 4 : index
    %c0_185 = arith.constant 0 : index
    %c26_186 = arith.constant 26 : index
    %123 = vector.load %arg1[%c4_184, %c0_185, %c26_186] : memref<8x8x456xbf16, #tpu.memory_space<vmem>>, vector<1x8x384xbf16>
    %124 = vector.shape_cast %123 : vector<1x8x384xbf16> to vector<8x384xbf16>
    %c40_187 = arith.constant 40 : index
    %c1536_188 = arith.constant 1536 : index
    %125 = vector.load %arg8[%c40_187, %c1536_188] : memref<72x3072xbf16, #tpu.memory_space<vmem>>, vector<8x384xbf16>
    tpu.vector_store %arg8[%c40_187, %c1536_188], %124 {strides = array<i32>} : memref<72x3072xbf16, #tpu.memory_space<vmem>>, vector<8x384xbf16>,
    %c4_189 = arith.constant 4 : index
    %c0_190 = arith.constant 0 : index
    %c48_191 = arith.constant 48 : index
    %126 = vector.load %arg1[%c4_189, %c0_190, %c48_191] : memref<8x8x456xbf16, #tpu.memory_space<vmem>>, vector<1x8x384xbf16>
    %127 = vector.shape_cast %126 : vector<1x8x384xbf16> to vector<8x384xbf16>
    %c48_192 = arith.constant 48 : index
    %c1536_193 = arith.constant 1536 : index
    %128 = vector.load %arg8[%c48_192, %c1536_193] : memref<72x3072xbf16, #tpu.memory_space<vmem>>, vector<8x384xbf16>
    tpu.vector_store %arg8[%c48_192, %c1536_193], %127 {strides = array<i32>} : memref<72x3072xbf16, #tpu.memory_space<vmem>>, vector<8x384xbf16>,
    %c4_194 = arith.constant 4 : index
    %c0_195 = arith.constant 0 : index
    %c49_196 = arith.constant 49 : index
    %129 = vector.load %arg1[%c4_194, %c0_195, %c49_196] : memref<8x8x456xbf16, #tpu.memory_space<vmem>>, vector<1x8x384xbf16>
    %130 = vector.shape_cast %129 : vector<1x8x384xbf16> to vector<8x384xbf16>
    %c56_197 = arith.constant 56 : index
    %c1536_198 = arith.constant 1536 : index
    %131 = vector.load %arg8[%c56_197, %c1536_198] : memref<72x3072xbf16, #tpu.memory_space<vmem>>, vector<8x384xbf16>
    tpu.vector_store %arg8[%c56_197, %c1536_198], %130 {strides = array<i32>} : memref<72x3072xbf16, #tpu.memory_space<vmem>>, vector<8x384xbf16>,
    %c4_199 = arith.constant 4 : index
    %c0_200 = arith.constant 0 : index
    %c50_201 = arith.constant 50 : index
    %132 = vector.load %arg1[%c4_199, %c0_200, %c50_201] : memref<8x8x456xbf16, #tpu.memory_space<vmem>>, vector<1x8x384xbf16>
    %133 = vector.shape_cast %132 : vector<1x8x384xbf16> to vector<8x384xbf16>
    %c64_202 = arith.constant 64 : index
    %c1536_203 = arith.constant 1536 : index
    %134 = vector.load %arg8[%c64_202, %c1536_203] : memref<72x3072xbf16, #tpu.memory_space<vmem>>, vector<8x384xbf16>
    tpu.vector_store %arg8[%c64_202, %c1536_203], %133 {strides = array<i32>} : memref<72x3072xbf16, #tpu.memory_space<vmem>>, vector<8x384xbf16>,
    %c5 = arith.constant 5 : index
    %c0_204 = arith.constant 0 : index
    %c0_205 = arith.constant 0 : index
    %135 = vector.load %arg1[%c5, %c0_204, %c0_205] : memref<8x8x456xbf16, #tpu.memory_space<vmem>>, vector<1x8x384xbf16>
    %136 = vector.shape_cast %135 : vector<1x8x384xbf16> to vector<8x384xbf16>
    %c0_206 = arith.constant 0 : index
    %c1920 = arith.constant 1920 : index
    %137 = vector.load %arg8[%c0_206, %c1920] : memref<72x3072xbf16, #tpu.memory_space<vmem>>, vector<8x384xbf16>
    tpu.vector_store %arg8[%c0_206, %c1920], %136 {strides = array<i32>} : memref<72x3072xbf16, #tpu.memory_space<vmem>>, vector<8x384xbf16>,
    %c5_207 = arith.constant 5 : index
    %c0_208 = arith.constant 0 : index
    %c1_209 = arith.constant 1 : index
    %138 = vector.load %arg1[%c5_207, %c0_208, %c1_209] : memref<8x8x456xbf16, #tpu.memory_space<vmem>>, vector<1x8x384xbf16>
    %139 = vector.shape_cast %138 : vector<1x8x384xbf16> to vector<8x384xbf16>
    %c8_210 = arith.constant 8 : index
    %c1920_211 = arith.constant 1920 : index
    %140 = vector.load %arg8[%c8_210, %c1920_211] : memref<72x3072xbf16, #tpu.memory_space<vmem>>, vector<8x384xbf16>
    tpu.vector_store %arg8[%c8_210, %c1920_211], %139 {strides = array<i32>} : memref<72x3072xbf16, #tpu.memory_space<vmem>>, vector<8x384xbf16>,
    %c5_212 = arith.constant 5 : index
    %c0_213 = arith.constant 0 : index
    %c2_214 = arith.constant 2 : index
    %141 = vector.load %arg1[%c5_212, %c0_213, %c2_214] : memref<8x8x456xbf16, #tpu.memory_space<vmem>>, vector<1x8x384xbf16>
    %142 = vector.shape_cast %141 : vector<1x8x384xbf16> to vector<8x384xbf16>
    %c16_215 = arith.constant 16 : index
    %c1920_216 = arith.constant 1920 : index
    %143 = vector.load %arg8[%c16_215, %c1920_216] : memref<72x3072xbf16, #tpu.memory_space<vmem>>, vector<8x384xbf16>
    tpu.vector_store %arg8[%c16_215, %c1920_216], %142 {strides = array<i32>} : memref<72x3072xbf16, #tpu.memory_space<vmem>>, vector<8x384xbf16>,
    %c5_217 = arith.constant 5 : index
    %c0_218 = arith.constant 0 : index
    %c24_219 = arith.constant 24 : index
    %144 = vector.load %arg1[%c5_217, %c0_218, %c24_219] : memref<8x8x456xbf16, #tpu.memory_space<vmem>>, vector<1x8x384xbf16>
    %145 = vector.shape_cast %144 : vector<1x8x384xbf16> to vector<8x384xbf16>
    %c24_220 = arith.constant 24 : index
    %c1920_221 = arith.constant 1920 : index
    %146 = vector.load %arg8[%c24_220, %c1920_221] : memref<72x3072xbf16, #tpu.memory_space<vmem>>, vector<8x384xbf16>
    tpu.vector_store %arg8[%c24_220, %c1920_221], %145 {strides = array<i32>} : memref<72x3072xbf16, #tpu.memory_space<vmem>>, vector<8x384xbf16>,
    %c5_222 = arith.constant 5 : index
    %c0_223 = arith.constant 0 : index
    %c25_224 = arith.constant 25 : index
    %147 = vector.load %arg1[%c5_222, %c0_223, %c25_224] : memref<8x8x456xbf16, #tpu.memory_space<vmem>>, vector<1x8x384xbf16>
    %148 = vector.shape_cast %147 : vector<1x8x384xbf16> to vector<8x384xbf16>
    %c32_225 = arith.constant 32 : index
    %c1920_226 = arith.constant 1920 : index
    %149 = vector.load %arg8[%c32_225, %c1920_226] : memref<72x3072xbf16, #tpu.memory_space<vmem>>, vector<8x384xbf16>
    tpu.vector_store %arg8[%c32_225, %c1920_226], %148 {strides = array<i32>} : memref<72x3072xbf16, #tpu.memory_space<vmem>>, vector<8x384xbf16>,
    %c5_227 = arith.constant 5 : index
    %c0_228 = arith.constant 0 : index
    %c26_229 = arith.constant 26 : index
    %150 = vector.load %arg1[%c5_227, %c0_228, %c26_229] : memref<8x8x456xbf16, #tpu.memory_space<vmem>>, vector<1x8x384xbf16>
    %151 = vector.shape_cast %150 : vector<1x8x384xbf16> to vector<8x384xbf16>
    %c40_230 = arith.constant 40 : index
    %c1920_231 = arith.constant 1920 : index
    %152 = vector.load %arg8[%c40_230, %c1920_231] : memref<72x3072xbf16, #tpu.memory_space<vmem>>, vector<8x384xbf16>
    tpu.vector_store %arg8[%c40_230, %c1920_231], %151 {strides = array<i32>} : memref<72x3072xbf16, #tpu.memory_space<vmem>>, vector<8x384xbf16>,
    %c5_232 = arith.constant 5 : index
    %c0_233 = arith.constant 0 : index
    %c48_234 = arith.constant 48 : index
    %153 = vector.load %arg1[%c5_232, %c0_233, %c48_234] : memref<8x8x456xbf16, #tpu.memory_space<vmem>>, vector<1x8x384xbf16>
    %154 = vector.shape_cast %153 : vector<1x8x384xbf16> to vector<8x384xbf16>
    %c48_235 = arith.constant 48 : index
    %c1920_236 = arith.constant 1920 : index
    %155 = vector.load %arg8[%c48_235, %c1920_236] : memref<72x3072xbf16, #tpu.memory_space<vmem>>, vector<8x384xbf16>
    tpu.vector_store %arg8[%c48_235, %c1920_236], %154 {strides = array<i32>} : memref<72x3072xbf16, #tpu.memory_space<vmem>>, vector<8x384xbf16>,
    %c5_237 = arith.constant 5 : index
    %c0_238 = arith.constant 0 : index
    %c49_239 = arith.constant 49 : index
    %156 = vector.load %arg1[%c5_237, %c0_238, %c49_239] : memref<8x8x456xbf16, #tpu.memory_space<vmem>>, vector<1x8x384xbf16>
    %157 = vector.shape_cast %156 : vector<1x8x384xbf16> to vector<8x384xbf16>
    %c56_240 = arith.constant 56 : index
    %c1920_241 = arith.constant 1920 : index
    %158 = vector.load %arg8[%c56_240, %c1920_241] : memref<72x3072xbf16, #tpu.memory_space<vmem>>, vector<8x384xbf16>
    tpu.vector_store %arg8[%c56_240, %c1920_241], %157 {strides = array<i32>} : memref<72x3072xbf16, #tpu.memory_space<vmem>>, vector<8x384xbf16>,
    %c5_242 = arith.constant 5 : index
    %c0_243 = arith.constant 0 : index
    %c50_244 = arith.constant 50 : index
    %159 = vector.load %arg1[%c5_242, %c0_243, %c50_244] : memref<8x8x456xbf16, #tpu.memory_space<vmem>>, vector<1x8x384xbf16>
    %160 = vector.shape_cast %159 : vector<1x8x384xbf16> to vector<8x384xbf16>
    %c64_245 = arith.constant 64 : index
    %c1920_246 = arith.constant 1920 : index
    %161 = vector.load %arg8[%c64_245, %c1920_246] : memref<72x3072xbf16, #tpu.memory_space<vmem>>, vector<8x384xbf16>
    tpu.vector_store %arg8[%c64_245, %c1920_246], %160 {strides = array<i32>} : memref<72x3072xbf16, #tpu.memory_space<vmem>>, vector<8x384xbf16>,
    %c6 = arith.constant 6 : index
    %c0_247 = arith.constant 0 : index
    %c0_248 = arith.constant 0 : index
    %162 = vector.load %arg1[%c6, %c0_247, %c0_248] : memref<8x8x456xbf16, #tpu.memory_space<vmem>>, vector<1x8x384xbf16>
    %163 = vector.shape_cast %162 : vector<1x8x384xbf16> to vector<8x384xbf16>
    %c0_249 = arith.constant 0 : index
    %c2304 = arith.constant 2304 : index
    %164 = vector.load %arg8[%c0_249, %c2304] : memref<72x3072xbf16, #tpu.memory_space<vmem>>, vector<8x384xbf16>
    tpu.vector_store %arg8[%c0_249, %c2304], %163 {strides = array<i32>} : memref<72x3072xbf16, #tpu.memory_space<vmem>>, vector<8x384xbf16>,
    %c6_250 = arith.constant 6 : index
    %c0_251 = arith.constant 0 : index
    %c1_252 = arith.constant 1 : index
    %165 = vector.load %arg1[%c6_250, %c0_251, %c1_252] : memref<8x8x456xbf16, #tpu.memory_space<vmem>>, vector<1x8x384xbf16>
    %166 = vector.shape_cast %165 : vector<1x8x384xbf16> to vector<8x384xbf16>
    %c8_253 = arith.constant 8 : index
    %c2304_254 = arith.constant 2304 : index
    %167 = vector.load %arg8[%c8_253, %c2304_254] : memref<72x3072xbf16, #tpu.memory_space<vmem>>, vector<8x384xbf16>
    tpu.vector_store %arg8[%c8_253, %c2304_254], %166 {strides = array<i32>} : memref<72x3072xbf16, #tpu.memory_space<vmem>>, vector<8x384xbf16>,
    %c6_255 = arith.constant 6 : index
    %c0_256 = arith.constant 0 : index
    %c2_257 = arith.constant 2 : index
    %168 = vector.load %arg1[%c6_255, %c0_256, %c2_257] : memref<8x8x456xbf16, #tpu.memory_space<vmem>>, vector<1x8x384xbf16>
    %169 = vector.shape_cast %168 : vector<1x8x384xbf16> to vector<8x384xbf16>
    %c16_258 = arith.constant 16 : index
    %c2304_259 = arith.constant 2304 : index
    %170 = vector.load %arg8[%c16_258, %c2304_259] : memref<72x3072xbf16, #tpu.memory_space<vmem>>, vector<8x384xbf16>
    tpu.vector_store %arg8[%c16_258, %c2304_259], %169 {strides = array<i32>} : memref<72x3072xbf16, #tpu.memory_space<vmem>>, vector<8x384xbf16>,
    %c6_260 = arith.constant 6 : index
    %c0_261 = arith.constant 0 : index
    %c24_262 = arith.constant 24 : index
    %171 = vector.load %arg1[%c6_260, %c0_261, %c24_262] : memref<8x8x456xbf16, #tpu.memory_space<vmem>>, vector<1x8x384xbf16>
    %172 = vector.shape_cast %171 : vector<1x8x384xbf16> to vector<8x384xbf16>
    %c24_263 = arith.constant 24 : index
    %c2304_264 = arith.constant 2304 : index
    %173 = vector.load %arg8[%c24_263, %c2304_264] : memref<72x3072xbf16, #tpu.memory_space<vmem>>, vector<8x384xbf16>
    tpu.vector_store %arg8[%c24_263, %c2304_264], %172 {strides = array<i32>} : memref<72x3072xbf16, #tpu.memory_space<vmem>>, vector<8x384xbf16>,
    %c6_265 = arith.constant 6 : index
    %c0_266 = arith.constant 0 : index
    %c25_267 = arith.constant 25 : index
    %174 = vector.load %arg1[%c6_265, %c0_266, %c25_267] : memref<8x8x456xbf16, #tpu.memory_space<vmem>>, vector<1x8x384xbf16>
    %175 = vector.shape_cast %174 : vector<1x8x384xbf16> to vector<8x384xbf16>
    %c32_268 = arith.constant 32 : index
    %c2304_269 = arith.constant 2304 : index
    %176 = vector.load %arg8[%c32_268, %c2304_269] : memref<72x3072xbf16, #tpu.memory_space<vmem>>, vector<8x384xbf16>
    tpu.vector_store %arg8[%c32_268, %c2304_269], %175 {strides = array<i32>} : memref<72x3072xbf16, #tpu.memory_space<vmem>>, vector<8x384xbf16>,
    %c6_270 = arith.constant 6 : index
    %c0_271 = arith.constant 0 : index
    %c26_272 = arith.constant 26 : index
    %177 = vector.load %arg1[%c6_270, %c0_271, %c26_272] : memref<8x8x456xbf16, #tpu.memory_space<vmem>>, vector<1x8x384xbf16>
    %178 = vector.shape_cast %177 : vector<1x8x384xbf16> to vector<8x384xbf16>
    %c40_273 = arith.constant 40 : index
    %c2304_274 = arith.constant 2304 : index
    %179 = vector.load %arg8[%c40_273, %c2304_274] : memref<72x3072xbf16, #tpu.memory_space<vmem>>, vector<8x384xbf16>
    tpu.vector_store %arg8[%c40_273, %c2304_274], %178 {strides = array<i32>} : memref<72x3072xbf16, #tpu.memory_space<vmem>>, vector<8x384xbf16>,
    %c6_275 = arith.constant 6 : index
    %c0_276 = arith.constant 0 : index
    %c48_277 = arith.constant 48 : index
    %180 = vector.load %arg1[%c6_275, %c0_276, %c48_277] : memref<8x8x456xbf16, #tpu.memory_space<vmem>>, vector<1x8x384xbf16>
    %181 = vector.shape_cast %180 : vector<1x8x384xbf16> to vector<8x384xbf16>
    %c48_278 = arith.constant 48 : index
    %c2304_279 = arith.constant 2304 : index
    %182 = vector.load %arg8[%c48_278, %c2304_279] : memref<72x3072xbf16, #tpu.memory_space<vmem>>, vector<8x384xbf16>
    tpu.vector_store %arg8[%c48_278, %c2304_279], %181 {strides = array<i32>} : memref<72x3072xbf16, #tpu.memory_space<vmem>>, vector<8x384xbf16>,
    %c6_280 = arith.constant 6 : index
    %c0_281 = arith.constant 0 : index
    %c49_282 = arith.constant 49 : index
    %183 = vector.load %arg1[%c6_280, %c0_281, %c49_282] : memref<8x8x456xbf16, #tpu.memory_space<vmem>>, vector<1x8x384xbf16>
    %184 = vector.shape_cast %183 : vector<1x8x384xbf16> to vector<8x384xbf16>
    %c56_283 = arith.constant 56 : index
    %c2304_284 = arith.constant 2304 : index
    %185 = vector.load %arg8[%c56_283, %c2304_284] : memref<72x3072xbf16, #tpu.memory_space<vmem>>, vector<8x384xbf16>
    tpu.vector_store %arg8[%c56_283, %c2304_284], %184 {strides = array<i32>} : memref<72x3072xbf16, #tpu.memory_space<vmem>>, vector<8x384xbf16>,
    %c6_285 = arith.constant 6 : index
    %c0_286 = arith.constant 0 : index
    %c50_287 = arith.constant 50 : index
    %186 = vector.load %arg1[%c6_285, %c0_286, %c50_287] : memref<8x8x456xbf16, #tpu.memory_space<vmem>>, vector<1x8x384xbf16>
    %187 = vector.shape_cast %186 : vector<1x8x384xbf16> to vector<8x384xbf16>
    %c64_288 = arith.constant 64 : index
    %c2304_289 = arith.constant 2304 : index
    %188 = vector.load %arg8[%c64_288, %c2304_289] : memref<72x3072xbf16, #tpu.memory_space<vmem>>, vector<8x384xbf16>
    tpu.vector_store %arg8[%c64_288, %c2304_289], %187 {strides = array<i32>} : memref<72x3072xbf16, #tpu.memory_space<vmem>>, vector<8x384xbf16>,
    %c7 = arith.constant 7 : index
    %c0_290 = arith.constant 0 : index
    %c0_291 = arith.constant 0 : index
    %189 = vector.load %arg1[%c7, %c0_290, %c0_291] : memref<8x8x456xbf16, #tpu.memory_space<vmem>>, vector<1x8x384xbf16>
    %190 = vector.shape_cast %189 : vector<1x8x384xbf16> to vector<8x384xbf16>
    %c0_292 = arith.constant 0 : index
    %c2688 = arith.constant 2688 : index
    %191 = vector.load %arg8[%c0_292, %c2688] : memref<72x3072xbf16, #tpu.memory_space<vmem>>, vector<8x384xbf16>
    tpu.vector_store %arg8[%c0_292, %c2688], %190 {strides = array<i32>} : memref<72x3072xbf16, #tpu.memory_space<vmem>>, vector<8x384xbf16>,
    %c7_293 = arith.constant 7 : index
    %c0_294 = arith.constant 0 : index
    %c1_295 = arith.constant 1 : index
    %192 = vector.load %arg1[%c7_293, %c0_294, %c1_295] : memref<8x8x456xbf16, #tpu.memory_space<vmem>>, vector<1x8x384xbf16>
    %193 = vector.shape_cast %192 : vector<1x8x384xbf16> to vector<8x384xbf16>
    %c8_296 = arith.constant 8 : index
    %c2688_297 = arith.constant 2688 : index
    %194 = vector.load %arg8[%c8_296, %c2688_297] : memref<72x3072xbf16, #tpu.memory_space<vmem>>, vector<8x384xbf16>
    tpu.vector_store %arg8[%c8_296, %c2688_297], %193 {strides = array<i32>} : memref<72x3072xbf16, #tpu.memory_space<vmem>>, vector<8x384xbf16>,
    %c7_298 = arith.constant 7 : index
    %c0_299 = arith.constant 0 : index
    %c2_300 = arith.constant 2 : index
    %195 = vector.load %arg1[%c7_298, %c0_299, %c2_300] : memref<8x8x456xbf16, #tpu.memory_space<vmem>>, vector<1x8x384xbf16>
    %196 = vector.shape_cast %195 : vector<1x8x384xbf16> to vector<8x384xbf16>
    %c16_301 = arith.constant 16 : index
    %c2688_302 = arith.constant 2688 : index
    %197 = vector.load %arg8[%c16_301, %c2688_302] : memref<72x3072xbf16, #tpu.memory_space<vmem>>, vector<8x384xbf16>
    tpu.vector_store %arg8[%c16_301, %c2688_302], %196 {strides = array<i32>} : memref<72x3072xbf16, #tpu.memory_space<vmem>>, vector<8x384xbf16>,
    %c7_303 = arith.constant 7 : index
    %c0_304 = arith.constant 0 : index
    %c24_305 = arith.constant 24 : index
    %198 = vector.load %arg1[%c7_303, %c0_304, %c24_305] : memref<8x8x456xbf16, #tpu.memory_space<vmem>>, vector<1x8x384xbf16>
    %199 = vector.shape_cast %198 : vector<1x8x384xbf16> to vector<8x384xbf16>
    %c24_306 = arith.constant 24 : index
    %c2688_307 = arith.constant 2688 : index
    %200 = vector.load %arg8[%c24_306, %c2688_307] : memref<72x3072xbf16, #tpu.memory_space<vmem>>, vector<8x384xbf16>
    tpu.vector_store %arg8[%c24_306, %c2688_307], %199 {strides = array<i32>} : memref<72x3072xbf16, #tpu.memory_space<vmem>>, vector<8x384xbf16>,
    %c7_308 = arith.constant 7 : index
    %c0_309 = arith.constant 0 : index
    %c25_310 = arith.constant 25 : index
    %201 = vector.load %arg1[%c7_308, %c0_309, %c25_310] : memref<8x8x456xbf16, #tpu.memory_space<vmem>>, vector<1x8x384xbf16>
    %202 = vector.shape_cast %201 : vector<1x8x384xbf16> to vector<8x384xbf16>
    %c32_311 = arith.constant 32 : index
    %c2688_312 = arith.constant 2688 : index
    %203 = vector.load %arg8[%c32_311, %c2688_312] : memref<72x3072xbf16, #tpu.memory_space<vmem>>, vector<8x384xbf16>
    tpu.vector_store %arg8[%c32_311, %c2688_312], %202 {strides = array<i32>} : memref<72x3072xbf16, #tpu.memory_space<vmem>>, vector<8x384xbf16>,
    %c7_313 = arith.constant 7 : index
    %c0_314 = arith.constant 0 : index
    %c26_315 = arith.constant 26 : index
    %204 = vector.load %arg1[%c7_313, %c0_314, %c26_315] : memref<8x8x456xbf16, #tpu.memory_space<vmem>>, vector<1x8x384xbf16>
    %205 = vector.shape_cast %204 : vector<1x8x384xbf16> to vector<8x384xbf16>
    %c40_316 = arith.constant 40 : index
    %c2688_317 = arith.constant 2688 : index
    %206 = vector.load %arg8[%c40_316, %c2688_317] : memref<72x3072xbf16, #tpu.memory_space<vmem>>, vector<8x384xbf16>
    tpu.vector_store %arg8[%c40_316, %c2688_317], %205 {strides = array<i32>} : memref<72x3072xbf16, #tpu.memory_space<vmem>>, vector<8x384xbf16>,
    %c7_318 = arith.constant 7 : index
    %c0_319 = arith.constant 0 : index
    %c48_320 = arith.constant 48 : index
    %207 = vector.load %arg1[%c7_318, %c0_319, %c48_320] : memref<8x8x456xbf16, #tpu.memory_space<vmem>>, vector<1x8x384xbf16>
    %208 = vector.shape_cast %207 : vector<1x8x384xbf16> to vector<8x384xbf16>
    %c48_321 = arith.constant 48 : index
    %c2688_322 = arith.constant 2688 : index
    %209 = vector.load %arg8[%c48_321, %c2688_322] : memref<72x3072xbf16, #tpu.memory_space<vmem>>, vector<8x384xbf16>
    tpu.vector_store %arg8[%c48_321, %c2688_322], %208 {strides = array<i32>} : memref<72x3072xbf16, #tpu.memory_space<vmem>>, vector<8x384xbf16>,
    %c7_323 = arith.constant 7 : index
    %c0_324 = arith.constant 0 : index
    %c49_325 = arith.constant 49 : index
    %210 = vector.load %arg1[%c7_323, %c0_324, %c49_325] : memref<8x8x456xbf16, #tpu.memory_space<vmem>>, vector<1x8x384xbf16>
    %211 = vector.shape_cast %210 : vector<1x8x384xbf16> to vector<8x384xbf16>
    %c56_326 = arith.constant 56 : index
    %c2688_327 = arith.constant 2688 : index
    %212 = vector.load %arg8[%c56_326, %c2688_327] : memref<72x3072xbf16, #tpu.memory_space<vmem>>, vector<8x384xbf16>
    tpu.vector_store %arg8[%c56_326, %c2688_327], %211 {strides = array<i32>} : memref<72x3072xbf16, #tpu.memory_space<vmem>>, vector<8x384xbf16>,
    %c7_328 = arith.constant 7 : index
    %c0_329 = arith.constant 0 : index
    %c50_330 = arith.constant 50 : index
    %213 = vector.load %arg1[%c7_328, %c0_329, %c50_330] : memref<8x8x456xbf16, #tpu.memory_space<vmem>>, vector<1x8x384xbf16>
    %214 = vector.shape_cast %213 : vector<1x8x384xbf16> to vector<8x384xbf16>
    %c64_331 = arith.constant 64 : index
    %c2688_332 = arith.constant 2688 : index
    %215 = vector.load %arg8[%c64_331, %c2688_332] : memref<72x3072xbf16, #tpu.memory_space<vmem>>, vector<8x384xbf16>
    tpu.vector_store %arg8[%c64_331, %c2688_332], %214 {strides = array<i32>} : memref<72x3072xbf16, #tpu.memory_space<vmem>>, vector<8x384xbf16>,
    %c0_333 = arith.constant 0 : index
    %c0_334 = arith.constant 0 : index
    %216 = vector.load %arg2[%c0_333, %c0_334] : memref<32x72xbf16, #tpu.memory_space<vmem>>, vector<32x72xbf16>
    %c0_335 = arith.constant 0 : index
    %c0_336 = arith.constant 0 : index
    %217 = vector.load %arg8[%c0_335, %c0_336] : memref<72x3072xbf16, #tpu.memory_space<vmem>>, vector<72x3072xbf16>
    %cst = arith.constant dense<0.000000e+00> : vector<32x3072xf32>
    %218 = tpu.matmul %216, %217, %cst {dimension_numbers = #tpu.dot_dimension_numbers<[1], [0], [0], [1], [0, 0, 1, 1], [], []>} : vector<32x72xbf16>, vector<72x3072xbf16>, vector<32x3072xf32> -> vector<32x3072xf32>
    %c0_337 = arith.constant 0 : index
    %c0_338 = arith.constant 0 : index
    %219 = vector.load %arg9[%c0_337, %c0_338] : memref<32x3072xf32, #tpu.memory_space<vmem>>, vector<32x3072xf32>
    tpu.vector_store %arg9[%c0_337, %c0_338], %218 {strides = array<i32>} : memref<32x3072xf32, #tpu.memory_space<vmem>>, vector<32x3072xf32>,
    %c0_339 = arith.constant 0 : index
    %c0_340 = arith.constant 0 : index
    %220 = vector.load %arg4[%c0_339, %c0_340] : memref<32x1xf32, #tpu.memory_space<vmem>>, vector<32x1xf32>
    %c0_341 = arith.constant 0 : index
    %c0_342 = arith.constant 0 : index
    %221 = vector.load %arg6[%c0_341, %c0_342] : memref<1x384xf32, #tpu.memory_space<vmem>>, vector<1x384xf32>
    %cst_343 = arith.constant 0.000000e+00 : bf16
    %222 = vector.broadcast %cst_343 : bf16 to vector<32x25xbf16>
    %cst_344 = arith.constant 0.000000e+00 : bf16
    %223 = vector.broadcast %cst_344 : bf16 to vector<32x47xbf16>
    %c0_345 = arith.constant 0 : index
    %c0_346 = arith.constant 0 : index
    %224 = vector.load %arg9[%c0_345, %c0_346] : memref<32x3072xf32, #tpu.memory_space<vmem>>, vector<32x384xf32>
    %225 = vector.broadcast %220 : vector<32x1xf32> to vector<32x384xf32>
    %226 = arith.addf %224, %225 : vector<32x384xf32>
    %cst_347 = arith.constant 0.000000e+00 : f32
    %227 = vector.broadcast %cst_347 : f32 to vector<32x384xf32>
    %228 = arith.maximumf %226, %227 : vector<32x384xf32>
    %229 = vector.broadcast %221 : vector<1x384xf32> to vector<32x384xf32>
    %230 = arith.mulf %228, %229 : vector<32x384xf32>
    %c0_348 = arith.constant 0 : index
    %c0_349 = arith.constant 0 : index
    %c0_350 = arith.constant 0 : index
    %231 = vector.load %arg10[%c0_348, %c0_349, %c0_350] : memref<8x32x456xbf16, #tpu.memory_space<vmem>>, vector<1x32x25xbf16>
    %232 = vector.shape_cast %231 : vector<1x32x25xbf16> to vector<32x25xbf16>
    %233 = vector.shape_cast %222 : vector<32x25xbf16> to vector<1x32x25xbf16>
    tpu.vector_store %arg10[%c0_348, %c0_349, %c0_350], %233 {strides = array<i32>} : memref<8x32x456xbf16, #tpu.memory_space<vmem>>, vector<1x32x25xbf16>,
    %c0_351 = arith.constant 0 : index
    %c0_352 = arith.constant 0 : index
    %c409 = arith.constant 409 : index
    %234 = vector.load %arg10[%c0_351, %c0_352, %c409] : memref<8x32x456xbf16, #tpu.memory_space<vmem>>, vector<1x32x47xbf16>
    %235 = vector.shape_cast %234 : vector<1x32x47xbf16> to vector<32x47xbf16>
    %236 = vector.shape_cast %223 : vector<32x47xbf16> to vector<1x32x47xbf16>
    tpu.vector_store %arg10[%c0_351, %c0_352, %c409], %236 {strides = array<i32>} : memref<8x32x456xbf16, #tpu.memory_space<vmem>>, vector<1x32x47xbf16>,
    %237 = arith.truncf %230 : vector<32x384xf32> to vector<32x384xbf16>
    %c0_353 = arith.constant 0 : index
    %c0_354 = arith.constant 0 : index
    %c25_355 = arith.constant 25 : index
    %238 = vector.load %arg10[%c0_353, %c0_354, %c25_355] : memref<8x32x456xbf16, #tpu.memory_space<vmem>>, vector<1x32x384xbf16>
    %239 = vector.shape_cast %238 : vector<1x32x384xbf16> to vector<32x384xbf16>
    %240 = vector.shape_cast %237 : vector<32x384xbf16> to vector<1x32x384xbf16>
    tpu.vector_store %arg10[%c0_353, %c0_354, %c25_355], %240 {strides = array<i32>} : memref<8x32x456xbf16, #tpu.memory_space<vmem>>, vector<1x32x384xbf16>,
    %c0_356 = arith.constant 0 : index
    %c384_357 = arith.constant 384 : index
    %241 = vector.load %arg9[%c0_356, %c384_357] : memref<32x3072xf32, #tpu.memory_space<vmem>>, vector<32x384xf32>
    %242 = vector.broadcast %220 : vector<32x1xf32> to vector<32x384xf32>
    %243 = arith.addf %241, %242 : vector<32x384xf32>
    %cst_358 = arith.constant 0.000000e+00 : f32
    %244 = vector.broadcast %cst_358 : f32 to vector<32x384xf32>
    %245 = arith.maximumf %243, %244 : vector<32x384xf32>
    %246 = vector.broadcast %221 : vector<1x384xf32> to vector<32x384xf32>
    %247 = arith.mulf %245, %246 : vector<32x384xf32>
    %c1_359 = arith.constant 1 : index
    %c0_360 = arith.constant 0 : index
    %c0_361 = arith.constant 0 : index
    %248 = vector.load %arg10[%c1_359, %c0_360, %c0_361] : memref<8x32x456xbf16, #tpu.memory_space<vmem>>, vector<1x32x25xbf16>
    %249 = vector.shape_cast %248 : vector<1x32x25xbf16> to vector<32x25xbf16>
    %250 = vector.shape_cast %222 : vector<32x25xbf16> to vector<1x32x25xbf16>
    tpu.vector_store %arg10[%c1_359, %c0_360, %c0_361], %250 {strides = array<i32>} : memref<8x32x456xbf16, #tpu.memory_space<vmem>>, vector<1x32x25xbf16>,
    %c1_362 = arith.constant 1 : index
    %c0_363 = arith.constant 0 : index
    %c409_364 = arith.constant 409 : index
    %251 = vector.load %arg10[%c1_362, %c0_363, %c409_364] : memref<8x32x456xbf16, #tpu.memory_space<vmem>>, vector<1x32x47xbf16>
    %252 = vector.shape_cast %251 : vector<1x32x47xbf16> to vector<32x47xbf16>
    %253 = vector.shape_cast %223 : vector<32x47xbf16> to vector<1x32x47xbf16>
    tpu.vector_store %arg10[%c1_362, %c0_363, %c409_364], %253 {strides = array<i32>} : memref<8x32x456xbf16, #tpu.memory_space<vmem>>, vector<1x32x47xbf16>,
    %254 = arith.truncf %247 : vector<32x384xf32> to vector<32x384xbf16>
    %c1_365 = arith.constant 1 : index
    %c0_366 = arith.constant 0 : index
    %c25_367 = arith.constant 25 : index
    %255 = vector.load %arg10[%c1_365, %c0_366, %c25_367] : memref<8x32x456xbf16, #tpu.memory_space<vmem>>, vector<1x32x384xbf16>
    %256 = vector.shape_cast %255 : vector<1x32x384xbf16> to vector<32x384xbf16>
    %257 = vector.shape_cast %254 : vector<32x384xbf16> to vector<1x32x384xbf16>
    tpu.vector_store %arg10[%c1_365, %c0_366, %c25_367], %257 {strides = array<i32>} : memref<8x32x456xbf16, #tpu.memory_space<vmem>>, vector<1x32x384xbf16>,
    %c0_368 = arith.constant 0 : index
    %c768_369 = arith.constant 768 : index
    %258 = vector.load %arg9[%c0_368, %c768_369] : memref<32x3072xf32, #tpu.memory_space<vmem>>, vector<32x384xf32>
    %259 = vector.broadcast %220 : vector<32x1xf32> to vector<32x384xf32>
    %260 = arith.addf %258, %259 : vector<32x384xf32>
    %cst_370 = arith.constant 0.000000e+00 : f32
    %261 = vector.broadcast %cst_370 : f32 to vector<32x384xf32>
    %262 = arith.maximumf %260, %261 : vector<32x384xf32>
    %263 = vector.broadcast %221 : vector<1x384xf32> to vector<32x384xf32>
    %264 = arith.mulf %262, %263 : vector<32x384xf32>
    %c2_371 = arith.constant 2 : index
    %c0_372 = arith.constant 0 : index
    %c0_373 = arith.constant 0 : index
    %265 = vector.load %arg10[%c2_371, %c0_372, %c0_373] : memref<8x32x456xbf16, #tpu.memory_space<vmem>>, vector<1x32x25xbf16>
    %266 = vector.shape_cast %265 : vector<1x32x25xbf16> to vector<32x25xbf16>
    %267 = vector.shape_cast %222 : vector<32x25xbf16> to vector<1x32x25xbf16>
    tpu.vector_store %arg10[%c2_371, %c0_372, %c0_373], %267 {strides = array<i32>} : memref<8x32x456xbf16, #tpu.memory_space<vmem>>, vector<1x32x25xbf16>,
    %c2_374 = arith.constant 2 : index
    %c0_375 = arith.constant 0 : index
    %c409_376 = arith.constant 409 : index
    %268 = vector.load %arg10[%c2_374, %c0_375, %c409_376] : memref<8x32x456xbf16, #tpu.memory_space<vmem>>, vector<1x32x47xbf16>
    %269 = vector.shape_cast %268 : vector<1x32x47xbf16> to vector<32x47xbf16>
    %270 = vector.shape_cast %223 : vector<32x47xbf16> to vector<1x32x47xbf16>
    tpu.vector_store %arg10[%c2_374, %c0_375, %c409_376], %270 {strides = array<i32>} : memref<8x32x456xbf16, #tpu.memory_space<vmem>>, vector<1x32x47xbf16>,
    %271 = arith.truncf %264 : vector<32x384xf32> to vector<32x384xbf16>
    %c2_377 = arith.constant 2 : index
    %c0_378 = arith.constant 0 : index
    %c25_379 = arith.constant 25 : index
    %272 = vector.load %arg10[%c2_377, %c0_378, %c25_379] : memref<8x32x456xbf16, #tpu.memory_space<vmem>>, vector<1x32x384xbf16>
    %273 = vector.shape_cast %272 : vector<1x32x384xbf16> to vector<32x384xbf16>
    %274 = vector.shape_cast %271 : vector<32x384xbf16> to vector<1x32x384xbf16>
    tpu.vector_store %arg10[%c2_377, %c0_378, %c25_379], %274 {strides = array<i32>} : memref<8x32x456xbf16, #tpu.memory_space<vmem>>, vector<1x32x384xbf16>,
    %c0_380 = arith.constant 0 : index
    %c1152_381 = arith.constant 1152 : index
    %275 = vector.load %arg9[%c0_380, %c1152_381] : memref<32x3072xf32, #tpu.memory_space<vmem>>, vector<32x384xf32>
    %276 = vector.broadcast %220 : vector<32x1xf32> to vector<32x384xf32>
    %277 = arith.addf %275, %276 : vector<32x384xf32>
    %cst_382 = arith.constant 0.000000e+00 : f32
    %278 = vector.broadcast %cst_382 : f32 to vector<32x384xf32>
    %279 = arith.maximumf %277, %278 : vector<32x384xf32>
    %280 = vector.broadcast %221 : vector<1x384xf32> to vector<32x384xf32>
    %281 = arith.mulf %279, %280 : vector<32x384xf32>
    %c3_383 = arith.constant 3 : index
    %c0_384 = arith.constant 0 : index
    %c0_385 = arith.constant 0 : index
    %282 = vector.load %arg10[%c3_383, %c0_384, %c0_385] : memref<8x32x456xbf16, #tpu.memory_space<vmem>>, vector<1x32x25xbf16>
    %283 = vector.shape_cast %282 : vector<1x32x25xbf16> to vector<32x25xbf16>
    %284 = vector.shape_cast %222 : vector<32x25xbf16> to vector<1x32x25xbf16>
    tpu.vector_store %arg10[%c3_383, %c0_384, %c0_385], %284 {strides = array<i32>} : memref<8x32x456xbf16, #tpu.memory_space<vmem>>, vector<1x32x25xbf16>,
    %c3_386 = arith.constant 3 : index
    %c0_387 = arith.constant 0 : index
    %c409_388 = arith.constant 409 : index
    %285 = vector.load %arg10[%c3_386, %c0_387, %c409_388] : memref<8x32x456xbf16, #tpu.memory_space<vmem>>, vector<1x32x47xbf16>
    %286 = vector.shape_cast %285 : vector<1x32x47xbf16> to vector<32x47xbf16>
    %287 = vector.shape_cast %223 : vector<32x47xbf16> to vector<1x32x47xbf16>
    tpu.vector_store %arg10[%c3_386, %c0_387, %c409_388], %287 {strides = array<i32>} : memref<8x32x456xbf16, #tpu.memory_space<vmem>>, vector<1x32x47xbf16>,
    %288 = arith.truncf %281 : vector<32x384xf32> to vector<32x384xbf16>
    %c3_389 = arith.constant 3 : index
    %c0_390 = arith.constant 0 : index
    %c25_391 = arith.constant 25 : index
    %289 = vector.load %arg10[%c3_389, %c0_390, %c25_391] : memref<8x32x456xbf16, #tpu.memory_space<vmem>>, vector<1x32x384xbf16>
    %290 = vector.shape_cast %289 : vector<1x32x384xbf16> to vector<32x384xbf16>
    %291 = vector.shape_cast %288 : vector<32x384xbf16> to vector<1x32x384xbf16>
    tpu.vector_store %arg10[%c3_389, %c0_390, %c25_391], %291 {strides = array<i32>} : memref<8x32x456xbf16, #tpu.memory_space<vmem>>, vector<1x32x384xbf16>,
    %c0_392 = arith.constant 0 : index
    %c1536_393 = arith.constant 1536 : index
    %292 = vector.load %arg9[%c0_392, %c1536_393] : memref<32x3072xf32, #tpu.memory_space<vmem>>, vector<32x384xf32>
    %293 = vector.broadcast %220 : vector<32x1xf32> to vector<32x384xf32>
    %294 = arith.addf %292, %293 : vector<32x384xf32>
    %cst_394 = arith.constant 0.000000e+00 : f32
    %295 = vector.broadcast %cst_394 : f32 to vector<32x384xf32>
    %296 = arith.maximumf %294, %295 : vector<32x384xf32>
    %297 = vector.broadcast %221 : vector<1x384xf32> to vector<32x384xf32>
    %298 = arith.mulf %296, %297 : vector<32x384xf32>
    %c4_395 = arith.constant 4 : index
    %c0_396 = arith.constant 0 : index
    %c0_397 = arith.constant 0 : index
    %299 = vector.load %arg10[%c4_395, %c0_396, %c0_397] : memref<8x32x456xbf16, #tpu.memory_space<vmem>>, vector<1x32x25xbf16>
    %300 = vector.shape_cast %299 : vector<1x32x25xbf16> to vector<32x25xbf16>
    %301 = vector.shape_cast %222 : vector<32x25xbf16> to vector<1x32x25xbf16>
    tpu.vector_store %arg10[%c4_395, %c0_396, %c0_397], %301 {strides = array<i32>} : memref<8x32x456xbf16, #tpu.memory_space<vmem>>, vector<1x32x25xbf16>,
    %c4_398 = arith.constant 4 : index
    %c0_399 = arith.constant 0 : index
    %c409_400 = arith.constant 409 : index
    %302 = vector.load %arg10[%c4_398, %c0_399, %c409_400] : memref<8x32x456xbf16, #tpu.memory_space<vmem>>, vector<1x32x47xbf16>
    %303 = vector.shape_cast %302 : vector<1x32x47xbf16> to vector<32x47xbf16>
    %304 = vector.shape_cast %223 : vector<32x47xbf16> to vector<1x32x47xbf16>
    tpu.vector_store %arg10[%c4_398, %c0_399, %c409_400], %304 {strides = array<i32>} : memref<8x32x456xbf16, #tpu.memory_space<vmem>>, vector<1x32x47xbf16>,
    %305 = arith.truncf %298 : vector<32x384xf32> to vector<32x384xbf16>
    %c4_401 = arith.constant 4 : index
    %c0_402 = arith.constant 0 : index
    %c25_403 = arith.constant 25 : index
    %306 = vector.load %arg10[%c4_401, %c0_402, %c25_403] : memref<8x32x456xbf16, #tpu.memory_space<vmem>>, vector<1x32x384xbf16>
    %307 = vector.shape_cast %306 : vector<1x32x384xbf16> to vector<32x384xbf16>
    %308 = vector.shape_cast %305 : vector<32x384xbf16> to vector<1x32x384xbf16>
    tpu.vector_store %arg10[%c4_401, %c0_402, %c25_403], %308 {strides = array<i32>} : memref<8x32x456xbf16, #tpu.memory_space<vmem>>, vector<1x32x384xbf16>,
    %c0_404 = arith.constant 0 : index
    %c1920_405 = arith.constant 1920 : index
    %309 = vector.load %arg9[%c0_404, %c1920_405] : memref<32x3072xf32, #tpu.memory_space<vmem>>, vector<32x384xf32>
    %310 = vector.broadcast %220 : vector<32x1xf32> to vector<32x384xf32>
    %311 = arith.addf %309, %310 : vector<32x384xf32>
    %cst_406 = arith.constant 0.000000e+00 : f32
    %312 = vector.broadcast %cst_406 : f32 to vector<32x384xf32>
    %313 = arith.maximumf %311, %312 : vector<32x384xf32>
    %314 = vector.broadcast %221 : vector<1x384xf32> to vector<32x384xf32>
    %315 = arith.mulf %313, %314 : vector<32x384xf32>
    %c5_407 = arith.constant 5 : index
    %c0_408 = arith.constant 0 : index
    %c0_409 = arith.constant 0 : index
    %316 = vector.load %arg10[%c5_407, %c0_408, %c0_409] : memref<8x32x456xbf16, #tpu.memory_space<vmem>>, vector<1x32x25xbf16>
    %317 = vector.shape_cast %316 : vector<1x32x25xbf16> to vector<32x25xbf16>
    %318 = vector.shape_cast %222 : vector<32x25xbf16> to vector<1x32x25xbf16>
    tpu.vector_store %arg10[%c5_407, %c0_408, %c0_409], %318 {strides = array<i32>} : memref<8x32x456xbf16, #tpu.memory_space<vmem>>, vector<1x32x25xbf16>,
    %c5_410 = arith.constant 5 : index
    %c0_411 = arith.constant 0 : index
    %c409_412 = arith.constant 409 : index
    %319 = vector.load %arg10[%c5_410, %c0_411, %c409_412] : memref<8x32x456xbf16, #tpu.memory_space<vmem>>, vector<1x32x47xbf16>
    %320 = vector.shape_cast %319 : vector<1x32x47xbf16> to vector<32x47xbf16>
    %321 = vector.shape_cast %223 : vector<32x47xbf16> to vector<1x32x47xbf16>
    tpu.vector_store %arg10[%c5_410, %c0_411, %c409_412], %321 {strides = array<i32>} : memref<8x32x456xbf16, #tpu.memory_space<vmem>>, vector<1x32x47xbf16>,
    %322 = arith.truncf %315 : vector<32x384xf32> to vector<32x384xbf16>
    %c5_413 = arith.constant 5 : index
    %c0_414 = arith.constant 0 : index
    %c25_415 = arith.constant 25 : index
    %323 = vector.load %arg10[%c5_413, %c0_414, %c25_415] : memref<8x32x456xbf16, #tpu.memory_space<vmem>>, vector<1x32x384xbf16>
    %324 = vector.shape_cast %323 : vector<1x32x384xbf16> to vector<32x384xbf16>
    %325 = vector.shape_cast %322 : vector<32x384xbf16> to vector<1x32x384xbf16>
    tpu.vector_store %arg10[%c5_413, %c0_414, %c25_415], %325 {strides = array<i32>} : memref<8x32x456xbf16, #tpu.memory_space<vmem>>, vector<1x32x384xbf16>,
    %c0_416 = arith.constant 0 : index
    %c2304_417 = arith.constant 2304 : index
    %326 = vector.load %arg9[%c0_416, %c2304_417] : memref<32x3072xf32, #tpu.memory_space<vmem>>, vector<32x384xf32>
    %327 = vector.broadcast %220 : vector<32x1xf32> to vector<32x384xf32>
    %328 = arith.addf %326, %327 : vector<32x384xf32>
    %cst_418 = arith.constant 0.000000e+00 : f32
    %329 = vector.broadcast %cst_418 : f32 to vector<32x384xf32>
    %330 = arith.maximumf %328, %329 : vector<32x384xf32>
    %331 = vector.broadcast %221 : vector<1x384xf32> to vector<32x384xf32>
    %332 = arith.mulf %330, %331 : vector<32x384xf32>
    %c6_419 = arith.constant 6 : index
    %c0_420 = arith.constant 0 : index
    %c0_421 = arith.constant 0 : index
    %333 = vector.load %arg10[%c6_419, %c0_420, %c0_421] : memref<8x32x456xbf16, #tpu.memory_space<vmem>>, vector<1x32x25xbf16>
    %334 = vector.shape_cast %333 : vector<1x32x25xbf16> to vector<32x25xbf16>
    %335 = vector.shape_cast %222 : vector<32x25xbf16> to vector<1x32x25xbf16>
    tpu.vector_store %arg10[%c6_419, %c0_420, %c0_421], %335 {strides = array<i32>} : memref<8x32x456xbf16, #tpu.memory_space<vmem>>, vector<1x32x25xbf16>,
    %c6_422 = arith.constant 6 : index
    %c0_423 = arith.constant 0 : index
    %c409_424 = arith.constant 409 : index
    %336 = vector.load %arg10[%c6_422, %c0_423, %c409_424] : memref<8x32x456xbf16, #tpu.memory_space<vmem>>, vector<1x32x47xbf16>
    %337 = vector.shape_cast %336 : vector<1x32x47xbf16> to vector<32x47xbf16>
    %338 = vector.shape_cast %223 : vector<32x47xbf16> to vector<1x32x47xbf16>
    tpu.vector_store %arg10[%c6_422, %c0_423, %c409_424], %338 {strides = array<i32>} : memref<8x32x456xbf16, #tpu.memory_space<vmem>>, vector<1x32x47xbf16>,
    %339 = arith.truncf %332 : vector<32x384xf32> to vector<32x384xbf16>
    %c6_425 = arith.constant 6 : index
    %c0_426 = arith.constant 0 : index
    %c25_427 = arith.constant 25 : index
    %340 = vector.load %arg10[%c6_425, %c0_426, %c25_427] : memref<8x32x456xbf16, #tpu.memory_space<vmem>>, vector<1x32x384xbf16>
    %341 = vector.shape_cast %340 : vector<1x32x384xbf16> to vector<32x384xbf16>
    %342 = vector.shape_cast %339 : vector<32x384xbf16> to vector<1x32x384xbf16>
    tpu.vector_store %arg10[%c6_425, %c0_426, %c25_427], %342 {strides = array<i32>} : memref<8x32x456xbf16, #tpu.memory_space<vmem>>, vector<1x32x384xbf16>,
    %c0_428 = arith.constant 0 : index
    %c2688_429 = arith.constant 2688 : index
    %343 = vector.load %arg9[%c0_428, %c2688_429] : memref<32x3072xf32, #tpu.memory_space<vmem>>, vector<32x384xf32>
    %344 = vector.broadcast %220 : vector<32x1xf32> to vector<32x384xf32>
    %345 = arith.addf %343, %344 : vector<32x384xf32>
    %cst_430 = arith.constant 0.000000e+00 : f32
    %346 = vector.broadcast %cst_430 : f32 to vector<32x384xf32>
    %347 = arith.maximumf %345, %346 : vector<32x384xf32>
    %348 = vector.broadcast %221 : vector<1x384xf32> to vector<32x384xf32>
    %349 = arith.mulf %347, %348 : vector<32x384xf32>
    %c7_431 = arith.constant 7 : index
    %c0_432 = arith.constant 0 : index
    %c0_433 = arith.constant 0 : index
    %350 = vector.load %arg10[%c7_431, %c0_432, %c0_433] : memref<8x32x456xbf16, #tpu.memory_space<vmem>>, vector<1x32x25xbf16>
    %351 = vector.shape_cast %350 : vector<1x32x25xbf16> to vector<32x25xbf16>
    %352 = vector.shape_cast %222 : vector<32x25xbf16> to vector<1x32x25xbf16>
    tpu.vector_store %arg10[%c7_431, %c0_432, %c0_433], %352 {strides = array<i32>} : memref<8x32x456xbf16, #tpu.memory_space<vmem>>, vector<1x32x25xbf16>,
    %c7_434 = arith.constant 7 : index
    %c0_435 = arith.constant 0 : index
    %c409_436 = arith.constant 409 : index
    %353 = vector.load %arg10[%c7_434, %c0_435, %c409_436] : memref<8x32x456xbf16, #tpu.memory_space<vmem>>, vector<1x32x47xbf16>
    %354 = vector.shape_cast %353 : vector<1x32x47xbf16> to vector<32x47xbf16>
    %355 = vector.shape_cast %223 : vector<32x47xbf16> to vector<1x32x47xbf16>
    tpu.vector_store %arg10[%c7_434, %c0_435, %c409_436], %355 {strides = array<i32>} : memref<8x32x456xbf16, #tpu.memory_space<vmem>>, vector<1x32x47xbf16>,
    %356 = arith.truncf %349 : vector<32x384xf32> to vector<32x384xbf16>
    %c7_437 = arith.constant 7 : index
    %c0_438 = arith.constant 0 : index
    %c25_439 = arith.constant 25 : index
    %357 = vector.load %arg10[%c7_437, %c0_438, %c25_439] : memref<8x32x456xbf16, #tpu.memory_space<vmem>>, vector<1x32x384xbf16>
    %358 = vector.shape_cast %357 : vector<1x32x384xbf16> to vector<32x384xbf16>
    %359 = vector.shape_cast %356 : vector<32x384xbf16> to vector<1x32x384xbf16>
    tpu.vector_store %arg10[%c7_437, %c0_438, %c25_439], %359 {strides = array<i32>} : memref<8x32x456xbf16, #tpu.memory_space<vmem>>, vector<1x32x384xbf16>,
    %c0_440 = arith.constant 0 : index
    %c0_441 = arith.constant 0 : index
    %c0_442 = arith.constant 0 : index
    %360 = vector.load %arg10[%c0_440, %c0_441, %c0_442] : memref<8x32x456xbf16, #tpu.memory_space<vmem>>, vector<1x32x384xbf16>
    %361 = vector.shape_cast %360 : vector<1x32x384xbf16> to vector<32x384xbf16>
    %c0_443 = arith.constant 0 : index
    %c0_444 = arith.constant 0 : index
    %362 = vector.load %arg11[%c0_443, %c0_444] : memref<288x3072xbf16, #tpu.memory_space<vmem>>, vector<32x384xbf16>
    tpu.vector_store %arg11[%c0_443, %c0_444], %361 {strides = array<i32>} : memref<288x3072xbf16, #tpu.memory_space<vmem>>, vector<32x384xbf16>,
    %c0_445 = arith.constant 0 : index
    %c0_446 = arith.constant 0 : index
    %c1_447 = arith.constant 1 : index
    %363 = vector.load %arg10[%c0_445, %c0_446, %c1_447] : memref<8x32x456xbf16, #tpu.memory_space<vmem>>, vector<1x32x384xbf16>
    %364 = vector.shape_cast %363 : vector<1x32x384xbf16> to vector<32x384xbf16>
    %c32_448 = arith.constant 32 : index
    %c0_449 = arith.constant 0 : index
    %365 = vector.load %arg11[%c32_448, %c0_449] : memref<288x3072xbf16, #tpu.memory_space<vmem>>, vector<32x384xbf16>
    tpu.vector_store %arg11[%c32_448, %c0_449], %364 {strides = array<i32>} : memref<288x3072xbf16, #tpu.memory_space<vmem>>, vector<32x384xbf16>,
    %c0_450 = arith.constant 0 : index
    %c0_451 = arith.constant 0 : index
    %c2_452 = arith.constant 2 : index
    %366 = vector.load %arg10[%c0_450, %c0_451, %c2_452] : memref<8x32x456xbf16, #tpu.memory_space<vmem>>, vector<1x32x384xbf16>
    %367 = vector.shape_cast %366 : vector<1x32x384xbf16> to vector<32x384xbf16>
    %c64_453 = arith.constant 64 : index
    %c0_454 = arith.constant 0 : index
    %368 = vector.load %arg11[%c64_453, %c0_454] : memref<288x3072xbf16, #tpu.memory_space<vmem>>, vector<32x384xbf16>
    tpu.vector_store %arg11[%c64_453, %c0_454], %367 {strides = array<i32>} : memref<288x3072xbf16, #tpu.memory_space<vmem>>, vector<32x384xbf16>,
    %c0_455 = arith.constant 0 : index
    %c0_456 = arith.constant 0 : index
    %c24_457 = arith.constant 24 : index
    %369 = vector.load %arg10[%c0_455, %c0_456, %c24_457] : memref<8x32x456xbf16, #tpu.memory_space<vmem>>, vector<1x32x384xbf16>
    %370 = vector.shape_cast %369 : vector<1x32x384xbf16> to vector<32x384xbf16>
    %c96 = arith.constant 96 : index
    %c0_458 = arith.constant 0 : index
    %371 = vector.load %arg11[%c96, %c0_458] : memref<288x3072xbf16, #tpu.memory_space<vmem>>, vector<32x384xbf16>
    tpu.vector_store %arg11[%c96, %c0_458], %370 {strides = array<i32>} : memref<288x3072xbf16, #tpu.memory_space<vmem>>, vector<32x384xbf16>,
    %c0_459 = arith.constant 0 : index
    %c0_460 = arith.constant 0 : index
    %c25_461 = arith.constant 25 : index
    %372 = vector.load %arg10[%c0_459, %c0_460, %c25_461] : memref<8x32x456xbf16, #tpu.memory_space<vmem>>, vector<1x32x384xbf16>
    %373 = vector.shape_cast %372 : vector<1x32x384xbf16> to vector<32x384xbf16>
    %c128 = arith.constant 128 : index
    %c0_462 = arith.constant 0 : index
    %374 = vector.load %arg11[%c128, %c0_462] : memref<288x3072xbf16, #tpu.memory_space<vmem>>, vector<32x384xbf16>
    tpu.vector_store %arg11[%c128, %c0_462], %373 {strides = array<i32>} : memref<288x3072xbf16, #tpu.memory_space<vmem>>, vector<32x384xbf16>,
    %c0_463 = arith.constant 0 : index
    %c0_464 = arith.constant 0 : index
    %c26_465 = arith.constant 26 : index
    %375 = vector.load %arg10[%c0_463, %c0_464, %c26_465] : memref<8x32x456xbf16, #tpu.memory_space<vmem>>, vector<1x32x384xbf16>
    %376 = vector.shape_cast %375 : vector<1x32x384xbf16> to vector<32x384xbf16>
    %c160 = arith.constant 160 : index
    %c0_466 = arith.constant 0 : index
    %377 = vector.load %arg11[%c160, %c0_466] : memref<288x3072xbf16, #tpu.memory_space<vmem>>, vector<32x384xbf16>
    tpu.vector_store %arg11[%c160, %c0_466], %376 {strides = array<i32>} : memref<288x3072xbf16, #tpu.memory_space<vmem>>, vector<32x384xbf16>,
    %c0_467 = arith.constant 0 : index
    %c0_468 = arith.constant 0 : index
    %c48_469 = arith.constant 48 : index
    %378 = vector.load %arg10[%c0_467, %c0_468, %c48_469] : memref<8x32x456xbf16, #tpu.memory_space<vmem>>, vector<1x32x384xbf16>
    %379 = vector.shape_cast %378 : vector<1x32x384xbf16> to vector<32x384xbf16>
    %c192 = arith.constant 192 : index
    %c0_470 = arith.constant 0 : index
    %380 = vector.load %arg11[%c192, %c0_470] : memref<288x3072xbf16, #tpu.memory_space<vmem>>, vector<32x384xbf16>
    tpu.vector_store %arg11[%c192, %c0_470], %379 {strides = array<i32>} : memref<288x3072xbf16, #tpu.memory_space<vmem>>, vector<32x384xbf16>,
    %c0_471 = arith.constant 0 : index
    %c0_472 = arith.constant 0 : index
    %c49_473 = arith.constant 49 : index
    %381 = vector.load %arg10[%c0_471, %c0_472, %c49_473] : memref<8x32x456xbf16, #tpu.memory_space<vmem>>, vector<1x32x384xbf16>
    %382 = vector.shape_cast %381 : vector<1x32x384xbf16> to vector<32x384xbf16>
    %c224 = arith.constant 224 : index
    %c0_474 = arith.constant 0 : index
    %383 = vector.load %arg11[%c224, %c0_474] : memref<288x3072xbf16, #tpu.memory_space<vmem>>, vector<32x384xbf16>
    tpu.vector_store %arg11[%c224, %c0_474], %382 {strides = array<i32>} : memref<288x3072xbf16, #tpu.memory_space<vmem>>, vector<32x384xbf16>,
    %c0_475 = arith.constant 0 : index
    %c0_476 = arith.constant 0 : index
    %c50_477 = arith.constant 50 : index
    %384 = vector.load %arg10[%c0_475, %c0_476, %c50_477] : memref<8x32x456xbf16, #tpu.memory_space<vmem>>, vector<1x32x384xbf16>
    %385 = vector.shape_cast %384 : vector<1x32x384xbf16> to vector<32x384xbf16>
    %c256 = arith.constant 256 : index
    %c0_478 = arith.constant 0 : index
    %386 = vector.load %arg11[%c256, %c0_478] : memref<288x3072xbf16, #tpu.memory_space<vmem>>, vector<32x384xbf16>
    tpu.vector_store %arg11[%c256, %c0_478], %385 {strides = array<i32>} : memref<288x3072xbf16, #tpu.memory_space<vmem>>, vector<32x384xbf16>,
    %c1_479 = arith.constant 1 : index
    %c0_480 = arith.constant 0 : index
    %c0_481 = arith.constant 0 : index
    %387 = vector.load %arg10[%c1_479, %c0_480, %c0_481] : memref<8x32x456xbf16, #tpu.memory_space<vmem>>, vector<1x32x384xbf16>
    %388 = vector.shape_cast %387 : vector<1x32x384xbf16> to vector<32x384xbf16>
    %c0_482 = arith.constant 0 : index
    %c384_483 = arith.constant 384 : index
    %389 = vector.load %arg11[%c0_482, %c384_483] : memref<288x3072xbf16, #tpu.memory_space<vmem>>, vector<32x384xbf16>
    tpu.vector_store %arg11[%c0_482, %c384_483], %388 {strides = array<i32>} : memref<288x3072xbf16, #tpu.memory_space<vmem>>, vector<32x384xbf16>,
    %c1_484 = arith.constant 1 : index
    %c0_485 = arith.constant 0 : index
    %c1_486 = arith.constant 1 : index
    %390 = vector.load %arg10[%c1_484, %c0_485, %c1_486] : memref<8x32x456xbf16, #tpu.memory_space<vmem>>, vector<1x32x384xbf16>
    %391 = vector.shape_cast %390 : vector<1x32x384xbf16> to vector<32x384xbf16>
    %c32_487 = arith.constant 32 : index
    %c384_488 = arith.constant 384 : index
    %392 = vector.load %arg11[%c32_487, %c384_488] : memref<288x3072xbf16, #tpu.memory_space<vmem>>, vector<32x384xbf16>
    tpu.vector_store %arg11[%c32_487, %c384_488], %391 {strides = array<i32>} : memref<288x3072xbf16, #tpu.memory_space<vmem>>, vector<32x384xbf16>,
    %c1_489 = arith.constant 1 : index
    %c0_490 = arith.constant 0 : index
    %c2_491 = arith.constant 2 : index
    %393 = vector.load %arg10[%c1_489, %c0_490, %c2_491] : memref<8x32x456xbf16, #tpu.memory_space<vmem>>, vector<1x32x384xbf16>
    %394 = vector.shape_cast %393 : vector<1x32x384xbf16> to vector<32x384xbf16>
    %c64_492 = arith.constant 64 : index
    %c384_493 = arith.constant 384 : index
    %395 = vector.load %arg11[%c64_492, %c384_493] : memref<288x3072xbf16, #tpu.memory_space<vmem>>, vector<32x384xbf16>
    tpu.vector_store %arg11[%c64_492, %c384_493], %394 {strides = array<i32>} : memref<288x3072xbf16, #tpu.memory_space<vmem>>, vector<32x384xbf16>,
    %c1_494 = arith.constant 1 : index
    %c0_495 = arith.constant 0 : index
    %c24_496 = arith.constant 24 : index
    %396 = vector.load %arg10[%c1_494, %c0_495, %c24_496] : memref<8x32x456xbf16, #tpu.memory_space<vmem>>, vector<1x32x384xbf16>
    %397 = vector.shape_cast %396 : vector<1x32x384xbf16> to vector<32x384xbf16>
    %c96_497 = arith.constant 96 : index
    %c384_498 = arith.constant 384 : index
    %398 = vector.load %arg11[%c96_497, %c384_498] : memref<288x3072xbf16, #tpu.memory_space<vmem>>, vector<32x384xbf16>
    tpu.vector_store %arg11[%c96_497, %c384_498], %397 {strides = array<i32>} : memref<288x3072xbf16, #tpu.memory_space<vmem>>, vector<32x384xbf16>,
    %c1_499 = arith.constant 1 : index
    %c0_500 = arith.constant 0 : index
    %c25_501 = arith.constant 25 : index
    %399 = vector.load %arg10[%c1_499, %c0_500, %c25_501] : memref<8x32x456xbf16, #tpu.memory_space<vmem>>, vector<1x32x384xbf16>
    %400 = vector.shape_cast %399 : vector<1x32x384xbf16> to vector<32x384xbf16>
    %c128_502 = arith.constant 128 : index
    %c384_503 = arith.constant 384 : index
    %401 = vector.load %arg11[%c128_502, %c384_503] : memref<288x3072xbf16, #tpu.memory_space<vmem>>, vector<32x384xbf16>
    tpu.vector_store %arg11[%c128_502, %c384_503], %400 {strides = array<i32>} : memref<288x3072xbf16, #tpu.memory_space<vmem>>, vector<32x384xbf16>,
    %c1_504 = arith.constant 1 : index
    %c0_505 = arith.constant 0 : index
    %c26_506 = arith.constant 26 : index
    %402 = vector.load %arg10[%c1_504, %c0_505, %c26_506] : memref<8x32x456xbf16, #tpu.memory_space<vmem>>, vector<1x32x384xbf16>
    %403 = vector.shape_cast %402 : vector<1x32x384xbf16> to vector<32x384xbf16>
    %c160_507 = arith.constant 160 : index
    %c384_508 = arith.constant 384 : index
    %404 = vector.load %arg11[%c160_507, %c384_508] : memref<288x3072xbf16, #tpu.memory_space<vmem>>, vector<32x384xbf16>
    tpu.vector_store %arg11[%c160_507, %c384_508], %403 {strides = array<i32>} : memref<288x3072xbf16, #tpu.memory_space<vmem>>, vector<32x384xbf16>,
    %c1_509 = arith.constant 1 : index
    %c0_510 = arith.constant 0 : index
    %c48_511 = arith.constant 48 : index
    %405 = vector.load %arg10[%c1_509, %c0_510, %c48_511] : memref<8x32x456xbf16, #tpu.memory_space<vmem>>, vector<1x32x384xbf16>
    %406 = vector.shape_cast %405 : vector<1x32x384xbf16> to vector<32x384xbf16>
    %c192_512 = arith.constant 192 : index
    %c384_513 = arith.constant 384 : index
    %407 = vector.load %arg11[%c192_512, %c384_513] : memref<288x3072xbf16, #tpu.memory_space<vmem>>, vector<32x384xbf16>
    tpu.vector_store %arg11[%c192_512, %c384_513], %406 {strides = array<i32>} : memref<288x3072xbf16, #tpu.memory_space<vmem>>, vector<32x384xbf16>,
    %c1_514 = arith.constant 1 : index
    %c0_515 = arith.constant 0 : index
    %c49_516 = arith.constant 49 : index
    %408 = vector.load %arg10[%c1_514, %c0_515, %c49_516] : memref<8x32x456xbf16, #tpu.memory_space<vmem>>, vector<1x32x384xbf16>
    %409 = vector.shape_cast %408 : vector<1x32x384xbf16> to vector<32x384xbf16>
    %c224_517 = arith.constant 224 : index
    %c384_518 = arith.constant 384 : index
    %410 = vector.load %arg11[%c224_517, %c384_518] : memref<288x3072xbf16, #tpu.memory_space<vmem>>, vector<32x384xbf16>
    tpu.vector_store %arg11[%c224_517, %c384_518], %409 {strides = array<i32>} : memref<288x3072xbf16, #tpu.memory_space<vmem>>, vector<32x384xbf16>,
    %c1_519 = arith.constant 1 : index
    %c0_520 = arith.constant 0 : index
    %c50_521 = arith.constant 50 : index
    %411 = vector.load %arg10[%c1_519, %c0_520, %c50_521] : memref<8x32x456xbf16, #tpu.memory_space<vmem>>, vector<1x32x384xbf16>
    %412 = vector.shape_cast %411 : vector<1x32x384xbf16> to vector<32x384xbf16>
    %c256_522 = arith.constant 256 : index
    %c384_523 = arith.constant 384 : index
    %413 = vector.load %arg11[%c256_522, %c384_523] : memref<288x3072xbf16, #tpu.memory_space<vmem>>, vector<32x384xbf16>
    tpu.vector_store %arg11[%c256_522, %c384_523], %412 {strides = array<i32>} : memref<288x3072xbf16, #tpu.memory_space<vmem>>, vector<32x384xbf16>,
    %c2_524 = arith.constant 2 : index
    %c0_525 = arith.constant 0 : index
    %c0_526 = arith.constant 0 : index
    %414 = vector.load %arg10[%c2_524, %c0_525, %c0_526] : memref<8x32x456xbf16, #tpu.memory_space<vmem>>, vector<1x32x384xbf16>
    %415 = vector.shape_cast %414 : vector<1x32x384xbf16> to vector<32x384xbf16>
    %c0_527 = arith.constant 0 : index
    %c768_528 = arith.constant 768 : index
    %416 = vector.load %arg11[%c0_527, %c768_528] : memref<288x3072xbf16, #tpu.memory_space<vmem>>, vector<32x384xbf16>
    tpu.vector_store %arg11[%c0_527, %c768_528], %415 {strides = array<i32>} : memref<288x3072xbf16, #tpu.memory_space<vmem>>, vector<32x384xbf16>,
    %c2_529 = arith.constant 2 : index
    %c0_530 = arith.constant 0 : index
    %c1_531 = arith.constant 1 : index
    %417 = vector.load %arg10[%c2_529, %c0_530, %c1_531] : memref<8x32x456xbf16, #tpu.memory_space<vmem>>, vector<1x32x384xbf16>
    %418 = vector.shape_cast %417 : vector<1x32x384xbf16> to vector<32x384xbf16>
    %c32_532 = arith.constant 32 : index
    %c768_533 = arith.constant 768 : index
    %419 = vector.load %arg11[%c32_532, %c768_533] : memref<288x3072xbf16, #tpu.memory_space<vmem>>, vector<32x384xbf16>
    tpu.vector_store %arg11[%c32_532, %c768_533], %418 {strides = array<i32>} : memref<288x3072xbf16, #tpu.memory_space<vmem>>, vector<32x384xbf16>,
    %c2_534 = arith.constant 2 : index
    %c0_535 = arith.constant 0 : index
    %c2_536 = arith.constant 2 : index
    %420 = vector.load %arg10[%c2_534, %c0_535, %c2_536] : memref<8x32x456xbf16, #tpu.memory_space<vmem>>, vector<1x32x384xbf16>
    %421 = vector.shape_cast %420 : vector<1x32x384xbf16> to vector<32x384xbf16>
    %c64_537 = arith.constant 64 : index
    %c768_538 = arith.constant 768 : index
    %422 = vector.load %arg11[%c64_537, %c768_538] : memref<288x3072xbf16, #tpu.memory_space<vmem>>, vector<32x384xbf16>
    tpu.vector_store %arg11[%c64_537, %c768_538], %421 {strides = array<i32>} : memref<288x3072xbf16, #tpu.memory_space<vmem>>, vector<32x384xbf16>,
    %c2_539 = arith.constant 2 : index
    %c0_540 = arith.constant 0 : index
    %c24_541 = arith.constant 24 : index
    %423 = vector.load %arg10[%c2_539, %c0_540, %c24_541] : memref<8x32x456xbf16, #tpu.memory_space<vmem>>, vector<1x32x384xbf16>
    %424 = vector.shape_cast %423 : vector<1x32x384xbf16> to vector<32x384xbf16>
    %c96_542 = arith.constant 96 : index
    %c768_543 = arith.constant 768 : index
    %425 = vector.load %arg11[%c96_542, %c768_543] : memref<288x3072xbf16, #tpu.memory_space<vmem>>, vector<32x384xbf16>
    tpu.vector_store %arg11[%c96_542, %c768_543], %424 {strides = array<i32>} : memref<288x3072xbf16, #tpu.memory_space<vmem>>, vector<32x384xbf16>,
    %c2_544 = arith.constant 2 : index
    %c0_545 = arith.constant 0 : index
    %c25_546 = arith.constant 25 : index
    %426 = vector.load %arg10[%c2_544, %c0_545, %c25_546] : memref<8x32x456xbf16, #tpu.memory_space<vmem>>, vector<1x32x384xbf16>
    %427 = vector.shape_cast %426 : vector<1x32x384xbf16> to vector<32x384xbf16>
    %c128_547 = arith.constant 128 : index
    %c768_548 = arith.constant 768 : index
    %428 = vector.load %arg11[%c128_547, %c768_548] : memref<288x3072xbf16, #tpu.memory_space<vmem>>, vector<32x384xbf16>
    tpu.vector_store %arg11[%c128_547, %c768_548], %427 {strides = array<i32>} : memref<288x3072xbf16, #tpu.memory_space<vmem>>, vector<32x384xbf16>,
    %c2_549 = arith.constant 2 : index
    %c0_550 = arith.constant 0 : index
    %c26_551 = arith.constant 26 : index
    %429 = vector.load %arg10[%c2_549, %c0_550, %c26_551] : memref<8x32x456xbf16, #tpu.memory_space<vmem>>, vector<1x32x384xbf16>
    %430 = vector.shape_cast %429 : vector<1x32x384xbf16> to vector<32x384xbf16>
    %c160_552 = arith.constant 160 : index
    %c768_553 = arith.constant 768 : index
    %431 = vector.load %arg11[%c160_552, %c768_553] : memref<288x3072xbf16, #tpu.memory_space<vmem>>, vector<32x384xbf16>
    tpu.vector_store %arg11[%c160_552, %c768_553], %430 {strides = array<i32>} : memref<288x3072xbf16, #tpu.memory_space<vmem>>, vector<32x384xbf16>,
    %c2_554 = arith.constant 2 : index
    %c0_555 = arith.constant 0 : index
    %c48_556 = arith.constant 48 : index
    %432 = vector.load %arg10[%c2_554, %c0_555, %c48_556] : memref<8x32x456xbf16, #tpu.memory_space<vmem>>, vector<1x32x384xbf16>
    %433 = vector.shape_cast %432 : vector<1x32x384xbf16> to vector<32x384xbf16>
    %c192_557 = arith.constant 192 : index
    %c768_558 = arith.constant 768 : index
    %434 = vector.load %arg11[%c192_557, %c768_558] : memref<288x3072xbf16, #tpu.memory_space<vmem>>, vector<32x384xbf16>
    tpu.vector_store %arg11[%c192_557, %c768_558], %433 {strides = array<i32>} : memref<288x3072xbf16, #tpu.memory_space<vmem>>, vector<32x384xbf16>,
    %c2_559 = arith.constant 2 : index
    %c0_560 = arith.constant 0 : index
    %c49_561 = arith.constant 49 : index
    %435 = vector.load %arg10[%c2_559, %c0_560, %c49_561] : memref<8x32x456xbf16, #tpu.memory_space<vmem>>, vector<1x32x384xbf16>
    %436 = vector.shape_cast %435 : vector<1x32x384xbf16> to vector<32x384xbf16>
    %c224_562 = arith.constant 224 : index
    %c768_563 = arith.constant 768 : index
    %437 = vector.load %arg11[%c224_562, %c768_563] : memref<288x3072xbf16, #tpu.memory_space<vmem>>, vector<32x384xbf16>
    tpu.vector_store %arg11[%c224_562, %c768_563], %436 {strides = array<i32>} : memref<288x3072xbf16, #tpu.memory_space<vmem>>, vector<32x384xbf16>,
    %c2_564 = arith.constant 2 : index
    %c0_565 = arith.constant 0 : index
    %c50_566 = arith.constant 50 : index
    %438 = vector.load %arg10[%c2_564, %c0_565, %c50_566] : memref<8x32x456xbf16, #tpu.memory_space<vmem>>, vector<1x32x384xbf16>
    %439 = vector.shape_cast %438 : vector<1x32x384xbf16> to vector<32x384xbf16>
    %c256_567 = arith.constant 256 : index
    %c768_568 = arith.constant 768 : index
    %440 = vector.load %arg11[%c256_567, %c768_568] : memref<288x3072xbf16, #tpu.memory_space<vmem>>, vector<32x384xbf16>
    tpu.vector_store %arg11[%c256_567, %c768_568], %439 {strides = array<i32>} : memref<288x3072xbf16, #tpu.memory_space<vmem>>, vector<32x384xbf16>,
    %c3_569 = arith.constant 3 : index
    %c0_570 = arith.constant 0 : index
    %c0_571 = arith.constant 0 : index
    %441 = vector.load %arg10[%c3_569, %c0_570, %c0_571] : memref<8x32x456xbf16, #tpu.memory_space<vmem>>, vector<1x32x384xbf16>
    %442 = vector.shape_cast %441 : vector<1x32x384xbf16> to vector<32x384xbf16>
    %c0_572 = arith.constant 0 : index
    %c1152_573 = arith.constant 1152 : index
    %443 = vector.load %arg11[%c0_572, %c1152_573] : memref<288x3072xbf16, #tpu.memory_space<vmem>>, vector<32x384xbf16>
    tpu.vector_store %arg11[%c0_572, %c1152_573], %442 {strides = array<i32>} : memref<288x3072xbf16, #tpu.memory_space<vmem>>, vector<32x384xbf16>,
    %c3_574 = arith.constant 3 : index
    %c0_575 = arith.constant 0 : index
    %c1_576 = arith.constant 1 : index
    %444 = vector.load %arg10[%c3_574, %c0_575, %c1_576] : memref<8x32x456xbf16, #tpu.memory_space<vmem>>, vector<1x32x384xbf16>
    %445 = vector.shape_cast %444 : vector<1x32x384xbf16> to vector<32x384xbf16>
    %c32_577 = arith.constant 32 : index
    %c1152_578 = arith.constant 1152 : index
    %446 = vector.load %arg11[%c32_577, %c1152_578] : memref<288x3072xbf16, #tpu.memory_space<vmem>>, vector<32x384xbf16>
    tpu.vector_store %arg11[%c32_577, %c1152_578], %445 {strides = array<i32>} : memref<288x3072xbf16, #tpu.memory_space<vmem>>, vector<32x384xbf16>,
    %c3_579 = arith.constant 3 : index
    %c0_580 = arith.constant 0 : index
    %c2_581 = arith.constant 2 : index
    %447 = vector.load %arg10[%c3_579, %c0_580, %c2_581] : memref<8x32x456xbf16, #tpu.memory_space<vmem>>, vector<1x32x384xbf16>
    %448 = vector.shape_cast %447 : vector<1x32x384xbf16> to vector<32x384xbf16>
    %c64_582 = arith.constant 64 : index
    %c1152_583 = arith.constant 1152 : index
    %449 = vector.load %arg11[%c64_582, %c1152_583] : memref<288x3072xbf16, #tpu.memory_space<vmem>>, vector<32x384xbf16>
    tpu.vector_store %arg11[%c64_582, %c1152_583], %448 {strides = array<i32>} : memref<288x3072xbf16, #tpu.memory_space<vmem>>, vector<32x384xbf16>,
    %c3_584 = arith.constant 3 : index
    %c0_585 = arith.constant 0 : index
    %c24_586 = arith.constant 24 : index
    %450 = vector.load %arg10[%c3_584, %c0_585, %c24_586] : memref<8x32x456xbf16, #tpu.memory_space<vmem>>, vector<1x32x384xbf16>
    %451 = vector.shape_cast %450 : vector<1x32x384xbf16> to vector<32x384xbf16>
    %c96_587 = arith.constant 96 : index
    %c1152_588 = arith.constant 1152 : index
    %452 = vector.load %arg11[%c96_587, %c1152_588] : memref<288x3072xbf16, #tpu.memory_space<vmem>>, vector<32x384xbf16>
    tpu.vector_store %arg11[%c96_587, %c1152_588], %451 {strides = array<i32>} : memref<288x3072xbf16, #tpu.memory_space<vmem>>, vector<32x384xbf16>,
    %c3_589 = arith.constant 3 : index
    %c0_590 = arith.constant 0 : index
    %c25_591 = arith.constant 25 : index
    %453 = vector.load %arg10[%c3_589, %c0_590, %c25_591] : memref<8x32x456xbf16, #tpu.memory_space<vmem>>, vector<1x32x384xbf16>
    %454 = vector.shape_cast %453 : vector<1x32x384xbf16> to vector<32x384xbf16>
    %c128_592 = arith.constant 128 : index
    %c1152_593 = arith.constant 1152 : index
    %455 = vector.load %arg11[%c128_592, %c1152_593] : memref<288x3072xbf16, #tpu.memory_space<vmem>>, vector<32x384xbf16>
    tpu.vector_store %arg11[%c128_592, %c1152_593], %454 {strides = array<i32>} : memref<288x3072xbf16, #tpu.memory_space<vmem>>, vector<32x384xbf16>,
    %c3_594 = arith.constant 3 : index
    %c0_595 = arith.constant 0 : index
    %c26_596 = arith.constant 26 : index
    %456 = vector.load %arg10[%c3_594, %c0_595, %c26_596] : memref<8x32x456xbf16, #tpu.memory_space<vmem>>, vector<1x32x384xbf16>
    %457 = vector.shape_cast %456 : vector<1x32x384xbf16> to vector<32x384xbf16>
    %c160_597 = arith.constant 160 : index
    %c1152_598 = arith.constant 1152 : index
    %458 = vector.load %arg11[%c160_597, %c1152_598] : memref<288x3072xbf16, #tpu.memory_space<vmem>>, vector<32x384xbf16>
    tpu.vector_store %arg11[%c160_597, %c1152_598], %457 {strides = array<i32>} : memref<288x3072xbf16, #tpu.memory_space<vmem>>, vector<32x384xbf16>,
    %c3_599 = arith.constant 3 : index
    %c0_600 = arith.constant 0 : index
    %c48_601 = arith.constant 48 : index
    %459 = vector.load %arg10[%c3_599, %c0_600, %c48_601] : memref<8x32x456xbf16, #tpu.memory_space<vmem>>, vector<1x32x384xbf16>
    %460 = vector.shape_cast %459 : vector<1x32x384xbf16> to vector<32x384xbf16>
    %c192_602 = arith.constant 192 : index
    %c1152_603 = arith.constant 1152 : index
    %461 = vector.load %arg11[%c192_602, %c1152_603] : memref<288x3072xbf16, #tpu.memory_space<vmem>>, vector<32x384xbf16>
    tpu.vector_store %arg11[%c192_602, %c1152_603], %460 {strides = array<i32>} : memref<288x3072xbf16, #tpu.memory_space<vmem>>, vector<32x384xbf16>,
    %c3_604 = arith.constant 3 : index
    %c0_605 = arith.constant 0 : index
    %c49_606 = arith.constant 49 : index
    %462 = vector.load %arg10[%c3_604, %c0_605, %c49_606] : memref<8x32x456xbf16, #tpu.memory_space<vmem>>, vector<1x32x384xbf16>
    %463 = vector.shape_cast %462 : vector<1x32x384xbf16> to vector<32x384xbf16>
    %c224_607 = arith.constant 224 : index
    %c1152_608 = arith.constant 1152 : index
    %464 = vector.load %arg11[%c224_607, %c1152_608] : memref<288x3072xbf16, #tpu.memory_space<vmem>>, vector<32x384xbf16>
    tpu.vector_store %arg11[%c224_607, %c1152_608], %463 {strides = array<i32>} : memref<288x3072xbf16, #tpu.memory_space<vmem>>, vector<32x384xbf16>,
    %c3_609 = arith.constant 3 : index
    %c0_610 = arith.constant 0 : index
    %c50_611 = arith.constant 50 : index
    %465 = vector.load %arg10[%c3_609, %c0_610, %c50_611] : memref<8x32x456xbf16, #tpu.memory_space<vmem>>, vector<1x32x384xbf16>
    %466 = vector.shape_cast %465 : vector<1x32x384xbf16> to vector<32x384xbf16>
    %c256_612 = arith.constant 256 : index
    %c1152_613 = arith.constant 1152 : index
    %467 = vector.load %arg11[%c256_612, %c1152_613] : memref<288x3072xbf16, #tpu.memory_space<vmem>>, vector<32x384xbf16>
    tpu.vector_store %arg11[%c256_612, %c1152_613], %466 {strides = array<i32>} : memref<288x3072xbf16, #tpu.memory_space<vmem>>, vector<32x384xbf16>,
    %c4_614 = arith.constant 4 : index
    %c0_615 = arith.constant 0 : index
    %c0_616 = arith.constant 0 : index
    %468 = vector.load %arg10[%c4_614, %c0_615, %c0_616] : memref<8x32x456xbf16, #tpu.memory_space<vmem>>, vector<1x32x384xbf16>
    %469 = vector.shape_cast %468 : vector<1x32x384xbf16> to vector<32x384xbf16>
    %c0_617 = arith.constant 0 : index
    %c1536_618 = arith.constant 1536 : index
    %470 = vector.load %arg11[%c0_617, %c1536_618] : memref<288x3072xbf16, #tpu.memory_space<vmem>>, vector<32x384xbf16>
    tpu.vector_store %arg11[%c0_617, %c1536_618], %469 {strides = array<i32>} : memref<288x3072xbf16, #tpu.memory_space<vmem>>, vector<32x384xbf16>,
    %c4_619 = arith.constant 4 : index
    %c0_620 = arith.constant 0 : index
    %c1_621 = arith.constant 1 : index
    %471 = vector.load %arg10[%c4_619, %c0_620, %c1_621] : memref<8x32x456xbf16, #tpu.memory_space<vmem>>, vector<1x32x384xbf16>
    %472 = vector.shape_cast %471 : vector<1x32x384xbf16> to vector<32x384xbf16>
    %c32_622 = arith.constant 32 : index
    %c1536_623 = arith.constant 1536 : index
    %473 = vector.load %arg11[%c32_622, %c1536_623] : memref<288x3072xbf16, #tpu.memory_space<vmem>>, vector<32x384xbf16>
    tpu.vector_store %arg11[%c32_622, %c1536_623], %472 {strides = array<i32>} : memref<288x3072xbf16, #tpu.memory_space<vmem>>, vector<32x384xbf16>,
    %c4_624 = arith.constant 4 : index
    %c0_625 = arith.constant 0 : index
    %c2_626 = arith.constant 2 : index
    %474 = vector.load %arg10[%c4_624, %c0_625, %c2_626] : memref<8x32x456xbf16, #tpu.memory_space<vmem>>, vector<1x32x384xbf16>
    %475 = vector.shape_cast %474 : vector<1x32x384xbf16> to vector<32x384xbf16>
    %c64_627 = arith.constant 64 : index
    %c1536_628 = arith.constant 1536 : index
    %476 = vector.load %arg11[%c64_627, %c1536_628] : memref<288x3072xbf16, #tpu.memory_space<vmem>>, vector<32x384xbf16>
    tpu.vector_store %arg11[%c64_627, %c1536_628], %475 {strides = array<i32>} : memref<288x3072xbf16, #tpu.memory_space<vmem>>, vector<32x384xbf16>,
    %c4_629 = arith.constant 4 : index
    %c0_630 = arith.constant 0 : index
    %c24_631 = arith.constant 24 : index
    %477 = vector.load %arg10[%c4_629, %c0_630, %c24_631] : memref<8x32x456xbf16, #tpu.memory_space<vmem>>, vector<1x32x384xbf16>
    %478 = vector.shape_cast %477 : vector<1x32x384xbf16> to vector<32x384xbf16>
    %c96_632 = arith.constant 96 : index
    %c1536_633 = arith.constant 1536 : index
    %479 = vector.load %arg11[%c96_632, %c1536_633] : memref<288x3072xbf16, #tpu.memory_space<vmem>>, vector<32x384xbf16>
    tpu.vector_store %arg11[%c96_632, %c1536_633], %478 {strides = array<i32>} : memref<288x3072xbf16, #tpu.memory_space<vmem>>, vector<32x384xbf16>,
    %c4_634 = arith.constant 4 : index
    %c0_635 = arith.constant 0 : index
    %c25_636 = arith.constant 25 : index
    %480 = vector.load %arg10[%c4_634, %c0_635, %c25_636] : memref<8x32x456xbf16, #tpu.memory_space<vmem>>, vector<1x32x384xbf16>
    %481 = vector.shape_cast %480 : vector<1x32x384xbf16> to vector<32x384xbf16>
    %c128_637 = arith.constant 128 : index
    %c1536_638 = arith.constant 1536 : index
    %482 = vector.load %arg11[%c128_637, %c1536_638] : memref<288x3072xbf16, #tpu.memory_space<vmem>>, vector<32x384xbf16>
    tpu.vector_store %arg11[%c128_637, %c1536_638], %481 {strides = array<i32>} : memref<288x3072xbf16, #tpu.memory_space<vmem>>, vector<32x384xbf16>,
    %c4_639 = arith.constant 4 : index
    %c0_640 = arith.constant 0 : index
    %c26_641 = arith.constant 26 : index
    %483 = vector.load %arg10[%c4_639, %c0_640, %c26_641] : memref<8x32x456xbf16, #tpu.memory_space<vmem>>, vector<1x32x384xbf16>
    %484 = vector.shape_cast %483 : vector<1x32x384xbf16> to vector<32x384xbf16>
    %c160_642 = arith.constant 160 : index
    %c1536_643 = arith.constant 1536 : index
    %485 = vector.load %arg11[%c160_642, %c1536_643] : memref<288x3072xbf16, #tpu.memory_space<vmem>>, vector<32x384xbf16>
    tpu.vector_store %arg11[%c160_642, %c1536_643], %484 {strides = array<i32>} : memref<288x3072xbf16, #tpu.memory_space<vmem>>, vector<32x384xbf16>,
    %c4_644 = arith.constant 4 : index
    %c0_645 = arith.constant 0 : index
    %c48_646 = arith.constant 48 : index
    %486 = vector.load %arg10[%c4_644, %c0_645, %c48_646] : memref<8x32x456xbf16, #tpu.memory_space<vmem>>, vector<1x32x384xbf16>
    %487 = vector.shape_cast %486 : vector<1x32x384xbf16> to vector<32x384xbf16>
    %c192_647 = arith.constant 192 : index
    %c1536_648 = arith.constant 1536 : index
    %488 = vector.load %arg11[%c192_647, %c1536_648] : memref<288x3072xbf16, #tpu.memory_space<vmem>>, vector<32x384xbf16>
    tpu.vector_store %arg11[%c192_647, %c1536_648], %487 {strides = array<i32>} : memref<288x3072xbf16, #tpu.memory_space<vmem>>, vector<32x384xbf16>,
    %c4_649 = arith.constant 4 : index
    %c0_650 = arith.constant 0 : index
    %c49_651 = arith.constant 49 : index
    %489 = vector.load %arg10[%c4_649, %c0_650, %c49_651] : memref<8x32x456xbf16, #tpu.memory_space<vmem>>, vector<1x32x384xbf16>
    %490 = vector.shape_cast %489 : vector<1x32x384xbf16> to vector<32x384xbf16>
    %c224_652 = arith.constant 224 : index
    %c1536_653 = arith.constant 1536 : index
    %491 = vector.load %arg11[%c224_652, %c1536_653] : memref<288x3072xbf16, #tpu.memory_space<vmem>>, vector<32x384xbf16>
    tpu.vector_store %arg11[%c224_652, %c1536_653], %490 {strides = array<i32>} : memref<288x3072xbf16, #tpu.memory_space<vmem>>, vector<32x384xbf16>,
    %c4_654 = arith.constant 4 : index
    %c0_655 = arith.constant 0 : index
    %c50_656 = arith.constant 50 : index
    %492 = vector.load %arg10[%c4_654, %c0_655, %c50_656] : memref<8x32x456xbf16, #tpu.memory_space<vmem>>, vector<1x32x384xbf16>
    %493 = vector.shape_cast %492 : vector<1x32x384xbf16> to vector<32x384xbf16>
    %c256_657 = arith.constant 256 : index
    %c1536_658 = arith.constant 1536 : index
    %494 = vector.load %arg11[%c256_657, %c1536_658] : memref<288x3072xbf16, #tpu.memory_space<vmem>>, vector<32x384xbf16>
    tpu.vector_store %arg11[%c256_657, %c1536_658], %493 {strides = array<i32>} : memref<288x3072xbf16, #tpu.memory_space<vmem>>, vector<32x384xbf16>,
    %c5_659 = arith.constant 5 : index
    %c0_660 = arith.constant 0 : index
    %c0_661 = arith.constant 0 : index
    %495 = vector.load %arg10[%c5_659, %c0_660, %c0_661] : memref<8x32x456xbf16, #tpu.memory_space<vmem>>, vector<1x32x384xbf16>
    %496 = vector.shape_cast %495 : vector<1x32x384xbf16> to vector<32x384xbf16>
    %c0_662 = arith.constant 0 : index
    %c1920_663 = arith.constant 1920 : index
    %497 = vector.load %arg11[%c0_662, %c1920_663] : memref<288x3072xbf16, #tpu.memory_space<vmem>>, vector<32x384xbf16>
    tpu.vector_store %arg11[%c0_662, %c1920_663], %496 {strides = array<i32>} : memref<288x3072xbf16, #tpu.memory_space<vmem>>, vector<32x384xbf16>,
    %c5_664 = arith.constant 5 : index
    %c0_665 = arith.constant 0 : index
    %c1_666 = arith.constant 1 : index
    %498 = vector.load %arg10[%c5_664, %c0_665, %c1_666] : memref<8x32x456xbf16, #tpu.memory_space<vmem>>, vector<1x32x384xbf16>
    %499 = vector.shape_cast %498 : vector<1x32x384xbf16> to vector<32x384xbf16>
    %c32_667 = arith.constant 32 : index
    %c1920_668 = arith.constant 1920 : index
    %500 = vector.load %arg11[%c32_667, %c1920_668] : memref<288x3072xbf16, #tpu.memory_space<vmem>>, vector<32x384xbf16>
    tpu.vector_store %arg11[%c32_667, %c1920_668], %499 {strides = array<i32>} : memref<288x3072xbf16, #tpu.memory_space<vmem>>, vector<32x384xbf16>,
    %c5_669 = arith.constant 5 : index
    %c0_670 = arith.constant 0 : index
    %c2_671 = arith.constant 2 : index
    %501 = vector.load %arg10[%c5_669, %c0_670, %c2_671] : memref<8x32x456xbf16, #tpu.memory_space<vmem>>, vector<1x32x384xbf16>
    %502 = vector.shape_cast %501 : vector<1x32x384xbf16> to vector<32x384xbf16>
    %c64_672 = arith.constant 64 : index
    %c1920_673 = arith.constant 1920 : index
    %503 = vector.load %arg11[%c64_672, %c1920_673] : memref<288x3072xbf16, #tpu.memory_space<vmem>>, vector<32x384xbf16>
    tpu.vector_store %arg11[%c64_672, %c1920_673], %502 {strides = array<i32>} : memref<288x3072xbf16, #tpu.memory_space<vmem>>, vector<32x384xbf16>,
    %c5_674 = arith.constant 5 : index
    %c0_675 = arith.constant 0 : index
    %c24_676 = arith.constant 24 : index
    %504 = vector.load %arg10[%c5_674, %c0_675, %c24_676] : memref<8x32x456xbf16, #tpu.memory_space<vmem>>, vector<1x32x384xbf16>
    %505 = vector.shape_cast %504 : vector<1x32x384xbf16> to vector<32x384xbf16>
    %c96_677 = arith.constant 96 : index
    %c1920_678 = arith.constant 1920 : index
    %506 = vector.load %arg11[%c96_677, %c1920_678] : memref<288x3072xbf16, #tpu.memory_space<vmem>>, vector<32x384xbf16>
    tpu.vector_store %arg11[%c96_677, %c1920_678], %505 {strides = array<i32>} : memref<288x3072xbf16, #tpu.memory_space<vmem>>, vector<32x384xbf16>,
    %c5_679 = arith.constant 5 : index
    %c0_680 = arith.constant 0 : index
    %c25_681 = arith.constant 25 : index
    %507 = vector.load %arg10[%c5_679, %c0_680, %c25_681] : memref<8x32x456xbf16, #tpu.memory_space<vmem>>, vector<1x32x384xbf16>
    %508 = vector.shape_cast %507 : vector<1x32x384xbf16> to vector<32x384xbf16>
    %c128_682 = arith.constant 128 : index
    %c1920_683 = arith.constant 1920 : index
    %509 = vector.load %arg11[%c128_682, %c1920_683] : memref<288x3072xbf16, #tpu.memory_space<vmem>>, vector<32x384xbf16>
    tpu.vector_store %arg11[%c128_682, %c1920_683], %508 {strides = array<i32>} : memref<288x3072xbf16, #tpu.memory_space<vmem>>, vector<32x384xbf16>,
    %c5_684 = arith.constant 5 : index
    %c0_685 = arith.constant 0 : index
    %c26_686 = arith.constant 26 : index
    %510 = vector.load %arg10[%c5_684, %c0_685, %c26_686] : memref<8x32x456xbf16, #tpu.memory_space<vmem>>, vector<1x32x384xbf16>
    %511 = vector.shape_cast %510 : vector<1x32x384xbf16> to vector<32x384xbf16>
    %c160_687 = arith.constant 160 : index
    %c1920_688 = arith.constant 1920 : index
    %512 = vector.load %arg11[%c160_687, %c1920_688] : memref<288x3072xbf16, #tpu.memory_space<vmem>>, vector<32x384xbf16>
    tpu.vector_store %arg11[%c160_687, %c1920_688], %511 {strides = array<i32>} : memref<288x3072xbf16, #tpu.memory_space<vmem>>, vector<32x384xbf16>,
    %c5_689 = arith.constant 5 : index
    %c0_690 = arith.constant 0 : index
    %c48_691 = arith.constant 48 : index
    %513 = vector.load %arg10[%c5_689, %c0_690, %c48_691] : memref<8x32x456xbf16, #tpu.memory_space<vmem>>, vector<1x32x384xbf16>
    %514 = vector.shape_cast %513 : vector<1x32x384xbf16> to vector<32x384xbf16>
    %c192_692 = arith.constant 192 : index
    %c1920_693 = arith.constant 1920 : index
    %515 = vector.load %arg11[%c192_692, %c1920_693] : memref<288x3072xbf16, #tpu.memory_space<vmem>>, vector<32x384xbf16>
    tpu.vector_store %arg11[%c192_692, %c1920_693], %514 {strides = array<i32>} : memref<288x3072xbf16, #tpu.memory_space<vmem>>, vector<32x384xbf16>,
    %c5_694 = arith.constant 5 : index
    %c0_695 = arith.constant 0 : index
    %c49_696 = arith.constant 49 : index
    %516 = vector.load %arg10[%c5_694, %c0_695, %c49_696] : memref<8x32x456xbf16, #tpu.memory_space<vmem>>, vector<1x32x384xbf16>
    %517 = vector.shape_cast %516 : vector<1x32x384xbf16> to vector<32x384xbf16>
    %c224_697 = arith.constant 224 : index
    %c1920_698 = arith.constant 1920 : index
    %518 = vector.load %arg11[%c224_697, %c1920_698] : memref<288x3072xbf16, #tpu.memory_space<vmem>>, vector<32x384xbf16>
    tpu.vector_store %arg11[%c224_697, %c1920_698], %517 {strides = array<i32>} : memref<288x3072xbf16, #tpu.memory_space<vmem>>, vector<32x384xbf16>,
    %c5_699 = arith.constant 5 : index
    %c0_700 = arith.constant 0 : index
    %c50_701 = arith.constant 50 : index
    %519 = vector.load %arg10[%c5_699, %c0_700, %c50_701] : memref<8x32x456xbf16, #tpu.memory_space<vmem>>, vector<1x32x384xbf16>
    %520 = vector.shape_cast %519 : vector<1x32x384xbf16> to vector<32x384xbf16>
    %c256_702 = arith.constant 256 : index
    %c1920_703 = arith.constant 1920 : index
    %521 = vector.load %arg11[%c256_702, %c1920_703] : memref<288x3072xbf16, #tpu.memory_space<vmem>>, vector<32x384xbf16>
    tpu.vector_store %arg11[%c256_702, %c1920_703], %520 {strides = array<i32>} : memref<288x3072xbf16, #tpu.memory_space<vmem>>, vector<32x384xbf16>,
    %c6_704 = arith.constant 6 : index
    %c0_705 = arith.constant 0 : index
    %c0_706 = arith.constant 0 : index
    %522 = vector.load %arg10[%c6_704, %c0_705, %c0_706] : memref<8x32x456xbf16, #tpu.memory_space<vmem>>, vector<1x32x384xbf16>
    %523 = vector.shape_cast %522 : vector<1x32x384xbf16> to vector<32x384xbf16>
    %c0_707 = arith.constant 0 : index
    %c2304_708 = arith.constant 2304 : index
    %524 = vector.load %arg11[%c0_707, %c2304_708] : memref<288x3072xbf16, #tpu.memory_space<vmem>>, vector<32x384xbf16>
    tpu.vector_store %arg11[%c0_707, %c2304_708], %523 {strides = array<i32>} : memref<288x3072xbf16, #tpu.memory_space<vmem>>, vector<32x384xbf16>,
    %c6_709 = arith.constant 6 : index
    %c0_710 = arith.constant 0 : index
    %c1_711 = arith.constant 1 : index
    %525 = vector.load %arg10[%c6_709, %c0_710, %c1_711] : memref<8x32x456xbf16, #tpu.memory_space<vmem>>, vector<1x32x384xbf16>
    %526 = vector.shape_cast %525 : vector<1x32x384xbf16> to vector<32x384xbf16>
    %c32_712 = arith.constant 32 : index
    %c2304_713 = arith.constant 2304 : index
    %527 = vector.load %arg11[%c32_712, %c2304_713] : memref<288x3072xbf16, #tpu.memory_space<vmem>>, vector<32x384xbf16>
    tpu.vector_store %arg11[%c32_712, %c2304_713], %526 {strides = array<i32>} : memref<288x3072xbf16, #tpu.memory_space<vmem>>, vector<32x384xbf16>,
    %c6_714 = arith.constant 6 : index
    %c0_715 = arith.constant 0 : index
    %c2_716 = arith.constant 2 : index
    %528 = vector.load %arg10[%c6_714, %c0_715, %c2_716] : memref<8x32x456xbf16, #tpu.memory_space<vmem>>, vector<1x32x384xbf16>
    %529 = vector.shape_cast %528 : vector<1x32x384xbf16> to vector<32x384xbf16>
    %c64_717 = arith.constant 64 : index
    %c2304_718 = arith.constant 2304 : index
    %530 = vector.load %arg11[%c64_717, %c2304_718] : memref<288x3072xbf16, #tpu.memory_space<vmem>>, vector<32x384xbf16>
    tpu.vector_store %arg11[%c64_717, %c2304_718], %529 {strides = array<i32>} : memref<288x3072xbf16, #tpu.memory_space<vmem>>, vector<32x384xbf16>,
    %c6_719 = arith.constant 6 : index
    %c0_720 = arith.constant 0 : index
    %c24_721 = arith.constant 24 : index
    %531 = vector.load %arg10[%c6_719, %c0_720, %c24_721] : memref<8x32x456xbf16, #tpu.memory_space<vmem>>, vector<1x32x384xbf16>
    %532 = vector.shape_cast %531 : vector<1x32x384xbf16> to vector<32x384xbf16>
    %c96_722 = arith.constant 96 : index
    %c2304_723 = arith.constant 2304 : index
    %533 = vector.load %arg11[%c96_722, %c2304_723] : memref<288x3072xbf16, #tpu.memory_space<vmem>>, vector<32x384xbf16>
    tpu.vector_store %arg11[%c96_722, %c2304_723], %532 {strides = array<i32>} : memref<288x3072xbf16, #tpu.memory_space<vmem>>, vector<32x384xbf16>,
    %c6_724 = arith.constant 6 : index
    %c0_725 = arith.constant 0 : index
    %c25_726 = arith.constant 25 : index
    %534 = vector.load %arg10[%c6_724, %c0_725, %c25_726] : memref<8x32x456xbf16, #tpu.memory_space<vmem>>, vector<1x32x384xbf16>
    %535 = vector.shape_cast %534 : vector<1x32x384xbf16> to vector<32x384xbf16>
    %c128_727 = arith.constant 128 : index
    %c2304_728 = arith.constant 2304 : index
    %536 = vector.load %arg11[%c128_727, %c2304_728] : memref<288x3072xbf16, #tpu.memory_space<vmem>>, vector<32x384xbf16>
    tpu.vector_store %arg11[%c128_727, %c2304_728], %535 {strides = array<i32>} : memref<288x3072xbf16, #tpu.memory_space<vmem>>, vector<32x384xbf16>,
    %c6_729 = arith.constant 6 : index
    %c0_730 = arith.constant 0 : index
    %c26_731 = arith.constant 26 : index
    %537 = vector.load %arg10[%c6_729, %c0_730, %c26_731] : memref<8x32x456xbf16, #tpu.memory_space<vmem>>, vector<1x32x384xbf16>
    %538 = vector.shape_cast %537 : vector<1x32x384xbf16> to vector<32x384xbf16>
    %c160_732 = arith.constant 160 : index
    %c2304_733 = arith.constant 2304 : index
    %539 = vector.load %arg11[%c160_732, %c2304_733] : memref<288x3072xbf16, #tpu.memory_space<vmem>>, vector<32x384xbf16>
    tpu.vector_store %arg11[%c160_732, %c2304_733], %538 {strides = array<i32>} : memref<288x3072xbf16, #tpu.memory_space<vmem>>, vector<32x384xbf16>,
    %c6_734 = arith.constant 6 : index
    %c0_735 = arith.constant 0 : index
    %c48_736 = arith.constant 48 : index
    %540 = vector.load %arg10[%c6_734, %c0_735, %c48_736] : memref<8x32x456xbf16, #tpu.memory_space<vmem>>, vector<1x32x384xbf16>
    %541 = vector.shape_cast %540 : vector<1x32x384xbf16> to vector<32x384xbf16>
    %c192_737 = arith.constant 192 : index
    %c2304_738 = arith.constant 2304 : index
    %542 = vector.load %arg11[%c192_737, %c2304_738] : memref<288x3072xbf16, #tpu.memory_space<vmem>>, vector<32x384xbf16>
    tpu.vector_store %arg11[%c192_737, %c2304_738], %541 {strides = array<i32>} : memref<288x3072xbf16, #tpu.memory_space<vmem>>, vector<32x384xbf16>,
    %c6_739 = arith.constant 6 : index
    %c0_740 = arith.constant 0 : index
    %c49_741 = arith.constant 49 : index
    %543 = vector.load %arg10[%c6_739, %c0_740, %c49_741] : memref<8x32x456xbf16, #tpu.memory_space<vmem>>, vector<1x32x384xbf16>
    %544 = vector.shape_cast %543 : vector<1x32x384xbf16> to vector<32x384xbf16>
    %c224_742 = arith.constant 224 : index
    %c2304_743 = arith.constant 2304 : index
    %545 = vector.load %arg11[%c224_742, %c2304_743] : memref<288x3072xbf16, #tpu.memory_space<vmem>>, vector<32x384xbf16>
    tpu.vector_store %arg11[%c224_742, %c2304_743], %544 {strides = array<i32>} : memref<288x3072xbf16, #tpu.memory_space<vmem>>, vector<32x384xbf16>,
    %c6_744 = arith.constant 6 : index
    %c0_745 = arith.constant 0 : index
    %c50_746 = arith.constant 50 : index
    %546 = vector.load %arg10[%c6_744, %c0_745, %c50_746] : memref<8x32x456xbf16, #tpu.memory_space<vmem>>, vector<1x32x384xbf16>
    %547 = vector.shape_cast %546 : vector<1x32x384xbf16> to vector<32x384xbf16>
    %c256_747 = arith.constant 256 : index
    %c2304_748 = arith.constant 2304 : index
    %548 = vector.load %arg11[%c256_747, %c2304_748] : memref<288x3072xbf16, #tpu.memory_space<vmem>>, vector<32x384xbf16>
    tpu.vector_store %arg11[%c256_747, %c2304_748], %547 {strides = array<i32>} : memref<288x3072xbf16, #tpu.memory_space<vmem>>, vector<32x384xbf16>,
    %c7_749 = arith.constant 7 : index
    %c0_750 = arith.constant 0 : index
    %c0_751 = arith.constant 0 : index
    %549 = vector.load %arg10[%c7_749, %c0_750, %c0_751] : memref<8x32x456xbf16, #tpu.memory_space<vmem>>, vector<1x32x384xbf16>
    %550 = vector.shape_cast %549 : vector<1x32x384xbf16> to vector<32x384xbf16>
    %c0_752 = arith.constant 0 : index
    %c2688_753 = arith.constant 2688 : index
    %551 = vector.load %arg11[%c0_752, %c2688_753] : memref<288x3072xbf16, #tpu.memory_space<vmem>>, vector<32x384xbf16>
    tpu.vector_store %arg11[%c0_752, %c2688_753], %550 {strides = array<i32>} : memref<288x3072xbf16, #tpu.memory_space<vmem>>, vector<32x384xbf16>,
    %c7_754 = arith.constant 7 : index
    %c0_755 = arith.constant 0 : index
    %c1_756 = arith.constant 1 : index
    %552 = vector.load %arg10[%c7_754, %c0_755, %c1_756] : memref<8x32x456xbf16, #tpu.memory_space<vmem>>, vector<1x32x384xbf16>
    %553 = vector.shape_cast %552 : vector<1x32x384xbf16> to vector<32x384xbf16>
    %c32_757 = arith.constant 32 : index
    %c2688_758 = arith.constant 2688 : index
    %554 = vector.load %arg11[%c32_757, %c2688_758] : memref<288x3072xbf16, #tpu.memory_space<vmem>>, vector<32x384xbf16>
    tpu.vector_store %arg11[%c32_757, %c2688_758], %553 {strides = array<i32>} : memref<288x3072xbf16, #tpu.memory_space<vmem>>, vector<32x384xbf16>,
    %c7_759 = arith.constant 7 : index
    %c0_760 = arith.constant 0 : index
    %c2_761 = arith.constant 2 : index
    %555 = vector.load %arg10[%c7_759, %c0_760, %c2_761] : memref<8x32x456xbf16, #tpu.memory_space<vmem>>, vector<1x32x384xbf16>
    %556 = vector.shape_cast %555 : vector<1x32x384xbf16> to vector<32x384xbf16>
    %c64_762 = arith.constant 64 : index
    %c2688_763 = arith.constant 2688 : index
    %557 = vector.load %arg11[%c64_762, %c2688_763] : memref<288x3072xbf16, #tpu.memory_space<vmem>>, vector<32x384xbf16>
    tpu.vector_store %arg11[%c64_762, %c2688_763], %556 {strides = array<i32>} : memref<288x3072xbf16, #tpu.memory_space<vmem>>, vector<32x384xbf16>,
    %c7_764 = arith.constant 7 : index
    %c0_765 = arith.constant 0 : index
    %c24_766 = arith.constant 24 : index
    %558 = vector.load %arg10[%c7_764, %c0_765, %c24_766] : memref<8x32x456xbf16, #tpu.memory_space<vmem>>, vector<1x32x384xbf16>
    %559 = vector.shape_cast %558 : vector<1x32x384xbf16> to vector<32x384xbf16>
    %c96_767 = arith.constant 96 : index
    %c2688_768 = arith.constant 2688 : index
    %560 = vector.load %arg11[%c96_767, %c2688_768] : memref<288x3072xbf16, #tpu.memory_space<vmem>>, vector<32x384xbf16>
    tpu.vector_store %arg11[%c96_767, %c2688_768], %559 {strides = array<i32>} : memref<288x3072xbf16, #tpu.memory_space<vmem>>, vector<32x384xbf16>,
    %c7_769 = arith.constant 7 : index
    %c0_770 = arith.constant 0 : index
    %c25_771 = arith.constant 25 : index
    %561 = vector.load %arg10[%c7_769, %c0_770, %c25_771] : memref<8x32x456xbf16, #tpu.memory_space<vmem>>, vector<1x32x384xbf16>
    %562 = vector.shape_cast %561 : vector<1x32x384xbf16> to vector<32x384xbf16>
    %c128_772 = arith.constant 128 : index
    %c2688_773 = arith.constant 2688 : index
    %563 = vector.load %arg11[%c128_772, %c2688_773] : memref<288x3072xbf16, #tpu.memory_space<vmem>>, vector<32x384xbf16>
    tpu.vector_store %arg11[%c128_772, %c2688_773], %562 {strides = array<i32>} : memref<288x3072xbf16, #tpu.memory_space<vmem>>, vector<32x384xbf16>,
    %c7_774 = arith.constant 7 : index
    %c0_775 = arith.constant 0 : index
    %c26_776 = arith.constant 26 : index
    %564 = vector.load %arg10[%c7_774, %c0_775, %c26_776] : memref<8x32x456xbf16, #tpu.memory_space<vmem>>, vector<1x32x384xbf16>
    %565 = vector.shape_cast %564 : vector<1x32x384xbf16> to vector<32x384xbf16>
    %c160_777 = arith.constant 160 : index
    %c2688_778 = arith.constant 2688 : index
    %566 = vector.load %arg11[%c160_777, %c2688_778] : memref<288x3072xbf16, #tpu.memory_space<vmem>>, vector<32x384xbf16>
    tpu.vector_store %arg11[%c160_777, %c2688_778], %565 {strides = array<i32>} : memref<288x3072xbf16, #tpu.memory_space<vmem>>, vector<32x384xbf16>,
    %c7_779 = arith.constant 7 : index
    %c0_780 = arith.constant 0 : index
    %c48_781 = arith.constant 48 : index
    %567 = vector.load %arg10[%c7_779, %c0_780, %c48_781] : memref<8x32x456xbf16, #tpu.memory_space<vmem>>, vector<1x32x384xbf16>
    %568 = vector.shape_cast %567 : vector<1x32x384xbf16> to vector<32x384xbf16>
    %c192_782 = arith.constant 192 : index
    %c2688_783 = arith.constant 2688 : index
    %569 = vector.load %arg11[%c192_782, %c2688_783] : memref<288x3072xbf16, #tpu.memory_space<vmem>>, vector<32x384xbf16>
    tpu.vector_store %arg11[%c192_782, %c2688_783], %568 {strides = array<i32>} : memref<288x3072xbf16, #tpu.memory_space<vmem>>, vector<32x384xbf16>,
    %c7_784 = arith.constant 7 : index
    %c0_785 = arith.constant 0 : index
    %c49_786 = arith.constant 49 : index
    %570 = vector.load %arg10[%c7_784, %c0_785, %c49_786] : memref<8x32x456xbf16, #tpu.memory_space<vmem>>, vector<1x32x384xbf16>
    %571 = vector.shape_cast %570 : vector<1x32x384xbf16> to vector<32x384xbf16>
    %c224_787 = arith.constant 224 : index
    %c2688_788 = arith.constant 2688 : index
    %572 = vector.load %arg11[%c224_787, %c2688_788] : memref<288x3072xbf16, #tpu.memory_space<vmem>>, vector<32x384xbf16>
    tpu.vector_store %arg11[%c224_787, %c2688_788], %571 {strides = array<i32>} : memref<288x3072xbf16, #tpu.memory_space<vmem>>, vector<32x384xbf16>,
    %c7_789 = arith.constant 7 : index
    %c0_790 = arith.constant 0 : index
    %c50_791 = arith.constant 50 : index
    %573 = vector.load %arg10[%c7_789, %c0_790, %c50_791] : memref<8x32x456xbf16, #tpu.memory_space<vmem>>, vector<1x32x384xbf16>
    %574 = vector.shape_cast %573 : vector<1x32x384xbf16> to vector<32x384xbf16>
    %c256_792 = arith.constant 256 : index
    %c2688_793 = arith.constant 2688 : index
    %575 = vector.load %arg11[%c256_792, %c2688_793] : memref<288x3072xbf16, #tpu.memory_space<vmem>>, vector<32x384xbf16>
    tpu.vector_store %arg11[%c256_792, %c2688_793], %574 {strides = array<i32>} : memref<288x3072xbf16, #tpu.memory_space<vmem>>, vector<32x384xbf16>,
    %c0_794 = arith.constant 0 : index
    %c0_795 = arith.constant 0 : index
    %576 = vector.load %arg3[%c0_794, %c0_795] : memref<3x288xbf16, #tpu.memory_space<vmem>>, vector<3x288xbf16>
    %c0_796 = arith.constant 0 : index
    %c0_797 = arith.constant 0 : index
    %577 = vector.load %arg11[%c0_796, %c0_797] : memref<288x3072xbf16, #tpu.memory_space<vmem>>, vector<288x3072xbf16>
    %cst_798 = arith.constant dense<0.000000e+00> : vector<3x3072xf32>
    %578 = tpu.matmul %576, %577, %cst_798 {dimension_numbers = #tpu.dot_dimension_numbers<[1], [0], [0], [1], [0, 0, 1, 1], [], []>} : vector<3x288xbf16>, vector<288x3072xbf16>, vector<3x3072xf32> -> vector<3x3072xf32>
    %c0_799 = arith.constant 0 : index
    %c0_800 = arith.constant 0 : index
    %579 = vector.load %arg5[%c0_799, %c0_800] : memref<3x1xf32, #tpu.memory_space<vmem>>, vector<3x1xf32>
    %580 = vector.broadcast %579 : vector<3x1xf32> to vector<3x3072xf32>
    %581 = arith.addf %578, %580 : vector<3x3072xf32>
    %582 = vector.extract_strided_slice %581 {offsets = [0, 0], sizes = [3, 384], strides = [1, 1]} : vector<3x3072xf32> to vector<3x384xf32>
    %c0_801 = arith.constant 0 : index
    %c0_802 = arith.constant 0 : index
    %583 = vector.load %arg7[%c0_801, %c0_802] : memref<24x384xf32, #tpu.memory_space<vmem>>, vector<3x384xf32>
    tpu.vector_store %arg7[%c0_801, %c0_802], %582 {strides = array<i32>} : memref<24x384xf32, #tpu.memory_space<vmem>>, vector<3x384xf32>,
    %584 = vector.extract_strided_slice %581 {offsets = [0, 384], sizes = [3, 384], strides = [1, 1]} : vector<3x3072xf32> to vector<3x384xf32>
    %c3_803 = arith.constant 3 : index
    %c0_804 = arith.constant 0 : index
    %585 = vector.load %arg7[%c3_803, %c0_804] : memref<24x384xf32, #tpu.memory_space<vmem>>, vector<3x384xf32>
    tpu.vector_store %arg7[%c3_803, %c0_804], %584 {strides = array<i32>} : memref<24x384xf32, #tpu.memory_space<vmem>>, vector<3x384xf32>,
    %586 = vector.extract_strided_slice %581 {offsets = [0, 768], sizes = [3, 384], strides = [1, 1]} : vector<3x3072xf32> to vector<3x384xf32>
    %c6_805 = arith.constant 6 : index
    %c0_806 = arith.constant 0 : index
    %587 = vector.load %arg7[%c6_805, %c0_806] : memref<24x384xf32, #tpu.memory_space<vmem>>, vector<3x384xf32>
    tpu.vector_store %arg7[%c6_805, %c0_806], %586 {strides = array<i32>} : memref<24x384xf32, #tpu.memory_space<vmem>>, vector<3x384xf32>,
    %588 = vector.extract_strided_slice %581 {offsets = [0, 1152], sizes = [3, 384], strides = [1, 1]} : vector<3x3072xf32> to vector<3x384xf32>
    %c9 = arith.constant 9 : index
    %c0_807 = arith.constant 0 : index
    %589 = vector.load %arg7[%c9, %c0_807] : memref<24x384xf32, #tpu.memory_space<vmem>>, vector<3x384xf32>
    tpu.vector_store %arg7[%c9, %c0_807], %588 {strides = array<i32>} : memref<24x384xf32, #tpu.memory_space<vmem>>, vector<3x384xf32>,
    %590 = vector.extract_strided_slice %581 {offsets = [0, 1536], sizes = [3, 384], strides = [1, 1]} : vector<3x3072xf32> to vector<3x384xf32>
    %c12 = arith.constant 12 : index
    %c0_808 = arith.constant 0 : index
    %591 = vector.load %arg7[%c12, %c0_808] : memref<24x384xf32, #tpu.memory_space<vmem>>, vector<3x384xf32>
    tpu.vector_store %arg7[%c12, %c0_808], %590 {strides = array<i32>} : memref<24x384xf32, #tpu.memory_space<vmem>>, vector<3x384xf32>,
    %592 = vector.extract_strided_slice %581 {offsets = [0, 1920], sizes = [3, 384], strides = [1, 1]} : vector<3x3072xf32> to vector<3x384xf32>
    %c15 = arith.constant 15 : index
    %c0_809 = arith.constant 0 : index
    %593 = vector.load %arg7[%c15, %c0_809] : memref<24x384xf32, #tpu.memory_space<vmem>>, vector<3x384xf32>
    tpu.vector_store %arg7[%c15, %c0_809], %592 {strides = array<i32>} : memref<24x384xf32, #tpu.memory_space<vmem>>, vector<3x384xf32>,
    %594 = vector.extract_strided_slice %581 {offsets = [0, 2304], sizes = [3, 384], strides = [1, 1]} : vector<3x3072xf32> to vector<3x384xf32>
    %c18 = arith.constant 18 : index
    %c0_810 = arith.constant 0 : index
    %595 = vector.load %arg7[%c18, %c0_810] : memref<24x384xf32, #tpu.memory_space<vmem>>, vector<3x384xf32>
    tpu.vector_store %arg7[%c18, %c0_810], %594 {strides = array<i32>} : memref<24x384xf32, #tpu.memory_space<vmem>>, vector<3x384xf32>,
    %596 = vector.extract_strided_slice %581 {offsets = [0, 2688], sizes = [3, 384], strides = [1, 1]} : vector<3x3072xf32> to vector<3x384xf32>
    %c21 = arith.constant 21 : index
    %c0_811 = arith.constant 0 : index
    %597 = vector.load %arg7[%c21, %c0_811] : memref<24x384xf32, #tpu.memory_space<vmem>>, vector<3x384xf32>
    tpu.vector_store %arg7[%c21, %c0_811], %596 {strides = array<i32>} : memref<24x384xf32, #tpu.memory_space<vmem>>, vector<3x384xf32>,
    return
  }
  func.func @transform_0(%arg0: i32) -> (i32, i32, i32) {
    %c0_i32 = arith.constant 0 : i32
    %c0_i32_0 = arith.constant 0 : i32
    %c0_i32_1 = arith.constant 0 : i32
    return %arg0, %c0_i32, %c0_i32_0 : i32, i32, i32
  }
  func.func @transform_1(%arg0: i32) -> (i32, i32) {
    %c0_i32 = arith.constant 0 : i32
    %c0_i32_0 = arith.constant 0 : i32
    %c0_i32_1 = arith.constant 0 : i32
    return %c0_i32, %c0_i32_0 : i32, i32
  }
  func.func @transform_2(%arg0: i32) -> (i32, i32) {
    %c0_i32 = arith.constant 0 : i32
    %c0_i32_0 = arith.constant 0 : i32
    %c0_i32_1 = arith.constant 0 : i32
    return %c0_i32, %c0_i32_0 : i32, i32
  }
  func.func @transform_3(%arg0: i32) -> (i32, i32) {
    %c0_i32 = arith.constant 0 : i32
    %c0_i32_0 = arith.constant 0 : i32
    %c0_i32_1 = arith.constant 0 : i32
    return %c0_i32, %c0_i32_0 : i32, i32
  }
  func.func @transform_4(%arg0: i32) -> (i32, i32) {
    %c0_i32 = arith.constant 0 : i32
    %c0_i32_0 = arith.constant 0 : i32
    %c0_i32_1 = arith.constant 0 : i32
    return %c0_i32, %c0_i32_0 : i32, i32
  }
  func.func @transform_5(%arg0: i32) -> (i32, i32) {
    %c0_i32 = arith.constant 0 : i32
    %c0_i32_0 = arith.constant 0 : i32
    %c0_i32_1 = arith.constant 0 : i32
    return %c0_i32, %c0_i32_0 : i32, i32
  }
  func.func @transform_6(%arg0: i32) -> (i32, i32) {
    %c0_i32 = arith.constant 0 : i32
    %c0_i32_0 = arith.constant 0 : i32
    return %arg0, %c0_i32 : i32, i32
  }
}

</mosaic_0001>

<bundles_post_ra>
// kernel: model_forward.1
= control target key start
LH: loop header
LB: loop body
LE: loop exit
PB: predicated region body
PF: predicated region fallthrough
CT: control target
= control target key end

     0   :  { %s9063_s21 = smov 0   ;;  %s12506_s0 = inlined_call_operand.vmem [shape: bf16[16,8,456], index: 0, kind: input, shape index: {}]   ;;  %s12507_s1 = inlined_call_operand.vmem [shape: bf16[32,72], index: 1, kind: input, shape index: {}]   ;;  %s12508_s2 = inlined_call_operand.vmem [shape: bf16[3,288], index: 2, kind: input, shape index: {}]   ;;  %s12509_s3 = inlined_call_operand.vmem [shape: f32[32,1], index: 3, kind: input, shape index: {}]   ;;  %s12510_s4 = inlined_call_operand.vmem [shape: f32[3,1], index: 4, kind: input, shape index: {}]   ;;  %s12511_s5 = inlined_call_operand.vmem [shape: f32[1,384], index: 5, kind: input, shape index: {}]   ;;  %s12512_s6 = inlined_call_operand.vmem [shape: f32[48,384], index: 6, kind: output, shape index: {}]  }
   0x1 LB: > { %s8584_s22 = sadd.s32 4294967295, %s9015_s21   ;;  %p8588_p0 = scmp.ge.s32.totalorder %s9015_s21, 1  ;;  %s9015_s21 = sphi %s9063_s21, %s16_s21  }
   0x2   : > { %p214_p1 = scmp.lt.s32.totalorder %s9015_s21, 3 }
   0x4   : > { %p215_p2 = pnand %p8588_p0, %p214_p1 }
   0x6   : > { %218 = sbr.rel (%p215_p2) target bundleno = 2005 (0x7d5), region = 44 }
   0xd   : > { %s8589_s23 = sshll.u32 %s8584_s22, 3  ;;  %s9017_s28 = smov 126   ;;  %v12513_v7 = vmov 0   ;;  %vm275_vm0 = vcmask 1043456   ;;  %vm295_vm1 = vcmask 1031168   ;;  %vm277_vm2 = vcmask 1039360  }
   0xe   : > { %p247_p3 = scmp.lt.s32.totalorder %s8589_s23, 15  ;;  %s9018_s29 = smov 127   ;;  %2171 = vmatprep.mubr.bf16.mxu0 %v12513_v7  ;;  %2224 = vmatprep.mubr.bf16.mxu1 %v12513_v7  ;;  %vm313_vm3 = vcmask 850944   ;;  %vm331_vm4 = vcmask 842752   ;;  %vm349_vm5 = vcmask 834560   ;;  %vm367_vm6 = vcmask 654336  }
   0xf   : > { %s9019_s30 = smov 104   ;;  %s9020_s7 = smov 103   ;;  %8985 = vset.pattern.permute.xlu1 %v12513_v7  ;;  %8984 = vset.pattern.permute.xlu0 %v12513_v7  ;;  %vm385_vm7 = vcmask 646144   ;;  %vm403_vm8 = vcmask 637952   ;;  %vm2059_vm9 = vcmask 588800   ;;  %vm2960_vm10 = vcmask 203776  }
  0x10   : > { %s12541_s23 = smov (!%p247_p3, %s8589_s23), 15  ;;  %s9021_s8 = smov 102   ;;  %2961 = vst.msk [vmem:[#allocation4] sm:$0xff] %vm2960_vm10, %v12513_v7  ;;  %2962 = vst.msk [vmem:[#allocation4 + $0x20] sm:$0xff] %vm2960_vm10, %v12513_v7  ;;  %vm2963_vm11 = vcmask 589000   ;;  %vm3003_vm12 = vcmask 1047752  }
  0x11   : > { %s8891_s24 = sshll.u32 %s12541_s23, 4  ;;  %s9022_s9 = smov 80   ;;  %3061 = vst.msk [vmem:[#allocation4 + $0x40] sm:$0xff] %vm2960_vm10, %v12513_v7  ;;  %3062 = vst.msk [vmem:[#allocation4 + $0x60] sm:$0xff] %vm2960_vm10, %v12513_v7  ;;  %vm7445_vm13 = vcmask 261120  }
  0x12   : > { %s9076_s27 = scalar_lea.vmem %s12506_s0, %s8891_s24  ;;  %s9023_s10 = smov 79   ;;  %3158 = vst.msk [vmem:[#allocation4 + $0x80] sm:$0xff] %vm2960_vm10, %v12513_v7  ;;  %3159 = vst.msk [vmem:[#allocation4 + $0xa0] sm:$0xff] %vm2960_vm10, %v12513_v7 }
  0x13   : > { %v9079_v0 = vld [vmem:[%s9076_s27] sm:$0xff]  ;;  %v8595_v1 = vld [vmem:[%s9076_s27 + $0x10] sm:$0xff]  ;;  %v285_v2 = vld [vmem:[%s9076_s27 + $0x8] sm:$0xff]  ;;  %s9024_s11 = smov 78   ;;  %s9026_s16 = smov 25   ;;  %3255 = vst.msk [vmem:[#allocation4 + $0xc0] sm:$0xff] %vm2960_vm10, %v12513_v7 }
  0x14   : > { %288 = vrot.lane.b32.xlu1 %v9079_v0, %s9017_s28  ;;  %269 = vrot.lane.b32.xlu0 %v9079_v0, %s9018_s29  ;;  %v9088_v3 = vld [vmem:[%s9076_s27 + $0x20] sm:$0xff]  ;;  %413 = vst [vmem:[#allocation2 + $0xc] sm:$0xff] %v8595_v1  ;;  %v262_v4 = vld [vmem:[%s9076_s27 + $0x8] sm:$0xf]  ;;  %3256 = vst.msk [vmem:[#allocation4 + $0xe0] sm:$0xff] %vm2960_vm10, %v12513_v7 }
  0x15   : > { %v8594_v5 = vld [vmem:[%s9076_s27 + $0x18] sm:$0xf]  ;;  %264 = vst [vmem:[#allocation2 + $0x8] sm:$0xf] %v262_v4  ;;  %v8614_v8 = vld [vmem:[%s9076_s27 + $0x28] sm:$0xff]  ;;  %v8629_v10 = vld [vmem:[%s9076_s27 + $0x30] sm:$0xff] }
  0x16   : > { %414 = vst [vmem:[#allocation2 + $0x14] sm:$0xf] %v8594_v5  ;;  %v8596_v6 = vld [vmem:[%s9076_s27 + $0x18] sm:$0xff]  ;;  %v8612_v9 = vld [vmem:[%s9076_s27 + $0x28] sm:$0xf]  ;;  %695 = vst [vmem:[#allocation2 + $0x24] sm:$0xff] %v8629_v10 }
  0x17   : > { %555 = vst [vmem:[#allocation2 + $0x20] sm:$0xf] %v8612_v9  ;;  %v8630_v11 = vld [vmem:[%s9076_s27 + $0x38] sm:$0xf]  ;;  %v8631_v13 = vld [vmem:[%s9076_s27 + $0x30] sm:$0xff]  ;;  %v8647_v22 = vld [vmem:[%s9076_s27 + $0x40] sm:$0xff] }
  0x18   : > { %290 = vrot.lane.b32.xlu1 %v285_v2, %s9017_s28  ;;  %271 = vrot.lane.b32.xlu0 %v285_v2, %s9018_s29  ;;  %696 = vst [vmem:[#allocation2 + $0x2c] sm:$0xf] %v8630_v11  ;;  %v8632_v12 = vld [vmem:[%s9076_s27 + $0x38] sm:$0xff]  ;;  %836 = vst [vmem:[#allocation2 + $0x30] sm:$0xff] %v8647_v22  ;;  %v9191_v37 = vld [vmem:[%s9076_s27 + $0x48] sm:$0xff] }
  0x19   : > { %v9194_v38 = vld [vmem:[%s9076_s27 + $0x40] sm:$0xff]  ;;  %3352 = vst.msk [vmem:[#allocation4 + $0x100] sm:$0xff] %vm2960_vm10, %v12513_v7  ;;  %3353 = vst.msk [vmem:[#allocation4 + $0x120] sm:$0xff] %vm2960_vm10, %v12513_v7 }
  0x1a   : > { %3449 = vst.msk [vmem:[#allocation4 + $0x140] sm:$0xff] %vm2960_vm10, %v12513_v7  ;;  %3450 = vst.msk [vmem:[#allocation4 + $0x160] sm:$0xff] %vm2960_vm10, %v12513_v7 }
  0x1b   : > { %3546 = vst.msk [vmem:[#allocation4 + $0x180] sm:$0xff] %vm2960_vm10, %v12513_v7  ;;  %3547 = vst.msk [vmem:[#allocation4 + $0x1a0] sm:$0xff] %vm2960_vm10, %v12513_v7 }
  0x1c   : > { %308 = vrot.lane.b32.xlu1 %v285_v2, %s9019_s30  ;;  %306 = vrot.lane.b32.xlu0 %v9079_v0, %s9019_s30  ;;  %3643 = vst.msk [vmem:[#allocation4 + $0x1c0] sm:$0xff] %vm2960_vm10, %v12513_v7  ;;  %3644 = vst.msk [vmem:[#allocation4 + $0x1e0] sm:$0xff] %vm2960_vm10, %v12513_v7 }
  0x1d   : > { %2964 = vst.msk [vmem:[#allocation4 + $0x18] sm:$0xff] %vm2963_vm11, %v12513_v7  ;;  %2965 = vst.msk [vmem:[#allocation4 + $0x38] sm:$0xff] %vm2963_vm11, %v12513_v7 }
  0x1e   : > { %3063 = vst.msk [vmem:[#allocation4 + $0x58] sm:$0xff] %vm2963_vm11, %v12513_v7  ;;  %3064 = vst.msk [vmem:[#allocation4 + $0x78] sm:$0xff] %vm2963_vm11, %v12513_v7 }
  0x1f   : > { %3160 = vst.msk [vmem:[#allocation4 + $0x98] sm:$0xff] %vm2963_vm11, %v12513_v7  ;;  %3161 = vst.msk [vmem:[#allocation4 + $0xb8] sm:$0xff] %vm2963_vm11, %v12513_v7 }
  0x20   : > { %326 = vrot.lane.b32.xlu1 %v285_v2, %s9020_s7  ;;  %324 = vrot.lane.b32.xlu0 %v9079_v0, %s9020_s7  ;;  %3257 = vst.msk [vmem:[#allocation4 + $0xd8] sm:$0xff] %vm2963_vm11, %v12513_v7  ;;  %3258 = vst.msk [vmem:[#allocation4 + $0xf8] sm:$0xff] %vm2963_vm11, %v12513_v7 }
  0x21   : > { %3354 = vst.msk [vmem:[#allocation4 + $0x118] sm:$0xff] %vm2963_vm11, %v12513_v7  ;;  %3355 = vst.msk [vmem:[#allocation4 + $0x138] sm:$0xff] %vm2963_vm11, %v12513_v7 }
  0x22   : > { %3451 = vst.msk [vmem:[#allocation4 + $0x158] sm:$0xff] %vm2963_vm11, %v12513_v7  ;;  %3452 = vst.msk [vmem:[#allocation4 + $0x178] sm:$0xff] %vm2963_vm11, %v12513_v7 }
  0x23   : > { %3548 = vst.msk [vmem:[#allocation4 + $0x198] sm:$0xff] %vm2963_vm11, %v12513_v7  ;;  %3549 = vst.msk [vmem:[#allocation4 + $0x1b8] sm:$0xff] %vm2963_vm11, %v12513_v7 }
  0x24   : > { %344 = vrot.lane.b32.xlu1 %v285_v2, %s9021_s8  ;;  %342 = vrot.lane.b32.xlu0 %v9079_v0, %s9021_s8  ;;  %3645 = vst.msk [vmem:[#allocation4 + $0x1d8] sm:$0xff] %vm2963_vm11, %v12513_v7  ;;  %3646 = vst.msk [vmem:[#allocation4 + $0x1f8] sm:$0xff] %vm2963_vm11, %v12513_v7 }
  0x28   : > { %362 = vrot.lane.b32.xlu1 %v285_v2, %s9022_s9  ;;  %360 = vrot.lane.b32.xlu0 %v9079_v0, %s9022_s9 }
  0x2c   : > { %380 = vrot.lane.b32.xlu1 %v285_v2, %s9023_s10  ;;  %378 = vrot.lane.b32.xlu0 %v9079_v0, %s9023_s10 }
  0x30   : > { %398 = vrot.lane.b32.xlu1 %v285_v2, %s9024_s11  ;;  %396 = vrot.lane.b32.xlu0 %v9079_v0, %s9024_s11 }
  0x34   : > { %421 = vrot.lane.b32.xlu1 %v8596_v6, %s9018_s29  ;;  %419 = vrot.lane.b32.xlu0 %v8595_v1, %s9018_s29 }
  0x38   : > { %438 = vrot.lane.b32.xlu1 %v8596_v6, %s9017_s28  ;;  %436 = vrot.lane.b32.xlu0 %v8595_v1, %s9017_s28 }
  0x3c   : > { %455 = vrot.lane.b32.xlu1 %v8596_v6, %s9019_s30  ;;  %453 = vrot.lane.b32.xlu0 %v8595_v1, %s9019_s30 }
  0x40   : > { %472 = vrot.lane.b32.xlu1 %v8596_v6, %s9020_s7  ;;  %470 = vrot.lane.b32.xlu0 %v8595_v1, %s9020_s7 }
  0x44   : > { %489 = vrot.lane.b32.xlu1 %v8596_v6, %s9021_s8  ;;  %487 = vrot.lane.b32.xlu0 %v8595_v1, %s9021_s8 }
  0x48   : > { %506 = vrot.lane.b32.xlu1 %v8596_v6, %s9022_s9  ;;  %504 = vrot.lane.b32.xlu0 %v8595_v1, %s9022_s9 }
  0x4c   : > { %523 = vrot.lane.b32.xlu1 %v8596_v6, %s9023_s10  ;;  %521 = vrot.lane.b32.xlu0 %v8595_v1, %s9023_s10 }
  0x50   : > { %540 = vrot.lane.b32.xlu1 %v8596_v6, %s9024_s11  ;;  %538 = vrot.lane.b32.xlu0 %v8595_v1, %s9024_s11 }
  0x54   : > { %562 = vrot.lane.b32.xlu1 %v8614_v8, %s9018_s29  ;;  %560 = vrot.lane.b32.xlu0 %v9088_v3, %s9018_s29 }
  0x58   : > { %579 = vrot.lane.b32.xlu1 %v8614_v8, %s9017_s28  ;;  %577 = vrot.lane.b32.xlu0 %v9088_v3, %s9017_s28 }
  0x5c   : > { %596 = vrot.lane.b32.xlu1 %v8614_v8, %s9019_s30  ;;  %594 = vrot.lane.b32.xlu0 %v9088_v3, %s9019_s30 }
  0x60   : > { %613 = vrot.lane.b32.xlu1 %v8614_v8, %s9020_s7  ;;  %611 = vrot.lane.b32.xlu0 %v9088_v3, %s9020_s7 }
  0x64   : > { %630 = vrot.lane.b32.xlu1 %v8614_v8, %s9021_s8  ;;  %628 = vrot.lane.b32.xlu0 %v9088_v3, %s9021_s8 }
  0x68   : > { %647 = vrot.lane.b32.xlu1 %v8614_v8, %s9022_s9  ;;  %645 = vrot.lane.b32.xlu0 %v9088_v3, %s9022_s9 }
  0x6c   : > { %664 = vrot.lane.b32.xlu1 %v8614_v8, %s9023_s10  ;;  %662 = vrot.lane.b32.xlu0 %v9088_v3, %s9023_s10 }
  0x70   : > { %681 = vrot.lane.b32.xlu1 %v8614_v8, %s9024_s11  ;;  %679 = vrot.lane.b32.xlu0 %v9088_v3, %s9024_s11 }
  0x74   : > { %703 = vrot.lane.b32.xlu1 %v8632_v12, %s9018_s29  ;;  %701 = vrot.lane.b32.xlu0 %v8631_v13, %s9018_s29 }
  0x78   : > { %720 = vrot.lane.b32.xlu1 %v8632_v12, %s9017_s28  ;;  %718 = vrot.lane.b32.xlu0 %v8631_v13, %s9017_s28 }
  0x7c   : > { %737 = vrot.lane.b32.xlu1 %v8632_v12, %s9019_s30  ;;  %735 = vrot.lane.b32.xlu0 %v8631_v13, %s9019_s30 }
  0x80   : > { %754 = vrot.lane.b32.xlu1 %v8632_v12, %s9020_s7  ;;  %752 = vrot.lane.b32.xlu0 %v8631_v13, %s9020_s7 }
  0x84   : > { %771 = vrot.lane.b32.xlu1 %v8632_v12, %s9021_s8  ;;  %769 = vrot.lane.b32.xlu0 %v8631_v13, %s9021_s8 }
  0x86   : > { %v289_v14 = vpop.permute.xlu1 %288  ;;  %v270_v15 = vpop.permute.xlu0 %269 }
  0x87   : > { %v292_v18 = vrot.slane %v289_v14, 4  ;;  %v273_v19 = vrot.slane %v270_v15, 4 }
  0x88   : > { %788 = vrot.lane.b32.xlu1 %v8632_v12, %s9022_s9  ;;  %786 = vrot.lane.b32.xlu0 %v8631_v13, %s9022_s9 }
  0x8a   : > { %v291_v16 = vpop.permute.xlu1 %290  ;;  %v272_v17 = vpop.permute.xlu0 %271 }
  0x8b   : > { %v293_v20 = vrot.slane %v291_v16, 4  ;;  %v274_v21 = vrot.slane %v272_v17, 4 }
  0x8c   : > { %805 = vrot.lane.b32.xlu1 %v8632_v12, %s9023_s10  ;;  %803 = vrot.lane.b32.xlu0 %v8631_v13, %s9023_s10 }
  0x8d   : > { %v294_v23 = vsel %vm275_vm0, %v292_v18, %v293_v20  ;;  %v297_v24 = vsel %vm295_vm1, %v291_v16, %v293_v20  ;;  %v276_v25 = vsel %vm275_vm0, %v273_v19, %v274_v21  ;;  %v279_v26 = vsel %vm277_vm2, %v272_v17, %v274_v21 }
  0x8e   : > { %v296_v27 = vsel %vm295_vm1, %v289_v14, %v294_v23  ;;  %301 = vst [vmem:[#allocation2 + $0xc8] sm:$0xf] %v297_v24  ;;  %v278_v28 = vsel %vm277_vm2, %v270_v15, %v276_v25  ;;  %283 = vst [vmem:[#allocation2 + $0x68] sm:$0xf] %v279_v26  ;;  %v309_v29 = vpop.permute.xlu1 %308  ;;  %v307_v30 = vpop.permute.xlu0 %306 }
  0x8f   : > { %v311_v31 = vrot.slane %v309_v29, 4  ;;  %v310_v32 = vrot.slane %v307_v30, 4  ;;  %v8722_v33 = vcombine.high %v9079_v0, %v278_v28  ;;  %v8721_v34 = vcombine.low %v9079_v0, %v278_v28  ;;  %v9243_v28 = vld [vmem:[%s12507_s1] sm:$0xff]  }
  0x90   : > { %822 = vrot.lane.b32.xlu1 %v8632_v12, %s9024_s11  ;;  %820 = vrot.lane.b32.xlu0 %v8631_v13, %s9024_s11 }
  0x91   : > { %v315_v35 = vsel %vm313_vm3, %v309_v29, %v311_v31  ;;  %v312_v36 = vsel %vm275_vm0, %v310_v32, %v311_v31  ;;  %2139 = vmatprep.subr.bf16.mxu0 %v8722_v33 }
  0x92   : > { %319 = vst [vmem:[#allocation2 + $0x128] sm:$0xf] %v315_v35  ;;  %v314_v39 = vsel %vm313_vm3, %v307_v30, %v312_v36  ;;  %v327_v40 = vpop.permute.xlu1 %326  ;;  %v325_v41 = vpop.permute.xlu0 %324  ;;  %2140 = vmatpush1.bf16.msra.mxu0 %v8721_v34  ;;  %v8648_v34 = vld [vmem:[%s9076_s27 + $0x48] sm:$0xf]  ;;  %v8665_v35 = vld [vmem:[%s9076_s27 + $0x50] sm:$0xff] }
  0x93   : > { %v329_v42 = vrot.slane %v327_v40, 4  ;;  %v328_v43 = vrot.slane %v325_v41, 4  ;;  %v8746_v44 = vcombine.high %v296_v27, %v314_v39  ;;  %v8745_v45 = vcombine.low %v296_v27, %v314_v39  ;;  %837 = vst [vmem:[#allocation2 + $0x38] sm:$0xf] %v8648_v34  ;;  %977 = vst [vmem:[#allocation2 + $0x3c] sm:$0xff] %v8665_v35 }
  0x94   : > { %844 = vrot.lane.b32.xlu1 %v9191_v37, %s9018_s29  ;;  %842 = vrot.lane.b32.xlu0 %v9194_v38, %s9018_s29 }
  0x95   : > { %v333_v46 = vsel %vm331_vm4, %v327_v40, %v329_v42  ;;  %v330_v47 = vsel %vm275_vm0, %v328_v43, %v329_v42  ;;  %2141 = vmatprep.subr.bf16.mxu0 %v8746_v44  ;;  %v8666_v40 = vld [vmem:[%s9076_s27 + $0x58] sm:$0xf] }
  0x96   : > { %337 = vst [vmem:[#allocation2 + $0x188] sm:$0xf] %v333_v46  ;;  %v332_v48 = vsel %vm331_vm4, %v325_v41, %v330_v47  ;;  %v345_v49 = vpop.permute.xlu1 %344  ;;  %v343_v50 = vpop.permute.xlu0 %342  ;;  %2142 = vmatpush1.bf16.msra.mxu0 %v8745_v45  ;;  %978 = vst [vmem:[#allocation2 + $0x44] sm:$0xf] %v8666_v40  ;;  %v1402_v46 = vld [vmem:[#allocation2 + $0x8] sm:$0xff]  ;;  %v1403_v47 = vld [vmem:[#allocation2 + $0x10] sm:$0xff] }
  0x97   : > { %v347_v51 = vrot.slane %v345_v49, 4  ;;  %v346_v52 = vrot.slane %v343_v50, 4 }
  0x98   : > { %861 = vrot.lane.b32.xlu1 %v9191_v37, %s9017_s28  ;;  %859 = vrot.lane.b32.xlu0 %v9194_v38, %s9017_s28 }
  0x99   : > { %v351_v53 = vsel %vm349_vm5, %v345_v49, %v347_v51  ;;  %v348_v54 = vsel %vm275_vm0, %v346_v52, %v347_v51  ;;  %v9269_v51 = vld [vmem:[%s9076_s27 + $0x50] sm:$0xff]  ;;  %v9274_v52 = vld [vmem:[%s12507_s1 + $0x8] sm:$0xff]  }
  0x9a   : > { %355 = vst [vmem:[#allocation2 + $0x1e8] sm:$0xf] %v351_v53  ;;  %v350_v55 = vsel %vm349_vm5, %v343_v50, %v348_v54  ;;  %v363_v56 = vpop.permute.xlu1 %362  ;;  %v361_v57 = vpop.permute.xlu0 %360  ;;  %v9266_v50 = vld [vmem:[%s9076_s27 + $0x58] sm:$0xff] }
  0x9b   : > { %v365_v58 = vrot.slane %v363_v56, 4  ;;  %v364_v59 = vrot.slane %v361_v57, 4  ;;  %v8770_v60 = vcombine.high %v332_v48, %v350_v55  ;;  %v8769_v61 = vcombine.low %v332_v48, %v350_v55 }
  0x9c   : > { %878 = vrot.lane.b32.xlu1 %v9191_v37, %s9019_s30  ;;  %876 = vrot.lane.b32.xlu0 %v9194_v38, %s9019_s30 }
  0x9d   : > { %v369_v62 = vsel %vm367_vm6, %v363_v56, %v365_v58  ;;  %v366_v63 = vsel %vm275_vm0, %v364_v59, %v365_v58  ;;  %2143 = vmatprep.subr.bf16.mxu0 %v8770_v60 }
  0x9e   : > { %373 = vst [vmem:[#allocation2 + $0x248] sm:$0xf] %v369_v62  ;;  %v368_v0 = vsel %vm367_vm6, %v361_v57, %v366_v63  ;;  %v381_v1 = vpop.permute.xlu1 %380  ;;  %v379_v2 = vpop.permute.xlu0 %378  ;;  %2144 = vmatpush1.bf16.msra.mxu0 %v8769_v61 }
  0x9f   : > { %v383_v4 = vrot.slane %v381_v1, 4  ;;  %v382_v5 = vrot.slane %v379_v2, 4 }
  0xa0   : > { %895 = vrot.lane.b32.xlu1 %v9191_v37, %s9020_s7  ;;  %893 = vrot.lane.b32.xlu0 %v9194_v38, %s9020_s7 }
  0xa1   : > { %v387_v6 = vsel %vm385_vm7, %v381_v1, %v383_v4  ;;  %v384_v8 = vsel %vm275_vm0, %v382_v5, %v383_v4 }
  0xa2   : > { %391 = vst [vmem:[#allocation2 + $0x2a8] sm:$0xf] %v387_v6  ;;  %v386_v9 = vsel %vm385_vm7, %v379_v2, %v384_v8  ;;  %v399_v10 = vpop.permute.xlu1 %398  ;;  %v397_v11 = vpop.permute.xlu0 %396 }
  0xa3   : > { %v401_v12 = vrot.slane %v399_v10, 4  ;;  %v400_v13 = vrot.slane %v397_v11, 4  ;;  %v8794_v14 = vcombine.high %v368_v0, %v386_v9  ;;  %v8793_v15 = vcombine.low %v368_v0, %v386_v9 }
  0xa4   : > { %912 = vrot.lane.b32.xlu1 %v9191_v37, %s9021_s8  ;;  %910 = vrot.lane.b32.xlu0 %v9194_v38, %s9021_s8 }
  0xa5   : > { %v405_v16 = vsel %vm403_vm8, %v399_v10, %v401_v12  ;;  %v402_v17 = vsel %vm275_vm0, %v400_v13, %v401_v12  ;;  %2145 = vmatprep.subr.bf16.mxu0 %v8794_v14 }
  0xa6   : > { %409 = vst [vmem:[#allocation2 + $0x308] sm:$0xf] %v405_v16  ;;  %v404_v18 = vsel %vm403_vm8, %v397_v11, %v402_v17  ;;  %v422_v19 = vpop.permute.xlu1 %421  ;;  %v420_v20 = vpop.permute.xlu0 %419  ;;  %2146 = vmatpush1.bf16.msra.mxu0 %v8793_v15 }
  0xa7   : > { %v424_v21 = vrot.slane %v422_v19, 4  ;;  %v423_v22 = vrot.slane %v420_v20, 4  ;;  %v8818_v23 = vcombine.high %v404_v18, %v404_v18  ;;  %v8817_v24 = vcombine.low %v404_v18, %v404_v18 }
  0xa8   : > { %929 = vrot.lane.b32.xlu1 %v9191_v37, %s9022_s9  ;;  %927 = vrot.lane.b32.xlu0 %v9194_v38, %s9022_s9 }
  0xa9   : > { %v427_v25 = vsel %vm277_vm2, %v422_v19, %v424_v21  ;;  %v425_v26 = vsel %vm275_vm0, %v423_v22, %v424_v21  ;;  %8841 = vmatprep.subr.msk.bf16.mxu0 %vm275_vm0, %v8818_v23  ;;  %v2068_v27 = vsel %vm275_vm0, %v8817_v24, 0 }
  0xaa   : > { %431 = vst [vmem:[#allocation2 + $0x74] sm:$0xf] %v427_v25  ;;  %v426_v29 = vsel %vm277_vm2, %v420_v20, %v425_v26  ;;  %v439_v30 = vpop.permute.xlu1 %438  ;;  %v437_v31 = vpop.permute.xlu0 %436  ;;  %2148 = vmatpush1.bf16.msra.mxu0 %v2068_v27 }
  0xab   : > { %430 = vst [vmem:[#allocation2 + $0x6c] sm:$0xff] %v426_v29  ;;  %v441_v32 = vrot.slane %v439_v30, 4  ;;  %v440_v33 = vrot.slane %v437_v31, 4 }
  0xac   : > { %946 = vrot.lane.b32.xlu1 %v9191_v37, %s9023_s10  ;;  %944 = vrot.lane.b32.xlu0 %v9194_v38, %s9023_s10 }
  0xad   : > { %v444_v36 = vsel %vm295_vm1, %v439_v30, %v441_v32  ;;  %v442_v39 = vsel %vm275_vm0, %v440_v33, %v441_v32  ;;  %8842 = vmatmul.mubr.msk.bf16.vlgmr.msra.gmra.mrb[0].mxu0 %vm2059_vm9, %v9243_v28 }
  0xae   : > { %448 = vst [vmem:[#allocation2 + $0xd4] sm:$0xf] %v444_v36  ;;  %v443_v41 = vsel %vm295_vm1, %v437_v31, %v442_v39  ;;  %v456_v42 = vpop.permute.xlu1 %455  ;;  %v454_v43 = vpop.permute.xlu0 %453  ;;  %2181 = vmatprep.mubr.bf16.mxu0 %v12513_v7 }
  0xaf   : > { %447 = vst [vmem:[#allocation2 + $0xcc] sm:$0xff] %v443_v41  ;;  %v458_v44 = vrot.slane %v456_v42, 4  ;;  %v457_v45 = vrot.slane %v454_v43, 4 }
  0xb0   : > { %963 = vrot.lane.b32.xlu1 %v9191_v37, %s9024_s11  ;;  %961 = vrot.lane.b32.xlu0 %v9194_v38, %s9024_s11 }
  0xb1   : > { %v461_v48 = vsel %vm313_vm3, %v456_v42, %v458_v44  ;;  %v459_v49 = vsel %vm275_vm0, %v457_v45, %v458_v44 }
  0xb2   : > { %465 = vst [vmem:[#allocation2 + $0x134] sm:$0xf] %v461_v48  ;;  %v460_v37 = vsel %vm313_vm3, %v454_v43, %v459_v49  ;;  %v473_v53 = vpop.permute.xlu1 %472  ;;  %v471_v38 = vpop.permute.xlu0 %470  ;;  %v1414_v54 = vld [vmem:[#allocation2 + $0x68] sm:$0xff]  ;;  %v1415_v55 = vld [vmem:[#allocation2 + $0x70] sm:$0xff] }
  0xb3   : > { %464 = vst [vmem:[#allocation2 + $0x12c] sm:$0xff] %v460_v37  ;;  %v475_v56 = vrot.slane %v473_v53, 4  ;;  %v474_v57 = vrot.slane %v471_v38, 4  ;;  %v8724_v58 = vcombine.high %v1402_v46, %v1414_v54  ;;  %v8725_v59 = vcombine.low %v1403_v47, %v1415_v55 }
  0xb4   : > { %985 = vrot.lane.b32.xlu1 %v9266_v50, %s9018_s29  ;;  %983 = vrot.lane.b32.xlu0 %v9269_v51, %s9018_s29  ;;  %v8726_v60 = vcombine.high %v1403_v47, %v1415_v55  ;;  %v8723_v61 = vcombine.low %v1402_v46, %v1414_v54 }
  0xb5   : > { %v478_v62 = vsel %vm331_vm4, %v473_v53, %v475_v56  ;;  %v476_v63 = vsel %vm275_vm0, %v474_v57, %v475_v56  ;;  %2192 = vmatprep.subr.bf16.mxu1 %v8724_v58  ;;  %8843 = vmatmul.mubr.msk.bf16.gmra.mrb[4].mxu0 %vm2059_vm9, %v9274_v52 }
  0xb6   : > { %482 = vst [vmem:[#allocation2 + $0x194] sm:$0xf] %v478_v62  ;;  %v477_v0 = vsel %vm331_vm4, %v471_v38, %v476_v63  ;;  %2245 = vmatprep.subr.bf16.mxu0 %v8726_v60  ;;  %v490_v1 = vpop.permute.xlu1 %489  ;;  %v488_v2 = vpop.permute.xlu0 %487  ;;  %2193 = vmatpush1.bf16.msra.mxu1 %v8723_v61  ;;  %v1426_v9 = vld [vmem:[#allocation2 + $0xc8] sm:$0xff]  ;;  %v1427_v14 = vld [vmem:[#allocation2 + $0xd0] sm:$0xff] }
  0xb7   : > { %481 = vst [vmem:[#allocation2 + $0x18c] sm:$0xff] %v477_v0  ;;  %v492_v4 = vrot.slane %v490_v1, 4  ;;  %v491_v5 = vrot.slane %v488_v2, 4  ;;  %2246 = vmatpush1.bf16.msra.mxu0 %v8725_v59  ;;  %2277 = vmatprep.mubr.bf16.mxu0 %v12513_v7 }
  0xb8   : > { %1002 = vrot.lane.b32.xlu1 %v9266_v50, %s9017_s28  ;;  %1000 = vrot.lane.b32.xlu0 %v9269_v51, %s9017_s28 }
  0xb9   : > { %v495_v6 = vsel %vm349_vm5, %v490_v1, %v492_v4  ;;  %v493_v8 = vsel %vm275_vm0, %v491_v5, %v492_v4 }
  0xba   : > { %499 = vst [vmem:[#allocation2 + $0x1f4] sm:$0xf] %v495_v6  ;;  %v494_v10 = vsel %vm349_vm5, %v488_v2, %v493_v8  ;;  %v507_v11 = vpop.permute.xlu1 %506  ;;  %v505_v12 = vpop.permute.xlu0 %504  ;;  %v1438_v13 = vld [vmem:[#allocation2 + $0x128] sm:$0xff]  ;;  %v1439_v15 = vld [vmem:[#allocation2 + $0x130] sm:$0xff]  ;;  %v8683_v8 = vld [vmem:[%s9076_s27 + $0x60] sm:$0xff] }
  0xbb   : > { %498 = vst [vmem:[#allocation2 + $0x1ec] sm:$0xff] %v494_v10  ;;  %v509_v16 = vrot.slane %v507_v11, 4  ;;  %v508_v17 = vrot.slane %v505_v12, 4  ;;  %v8748_v18 = vcombine.high %v1426_v9, %v1438_v13  ;;  %v8749_v19 = vcombine.low %v1427_v14, %v1439_v15  ;;  %1118 = vst [vmem:[#allocation2 + $0x48] sm:$0xff] %v8683_v8 }
  0xbc   : > { %1019 = vrot.lane.b32.xlu1 %v9266_v50, %s9019_s30  ;;  %1017 = vrot.lane.b32.xlu0 %v9269_v51, %s9019_s30  ;;  %v8750_v20 = vcombine.high %v1427_v14, %v1439_v15  ;;  %v8747_v21 = vcombine.low %v1426_v9, %v1438_v13 }
  0xbd   : > { %v512_v22 = vsel %vm367_vm6, %v507_v11, %v509_v16  ;;  %v510_v23 = vsel %vm275_vm0, %v508_v17, %v509_v16  ;;  %2194 = vmatprep.subr.bf16.mxu1 %v8748_v18 }
  0xbe   : > { %516 = vst [vmem:[#allocation2 + $0x254] sm:$0xf] %v512_v22  ;;  %v511_v24 = vsel %vm367_vm6, %v505_v12, %v510_v23  ;;  %2247 = vmatprep.subr.bf16.mxu0 %v8750_v20  ;;  %v524_v25 = vpop.permute.xlu1 %523  ;;  %v522_v26 = vpop.permute.xlu0 %521  ;;  %2195 = vmatpush1.bf16.msra.mxu1 %v8747_v21  ;;  %v1450_v32 = vld [vmem:[#allocation2 + $0x188] sm:$0xff]  ;;  %v1451_v39 = vld [vmem:[#allocation2 + $0x190] sm:$0xff] }
  0xbf   : > { %515 = vst [vmem:[#allocation2 + $0x24c] sm:$0xff] %v511_v24  ;;  %v526_v27 = vrot.slane %v524_v25, 4  ;;  %v525_v29 = vrot.slane %v522_v26, 4  ;;  %2248 = vmatpush1.bf16.msra.mxu0 %v8749_v19  ;;  %v9343_v24 = vld [vmem:[%s9076_s27 + $0x68] sm:$0xff] }
  0xc0   : > { %1036 = vrot.lane.b32.xlu1 %v9266_v50, %s9020_s7  ;;  %1034 = vrot.lane.b32.xlu0 %v9269_v51, %s9020_s7 }
  0xc1   : > { %v529_v30 = vsel %vm385_vm7, %v524_v25, %v526_v27  ;;  %v527_v31 = vsel %vm275_vm0, %v525_v29, %v526_v27  ;;  %v9346_v25 = vld [vmem:[%s9076_s27 + $0x60] sm:$0xff] }
  0xc2   : > { %533 = vst [vmem:[#allocation2 + $0x2b4] sm:$0xf] %v529_v30  ;;  %v528_v33 = vsel %vm385_vm7, %v522_v26, %v527_v31  ;;  %v541_v34 = vpop.permute.xlu1 %540  ;;  %v539_v35 = vpop.permute.xlu0 %538  ;;  %v1462_v36 = vld [vmem:[#allocation2 + $0x1e8] sm:$0xff]  ;;  %v1463_v40 = vld [vmem:[#allocation2 + $0x1f0] sm:$0xff] }
  0xc3   : > { %532 = vst [vmem:[#allocation2 + $0x2ac] sm:$0xff] %v528_v33  ;;  %v543_v41 = vrot.slane %v541_v34, 4  ;;  %v542_v42 = vrot.slane %v539_v35, 4  ;;  %v8772_v43 = vcombine.high %v1450_v32, %v1462_v36  ;;  %v8773_v44 = vcombine.low %v1451_v39, %v1463_v40 }
  0xc4   : > { %1053 = vrot.lane.b32.xlu1 %v9266_v50, %s9021_s8  ;;  %1051 = vrot.lane.b32.xlu0 %v9269_v51, %s9021_s8  ;;  %v8774_v45 = vcombine.high %v1451_v39, %v1463_v40  ;;  %v8771_v46 = vcombine.low %v1450_v32, %v1462_v36 }
  0xc5   : > { %v546_v47 = vsel %vm403_vm8, %v541_v34, %v543_v41  ;;  %v544_v48 = vsel %vm275_vm0, %v542_v42, %v543_v41  ;;  %2196 = vmatprep.subr.bf16.mxu1 %v8772_v43 }
  0xc6   : > { %550 = vst [vmem:[#allocation2 + $0x314] sm:$0xf] %v546_v47  ;;  %v545_v49 = vsel %vm403_vm8, %v539_v35, %v544_v48  ;;  %2249 = vmatprep.subr.bf16.mxu0 %v8774_v45  ;;  %v563_v37 = vpop.permute.xlu1 %562  ;;  %v561_v53 = vpop.permute.xlu0 %560  ;;  %2197 = vmatpush1.bf16.msra.mxu1 %v8771_v46  ;;  %v1474_v57 = vld [vmem:[#allocation2 + $0x248] sm:$0xff]  ;;  %v1475_v62 = vld [vmem:[#allocation2 + $0x250] sm:$0xff] }
  0xc7   : > { %549 = vst [vmem:[#allocation2 + $0x30c] sm:$0xff] %v545_v49  ;;  %v565_v38 = vrot.slane %v563_v37, 4  ;;  %v564_v54 = vrot.slane %v561_v53, 4  ;;  %2250 = vmatpush1.bf16.msra.mxu0 %v8773_v44 }
  0xc8   : > { %1070 = vrot.lane.b32.xlu1 %v9266_v50, %s9022_s9  ;;  %1068 = vrot.lane.b32.xlu0 %v9269_v51, %s9022_s9 }
  0xc9   : > { %v568_v55 = vsel %vm277_vm2, %v563_v37, %v565_v38  ;;  %v566_v56 = vsel %vm275_vm0, %v564_v54, %v565_v38 }
  0xca   : > { %572 = vst [vmem:[#allocation2 + $0x80] sm:$0xf] %v568_v55  ;;  %v9322_v58 = vsel %vm277_vm2, %v561_v53, %v566_v56  ;;  %v580_v59 = vpop.permute.xlu1 %579  ;;  %v578_v60 = vpop.permute.xlu0 %577  ;;  %v1486_v61 = vld [vmem:[#allocation2 + $0x2a8] sm:$0xff]  ;;  %v1487_v63 = vld [vmem:[#allocation2 + $0x2b0] sm:$0xff] }
  0xcb   : > { %v582_v0 = vrot.slane %v580_v59, 4  ;;  %v581_v1 = vrot.slane %v578_v60, 4  ;;  %v8796_v2 = vcombine.high %v1474_v57, %v1486_v61  ;;  %v8797_v4 = vcombine.low %v1475_v62, %v1487_v63 }
  0xcc   : > { %1087 = vrot.lane.b32.xlu1 %v9266_v50, %s9023_s10  ;;  %1085 = vrot.lane.b32.xlu0 %v9269_v51, %s9023_s10  ;;  %v8798_v5 = vcombine.high %v1475_v62, %v1487_v63  ;;  %v8795_v6 = vcombine.low %v1474_v57, %v1486_v61  ;;  %v8728_v32 = vcombine.high %v9088_v3, %v9322_v58 }
  0xcd   : > { %v585_v9 = vsel %vm295_vm1, %v580_v59, %v582_v0  ;;  %v583_v10 = vsel %vm275_vm0, %v581_v1, %v582_v0  ;;  %2198 = vmatprep.subr.bf16.mxu1 %v8796_v2  ;;  %v8727_v35 = vcombine.low %v9088_v3, %v9322_v58 }
  0xce   : > { %589 = vst [vmem:[#allocation2 + $0xe0] sm:$0xf] %v585_v9  ;;  %v9332_v11 = vsel %vm295_vm1, %v578_v60, %v583_v10  ;;  %2251 = vmatprep.subr.bf16.mxu0 %v8798_v5  ;;  %v597_v12 = vpop.permute.xlu1 %596  ;;  %v595_v13 = vpop.permute.xlu0 %594  ;;  %2199 = vmatpush1.bf16.msra.mxu1 %v8795_v6  ;;  %v1498_v14 = vld [vmem:[#allocation2 + $0x308] sm:$0xff]  ;;  %v1499_v15 = vld [vmem:[#allocation2 + $0x310] sm:$0xff] }
  0xcf   : > { %v599_v16 = vrot.slane %v597_v12, 4  ;;  %v598_v17 = vrot.slane %v595_v13, 4  ;;  %2252 = vmatpush1.bf16.msra.mxu0 %v8797_v4  ;;  %v8820_v18 = vcombine.high %v1498_v14, %v1498_v14  ;;  %v8822_v19 = vcombine.high %v1499_v15, %v1499_v15 }
  0xd0   : > { %1104 = vrot.lane.b32.xlu1 %v9266_v50, %s9024_s11  ;;  %1102 = vrot.lane.b32.xlu0 %v9269_v51, %s9024_s11  ;;  %v8819_v20 = vcombine.low %v1498_v14, %v1498_v14  ;;  %v8821_v21 = vcombine.low %v1499_v15, %v1499_v15 }
  0xd1   : > { %v602_v22 = vsel %vm313_vm3, %v597_v12, %v599_v16  ;;  %v600_v23 = vsel %vm275_vm0, %v598_v17, %v599_v16  ;;  %8844 = vmatprep.subr.msk.bf16.mxu1 %vm275_vm0, %v8820_v18  ;;  %8847 = vmatprep.subr.msk.bf16.mxu0 %vm275_vm0, %v8822_v19 }
  0xd2   : > { %606 = vst [vmem:[#allocation2 + $0x140] sm:$0xf] %v602_v22  ;;  %v601_v50 = vsel %vm313_vm3, %v595_v13, %v600_v23  ;;  %v614_v26 = vpop.permute.xlu1 %613  ;;  %v612_v27 = vpop.permute.xlu0 %611  ;;  %v2074_v51 = vsel %vm275_vm0, %v8819_v20, 0  ;;  %v2080_v29 = vsel %vm275_vm0, %v8821_v21, 0 }
  0xd3   : > { %v616_v30 = vrot.slane %v614_v26, 4  ;;  %v615_v31 = vrot.slane %v612_v27, 4  ;;  %2201 = vmatpush1.bf16.msra.mxu1 %v2074_v51  ;;  %2254 = vmatpush1.bf16.msra.mxu0 %v2080_v29  ;;  %v8752_v43 = vcombine.high %v9332_v11, %v601_v50  ;;  %v8751_v45 = vcombine.low %v9332_v11, %v601_v50 }
  0xd4   : > { %1126 = vrot.lane.b32.xlu1 %v9343_v24, %s9018_s29  ;;  %1124 = vrot.lane.b32.xlu0 %v9346_v25, %s9018_s29 }
  0xd5   : > { %v619_v33 = vsel %vm331_vm4, %v614_v26, %v616_v30  ;;  %v617_v34 = vsel %vm275_vm0, %v615_v31, %v616_v30  ;;  %2298 = vmatprep.subr.bf16.mxu1 %v8728_v32  ;;  %v8684_v26 = vld [vmem:[%s9076_s27 + $0x68] sm:$0xf]  ;;  %v8702_v30 = vld [vmem:[%s9076_s27 + $0x78] sm:$0xf] }
  0xd6   : > { %623 = vst [vmem:[#allocation2 + $0x1a0] sm:$0xf] %v619_v33  ;;  %v618_v36 = vsel %vm331_vm4, %v612_v27, %v617_v34  ;;  %v631_v39 = vpop.permute.xlu1 %630  ;;  %v629_v40 = vpop.permute.xlu0 %628  ;;  %8845 = vmatmul.mubr.msk.bf16.vlgmr.msra.gmra.mrb[0].mxu1 %vm2059_vm9, %v9243_v28  ;;  %8848 = vmatmul.mubr.msk.bf16.vlgmr.msra.gmra.mrb[8].mxu0 %vm2059_vm9, %v9243_v28  ;;  %v8701_v27 = vld [vmem:[%s9076_s27 + $0x70] sm:$0xff]  ;;  %1119 = vst [vmem:[#allocation2 + $0x50] sm:$0xf] %v8684_v26 }
  0xd7   : > { %v633_v41 = vrot.slane %v631_v39, 4  ;;  %v632_v42 = vrot.slane %v629_v40, 4  ;;  %2299 = vmatpush1.bf16.msra.mxu1 %v8727_v35  ;;  %2234 = vmatprep.mubr.bf16.mxu1 %v12513_v7  ;;  %1259 = vst [vmem:[#allocation2 + $0x54] sm:$0xff] %v8701_v27  ;;  %1260 = vst [vmem:[#allocation2 + $0x5c] sm:$0xf] %v8702_v30 }
  0xd8   : > { %1143 = vrot.lane.b32.xlu1 %v9343_v24, %s9017_s28  ;;  %1141 = vrot.lane.b32.xlu0 %v9346_v25, %s9017_s28 }
  0xd9   : > { %v636_v3 = vsel %vm349_vm5, %v631_v39, %v633_v41  ;;  %v634_v44 = vsel %vm275_vm0, %v632_v42, %v633_v41  ;;  %2300 = vmatprep.subr.bf16.mxu1 %v8752_v43  ;;  %2287 = vmatprep.mubr.bf16.mxu0 %v12513_v7  ;;  %v9433_v41 = vld [vmem:[%s9076_s27 + $0x78] sm:$0xff]  ;;  %v9436_v42 = vld [vmem:[%s9076_s27 + $0x70] sm:$0xff]  ;;  %v1406_v43 = vld [vmem:[#allocation2 + $0x28] sm:$0xff] }
  0xda   : > { %640 = vst [vmem:[#allocation2 + $0x200] sm:$0xf] %v636_v3  ;;  %v635_v46 = vsel %vm349_vm5, %v629_v40, %v634_v44  ;;  %v648_v47 = vpop.permute.xlu1 %647  ;;  %v646_v48 = vpop.permute.xlu0 %645 }
  0xdb   : > { %v650_v49 = vrot.slane %v648_v47, 4  ;;  %v649_v37 = vrot.slane %v646_v48, 4  ;;  %2301 = vmatpush1.bf16.msra.mxu1 %v8751_v45  ;;  %v8775_v53 = vcombine.low %v618_v36, %v635_v46  ;;  %v8776_v38 = vcombine.high %v618_v36, %v635_v46  ;;  %v1405_v36 = vld [vmem:[#allocation2 + $0x20] sm:$0xff] }
  0xdc   : > { %1160 = vrot.lane.b32.xlu1 %v9343_v24, %s9019_s30  ;;  %1158 = vrot.lane.b32.xlu0 %v9346_v25, %s9019_s30 }
  0xdd   : > { %v653_v54 = vsel %vm367_vm6, %v648_v47, %v650_v49  ;;  %v651_v55 = vsel %vm275_vm0, %v649_v37, %v650_v49  ;;  %2302 = vmatprep.subr.bf16.mxu1 %v8776_v38 }
  0xde   : > { %657 = vst [vmem:[#allocation2 + $0x260] sm:$0xf] %v653_v54  ;;  %v652_v56 = vsel %vm367_vm6, %v646_v48, %v651_v55  ;;  %v665_v57 = vpop.permute.xlu1 %664  ;;  %v663_v58 = vpop.permute.xlu0 %662  ;;  %8846 = vmatmul.mubr.msk.bf16.gmra.mrb[4].mxu1 %vm2059_vm9, %v9274_v52  ;;  %8849 = vmatmul.mubr.msk.bf16.gmra.mrb[12].mxu0 %vm2059_vm9, %v9274_v52 }
  0xdf   : > { %v667_v59 = vrot.slane %v665_v57, 4  ;;  %v666_v60 = vrot.slane %v663_v58, 4  ;;  %2303 = vmatpush1.bf16.msra.mxu1 %v8775_v53  ;;  %2330 = vmatprep.mubr.bf16.mxu1 %v12513_v7 }
  0xe0   : > { %1177 = vrot.lane.b32.xlu1 %v9343_v24, %s9020_s7  ;;  %1175 = vrot.lane.b32.xlu0 %v9346_v25, %s9020_s7 }
  0xe1   : > { %v670_v61 = vsel %vm385_vm7, %v665_v57, %v667_v59  ;;  %v668_v62 = vsel %vm275_vm0, %v666_v60, %v667_v59  ;;  %2383 = vmatprep.mubr.bf16.mxu0 %v12513_v7 }
  0xe2   : > { %674 = vst [vmem:[#allocation2 + $0x2c0] sm:$0xf] %v670_v61  ;;  %v669_v63 = vsel %vm385_vm7, %v663_v58, %v668_v62  ;;  %v682_v0 = vpop.permute.xlu1 %681  ;;  %v680_v1 = vpop.permute.xlu0 %679 }
  0xe3   : > { %v684_v2 = vrot.slane %v682_v0, 4  ;;  %v683_v4 = vrot.slane %v680_v1, 4  ;;  %v8799_v5 = vcombine.low %v652_v56, %v669_v63  ;;  %v8800_v6 = vcombine.high %v652_v56, %v669_v63 }
  0xe4   : > { %1194 = vrot.lane.b32.xlu1 %v9343_v24, %s9021_s8  ;;  %1192 = vrot.lane.b32.xlu0 %v9346_v25, %s9021_s8 }
  0xe5   : > { %v687_v8 = vsel %vm403_vm8, %v682_v0, %v684_v2  ;;  %v685_v9 = vsel %vm275_vm0, %v683_v4, %v684_v2  ;;  %2304 = vmatprep.subr.bf16.mxu1 %v8800_v6 }
  0xe6   : > { %691 = vst [vmem:[#allocation2 + $0x320] sm:$0xf] %v687_v8  ;;  %v686_v10 = vsel %vm403_vm8, %v680_v1, %v685_v9  ;;  %v704_v11 = vpop.permute.xlu1 %703  ;;  %v702_v12 = vpop.permute.xlu0 %701  ;;  %2305 = vmatpush1.bf16.msra.mxu1 %v8799_v5 }
  0xe7   : > { %v706_v13 = vrot.slane %v704_v11, 4  ;;  %v705_v14 = vrot.slane %v702_v12, 4  ;;  %v8824_v15 = vcombine.high %v686_v10, %v686_v10  ;;  %v8823_v16 = vcombine.low %v686_v10, %v686_v10 }
  0xe8   : > { %1211 = vrot.lane.b32.xlu1 %v9343_v24, %s9022_s9  ;;  %1209 = vrot.lane.b32.xlu0 %v9346_v25, %s9022_s9 }
  0xe9   : > { %v709_v17 = vsel %vm277_vm2, %v704_v11, %v706_v13  ;;  %v707_v18 = vsel %vm275_vm0, %v705_v14, %v706_v13  ;;  %8850 = vmatprep.subr.msk.bf16.mxu1 %vm275_vm0, %v8824_v15  ;;  %v2086_v19 = vsel %vm275_vm0, %v8823_v16, 0 }
  0xea   : > { %713 = vst [vmem:[#allocation2 + $0x8c] sm:$0xf] %v709_v17  ;;  %v708_v20 = vsel %vm277_vm2, %v702_v12, %v707_v18  ;;  %v721_v21 = vpop.permute.xlu1 %720  ;;  %v719_v22 = vpop.permute.xlu0 %718  ;;  %2307 = vmatpush1.bf16.msra.mxu1 %v2086_v19 }
  0xeb   : > { %712 = vst [vmem:[#allocation2 + $0x84] sm:$0xff] %v708_v20  ;;  %v723_v23 = vrot.slane %v721_v21, 4  ;;  %v722_v50 = vrot.slane %v719_v22, 4 }
  0xec   : > { %1228 = vrot.lane.b32.xlu1 %v9343_v24, %s9023_s10  ;;  %1226 = vrot.lane.b32.xlu0 %v9346_v25, %s9023_s10 }
  0xed   : > { %v726_v51 = vsel %vm295_vm1, %v721_v21, %v723_v23  ;;  %v724_v29 = vsel %vm275_vm0, %v722_v50, %v723_v23  ;;  %8851 = vmatmul.mubr.msk.bf16.vlgmr.msra.gmra.mrb[8].mxu1 %vm2059_vm9, %v9243_v28 }
  0xee   : > { %730 = vst [vmem:[#allocation2 + $0xec] sm:$0xf] %v726_v51  ;;  %v725_v31 = vsel %vm295_vm1, %v719_v22, %v724_v29  ;;  %v738_v32 = vpop.permute.xlu1 %737  ;;  %v736_v33 = vpop.permute.xlu0 %735  ;;  %2340 = vmatprep.mubr.bf16.mxu1 %v12513_v7 }
  0xef   : > { %729 = vst [vmem:[#allocation2 + $0xe4] sm:$0xff] %v725_v31  ;;  %v740_v34 = vrot.slane %v738_v32, 4  ;;  %v739_v35 = vrot.slane %v736_v33, 4 }
  0xf0   : > { %1245 = vrot.lane.b32.xlu1 %v9343_v24, %s9024_s11  ;;  %1243 = vrot.lane.b32.xlu0 %v9346_v25, %s9024_s11 }
  0xf1   : > { %v743_v39 = vsel %vm313_vm3, %v738_v32, %v740_v34  ;;  %v741_v40 = vsel %vm275_vm0, %v739_v35, %v740_v34 }
  0xf2   : > { %747 = vst [vmem:[#allocation2 + $0x14c] sm:$0xf] %v743_v39  ;;  %v742_v3 = vsel %vm313_vm3, %v736_v33, %v741_v40  ;;  %v755_v44 = vpop.permute.xlu1 %754  ;;  %v753_v45 = vpop.permute.xlu0 %752  ;;  %v1417_v46 = vld [vmem:[#allocation2 + $0x80] sm:$0xff]  ;;  %v1418_v24 = vld [vmem:[#allocation2 + $0x88] sm:$0xff] }
  0xf3   : > { %746 = vst [vmem:[#allocation2 + $0x144] sm:$0xff] %v742_v3  ;;  %v757_v47 = vrot.slane %v755_v44, 4  ;;  %v756_v25 = vrot.slane %v753_v45, 4  ;;  %v8729_v48 = vcombine.low %v1405_v36, %v1417_v46  ;;  %v8730_v49 = vcombine.high %v1405_v36, %v1417_v46 }
  0xf4   : > { %1267 = vrot.lane.b32.xlu1 %v9433_v41, %s9018_s29  ;;  %1265 = vrot.lane.b32.xlu0 %v9436_v42, %s9018_s29  ;;  %v8731_v37 = vcombine.low %v1406_v43, %v1418_v24  ;;  %v8732_v53 = vcombine.high %v1406_v43, %v1418_v24 }
  0xf5   : > { %v760_v38 = vsel %vm331_vm4, %v755_v44, %v757_v47  ;;  %v758_v54 = vsel %vm275_vm0, %v756_v25, %v757_v47  ;;  %2351 = vmatprep.subr.bf16.mxu0 %v8730_v49  ;;  %8852 = vmatmul.mubr.msk.bf16.gmra.mrb[12].mxu1 %vm2059_vm9, %v9274_v52 }
  0xf6   : > { %764 = vst [vmem:[#allocation2 + $0x1ac] sm:$0xf] %v760_v38  ;;  %v759_v55 = vsel %vm331_vm4, %v753_v45, %v758_v54  ;;  %2404 = vmatprep.subr.bf16.mxu1 %v8732_v53  ;;  %v772_v56 = vpop.permute.xlu1 %771  ;;  %v770_v57 = vpop.permute.xlu0 %769  ;;  %2352 = vmatpush1.bf16.msra.mxu0 %v8729_v48  ;;  %v1429_v1 = vld [vmem:[#allocation2 + $0xe0] sm:$0xff]  ;;  %v1430_v10 = vld [vmem:[#allocation2 + $0xe8] sm:$0xff] }
  0xf7   : > { %763 = vst [vmem:[#allocation2 + $0x1a4] sm:$0xff] %v759_v55  ;;  %v774_v58 = vrot.slane %v772_v56, 4  ;;  %v773_v59 = vrot.slane %v770_v57, 4  ;;  %2405 = vmatpush1.bf16.msra.mxu1 %v8731_v37  ;;  %2436 = vmatprep.mubr.bf16.mxu1 %v12513_v7 }
  0xf8   : > { %1284 = vrot.lane.b32.xlu1 %v9433_v41, %s9017_s28  ;;  %1282 = vrot.lane.b32.xlu0 %v9436_v42, %s9017_s28 }
  0xf9   : > { %v777_v60 = vsel %vm349_vm5, %v772_v56, %v774_v58  ;;  %v775_v61 = vsel %vm275_vm0, %v773_v59, %v774_v58 }
  0xfa   : > { %781 = vst [vmem:[#allocation2 + $0x20c] sm:$0xf] %v777_v60  ;;  %v776_v62 = vsel %vm349_vm5, %v770_v57, %v775_v61  ;;  %v789_v63 = vpop.permute.xlu1 %788  ;;  %v787_v0 = vpop.permute.xlu0 %786  ;;  %v1441_v2 = vld [vmem:[#allocation2 + $0x140] sm:$0xff]  ;;  %v1442_v4 = vld [vmem:[#allocation2 + $0x148] sm:$0xff] }
  0xfb   : > { %780 = vst [vmem:[#allocation2 + $0x204] sm:$0xff] %v776_v62  ;;  %v791_v5 = vrot.slane %v789_v63, 4  ;;  %v790_v6 = vrot.slane %v787_v0, 4  ;;  %v8753_v8 = vcombine.low %v1429_v1, %v1441_v2  ;;  %v8754_v9 = vcombine.high %v1429_v1, %v1441_v2 }
  0xfc   : > { %1301 = vrot.lane.b32.xlu1 %v9433_v41, %s9019_s30  ;;  %1299 = vrot.lane.b32.xlu0 %v9436_v42, %s9019_s30  ;;  %v8755_v11 = vcombine.low %v1430_v10, %v1442_v4  ;;  %v8756_v12 = vcombine.high %v1430_v10, %v1442_v4 }
  0xfd   : > { %v794_v13 = vsel %vm367_vm6, %v789_v63, %v791_v5  ;;  %v792_v14 = vsel %vm275_vm0, %v790_v6, %v791_v5  ;;  %2353 = vmatprep.subr.bf16.mxu0 %v8754_v9 }
  0xfe   : > { %798 = vst [vmem:[#allocation2 + $0x26c] sm:$0xf] %v794_v13  ;;  %v793_v15 = vsel %vm367_vm6, %v787_v0, %v792_v14  ;;  %2406 = vmatprep.subr.bf16.mxu1 %v8756_v12  ;;  %v806_v16 = vpop.permute.xlu1 %805  ;;  %v804_v17 = vpop.permute.xlu0 %803  ;;  %2354 = vmatpush1.bf16.msra.mxu0 %v8753_v8  ;;  %v1453_v26 = vld [vmem:[#allocation2 + $0x1a0] sm:$0xff]  ;;  %v1454_v33 = vld [vmem:[#allocation2 + $0x1a8] sm:$0xff] }
  0xff   : > { %797 = vst [vmem:[#allocation2 + $0x264] sm:$0xff] %v793_v15  ;;  %v808_v18 = vrot.slane %v806_v16, 4  ;;  %v807_v19 = vrot.slane %v804_v17, 4  ;;  %2407 = vmatpush1.bf16.msra.mxu1 %v8755_v11  ;;  %v2872_v13 = vld [vmem:[%s12509_s3 + $0x8] sm:$0xff] }
 0x100   : > { %1318 = vrot.lane.b32.xlu1 %v9433_v41, %s9020_s7  ;;  %1316 = vrot.lane.b32.xlu0 %v9436_v42, %s9020_s7 }
 0x101   : > { %v811_v20 = vsel %vm385_vm7, %v806_v16, %v808_v18  ;;  %v809_v21 = vsel %vm275_vm0, %v807_v19, %v808_v18  ;;  %v2871_v19 = vld [vmem:[%s12509_s3] sm:$0xff] }
 0x102   : > { %815 = vst [vmem:[#allocation2 + $0x2cc] sm:$0xf] %v811_v20  ;;  %v810_v22 = vsel %vm385_vm7, %v804_v17, %v809_v21  ;;  %v823_v23 = vpop.permute.xlu1 %822  ;;  %v821_v50 = vpop.permute.xlu0 %820  ;;  %v1465_v27 = vld [vmem:[#allocation2 + $0x200] sm:$0xff]  ;;  %v1466_v51 = vld [vmem:[#allocation2 + $0x208] sm:$0xff]  ;;  %v9005_v17 = vld [vmem:[#allocation2 + $0x30] sm:$0xff] }
 0x103   : > { %814 = vst [vmem:[#allocation2 + $0x2c4] sm:$0xff] %v810_v22  ;;  %v825_v29 = vrot.slane %v823_v23, 4  ;;  %v824_v30 = vrot.slane %v821_v50, 4  ;;  %v8777_v31 = vcombine.low %v1453_v26, %v1465_v27  ;;  %v8778_v32 = vcombine.high %v1453_v26, %v1465_v27 }
 0x104   : > { %1335 = vrot.lane.b32.xlu1 %v9433_v41, %s9021_s8  ;;  %1333 = vrot.lane.b32.xlu0 %v9436_v42, %s9021_s8  ;;  %v8779_v34 = vcombine.low %v1454_v33, %v1466_v51  ;;  %v8780_v35 = vcombine.high %v1454_v33, %v1466_v51 }
 0x105   : > { %v828_v36 = vsel %vm403_vm8, %v823_v23, %v825_v29  ;;  %v826_v39 = vsel %vm275_vm0, %v824_v30, %v825_v29  ;;  %2355 = vmatprep.subr.bf16.mxu0 %v8778_v32  ;;  %v2873_v30 = vld [vmem:[%s12509_s3 + $0x10] sm:$0xff] }
 0x106   : > { %832 = vst [vmem:[#allocation2 + $0x32c] sm:$0xf] %v828_v36  ;;  %v827_v40 = vsel %vm403_vm8, %v821_v50, %v826_v39  ;;  %2408 = vmatprep.subr.bf16.mxu1 %v8780_v35  ;;  %v845_v43 = vpop.permute.xlu1 %844  ;;  %v843_v3 = vpop.permute.xlu0 %842  ;;  %2356 = vmatpush1.bf16.msra.mxu0 %v8777_v31  ;;  %v1477_v49 = vld [vmem:[#allocation2 + $0x260] sm:$0xff]  ;;  %v1478_v57 = vld [vmem:[#allocation2 + $0x268] sm:$0xff]  ;;  %v2874_v31 = vld [vmem:[%s12509_s3 + $0x18] sm:$0xff] }
 0x107   : > { %831 = vst [vmem:[#allocation2 + $0x324] sm:$0xff] %v827_v40  ;;  %v847_v44 = vrot.slane %v845_v43, 4  ;;  %v846_v45 = vrot.slane %v843_v3, 4  ;;  %2409 = vmatpush1.bf16.msra.mxu1 %v8779_v34 }
 0x108   : > { %1352 = vrot.lane.b32.xlu1 %v9433_v41, %s9022_s9  ;;  %1350 = vrot.lane.b32.xlu0 %v9436_v42, %s9022_s9 }
 0x109   : > { %v850_v46 = vsel %vm277_vm2, %v845_v43, %v847_v44  ;;  %v848_v24 = vsel %vm275_vm0, %v846_v45, %v847_v44 }
 0x10a   : > { %854 = vst [vmem:[#allocation2 + $0x98] sm:$0xf] %v850_v46  ;;  %v9484_v47 = vsel %vm277_vm2, %v843_v3, %v848_v24  ;;  %v862_v25 = vpop.permute.xlu1 %861  ;;  %v860_v48 = vpop.permute.xlu0 %859  ;;  %v1489_v37 = vld [vmem:[#allocation2 + $0x2c0] sm:$0xff]  ;;  %v1490_v53 = vld [vmem:[#allocation2 + $0x2c8] sm:$0xff] }
 0x10b   : > { %v864_v38 = vrot.slane %v862_v25, 4  ;;  %v863_v54 = vrot.slane %v860_v48, 4  ;;  %v8801_v55 = vcombine.low %v1477_v49, %v1489_v37  ;;  %v8802_v56 = vcombine.high %v1477_v49, %v1489_v37 }
 0x10c   : > { %1369 = vrot.lane.b32.xlu1 %v9433_v41, %s9023_s10  ;;  %1367 = vrot.lane.b32.xlu0 %v9436_v42, %s9023_s10  ;;  %v8803_v58 = vcombine.low %v1478_v57, %v1490_v53  ;;  %v8804_v59 = vcombine.high %v1478_v57, %v1490_v53  ;;  %v8734_v18 = vcombine.high %v9005_v17, %v9484_v47 }
 0x10d   : > { %v867_v60 = vsel %vm295_vm1, %v862_v25, %v864_v38  ;;  %v865_v61 = vsel %vm275_vm0, %v863_v54, %v864_v38  ;;  %2357 = vmatprep.subr.bf16.mxu0 %v8802_v56  ;;  %v8733_v50 = vcombine.low %v9005_v17, %v9484_v47 }
 0x10e   : > { %871 = vst [vmem:[#allocation2 + $0xf8] sm:$0xf] %v867_v60  ;;  %v9493_v62 = vsel %vm295_vm1, %v860_v48, %v865_v61  ;;  %2410 = vmatprep.subr.bf16.mxu1 %v8804_v59  ;;  %v879_v63 = vpop.permute.xlu1 %878  ;;  %v877_v0 = vpop.permute.xlu0 %876  ;;  %2358 = vmatpush1.bf16.msra.mxu0 %v8801_v55  ;;  %v1501_v1 = vld [vmem:[#allocation2 + $0x320] sm:$0xff]  ;;  %v1502_v2 = vld [vmem:[#allocation2 + $0x328] sm:$0xff] }
 0x10f   : > { %v881_v4 = vrot.slane %v879_v63, 4  ;;  %v880_v5 = vrot.slane %v877_v0, 4  ;;  %2411 = vmatpush1.bf16.msra.mxu1 %v8803_v58  ;;  %v8826_v6 = vcombine.high %v1501_v1, %v1501_v1  ;;  %v8828_v8 = vcombine.high %v1502_v2, %v1502_v2 }
 0x110   : > { %1386 = vrot.lane.b32.xlu1 %v9433_v41, %s9024_s11  ;;  %1384 = vrot.lane.b32.xlu0 %v9436_v42, %s9024_s11  ;;  %v8825_v9 = vcombine.low %v1501_v1, %v1501_v1  ;;  %v8827_v10 = vcombine.low %v1502_v2, %v1502_v2 }
 0x111   : > { %v884_v11 = vsel %vm313_vm3, %v879_v63, %v881_v4  ;;  %v882_v12 = vsel %vm275_vm0, %v880_v5, %v881_v4  ;;  %8853 = vmatprep.subr.msk.bf16.mxu0 %vm275_vm0, %v8826_v6  ;;  %8856 = vmatprep.subr.msk.bf16.mxu1 %vm275_vm0, %v8828_v8 }
 0x112   : > { %888 = vst [vmem:[#allocation2 + $0x158] sm:$0xf] %v884_v11  ;;  %v883_v41 = vsel %vm313_vm3, %v877_v0, %v882_v12  ;;  %v896_v14 = vpop.permute.xlu1 %895  ;;  %v894_v15 = vpop.permute.xlu0 %893  ;;  %v2092_v42 = vsel %vm275_vm0, %v8825_v9, 0  ;;  %v2098_v16 = vsel %vm275_vm0, %v8827_v10, 0 }
 0x113   : > { %v898_v20 = vrot.slane %v896_v14, 4  ;;  %v897_v21 = vrot.slane %v894_v15, 4  ;;  %2360 = vmatpush1.bf16.msra.mxu0 %v2092_v42  ;;  %2413 = vmatpush1.bf16.msra.mxu1 %v2098_v16  ;;  %v8758_v29 = vcombine.high %v9493_v62, %v883_v41  ;;  %v8757_v35 = vcombine.low %v9493_v62, %v883_v41  ;;  %v9559_v42 = vld [vmem:[%s12507_s1] sm:$0xff]  }
 0x114   : > { %2457 = vmatprep.subr.bf16.mxu0 %v8734_v18  ;;  %2895 = vperm.xlu1 %8985, %v2872_v13  }
 0x115   : > { %v901_v22 = vsel %vm331_vm4, %v896_v14, %v898_v20  ;;  %v899_v23 = vsel %vm275_vm0, %v897_v21, %v898_v20  ;;  %2890 = vperm.xlu0 %8984, %v2871_v19   ;;  %v1408_v21 = vld [vmem:[#allocation2 + $0x38] sm:$0xff] }
 0x116   : > { %905 = vst [vmem:[#allocation2 + $0x1b8] sm:$0xf] %v901_v22  ;;  %v900_v26 = vsel %vm331_vm4, %v894_v15, %v899_v23  ;;  %v913_v27 = vpop.permute.xlu1 %912  ;;  %v911_v51 = vpop.permute.xlu0 %910  ;;  %8854 = vmatmul.mubr.msk.bf16.vlgmr.msra.gmra.mrb[16].mxu0 %vm2059_vm9, %v9243_v28  ;;  %8857 = vmatmul.mubr.msk.bf16.vlgmr.msra.gmra.mrb[16].mxu1 %vm2059_vm9, %v9243_v28 }
 0x117   : > { %v915_v32 = vrot.slane %v913_v27, 4  ;;  %v914_v33 = vrot.slane %v911_v51, 4  ;;  %2458 = vmatpush1.bf16.msra.mxu0 %v8733_v50  ;;  %2393 = vmatprep.mubr.bf16.mxu0 %v12513_v7  ;;  %v1409_v50 = vld [vmem:[#allocation2 + $0x40] sm:$0xff] }
 0x118   : > { %2459 = vmatprep.subr.bf16.mxu0 %v8758_v29  ;;  %2446 = vmatprep.mubr.bf16.mxu1 %v12513_v7 }
 0x119   : > { %v918_v34 = vsel %vm349_vm5, %v913_v27, %v915_v32  ;;  %v916_v28 = vsel %vm275_vm0, %v914_v33, %v915_v32  ;;  %2900 = vperm.xlu1 %8985, %v2873_v30   ;;  %2905 = vperm.xlu0 %8984, %v2874_v31  }
 0x11a   : > { %922 = vst [vmem:[#allocation2 + $0x218] sm:$0xf] %v918_v34  ;;  %v917_v36 = vsel %vm349_vm5, %v911_v51, %v916_v28  ;;  %v930_v39 = vpop.permute.xlu1 %929  ;;  %v928_v40 = vpop.permute.xlu0 %927 }
 0x11b   : > { %v932_v43 = vrot.slane %v930_v39, 4  ;;  %v931_v3 = vrot.slane %v928_v40, 4  ;;  %2460 = vmatpush1.bf16.msra.mxu0 %v8757_v35  ;;  %v8781_v44 = vcombine.low %v900_v26, %v917_v36  ;;  %v8782_v45 = vcombine.high %v900_v26, %v917_v36 }
 0x11d   : > { %v935_v46 = vsel %vm367_vm6, %v930_v39, %v932_v43  ;;  %v933_v24 = vsel %vm275_vm0, %v931_v3, %v932_v43  ;;  %2461 = vmatprep.subr.bf16.mxu0 %v8782_v45 }
 0x11e   : > { %939 = vst [vmem:[#allocation2 + $0x278] sm:$0xf] %v935_v46  ;;  %v934_v47 = vsel %vm367_vm6, %v928_v40, %v933_v24  ;;  %v947_v25 = vpop.permute.xlu1 %946  ;;  %v945_v48 = vpop.permute.xlu0 %944  ;;  %8855 = vmatmul.mubr.msk.bf16.gmra.mrb[20].mxu0 %vm2059_vm9, %v9274_v52  ;;  %8858 = vmatmul.mubr.msk.bf16.gmra.mrb[20].mxu1 %vm2059_vm9, %v9274_v52  ;;  %v9573_v40 = vld [vmem:[%s12507_s1 + $0x8] sm:$0xff]  }
 0x11f   : > { %v949_v49 = vrot.slane %v947_v25, 4  ;;  %v948_v37 = vrot.slane %v945_v48, 4  ;;  %2462 = vmatpush1.bf16.msra.mxu0 %v8781_v44  ;;  %2489 = vmatprep.mubr.bf16.mxu0 %v12513_v7 }
 0x120   : > { %2542 = vmatprep.mubr.bf16.mxu1 %v12513_v7 }
 0x121   : > { %v952_v53 = vsel %vm385_vm7, %v947_v25, %v949_v49  ;;  %v950_v38 = vsel %vm275_vm0, %v948_v37, %v949_v49 }
 0x122   : > { %956 = vst [vmem:[#allocation2 + $0x2d8] sm:$0xf] %v952_v53  ;;  %v951_v54 = vsel %vm385_vm7, %v945_v48, %v950_v38  ;;  %v964_v55 = vpop.permute.xlu1 %963  ;;  %v962_v56 = vpop.permute.xlu0 %961 }
 0x123   : > { %v966_v57 = vrot.slane %v964_v55, 4  ;;  %v965_v58 = vrot.slane %v962_v56, 4  ;;  %v8805_v59 = vcombine.low %v934_v47, %v951_v54  ;;  %v8806_v52 = vcombine.high %v934_v47, %v951_v54 }
 0x125   : > { %v969_v60 = vsel %vm403_vm8, %v964_v55, %v966_v57  ;;  %v967_v61 = vsel %vm275_vm0, %v965_v58, %v966_v57  ;;  %2463 = vmatprep.subr.bf16.mxu0 %v8806_v52 }
 0x126   : > { %973 = vst [vmem:[#allocation2 + $0x338] sm:$0xf] %v969_v60  ;;  %v968_v62 = vsel %vm403_vm8, %v962_v56, %v967_v61  ;;  %v986_v63 = vpop.permute.xlu1 %985  ;;  %v984_v0 = vpop.permute.xlu0 %983  ;;  %2464 = vmatpush1.bf16.msra.mxu0 %v8805_v59 }
 0x127   : > { %v988_v1 = vrot.slane %v986_v63, 4  ;;  %v987_v2 = vrot.slane %v984_v0, 4  ;;  %v8830_v4 = vcombine.high %v968_v62, %v968_v62  ;;  %v8829_v5 = vcombine.low %v968_v62, %v968_v62 }
 0x129   : > { %v991_v6 = vsel %vm277_vm2, %v986_v63, %v988_v1  ;;  %v989_v8 = vsel %vm275_vm0, %v987_v2, %v988_v1  ;;  %8859 = vmatprep.subr.msk.bf16.mxu0 %vm275_vm0, %v8830_v4  ;;  %v2104_v9 = vsel %vm275_vm0, %v8829_v5, 0 }
 0x12a   : > { %995 = vst [vmem:[#allocation2 + $0xa4] sm:$0xf] %v991_v6  ;;  %v990_v10 = vsel %vm277_vm2, %v984_v0, %v989_v8  ;;  %v1003_v11 = vpop.permute.xlu1 %1002  ;;  %v1001_v12 = vpop.permute.xlu0 %1000  ;;  %2466 = vmatpush1.bf16.msra.mxu0 %v2104_v9 }
 0x12b   : > { %994 = vst [vmem:[#allocation2 + $0x9c] sm:$0xff] %v990_v10  ;;  %v1005_v13 = vrot.slane %v1003_v11, 4  ;;  %v1004_v41 = vrot.slane %v1001_v12, 4 }
 0x12d   : > { %v1008_v14 = vsel %vm295_vm1, %v1003_v11, %v1005_v13  ;;  %v1006_v15 = vsel %vm275_vm0, %v1004_v41, %v1005_v13  ;;  %8860 = vmatmul.mubr.msk.bf16.vlgmr.msra.gmra.mrb[24].mxu0 %vm2059_vm9, %v9559_v42 }
 0x12e   : > { %1012 = vst [vmem:[#allocation2 + $0x104] sm:$0xf] %v1008_v14  ;;  %v1007_v16 = vsel %vm295_vm1, %v1001_v12, %v1006_v15  ;;  %v1020_v17 = vpop.permute.xlu1 %1019  ;;  %v1018_v18 = vpop.permute.xlu0 %1017  ;;  %2499 = vmatprep.mubr.bf16.mxu0 %v12513_v7 }
 0x12f   : > { %1011 = vst [vmem:[#allocation2 + $0xfc] sm:$0xff] %v1007_v16  ;;  %v1022_v19 = vrot.slane %v1020_v17, 4  ;;  %v1021_v20 = vrot.slane %v1018_v18, 4 }
 0x131   : > { %v1025_v22 = vsel %vm313_vm3, %v1020_v17, %v1022_v19  ;;  %v1023_v23 = vsel %vm275_vm0, %v1021_v20, %v1022_v19 }
 0x132   : > { %1029 = vst [vmem:[#allocation2 + $0x164] sm:$0xf] %v1025_v22  ;;  %v1024_v26 = vsel %vm313_vm3, %v1018_v18, %v1023_v23  ;;  %v1037_v27 = vpop.permute.xlu1 %1036  ;;  %v1035_v51 = vpop.permute.xlu0 %1034  ;;  %v1420_v29 = vld [vmem:[#allocation2 + $0x98] sm:$0xff]  ;;  %v1421_v30 = vld [vmem:[#allocation2 + $0xa0] sm:$0xff] }
 0x133   : > { %1028 = vst [vmem:[#allocation2 + $0x15c] sm:$0xff] %v1024_v26  ;;  %v1039_v31 = vrot.slane %v1037_v27, 4  ;;  %v1038_v32 = vrot.slane %v1035_v51, 4  ;;  %v8735_v33 = vcombine.low %v1408_v21, %v1420_v29  ;;  %v8736_v34 = vcombine.high %v1408_v21, %v1420_v29 }
 0x134   : > { %v8737_v28 = vcombine.low %v1409_v50, %v1421_v30  ;;  %v8738_v35 = vcombine.high %v1409_v50, %v1421_v30 }
 0x135   : > { %v1042_v36 = vsel %vm331_vm4, %v1037_v27, %v1039_v31  ;;  %v1040_v39 = vsel %vm275_vm0, %v1038_v32, %v1039_v31  ;;  %2510 = vmatprep.subr.bf16.mxu1 %v8736_v34  ;;  %8861 = vmatmul.mubr.msk.bf16.gmra.mrb[28].mxu0 %vm2059_vm9, %v9573_v40 }
 0x136   : > { %1046 = vst [vmem:[#allocation2 + $0x1c4] sm:$0xf] %v1042_v36  ;;  %v1041_v43 = vsel %vm331_vm4, %v1035_v51, %v1040_v39  ;;  %2563 = vmatprep.subr.bf16.mxu0 %v8738_v35  ;;  %v1054_v3 = vpop.permute.xlu1 %1053  ;;  %v1052_v44 = vpop.permute.xlu0 %1051  ;;  %2511 = vmatpush1.bf16.msra.mxu1 %v8735_v33  ;;  %v1432_v37 = vld [vmem:[#allocation2 + $0xf8] sm:$0xff]  ;;  %v1433_v58 = vld [vmem:[#allocation2 + $0x100] sm:$0xff] }
 0x137   : > { %1045 = vst [vmem:[#allocation2 + $0x1bc] sm:$0xff] %v1041_v43  ;;  %v1056_v45 = vrot.slane %v1054_v3, 4  ;;  %v1055_v46 = vrot.slane %v1052_v44, 4  ;;  %2564 = vmatpush1.bf16.msra.mxu0 %v8737_v28  ;;  %2595 = vmatprep.mubr.bf16.mxu0 %v12513_v7 }
 0x139   : > { %v1059_v24 = vsel %vm349_vm5, %v1054_v3, %v1056_v45  ;;  %v1057_v47 = vsel %vm275_vm0, %v1055_v46, %v1056_v45 }
 0x13a   : > { %1063 = vst [vmem:[#allocation2 + $0x224] sm:$0xf] %v1059_v24  ;;  %v1058_v25 = vsel %vm349_vm5, %v1052_v44, %v1057_v47  ;;  %v1071_v48 = vpop.permute.xlu1 %1070  ;;  %v1069_v49 = vpop.permute.xlu0 %1068  ;;  %v1444_v53 = vld [vmem:[#allocation2 + $0x158] sm:$0xff]  ;;  %v1445_v38 = vld [vmem:[#allocation2 + $0x160] sm:$0xff] }
 0x13b   : > { %1062 = vst [vmem:[#allocation2 + $0x21c] sm:$0xff] %v1058_v25  ;;  %v1073_v54 = vrot.slane %v1071_v48, 4  ;;  %v1072_v55 = vrot.slane %v1069_v49, 4  ;;  %v8759_v56 = vcombine.low %v1432_v37, %v1444_v53  ;;  %v8760_v57 = vcombine.high %v1432_v37, %v1444_v53 }
 0x13c   : > { %v8761_v59 = vcombine.low %v1433_v58, %v1445_v38  ;;  %v8762_v52 = vcombine.high %v1433_v58, %v1445_v38 }
 0x13d   : > { %v1076_v60 = vsel %vm367_vm6, %v1071_v48, %v1073_v54  ;;  %v1074_v61 = vsel %vm275_vm0, %v1072_v55, %v1073_v54  ;;  %2512 = vmatprep.subr.bf16.mxu1 %v8760_v57 }
 0x13e   : > { %1080 = vst [vmem:[#allocation2 + $0x284] sm:$0xf] %v1076_v60  ;;  %v1075_v62 = vsel %vm367_vm6, %v1069_v49, %v1074_v61  ;;  %2565 = vmatprep.subr.bf16.mxu0 %v8762_v52  ;;  %v1088_v63 = vpop.permute.xlu1 %1087  ;;  %v1086_v0 = vpop.permute.xlu0 %1085  ;;  %2513 = vmatpush1.bf16.msra.mxu1 %v8759_v56  ;;  %v1456_v10 = vld [vmem:[#allocation2 + $0x1b8] sm:$0xff]  ;;  %v1457_v16 = vld [vmem:[#allocation2 + $0x1c0] sm:$0xff] }
 0x13f   : > { %1079 = vst [vmem:[#allocation2 + $0x27c] sm:$0xff] %v1075_v62  ;;  %v1090_v1 = vrot.slane %v1088_v63, 4  ;;  %v1089_v2 = vrot.slane %v1086_v0, 4  ;;  %2566 = vmatpush1.bf16.msra.mxu0 %v8761_v59 }
 0x141   : > { %v1093_v4 = vsel %vm385_vm7, %v1088_v63, %v1090_v1  ;;  %v1091_v5 = vsel %vm275_vm0, %v1089_v2, %v1090_v1  ;;  %v9008_v63 = vld [vmem:[#allocation2 + $0x48] sm:$0xff] }
 0x142   : > { %1097 = vst [vmem:[#allocation2 + $0x2e4] sm:$0xf] %v1093_v4  ;;  %v1092_v6 = vsel %vm385_vm7, %v1086_v0, %v1091_v5  ;;  %v1105_v8 = vpop.permute.xlu1 %1104  ;;  %v1103_v9 = vpop.permute.xlu0 %1102  ;;  %v1468_v11 = vld [vmem:[#allocation2 + $0x218] sm:$0xff]  ;;  %v1469_v12 = vld [vmem:[#allocation2 + $0x220] sm:$0xff] }
 0x143   : > { %1096 = vst [vmem:[#allocation2 + $0x2dc] sm:$0xff] %v1092_v6  ;;  %v1107_v13 = vrot.slane %v1105_v8, 4  ;;  %v1106_v41 = vrot.slane %v1103_v9, 4  ;;  %v8783_v14 = vcombine.low %v1456_v10, %v1468_v11  ;;  %v8784_v15 = vcombine.high %v1456_v10, %v1468_v11 }
 0x144   : > { %v8785_v17 = vcombine.low %v1457_v16, %v1469_v12  ;;  %v8786_v18 = vcombine.high %v1457_v16, %v1469_v12 }
 0x145   : > { %v1110_v19 = vsel %vm403_vm8, %v1105_v8, %v1107_v13  ;;  %v1108_v20 = vsel %vm275_vm0, %v1106_v41, %v1107_v13  ;;  %2514 = vmatprep.subr.bf16.mxu1 %v8784_v15 }
 0x146   : > { %1114 = vst [vmem:[#allocation2 + $0x344] sm:$0xf] %v1110_v19  ;;  %v1109_v21 = vsel %vm403_vm8, %v1103_v9, %v1108_v20  ;;  %2567 = vmatprep.subr.bf16.mxu0 %v8786_v18  ;;  %v1127_v22 = vpop.permute.xlu1 %1126  ;;  %v1125_v23 = vpop.permute.xlu0 %1124  ;;  %2515 = vmatpush1.bf16.msra.mxu1 %v8783_v14  ;;  %v1480_v32 = vld [vmem:[#allocation2 + $0x278] sm:$0xff]  ;;  %v1481_v43 = vld [vmem:[#allocation2 + $0x280] sm:$0xff] }
 0x147   : > { %1113 = vst [vmem:[#allocation2 + $0x33c] sm:$0xff] %v1109_v21  ;;  %v1129_v50 = vrot.slane %v1127_v22, 4  ;;  %v1128_v26 = vrot.slane %v1125_v23, 4  ;;  %2568 = vmatpush1.bf16.msra.mxu0 %v8785_v17 }
 0x149   : > { %v1132_v27 = vsel %vm277_vm2, %v1127_v22, %v1129_v50  ;;  %v1130_v51 = vsel %vm275_vm0, %v1128_v26, %v1129_v50 }
 0x14a   : > { %1136 = vst [vmem:[#allocation2 + $0xb0] sm:$0xf] %v1132_v27  ;;  %v1131_v29 = vsel %vm277_vm2, %v1125_v23, %v1130_v51  ;;  %v1144_v30 = vpop.permute.xlu1 %1143  ;;  %v1142_v31 = vpop.permute.xlu0 %1141  ;;  %v1492_v33 = vld [vmem:[#allocation2 + $0x2d8] sm:$0xff]  ;;  %v1493_v34 = vld [vmem:[#allocation2 + $0x2e0] sm:$0xff] }
 0x14b   : > { %v1146_v28 = vrot.slane %v1144_v30, 4  ;;  %v1145_v35 = vrot.slane %v1142_v31, 4  ;;  %v8807_v36 = vcombine.low %v1480_v32, %v1492_v33  ;;  %v8808_v39 = vcombine.high %v1480_v32, %v1492_v33 }
 0x14c   : > { %v8809_v3 = vcombine.low %v1481_v43, %v1493_v34  ;;  %v8810_v44 = vcombine.high %v1481_v43, %v1493_v34  ;;  %v8740_v0 = vcombine.high %v9008_v63, %v1131_v29  ;;  %v8739_v6 = vcombine.low %v9008_v63, %v1131_v29 }
 0x14d   : > { %v1149_v45 = vsel %vm295_vm1, %v1144_v30, %v1146_v28  ;;  %v1147_v46 = vsel %vm275_vm0, %v1145_v35, %v1146_v28  ;;  %2516 = vmatprep.subr.bf16.mxu1 %v8808_v39 }
 0x14e   : > { %1153 = vst [vmem:[#allocation2 + $0x110] sm:$0xf] %v1149_v45  ;;  %v1148_v24 = vsel %vm295_vm1, %v1142_v31, %v1147_v46  ;;  %2569 = vmatprep.subr.bf16.mxu0 %v8810_v44  ;;  %v1161_v47 = vpop.permute.xlu1 %1160  ;;  %v1159_v25 = vpop.permute.xlu0 %1158  ;;  %2517 = vmatpush1.bf16.msra.mxu1 %v8807_v36  ;;  %v1504_v48 = vld [vmem:[#allocation2 + $0x338] sm:$0xff]  ;;  %v1505_v49 = vld [vmem:[#allocation2 + $0x340] sm:$0xff] }
 0x14f   : > { %v1163_v37 = vrot.slane %v1161_v47, 4  ;;  %v1162_v53 = vrot.slane %v1159_v25, 4  ;;  %2570 = vmatpush1.bf16.msra.mxu0 %v8809_v3  ;;  %v8832_v38 = vcombine.high %v1504_v48, %v1504_v48  ;;  %v8834_v54 = vcombine.high %v1505_v49, %v1505_v49 }
 0x150   : > { %v8831_v55 = vcombine.low %v1504_v48, %v1504_v48  ;;  %v8833_v56 = vcombine.low %v1505_v49, %v1505_v49 }
 0x151   : > { %v1166_v57 = vsel %vm313_vm3, %v1161_v47, %v1163_v37  ;;  %v1164_v58 = vsel %vm275_vm0, %v1162_v53, %v1163_v37  ;;  %8862 = vmatprep.subr.msk.bf16.mxu1 %vm275_vm0, %v8832_v38  ;;  %8865 = vmatprep.subr.msk.bf16.mxu0 %vm275_vm0, %v8834_v54 }
 0x152   : > { %1170 = vst [vmem:[#allocation2 + $0x170] sm:$0xf] %v1166_v57  ;;  %v1165_v59 = vsel %vm313_vm3, %v1159_v25, %v1164_v58  ;;  %v1178_v52 = vpop.permute.xlu1 %1177  ;;  %v1176_v60 = vpop.permute.xlu0 %1175  ;;  %v2110_v61 = vsel %vm275_vm0, %v8831_v55, 0  ;;  %v2116_v62 = vsel %vm275_vm0, %v8833_v56, 0 }
 0x153   : > { %v1180_v1 = vrot.slane %v1178_v52, 4  ;;  %v1179_v2 = vrot.slane %v1176_v60, 4  ;;  %2519 = vmatpush1.bf16.msra.mxu1 %v2110_v61  ;;  %2572 = vmatpush1.bf16.msra.mxu0 %v2116_v62  ;;  %v8764_v11 = vcombine.high %v1148_v24, %v1165_v59  ;;  %v8763_v15 = vcombine.low %v1148_v24, %v1165_v59 }
 0x154   : > { %2616 = vmatprep.subr.bf16.mxu1 %v8740_v0 }
 0x155   : > { %v1183_v4 = vsel %vm331_vm4, %v1178_v52, %v1180_v1  ;;  %v1181_v5 = vsel %vm275_vm0, %v1179_v2, %v1180_v1  ;;  %v1411_v1 = vld [vmem:[#allocation2 + $0x50] sm:$0xff] }
 0x156   : > { %1187 = vst [vmem:[#allocation2 + $0x1d0] sm:$0xf] %v1183_v4  ;;  %v1182_v8 = vsel %vm331_vm4, %v1176_v60, %v1181_v5  ;;  %8863 = vmatmul.mubr.msk.bf16.vlgmr.msra.gmra.mrb[24].mxu1 %vm2059_vm9, %v9559_v42  ;;  %8866 = vmatmul.mubr.msk.bf16.vlgmr.msra.gmra.mrb[32].mxu0 %vm2059_vm9, %v9559_v42  ;;  %v1195_v9 = vpop.permute.xlu1 %1194  ;;  %v1193_v10 = vpop.permute.xlu0 %1192  ;;  %v1412_v5 = vld [vmem:[#allocation2 + $0x58] sm:$0xff] }
 0x157   : > { %v1197_v12 = vrot.slane %v1195_v9, 4  ;;  %v1196_v13 = vrot.slane %v1193_v10, 4  ;;  %2617 = vmatpush1.bf16.msra.mxu1 %v8739_v6  ;;  %2552 = vmatprep.mubr.bf16.mxu1 %v12513_v7 }
 0x158   : > { %2605 = vmatprep.mubr.bf16.mxu0 %v12513_v7  ;;  %2618 = vmatprep.subr.bf16.mxu1 %v8764_v11 }
 0x159   : > { %v1200_v41 = vsel %vm349_vm5, %v1195_v9, %v1197_v12  ;;  %v1198_v14 = vsel %vm275_vm0, %v1196_v13, %v1197_v12 }
 0x15a   : > { %1204 = vst [vmem:[#allocation2 + $0x230] sm:$0xf] %v1200_v41  ;;  %v1199_v16 = vsel %vm349_vm5, %v1193_v10, %v1198_v14  ;;  %v1212_v17 = vpop.permute.xlu1 %1211  ;;  %v1210_v18 = vpop.permute.xlu0 %1209 }
 0x15b   : > { %v1214_v19 = vrot.slane %v1212_v17, 4  ;;  %v1213_v20 = vrot.slane %v1210_v18, 4  ;;  %2619 = vmatpush1.bf16.msra.mxu1 %v8763_v15  ;;  %v8787_v21 = vcombine.low %v1182_v8, %v1199_v16  ;;  %v8788_v22 = vcombine.high %v1182_v8, %v1199_v16 }
 0x15d   : > { %v1217_v23 = vsel %vm367_vm6, %v1212_v17, %v1214_v19  ;;  %v1215_v50 = vsel %vm275_vm0, %v1213_v20, %v1214_v19  ;;  %2620 = vmatprep.subr.bf16.mxu1 %v8788_v22 }
 0x15e   : > { %1221 = vst [vmem:[#allocation2 + $0x290] sm:$0xf] %v1217_v23  ;;  %v1216_v26 = vsel %vm367_vm6, %v1210_v18, %v1215_v50  ;;  %8864 = vmatmul.mubr.msk.bf16.gmra.mrb[28].mxu1 %vm2059_vm9, %v9573_v40  ;;  %8867 = vmatmul.mubr.msk.bf16.gmra.mrb[36].mxu0 %vm2059_vm9, %v9573_v40  ;;  %v1229_v27 = vpop.permute.xlu1 %1228  ;;  %v1227_v51 = vpop.permute.xlu0 %1226 }
 0x15f   : > { %v1231_v29 = vrot.slane %v1229_v27, 4  ;;  %v1230_v30 = vrot.slane %v1227_v51, 4  ;;  %2621 = vmatpush1.bf16.msra.mxu1 %v8787_v21  ;;  %2648 = vmatprep.mubr.bf16.mxu1 %v12513_v7 }
 0x160   : > { %2701 = vmatprep.mubr.bf16.mxu0 %v12513_v7 }
 0x161   : > { %v1234_v31 = vsel %vm385_vm7, %v1229_v27, %v1231_v29  ;;  %v1232_v32 = vsel %vm275_vm0, %v1230_v30, %v1231_v29 }
 0x162   : > { %1238 = vst [vmem:[#allocation2 + $0x2f0] sm:$0xf] %v1234_v31  ;;  %v1233_v33 = vsel %vm385_vm7, %v1227_v51, %v1232_v32  ;;  %v1246_v34 = vpop.permute.xlu1 %1245  ;;  %v1244_v28 = vpop.permute.xlu0 %1243 }
 0x163   : > { %v1248_v35 = vrot.slane %v1246_v34, 4  ;;  %v1247_v36 = vrot.slane %v1244_v28, 4  ;;  %v8811_v39 = vcombine.low %v1216_v26, %v1233_v33  ;;  %v8812_v43 = vcombine.high %v1216_v26, %v1233_v33 }
 0x165   : > { %v1251_v3 = vsel %vm403_vm8, %v1246_v34, %v1248_v35  ;;  %v1249_v44 = vsel %vm275_vm0, %v1247_v36, %v1248_v35  ;;  %2622 = vmatprep.subr.bf16.mxu1 %v8812_v43 }
 0x166   : > { %1255 = vst [vmem:[#allocation2 + $0x350] sm:$0xf] %v1251_v3  ;;  %v1250_v45 = vsel %vm403_vm8, %v1244_v28, %v1249_v44  ;;  %v1268_v46 = vpop.permute.xlu1 %1267  ;;  %v1266_v24 = vpop.permute.xlu0 %1265  ;;  %2623 = vmatpush1.bf16.msra.mxu1 %v8811_v39 }
 0x167   : > { %v1270_v47 = vrot.slane %v1268_v46, 4  ;;  %v1269_v25 = vrot.slane %v1266_v24, 4  ;;  %v8836_v48 = vcombine.high %v1250_v45, %v1250_v45  ;;  %v8835_v49 = vcombine.low %v1250_v45, %v1250_v45 }
 0x169   : > { %v1273_v37 = vsel %vm277_vm2, %v1268_v46, %v1270_v47  ;;  %v1271_v53 = vsel %vm275_vm0, %v1269_v25, %v1270_v47  ;;  %8868 = vmatprep.subr.msk.bf16.mxu1 %vm275_vm0, %v8836_v48  ;;  %v2122_v38 = vsel %vm275_vm0, %v8835_v49, 0 }
 0x16a   : > { %1277 = vst [vmem:[#allocation2 + $0xbc] sm:$0xf] %v1273_v37  ;;  %v1272_v54 = vsel %vm277_vm2, %v1266_v24, %v1271_v53  ;;  %v1285_v55 = vpop.permute.xlu1 %1284  ;;  %v1283_v56 = vpop.permute.xlu0 %1282  ;;  %2625 = vmatpush1.bf16.msra.mxu1 %v2122_v38 }
 0x16b   : > { %1276 = vst [vmem:[#allocation2 + $0xb4] sm:$0xff] %v1272_v54  ;;  %v1287_v57 = vrot.slane %v1285_v55, 4  ;;  %v1286_v58 = vrot.slane %v1283_v56, 4 }
 0x16d   : > { %v1290_v59 = vsel %vm295_vm1, %v1285_v55, %v1287_v57  ;;  %v1288_v52 = vsel %vm275_vm0, %v1286_v58, %v1287_v57  ;;  %8869 = vmatmul.mubr.msk.bf16.vlgmr.msra.gmra.mrb[32].mxu1 %vm2059_vm9, %v9559_v42 }
 0x16e   : > { %1294 = vst [vmem:[#allocation2 + $0x11c] sm:$0xf] %v1290_v59  ;;  %v1289_v60 = vsel %vm295_vm1, %v1283_v56, %v1288_v52  ;;  %v1302_v61 = vpop.permute.xlu1 %1301  ;;  %v1300_v62 = vpop.permute.xlu0 %1299  ;;  %2658 = vmatprep.mubr.bf16.mxu1 %v12513_v7 }
 0x16f   : > { %1293 = vst [vmem:[#allocation2 + $0x114] sm:$0xff] %v1289_v60  ;;  %v1304_v63 = vrot.slane %v1302_v61, 4  ;;  %v1303_v0 = vrot.slane %v1300_v62, 4 }
 0x171   : > { %v1307_v2 = vsel %vm313_vm3, %v1302_v61, %v1304_v63  ;;  %v1305_v4 = vsel %vm275_vm0, %v1303_v0, %v1304_v63 }
 0x172   : > { %1311 = vst [vmem:[#allocation2 + $0x17c] sm:$0xf] %v1307_v2  ;;  %v1306_v6 = vsel %vm313_vm3, %v1300_v62, %v1305_v4  ;;  %v1319_v8 = vpop.permute.xlu1 %1318  ;;  %v1317_v9 = vpop.permute.xlu0 %1316  ;;  %v1423_v10 = vld [vmem:[#allocation2 + $0xb0] sm:$0xff]  ;;  %v1424_v11 = vld [vmem:[#allocation2 + $0xb8] sm:$0xff] }
 0x173   : > { %1310 = vst [vmem:[#allocation2 + $0x174] sm:$0xff] %v1306_v6  ;;  %v1321_v12 = vrot.slane %v1319_v8, 4  ;;  %v1320_v13 = vrot.slane %v1317_v9, 4  ;;  %v8741_v41 = vcombine.low %v1411_v1, %v1423_v10  ;;  %v8742_v14 = vcombine.high %v1411_v1, %v1423_v10 }
 0x174   : > { %v8743_v15 = vcombine.low %v1412_v5, %v1424_v11  ;;  %v8744_v16 = vcombine.high %v1412_v5, %v1424_v11 }
 0x175   : > { %v1324_v17 = vsel %vm331_vm4, %v1319_v8, %v1321_v12  ;;  %v1322_v18 = vsel %vm275_vm0, %v1320_v13, %v1321_v12  ;;  %2669 = vmatprep.subr.bf16.mxu0 %v8742_v14  ;;  %8870 = vmatmul.mubr.msk.bf16.gmra.mrb[36].mxu1 %vm2059_vm9, %v9573_v40  ;;  %v2933_v8 = vlaneseq }
 0x176   : > { %1328 = vst [vmem:[#allocation2 + $0x1dc] sm:$0xf] %v1324_v17  ;;  %v1323_v19 = vsel %vm331_vm4, %v1317_v9, %v1322_v18  ;;  %2722 = vmatprep.subr.bf16.mxu1 %v8744_v16  ;;  %v1336_v20 = vpop.permute.xlu1 %1335  ;;  %v1334_v21 = vpop.permute.xlu0 %1333  ;;  %2670 = vmatpush1.bf16.msra.mxu0 %v8741_v41  ;;  %v1435_v30 = vld [vmem:[#allocation2 + $0x110] sm:$0xff]  ;;  %v1436_v36 = vld [vmem:[#allocation2 + $0x118] sm:$0xff] }
 0x177   : > { %1327 = vst [vmem:[#allocation2 + $0x1d4] sm:$0xff] %v1323_v19  ;;  %v1338_v22 = vrot.slane %v1336_v20, 4  ;;  %v1337_v23 = vrot.slane %v1334_v21, 4  ;;  %2723 = vmatpush1.bf16.msra.mxu1 %v8743_v15  ;;  %2754 = vmatprep.mubr.bf16.mxu1 %v12513_v7 }
 0x179   : > { %v1341_v50 = vsel %vm349_vm5, %v1336_v20, %v1338_v22  ;;  %v1339_v26 = vsel %vm275_vm0, %v1337_v23, %v1338_v22  ;;  %v9667_v20 = vshrl.u32 %v2933_v8, 7 }
 0x17a   : > { %1345 = vst [vmem:[#allocation2 + $0x23c] sm:$0xf] %v1341_v50  ;;  %v1340_v27 = vsel %vm349_vm5, %v1334_v21, %v1339_v26  ;;  %v1353_v51 = vpop.permute.xlu1 %1352  ;;  %v1351_v29 = vpop.permute.xlu0 %1350  ;;  %v1447_v31 = vld [vmem:[#allocation2 + $0x170] sm:$0xff]  ;;  %v1448_v32 = vld [vmem:[#allocation2 + $0x178] sm:$0xff] }
 0x17b   : > { %1344 = vst [vmem:[#allocation2 + $0x234] sm:$0xff] %v1340_v27  ;;  %v1355_v33 = vrot.slane %v1353_v51, 4  ;;  %v1354_v34 = vrot.slane %v1351_v29, 4  ;;  %v8765_v28 = vcombine.low %v1435_v30, %v1447_v31  ;;  %v8766_v35 = vcombine.high %v1435_v30, %v1447_v31 }
 0x17c   : > { %v8767_v39 = vcombine.low %v1436_v36, %v1448_v32  ;;  %v8768_v43 = vcombine.high %v1436_v36, %v1448_v32  ;;  %v2875_v32 = vld [vmem:[%s12511_s5] sm:$0x7] }
 0x17d   : > { %v1358_v3 = vsel %vm367_vm6, %v1353_v51, %v1355_v33  ;;  %v1356_v44 = vsel %vm275_vm0, %v1354_v34, %v1355_v33  ;;  %2671 = vmatprep.subr.bf16.mxu0 %v8766_v35  ;;  %v2939_v51 = vsub.s32 1, %v9667_v20 }
 0x17e   : > { %1362 = vst [vmem:[#allocation2 + $0x29c] sm:$0xf] %v1358_v3  ;;  %v1357_v45 = vsel %vm367_vm6, %v1351_v29, %v1356_v44  ;;  %2724 = vmatprep.subr.bf16.mxu1 %v8768_v43  ;;  %v1370_v46 = vpop.permute.xlu1 %1369  ;;  %v1368_v24 = vpop.permute.xlu0 %1367  ;;  %2672 = vmatpush1.bf16.msra.mxu0 %v8765_v28  ;;  %v1459_v56 = vld [vmem:[#allocation2 + $0x1d0] sm:$0xff]  ;;  %v1460_v62 = vld [vmem:[#allocation2 + $0x1d8] sm:$0xff]  ;;  %v2935_v29 = vsub.s32 0, %v9667_v20 }
 0x17f   : > { %1361 = vst [vmem:[#allocation2 + $0x294] sm:$0xff] %v1357_v45  ;;  %v1372_v47 = vrot.slane %v1370_v46, 4  ;;  %v1371_v25 = vrot.slane %v1368_v24, 4  ;;  %2725 = vmatpush1.bf16.msra.mxu1 %v8767_v39  ;;  %v9683_v35 = vrot.slane %v2875_v32, %v2939_v51 }
 0x180   : > { %v9657_v48 = vpop.f32.mrb[0].mxu0  ;;  %v9685_v36 = vrot.slane %v2875_v32, %v2935_v29 }
 0x181   : > { %v1375_v49 = vsel %vm385_vm7, %v1370_v46, %v1372_v47  ;;  %v1373_v37 = vsel %vm275_vm0, %v1371_v25, %v1372_v47  ;;  %v9661_v53 = vpop.f32.mrb[1].mxu0 }
 0x182   : > { %1379 = vst [vmem:[#allocation2 + $0x2fc] sm:$0xf] %v1375_v49  ;;  %v1374_v38 = vsel %vm385_vm7, %v1368_v24, %v1373_v37  ;;  %v1387_v54 = vpop.permute.xlu1 %1386  ;;  %v1385_v55 = vpop.permute.xlu0 %1384  ;;  %v1471_v57 = vld [vmem:[#allocation2 + $0x230] sm:$0xff]  ;;  %v1472_v58 = vld [vmem:[#allocation2 + $0x238] sm:$0xff] }
 0x183   : > { %1378 = vst [vmem:[#allocation2 + $0x2f4] sm:$0xff] %v1374_v38  ;;  %v1389_v59 = vrot.slane %v1387_v54, 4  ;;  %v1388_v52 = vrot.slane %v1385_v55, 4  ;;  %v8789_v60 = vcombine.low %v1459_v56, %v1471_v57  ;;  %v8790_v61 = vcombine.high %v1459_v56, %v1471_v57  ;;  %v2177_v63 = vpop.f32.mrb[2].mxu0 }
 0x184   : > { %v8791_v0 = vcombine.low %v1460_v62, %v1472_v58  ;;  %v8792_v1 = vcombine.high %v1460_v62, %v1472_v58  ;;  %v2179_v2 = vpop.f32.mrb[3].mxu0 }
 0x185   : > { %v1392_v4 = vsel %vm403_vm8, %v1387_v54, %v1389_v59  ;;  %v1390_v5 = vsel %vm275_vm0, %v1388_v52, %v1389_v59  ;;  %2673 = vmatprep.subr.bf16.mxu0 %v8790_v61 }
 0x186   : > { %1396 = vst [vmem:[#allocation2 + $0x35c] sm:$0xf] %v1392_v4  ;;  %v1391_v6 = vsel %vm403_vm8, %v1385_v55, %v1390_v5  ;;  %2726 = vmatprep.subr.bf16.mxu1 %v8792_v1  ;;  %2674 = vmatpush1.bf16.msra.mxu0 %v8789_v60  ;;  %v1483_v10 = vld [vmem:[#allocation2 + $0x290] sm:$0xff]  ;;  %v1484_v13 = vld [vmem:[#allocation2 + $0x298] sm:$0xff] }
 0x187   : > { %1395 = vst [vmem:[#allocation2 + $0x354] sm:$0xff] %v1391_v6  ;;  %2727 = vmatpush1.bf16.msra.mxu1 %v8791_v0 }
 0x188   : > { %v2183_v9 = vpop.f32.mrb[4].mxu0 }
 0x189   : > { %v2185_v11 = vpop.f32.mrb[5].mxu0 }
 0x18a   : > { %v1495_v12 = vld [vmem:[#allocation2 + $0x2f0] sm:$0xff]  ;;  %v1496_v41 = vld [vmem:[#allocation2 + $0x2f8] sm:$0xff]  ;;  %v2187_v14 = vpop.f32.mrb[6].mxu0 }
 0x18b   : > { %v8813_v15 = vcombine.low %v1483_v10, %v1495_v12  ;;  %v8814_v16 = vcombine.high %v1483_v10, %v1495_v12  ;;  %v8815_v17 = vcombine.low %v1484_v13, %v1496_v41  ;;  %v8816_v18 = vcombine.high %v1484_v13, %v1496_v41  ;;  %v2189_v19 = vpop.f32.mrb[7].mxu0 }
 0x18d   : > { %2675 = vmatprep.subr.bf16.mxu0 %v8814_v16  ;;  %2728 = vmatprep.subr.bf16.mxu1 %v8816_v18 }
 0x18e   : > { %2676 = vmatpush1.bf16.msra.mxu0 %v8813_v15  ;;  %2729 = vmatpush1.bf16.msra.mxu1 %v8815_v17  ;;  %v1507_v21 = vld [vmem:[#allocation2 + $0x350] sm:$0xff]  ;;  %v1508_v22 = vld [vmem:[#allocation2 + $0x358] sm:$0xff] }
 0x18f   : > { %v8838_v23 = vcombine.high %v1507_v21, %v1507_v21  ;;  %v8840_v50 = vcombine.high %v1508_v22, %v1508_v22  ;;  %v8837_v26 = vcombine.low %v1507_v21, %v1507_v21  ;;  %v8839_v27 = vcombine.low %v1508_v22, %v1508_v22 }
 0x191   : > { %8871 = vmatprep.subr.msk.bf16.mxu0 %vm275_vm0, %v8838_v23  ;;  %8874 = vmatprep.subr.msk.bf16.mxu1 %vm275_vm0, %v8840_v50  ;;  %v2128_v30 = vsel %vm275_vm0, %v8837_v26, 0  ;;  %v2134_v31 = vsel %vm275_vm0, %v8839_v27, 0 }
 0x192   : > { %2678 = vmatpush1.bf16.msra.mxu0 %v2128_v30  ;;  %2731 = vmatpush1.bf16.msra.mxu1 %v2134_v31 }
 0x193   : > { %v9678_v33 = vpop.permute.xlu1 %2895 }
 0x194   : > { %v9680_v34 = vpop.permute.xlu0 %2890  ;;  %v2912_v28 = vadd.f32 %v9678_v33, %v2179_v2  ;;  %v2911_v39 = vadd.f32 %v9678_v33, %v2177_v63 }
 0x195   : > { %8872 = vmatmul.mubr.msk.bf16.vlgmr.msra.gmra.mrb[40].mxu0 %vm2059_vm9, %v9559_v42  ;;  %8875 = vmatmul.mubr.msk.bf16.vlgmr.msra.gmra.mrb[40].mxu1 %vm2059_vm9, %v9559_v42  ;;  %v2909_v43 = vadd.f32 %v9680_v34, %v9661_v53  ;;  %v2908_v3 = vadd.f32 %v9680_v34, %v9657_v48 }
 0x196   : > { %2711 = vmatprep.mubr.bf16.mxu0 %v12513_v7  ;;  %2764 = vmatprep.mubr.bf16.mxu1 %v12513_v7  ;;  %v2924_v44 = vmax.f32 %v2912_v28, 0.0  ;;  %v2923_v45 = vmax.f32 %v2911_v39, 0.0 }
 0x197   : > { %v2921_v46 = vmax.f32 %v2909_v43, 0.0  ;;  %v2920_v24 = vmax.f32 %v2908_v3, 0.0 }
 0x198   : > { %v2952_v47 = vmul.f32 %v9683_v35, %v2924_v44  ;;  %v9699_v25 = vpop.permute.xlu1 %2900  ;;  %v9701_v49 = vpop.permute.xlu0 %2905  ;;  %v2951_v42 = vmul.f32 %v9685_v36, %v2923_v45 }
 0x199   : > { %v2949_v37 = vmul.f32 %v9683_v35, %v2921_v46  ;;  %v2914_v48 = vadd.f32 %v9699_v25, %v2183_v9  ;;  %v2917_v53 = vadd.f32 %v9701_v49, %v2187_v14  ;;  %v2948_v38 = vmul.f32 %v9685_v36, %v2920_v24 }
 0x19a   : > { %v2915_v54 = vadd.f32 %v9699_v25, %v2185_v11  ;;  %v2918_v55 = vadd.f32 %v9701_v49, %v2189_v19 }
 0x19b   : > { %v2967_v56 = vpack.c.bf16 %v2952_v47, %v2949_v37  ;;  %v2926_v57 = vmax.f32 %v2914_v48, 0.0  ;;  %v2929_v58 = vmax.f32 %v2917_v53, 0.0  ;;  %v2966_v59 = vpack.c.bf16 %v2951_v42, %v2948_v38 }
 0x19c   : > { %v2927_v52 = vmax.f32 %v2915_v54, 0.0  ;;  %v2930_v60 = vmax.f32 %v2918_v55, 0.0 }
 0x19d   : > { %8873 = vmatmul.mubr.msk.bf16.gmra.mrb[44].mxu0 %vm2059_vm9, %v9573_v40  ;;  %8876 = vmatmul.mubr.msk.bf16.gmra.mrb[44].mxu1 %vm2059_vm9, %v9573_v40  ;;  %v2954_v61 = vmul.f32 %v9685_v36, %v2926_v57  ;;  %v2957_v62 = vmul.f32 %v9685_v36, %v2929_v58  ;;  %v2943_v40 = vsub.s32 2, %v9667_v20 }
 0x19e   : > { %2978 = vrot.lane.b32.xlu1 %v2966_v59, %s9026_s16  ;;  %2980 = vrot.lane.b32.xlu0 %v2967_v56, %s9026_s16  ;;  %v9719_v63 = vmul.f32 %v9683_v35, %v2927_v52  ;;  %v9722_v0 = vmul.f32 %v9683_v35, %v2930_v60 }
 0x19f   : > { %v2969_v1 = vpack.c.bf16 %v2957_v62, %v2954_v61  ;;  %v9729_v8 = vrot.slane %v2875_v32, %v2943_v40 }
 0x1a0   : > { %v2970_v2 = vpack.c.bf16 %v9722_v0, %v9719_v63 }
 0x1a2   : > { %2984 = vrot.lane.b32.xlu0 %v2969_v1, %s9026_s16 }
 0x1a9   : > { %v2226_v4 = vpop.f32.mrb[0].mxu1  ;;  %v2279_v5 = vpop.f32.mrb[8].mxu0 }
 0x1aa   : > { %v2910_v6 = vadd.f32 %v9680_v34, %v2226_v4  ;;  %v2228_v9 = vpop.f32.mrb[1].mxu1  ;;  %v3025_v10 = vadd.f32 %v9680_v34, %v2279_v5  ;;  %v2281_v11 = vpop.f32.mrb[9].mxu0 }
 0x1ab   : > { %v3024_v12 = vadd.f32 %v9680_v34, %v2228_v9  ;;  %v2230_v13 = vpop.f32.mrb[2].mxu1  ;;  %v3026_v41 = vadd.f32 %v9680_v34, %v2281_v11  ;;  %v2283_v14 = vpop.f32.mrb[10].mxu0 }
 0x1ac   : > { %v2922_v15 = vmax.f32 %v2910_v6, 0.0  ;;  %v2913_v16 = vadd.f32 %v9678_v33, %v2230_v13  ;;  %v2232_v17 = vpop.f32.mrb[3].mxu1  ;;  %v3037_v18 = vmax.f32 %v3025_v10, 0.0  ;;  %v3028_v19 = vadd.f32 %v9678_v33, %v2283_v14  ;;  %v2285_v21 = vpop.f32.mrb[11].mxu0 }
 0x1ad   : > { %v3036_v22 = vmax.f32 %v3024_v12, 0.0  ;;  %v3027_v23 = vadd.f32 %v9678_v33, %v2232_v17  ;;  %v3038_v50 = vmax.f32 %v3026_v41, 0.0  ;;  %v3029_v26 = vadd.f32 %v9678_v33, %v2285_v21 }
 0x1ae   : > { %v2950_v27 = vmul.f32 %v9729_v8, %v2922_v15  ;;  %v2925_v51 = vmax.f32 %v2913_v16, 0.0  ;;  %v9740_v29 = vmul.f32 %v3037_v18, %v9683_v35  ;;  %v3040_v30 = vmax.f32 %v3028_v19, 0.0 }
 0x1af   : > { %v3048_v31 = vmul.f32 %v3036_v22, %v9685_v36  ;;  %v3039_v32 = vmax.f32 %v3027_v23, 0.0  ;;  %v9744_v28 = vmul.f32 %v3038_v50, %v9729_v8  ;;  %v3041_v39 = vmax.f32 %v3029_v26, 0.0 }
 0x1b0   : > { %v2953_v43 = vmul.f32 %v9729_v8, %v2925_v51  ;;  %v3052_v3 = vmul.f32 %v3040_v30, %v9683_v35 }
 0x1b1   : > { %v3051_v44 = vmul.f32 %v3039_v32, %v9685_v36  ;;  %v2236_v45 = vpop.f32.mrb[4].mxu1  ;;  %v9750_v46 = vmul.f32 %v3041_v39, %v9729_v8  ;;  %v2289_v24 = vpop.f32.mrb[12].mxu0 }
 0x1b2   : > { %v2968_v47 = vpack.c.bf16 %v2953_v43, %v2950_v27  ;;  %v2916_v42 = vadd.f32 %v9699_v25, %v2236_v45  ;;  %v2238_v37 = vpop.f32.mrb[5].mxu1  ;;  %v3066_v48 = vpack.c.bf16 %v3052_v3, %v9740_v29  ;;  %v3031_v53 = vadd.f32 %v9699_v25, %v2289_v24  ;;  %v2291_v38 = vpop.f32.mrb[13].mxu0 }
 0x1b3   : > { %v3065_v54 = vpack.c.bf16 %v3051_v44, %v3048_v31  ;;  %v3030_v55 = vadd.f32 %v9699_v25, %v2238_v37  ;;  %v2240_v56 = vpop.f32.mrb[6].mxu1  ;;  %v3067_v57 = vpack.c.bf16 %v9750_v46, %v9744_v28  ;;  %v3032_v58 = vadd.f32 %v9699_v25, %v2291_v38  ;;  %v2293_v59 = vpop.f32.mrb[14].mxu0 }
 0x1b4   : > { %v2928_v52 = vmax.f32 %v2916_v42, 0.0  ;;  %v2919_v60 = vadd.f32 %v9701_v49, %v2240_v56  ;;  %v2242_v61 = vpop.f32.mrb[7].mxu1  ;;  %2982 = vrot.lane.b32.xlu1 %v2968_v47, %s9026_s16  ;;  %v3043_v62 = vmax.f32 %v3031_v53, 0.0  ;;  %v3034_v1 = vadd.f32 %v9701_v49, %v2293_v59  ;;  %v2295_v40 = vpop.f32.mrb[15].mxu0 }
 0x1b5   : > { %v3042_v4 = vmax.f32 %v3030_v55, 0.0  ;;  %v3033_v5 = vadd.f32 %v9701_v49, %v2242_v61  ;;  %v3044_v6 = vmax.f32 %v3032_v58, 0.0  ;;  %v3035_v9 = vadd.f32 %v9701_v49, %v2295_v40 }
 0x1b6   : > { %v2956_v10 = vmul.f32 %v9729_v8, %v2928_v52  ;;  %v2931_v11 = vmax.f32 %v2919_v60, 0.0  ;;  %v9766_v12 = vmul.f32 %v3043_v62, %v9683_v35  ;;  %v3046_v13 = vmax.f32 %v3034_v1, 0.0 }
 0x1b7   : > { %v3054_v41 = vmul.f32 %v3042_v4, %v9685_v36  ;;  %v3045_v14 = vmax.f32 %v3033_v5, 0.0  ;;  %v9770_v15 = vmul.f32 %v3044_v6, %v9729_v8  ;;  %v3047_v16 = vmax.f32 %v3035_v9, 0.0 }
 0x1b8   : > { %v2959_v17 = vmul.f32 %v9729_v8, %v2931_v11  ;;  %3077 = vrot.lane.b32.xlu1 %v3065_v54, %s9026_s16  ;;  %v9775_v18 = vmul.f32 %v3046_v13, %v9683_v35 }
 0x1b9   : > { %v3057_v19 = vmul.f32 %v3045_v14, %v9685_v36  ;;  %v9779_v21 = vmul.f32 %v3047_v16, %v9729_v8 }
 0x1ba   : > { %v2971_v22 = vpack.c.bf16 %v2959_v17, %v2956_v10  ;;  %v3069_v23 = vpack.c.bf16 %v9775_v18, %v9766_v12 }
 0x1bb   : > { %v3068_v50 = vpack.c.bf16 %v3057_v19, %v3054_v41  ;;  %v3070_v26 = vpack.c.bf16 %v9779_v21, %v9770_v15 }
 0x1bc   : > { %2988 = vrot.lane.b32.xlu0 %v2971_v22, %s9026_s16  ;;  %2986 = vrot.lane.b32.xlu1 %v2970_v2, %s9026_s16 }
 0x1c0   : > { %v2332_v27 = vpop.f32.mrb[8].mxu1  ;;  %3083 = vrot.lane.b32.xlu0 %v3068_v50, %s9026_s16 }
 0x1c1   : > { %v3121_v51 = vadd.f32 %v9680_v34, %v2332_v27  ;;  %v2334_v29 = vpop.f32.mrb[9].mxu1 }
 0x1c2   : > { %v3122_v30 = vadd.f32 %v9680_v34, %v2334_v29  ;;  %v2336_v31 = vpop.f32.mrb[10].mxu1 }
 0x1c3   : > { %v3133_v32 = vmax.f32 %v3121_v51, 0.0  ;;  %v3124_v39 = vadd.f32 %v9678_v33, %v2336_v31  ;;  %v2338_v43 = vpop.f32.mrb[11].mxu1 }
 0x1c4   : > { %v3134_v3 = vmax.f32 %v3122_v30, 0.0  ;;  %v3125_v44 = vadd.f32 %v9678_v33, %v2338_v43  ;;  %3079 = vrot.lane.b32.xlu0 %v3066_v48, %s9026_s16 }
 0x1c5   : > { %v3145_v63 = vmul.f32 %v3133_v32, %v9685_v36  ;;  %v3136_v0 = vmax.f32 %v3124_v39, 0.0 }
 0x1c6   : > { %v3146_v2 = vmul.f32 %v3134_v3, %v9683_v35  ;;  %v3137_v45 = vmax.f32 %v3125_v44, 0.0 }
 0x1c7   : > { %v3148_v24 = vmul.f32 %v3136_v0, %v9685_v36 }
 0x1c8   : > { %v3149_v47 = vmul.f32 %v3137_v45, %v9683_v35  ;;  %v2342_v42 = vpop.f32.mrb[12].mxu1 }
 0x1c9   : > { %v3162_v37 = vpack.c.bf16 %v3148_v24, %v3145_v63  ;;  %v3127_v53 = vadd.f32 %v9699_v25, %v2342_v42  ;;  %v2344_v38 = vpop.f32.mrb[13].mxu1 }
 0x1ca   : > { %v3163_v54 = vpack.c.bf16 %v3149_v47, %v3146_v2  ;;  %v3128_v55 = vadd.f32 %v9699_v25, %v2344_v38  ;;  %v2346_v56 = vpop.f32.mrb[14].mxu1 }
 0x1cb   : > { %v3139_v48 = vmax.f32 %v3127_v53, 0.0  ;;  %v3130_v58 = vadd.f32 %v9701_v49, %v2346_v56  ;;  %3174 = vrot.lane.b32.xlu1 %v3162_v37, %s9026_s16  ;;  %v2348_v59 = vpop.f32.mrb[15].mxu1 }
 0x1cc   : > { %v3140_v52 = vmax.f32 %v3128_v55, 0.0  ;;  %v3131_v60 = vadd.f32 %v9701_v49, %v2348_v59  ;;  %3176 = vrot.lane.b32.xlu0 %v3163_v54, %s9026_s16 }
 0x1cd   : > { %v3151_v61 = vmul.f32 %v3139_v48, %v9685_v36  ;;  %v3142_v62 = vmax.f32 %v3130_v58, 0.0 }
 0x1ce   : > { %v3152_v1 = vmul.f32 %v3140_v52, %v9683_v35  ;;  %v3143_v40 = vmax.f32 %v3131_v60, 0.0 }
 0x1cf   : > { %v3154_v4 = vmul.f32 %v3142_v62, %v9685_v36  ;;  %3081 = vrot.lane.b32.xlu1 %v3067_v57, %s9026_s16 }
 0x1d0   : > { %v3155_v5 = vmul.f32 %v3143_v40, %v9683_v35 }
 0x1d1   : > { %v3165_v6 = vpack.c.bf16 %v3154_v4, %v3151_v61 }
 0x1d2   : > { %v3166_v9 = vpack.c.bf16 %v3155_v5, %v3152_v1 }
 0x1d3   : > { %3180 = vrot.lane.b32.xlu0 %v3165_v6, %s9026_s16  ;;  %3085 = vrot.lane.b32.xlu1 %v3069_v23, %s9026_s16 }
 0x1d7   : > { %3182 = vrot.lane.b32.xlu1 %v3166_v9, %s9026_s16  ;;  %3087 = vrot.lane.b32.xlu0 %v3070_v26, %s9026_s16 }
 0x1e9   : > { %v2385_v28 = vpop.f32.mrb[16].mxu0  ;;  %v2438_v46 = vpop.f32.mrb[16].mxu1 }
 0x1ea   : > { %v3123_v57 = vadd.f32 %v9680_v34, %v2385_v28  ;;  %v3219_v10 = vadd.f32 %v9680_v34, %v2438_v46  ;;  %v2387_v11 = vpop.f32.mrb[17].mxu0  ;;  %v2440_v13 = vpop.f32.mrb[17].mxu1 }
 0x1eb   : > { %v3218_v41 = vadd.f32 %v9680_v34, %v2387_v11  ;;  %v3220_v12 = vadd.f32 %v9680_v34, %v2440_v13  ;;  %v2389_v14 = vpop.f32.mrb[18].mxu0  ;;  %v2442_v16 = vpop.f32.mrb[18].mxu1 }
 0x1ec   : > { %v3135_v17 = vmax.f32 %v3123_v57, 0.0  ;;  %v3231_v18 = vmax.f32 %v3219_v10, 0.0  ;;  %v3126_v19 = vadd.f32 %v9678_v33, %v2389_v14  ;;  %v3222_v15 = vadd.f32 %v9678_v33, %v2442_v16  ;;  %v2391_v21 = vpop.f32.mrb[19].mxu0  ;;  %v2444_v22 = vpop.f32.mrb[19].mxu1 }
 0x1ed   : > { %v3230_v23 = vmax.f32 %v3218_v41, 0.0  ;;  %v3232_v50 = vmax.f32 %v3220_v12, 0.0  ;;  %v3221_v26 = vadd.f32 %v9678_v33, %v2391_v21  ;;  %v3223_v27 = vadd.f32 %v9678_v33, %v2444_v22 }
 0x1ee   : > { %v3147_v51 = vmul.f32 %v3135_v17, %v9729_v8  ;;  %v3243_v29 = vmul.f32 %v3231_v18, %v9683_v35  ;;  %v3138_v30 = vmax.f32 %v3126_v19, 0.0  ;;  %v3234_v31 = vmax.f32 %v3222_v15, 0.0 }
 0x1ef   : > { %v3242_v32 = vmul.f32 %v3230_v23, %v9685_v36  ;;  %v3244_v39 = vmul.f32 %v3232_v50, %v9729_v8  ;;  %v3233_v43 = vmax.f32 %v3221_v26, 0.0  ;;  %v3235_v3 = vmax.f32 %v3223_v27, 0.0 }
 0x1f0   : > { %v3150_v44 = vmul.f32 %v3138_v30, %v9729_v8  ;;  %v3246_v63 = vmul.f32 %v3234_v31, %v9683_v35 }
 0x1f1   : > { %v3245_v0 = vmul.f32 %v3233_v43, %v9685_v36  ;;  %v2395_v2 = vpop.f32.mrb[20].mxu0  ;;  %v3247_v45 = vmul.f32 %v3235_v3, %v9729_v8  ;;  %v2448_v24 = vpop.f32.mrb[20].mxu1 }
 0x1f2   : > { %v3164_v47 = vpack.c.bf16 %v3150_v44, %v3147_v51  ;;  %v3260_v42 = vpack.c.bf16 %v3246_v63, %v3243_v29  ;;  %v3129_v37 = vadd.f32 %v9699_v25, %v2395_v2  ;;  %v2397_v53 = vpop.f32.mrb[21].mxu0  ;;  %v3225_v38 = vadd.f32 %v9699_v25, %v2448_v24  ;;  %v2450_v54 = vpop.f32.mrb[21].mxu1 }
 0x1f3   : > { %v3259_v55 = vpack.c.bf16 %v3245_v0, %v3242_v32  ;;  %v3224_v56 = vadd.f32 %v9699_v25, %v2397_v53  ;;  %v2399_v48 = vpop.f32.mrb[22].mxu0  ;;  %v3261_v58 = vpack.c.bf16 %v3247_v45, %v3244_v39  ;;  %v3226_v59 = vadd.f32 %v9699_v25, %v2450_v54  ;;  %v2452_v52 = vpop.f32.mrb[22].mxu1 }
 0x1f4   : > { %v3141_v60 = vmax.f32 %v3129_v37, 0.0  ;;  %v3132_v61 = vadd.f32 %v9701_v49, %v2399_v48  ;;  %v2401_v62 = vpop.f32.mrb[23].mxu0  ;;  %v3237_v1 = vmax.f32 %v3225_v38, 0.0  ;;  %3273 = vrot.lane.b32.xlu0 %v3260_v42, %s9026_s16  ;;  %3178 = vrot.lane.b32.xlu1 %v3164_v47, %s9026_s16  ;;  %v3228_v40 = vadd.f32 %v9701_v49, %v2452_v52  ;;  %v2454_v4 = vpop.f32.mrb[23].mxu1 }
 0x1f5   : > { %v3236_v5 = vmax.f32 %v3224_v56, 0.0  ;;  %v3227_v6 = vadd.f32 %v9701_v49, %v2401_v62  ;;  %v3238_v9 = vmax.f32 %v3226_v59, 0.0  ;;  %v3229_v28 = vadd.f32 %v9701_v49, %v2454_v4 }
 0x1f6   : > { %v3153_v46 = vmul.f32 %v3141_v60, %v9729_v8  ;;  %v3144_v57 = vmax.f32 %v3132_v61, 0.0  ;;  %v3249_v10 = vmul.f32 %v3237_v1, %v9683_v35  ;;  %v3240_v11 = vmax.f32 %v3228_v40, 0.0 }
 0x1f7   : > { %v3248_v13 = vmul.f32 %v3236_v5, %v9685_v36  ;;  %v3239_v41 = vmax.f32 %v3227_v6, 0.0  ;;  %v3250_v12 = vmul.f32 %v3238_v9, %v9729_v8  ;;  %v3241_v14 = vmax.f32 %v3229_v28, 0.0 }
 0x1f8   : > { %v3156_v16 = vmul.f32 %v3144_v57, %v9729_v8  ;;  %v3252_v17 = vmul.f32 %v3240_v11, %v9683_v35  ;;  %3271 = vrot.lane.b32.xlu1 %v3259_v55, %s9026_s16 }
 0x1f9   : > { %v3251_v18 = vmul.f32 %v3239_v41, %v9685_v36  ;;  %v3253_v19 = vmul.f32 %v3241_v14, %v9729_v8 }
 0x1fa   : > { %v3167_v15 = vpack.c.bf16 %v3156_v16, %v3153_v46  ;;  %v3263_v21 = vpack.c.bf16 %v3252_v17, %v3249_v10 }
 0x1fb   : > { %v3262_v22 = vpack.c.bf16 %v3251_v18, %v3248_v13  ;;  %v3264_v23 = vpack.c.bf16 %v3253_v19, %v3250_v12 }
 0x1fc   : > { %3184 = vrot.lane.b32.xlu0 %v3167_v15, %s9026_s16  ;;  %3275 = vrot.lane.b32.xlu1 %v3261_v58, %s9026_s16 }
 0x200   : > { %3277 = vrot.lane.b32.xlu0 %v3262_v22, %s9026_s16  ;;  %3279 = vrot.lane.b32.xlu1 %v3263_v21, %s9026_s16  ;;  %v2491_v50 = vpop.f32.mrb[24].mxu0 }
 0x201   : > { %v3315_v26 = vadd.f32 %v9680_v34, %v2491_v50  ;;  %v2493_v27 = vpop.f32.mrb[25].mxu0 }
 0x202   : > { %v3316_v51 = vadd.f32 %v9680_v34, %v2493_v27  ;;  %v2495_v29 = vpop.f32.mrb[26].mxu0 }
 0x203   : > { %v3327_v30 = vmax.f32 %v3315_v26, 0.0  ;;  %v3318_v31 = vadd.f32 %v9678_v33, %v2495_v29  ;;  %v2497_v32 = vpop.f32.mrb[27].mxu0 }
 0x204   : > { %3281 = vrot.lane.b32.xlu0 %v3264_v23, %s9026_s16  ;;  %v3328_v39 = vmax.f32 %v3316_v51, 0.0  ;;  %v3319_v43 = vadd.f32 %v9678_v33, %v2497_v32 }
 0x205   : > { %v3330_v3 = vmax.f32 %v3318_v31, 0.0  ;;  %v3339_v63 = vmul.f32 %v3327_v30, %v9685_v36 }
 0x206   : > { %v3331_v44 = vmax.f32 %v3319_v43, 0.0  ;;  %v3340_v2 = vmul.f32 %v3328_v39, %v9683_v35 }
 0x207   : > { %v3342_v0 = vmul.f32 %v3330_v3, %v9685_v36 }
 0x208   : > { %v3343_v45 = vmul.f32 %v3331_v44, %v9683_v35  ;;  %v2501_v24 = vpop.f32.mrb[28].mxu0 }
 0x209   : > { %v3356_v47 = vpack.c.bf16 %v3342_v0, %v3339_v63  ;;  %v3321_v42 = vadd.f32 %v9699_v25, %v2501_v24  ;;  %v2503_v37 = vpop.f32.mrb[29].mxu0 }
 0x20a   : > { %v3357_v53 = vpack.c.bf16 %v3343_v45, %v3340_v2  ;;  %v3322_v38 = vadd.f32 %v9699_v25, %v2503_v37  ;;  %v2505_v54 = vpop.f32.mrb[30].mxu0 }
 0x20b   : > { %v3333_v55 = vmax.f32 %v3321_v42, 0.0  ;;  %v3324_v56 = vadd.f32 %v9701_v49, %v2505_v54  ;;  %3368 = vrot.lane.b32.xlu1 %v3356_v47, %s9026_s16  ;;  %v2507_v48 = vpop.f32.mrb[31].mxu0 }
 0x20c   : > { %v3334_v58 = vmax.f32 %v3322_v38, 0.0  ;;  %v3325_v59 = vadd.f32 %v9701_v49, %v2507_v48  ;;  %3370 = vrot.lane.b32.xlu0 %v3357_v53, %s9026_s16 }
 0x20d   : > { %v3336_v52 = vmax.f32 %v3324_v56, 0.0  ;;  %v3345_v61 = vmul.f32 %v3333_v55, %v9685_v36 }
 0x20e   : > { %v3337_v60 = vmax.f32 %v3325_v59, 0.0  ;;  %v9945_v1 = vmul.f32 %v3334_v58, %v9683_v35 }
 0x20f   : > { %v3348_v62 = vmul.f32 %v3336_v52, %v9685_v36 }
 0x210   : > { %v9948_v40 = vmul.f32 %v3337_v60, %v9683_v35  ;;  %v2979_v4 = vpop.permute.xlu1 %2978  ;;  %v2981_v5 = vpop.permute.xlu0 %2980 }
 0x211   : > { %v3359_v6 = vpack.c.bf16 %v3348_v62, %v3345_v61  ;;  %3004 = vst.msk [vmem:[#allocation4] sm:$0xff] %vm3003_vm12, %v2979_v4  ;;  %v9952_v9 = vsel %vm2960_vm10, %v2979_v4, %v2981_v5 }
 0x212   : > { %v3360_v28 = vpack.c.bf16 %v9948_v40, %v9945_v1  ;;  %7449 = vmatprep.subr.bf16.mxu0 %v9952_v9 }
 0x213   : > { %3374 = vrot.lane.b32.xlu0 %v3359_v6, %s9026_s16 }
 0x214   : > { %v9958_v46 = vpop.permute.xlu0 %2984 }
 0x215   : > { %3008 = vst.msk [vmem:[#allocation4 + $0x20] sm:$0xff] %vm3003_vm12, %v9958_v46 }
 0x218   : > { %v9962_v57 = vld [vmem:[#allocation4] sm:$0xff] }
 0x219   : > { %7450 = vmatpush1.bf16.msra.mxu0 %v9962_v57 }
 0x226   : > { %v2983_v10 = vpop.permute.xlu1 %2982 }
 0x227   : > { %v9966_v11 = vsel %vm2960_vm10, %v2981_v5, %v2983_v10  ;;  %3007 = vst.msk [vmem:[#allocation4 + $0x18] sm:$0xff] %vm2960_vm10, %v2983_v10 }
 0x229   : > { %v2544_v13 = vpop.f32.mrb[24].mxu1  ;;  %v2597_v41 = vpop.f32.mrb[32].mxu0 }
 0x22a   : > { %v3317_v12 = vadd.f32 %v9680_v34, %v2544_v13  ;;  %v3413_v14 = vadd.f32 %v9680_v34, %v2597_v41  ;;  %v2546_v16 = vpop.f32.mrb[25].mxu1  ;;  %v2599_v17 = vpop.f32.mrb[33].mxu0 }
 0x22b   : > { %v3412_v18 = vadd.f32 %v9680_v34, %v2546_v16  ;;  %v3414_v19 = vadd.f32 %v9680_v34, %v2599_v17  ;;  %v2548_v15 = vpop.f32.mrb[26].mxu1  ;;  %v2601_v21 = vpop.f32.mrb[34].mxu0 }
 0x22c   : > { %v3329_v22 = vmax.f32 %v3317_v12, 0.0  ;;  %v3425_v23 = vmax.f32 %v3413_v14, 0.0  ;;  %v3320_v50 = vadd.f32 %v9678_v33, %v2548_v15  ;;  %v3416_v26 = vadd.f32 %v9678_v33, %v2601_v21  ;;  %v2550_v27 = vpop.f32.mrb[27].mxu1  ;;  %v2603_v51 = vpop.f32.mrb[35].mxu0 }
 0x22d   : > { %v3424_v29 = vmax.f32 %v3412_v18, 0.0  ;;  %v3426_v30 = vmax.f32 %v3414_v19, 0.0  ;;  %v3415_v31 = vadd.f32 %v9678_v33, %v2550_v27  ;;  %v3417_v32 = vadd.f32 %v9678_v33, %v2603_v51  ;;  %v9977_v39 = vpop.permute.xlu1 %3077 }
 0x22e   : > { %v3332_v43 = vmax.f32 %v3320_v50, 0.0  ;;  %v3428_v3 = vmax.f32 %v3416_v26, 0.0  ;;  %3101 = vst.msk [vmem:[#allocation4 + $0x40] sm:$0xff] %vm3003_vm12, %v9977_v39  ;;  %v2989_v44 = vpop.permute.xlu0 %2988  ;;  %v3341_v2 = vmul.f32 %v3329_v22, %v9729_v8  ;;  %v9984_v45 = vmul.f32 %v3425_v23, %v9683_v35 }
 0x22f   : > { %v3427_v63 = vmax.f32 %v3415_v31, 0.0  ;;  %v3429_v0 = vmax.f32 %v3417_v32, 0.0  ;;  %3011 = vst.msk [vmem:[#allocation4 + $0x38] sm:$0xff] %vm2960_vm10, %v2989_v44  ;;  %v3436_v42 = vmul.f32 %v3424_v29, %v9685_v36  ;;  %v9992_v37 = vmul.f32 %v3426_v30, %v9729_v8  ;;  %v10023_v32 = vld [vmem:[#allocation4 + $0x20] sm:$0xff] }
 0x230   : > { %v3344_v24 = vmul.f32 %v3332_v43, %v9729_v8  ;;  %v9988_v47 = vmul.f32 %v3428_v3, %v9683_v35 }
 0x231   : > { %v3439_v53 = vmul.f32 %v3427_v63, %v9685_v36  ;;  %v9996_v38 = vmul.f32 %v3429_v0, %v9729_v8  ;;  %v2554_v54 = vpop.f32.mrb[28].mxu1  ;;  %v2607_v55 = vpop.f32.mrb[36].mxu0 }
 0x232   : > { %v3358_v56 = vpack.c.bf16 %v3344_v24, %v3341_v2  ;;  %v3454_v48 = vpack.c.bf16 %v9988_v47, %v9984_v45  ;;  %v3323_v58 = vadd.f32 %v9699_v25, %v2554_v54  ;;  %v3419_v59 = vadd.f32 %v9699_v25, %v2607_v55  ;;  %v2556_v52 = vpop.f32.mrb[29].mxu1  ;;  %v2609_v60 = vpop.f32.mrb[37].mxu0 }
 0x233   : > { %v3453_v61 = vpack.c.bf16 %v3439_v53, %v3436_v42  ;;  %v3455_v62 = vpack.c.bf16 %v9996_v38, %v9992_v37  ;;  %v3418_v4 = vadd.f32 %v9699_v25, %v2556_v52  ;;  %v3420_v5 = vadd.f32 %v9699_v25, %v2609_v60  ;;  %v2558_v6 = vpop.f32.mrb[30].mxu1  ;;  %v2611_v10 = vpop.f32.mrb[38].mxu0 }
 0x234   : > { %v3335_v13 = vmax.f32 %v3323_v58, 0.0  ;;  %v3431_v41 = vmax.f32 %v3419_v59, 0.0  ;;  %v3326_v12 = vadd.f32 %v9701_v49, %v2558_v6  ;;  %v3422_v14 = vadd.f32 %v9701_v49, %v2611_v10  ;;  %v2560_v16 = vpop.f32.mrb[31].mxu1  ;;  %3372 = vrot.lane.b32.xlu1 %v3358_v56, %s9026_s16  ;;  %v2613_v17 = vpop.f32.mrb[39].mxu0 }
 0x235   : > { %v3430_v18 = vmax.f32 %v3418_v4, 0.0  ;;  %v3432_v19 = vmax.f32 %v3420_v5, 0.0  ;;  %v3421_v15 = vadd.f32 %v9701_v49, %v2560_v16  ;;  %v3423_v21 = vadd.f32 %v9701_v49, %v2613_v17  ;;  %v10011_v22 = vpop.permute.xlu0 %3083  ;;  %v10013_v23 = vld [vmem:[#allocation4 + $0x40] sm:$0xff]  ;;  %v2987_v31 = vpop.permute.xlu1 %2986 }
 0x236   : > { %v3338_v50 = vmax.f32 %v3326_v12, 0.0  ;;  %v3434_v26 = vmax.f32 %v3422_v14, 0.0  ;;  %3105 = vst.msk [vmem:[#allocation4 + $0x60] sm:$0xff] %vm3003_vm12, %v10011_v22  ;;  %7531 = vmatprep.subr.bf16.mxu1 %v10013_v23  ;;  %v3347_v27 = vmul.f32 %v3335_v13, %v9729_v8  ;;  %v10020_v51 = vmul.f32 %v3431_v41, %v9683_v35 }
 0x237   : > { %v3433_v29 = vmax.f32 %v3421_v15, 0.0  ;;  %v3435_v30 = vmax.f32 %v3423_v21, 0.0  ;;  %7532 = vmatpush1.bf16.msra.mxu1 %v9966_v11  ;;  %v10032_v63 = vsel %vm2960_vm10, %v9958_v46, %v2987_v31  ;;  %v10035_v0 = vsel %vm2960_vm10, %v2987_v31, %v2989_v44 }
 0x238   : > { %v3350_v43 = vmul.f32 %v3338_v50, %v9729_v8  ;;  %v10027_v3 = vmul.f32 %v3434_v26, %v9683_v35  ;;  %3465 = vrot.lane.b32.xlu1 %v3453_v61, %s9026_s16  ;;  %v3442_v2 = vmul.f32 %v3430_v18, %v9685_v36  ;;  %v10039_v24 = vmul.f32 %v3432_v19, %v9729_v8 }
 0x239   : > { %v3445_v42 = vmul.f32 %v3433_v29, %v9685_v36  ;;  %v10043_v53 = vmul.f32 %v3435_v30, %v9729_v8  ;;  %v3080_v54 = vpop.permute.xlu0 %3079  ;;  %7451 = vmatprep.subr.bf16.mxu0 %v10032_v63 }
 0x23a   : > { %v3361_v55 = vpack.c.bf16 %v3350_v43, %v3347_v27  ;;  %v3457_v46 = vpack.c.bf16 %v10027_v3, %v10020_v51  ;;  %v10050_v44 = vsel %vm2960_vm10, %v9977_v39, %v3080_v54  ;;  %7452 = vmatpush1.bf16.msra.mxu0 %v10023_v32 }
 0x23b   : > { %v3456_v56 = vpack.c.bf16 %v3445_v42, %v3442_v2  ;;  %v3458_v58 = vpack.c.bf16 %v10043_v53, %v10039_v24  ;;  %3102 = vst [vmem:[#allocation4 + $0x48] sm:$0xff] %v10050_v44 }
 0x23c   : > { %3378 = vrot.lane.b32.xlu0 %v3361_v55, %s9026_s16  ;;  %3376 = vrot.lane.b32.xlu1 %v3360_v28, %s9026_s16 }
 0x23d   : > { %v3175_v59 = vpop.permute.xlu1 %3174  ;;  %v10061_v52 = vld [vmem:[#allocation4 + $0x60] sm:$0xff] }
 0x23e   : > { %3198 = vst.msk [vmem:[#allocation4 + $0x80] sm:$0xff] %vm3003_vm12, %v3175_v59  ;;  %v10064_v39 = vpop.permute.xlu0 %3176  ;;  %7533 = vmatprep.subr.bf16.mxu1 %v10061_v52 }
 0x23f   : > { %v3186_v60 = vsel %vm2960_vm10, %v3175_v59, %v10064_v39  ;;  %7534 = vmatpush1.bf16.msra.mxu1 %v10035_v0 }
 0x240   : > { %3471 = vrot.lane.b32.xlu0 %v3456_v56, %s9026_s16  ;;  %v2650_v61 = vpop.f32.mrb[32].mxu1  ;;  %3199 = vst [vmem:[#allocation4 + $0x88] sm:$0xff] %v3186_v60 }
 0x241   : > { %v3509_v1 = vadd.f32 %v9680_v34, %v2650_v61  ;;  %v2652_v40 = vpop.f32.mrb[33].mxu1  ;;  %v3082_v28 = vpop.permute.xlu1 %3081 }
 0x242   : > { %v3510_v4 = vadd.f32 %v9680_v34, %v2652_v40  ;;  %v2654_v5 = vpop.f32.mrb[34].mxu1  ;;  %v10074_v6 = vsel %vm2960_vm10, %v3080_v54, %v3082_v28  ;;  %3104 = vst.msk [vmem:[#allocation4 + $0x58] sm:$0xff] %vm2960_vm10, %v3082_v28 }
 0x243   : > { %v3521_v10 = vmax.f32 %v3509_v1, 0.0  ;;  %v3512_v13 = vadd.f32 %v9678_v33, %v2654_v5  ;;  %v2656_v41 = vpop.f32.mrb[35].mxu1  ;;  %3103 = vst [vmem:[#allocation4 + $0x50] sm:$0xff] %v10074_v6 }
 0x244   : > { %3467 = vrot.lane.b32.xlu0 %v3454_v48, %s9026_s16  ;;  %v3522_v12 = vmax.f32 %v3510_v4, 0.0  ;;  %v3513_v14 = vadd.f32 %v9678_v33, %v2656_v41 }
 0x245   : > { %v3524_v16 = vmax.f32 %v3512_v13, 0.0  ;;  %v3181_v17 = vpop.permute.xlu0 %3180  ;;  %v3086_v18 = vpop.permute.xlu1 %3085  ;;  %v3533_v21 = vmul.f32 %v3521_v10, %v9685_v36 }
 0x246   : > { %v3525_v19 = vmax.f32 %v3513_v14, 0.0  ;;  %3202 = vst.msk [vmem:[#allocation4 + $0xa0] sm:$0xff] %vm3003_vm12, %v3181_v17  ;;  %v10087_v15 = vsel %vm2960_vm10, %v10011_v22, %v3086_v18  ;;  %v3534_v45 = vmul.f32 %v3522_v12, %v9683_v35 }
 0x247   : > { %v3536_v50 = vmul.f32 %v3524_v16, %v9685_v36  ;;  %3106 = vst [vmem:[#allocation4 + $0x68] sm:$0xff] %v10087_v15 }
 0x248   : > { %v3537_v47 = vmul.f32 %v3525_v19, %v9683_v35  ;;  %v2660_v48 = vpop.f32.mrb[36].mxu1 }
 0x249   : > { %v3550_v26 = vpack.c.bf16 %v3536_v50, %v3533_v21  ;;  %v3515_v27 = vadd.f32 %v9699_v25, %v2660_v48  ;;  %v2662_v29 = vpop.f32.mrb[37].mxu1  ;;  %v10095_v30 = vpop.permute.xlu1 %3182 }
 0x24a   : > { %v3551_v31 = vpack.c.bf16 %v3537_v47, %v3534_v45  ;;  %v3516_v22 = vadd.f32 %v9699_v25, %v2662_v29  ;;  %v2664_v43 = vpop.f32.mrb[38].mxu1  ;;  %v3188_v2 = vsel %vm2960_vm10, %v3181_v17, %v10095_v30  ;;  %v3088_v42 = vpop.permute.xlu0 %3087 }
 0x24b   : > { %v3527_v54 = vmax.f32 %v3515_v27, 0.0  ;;  %v3518_v55 = vadd.f32 %v9701_v49, %v2664_v43  ;;  %v2666_v56 = vpop.f32.mrb[39].mxu1  ;;  %3562 = vrot.lane.b32.xlu1 %v3550_v26, %s9026_s16  ;;  %3203 = vst [vmem:[#allocation4 + $0xa8] sm:$0xff] %v3188_v2  ;;  %v10103_v59 = vsel %vm2960_vm10, %v3086_v18, %v3088_v42  ;;  %3108 = vst.msk [vmem:[#allocation4 + $0x78] sm:$0xff] %vm2960_vm10, %v3088_v42 }
 0x24c   : > { %v3528_v60 = vmax.f32 %v3516_v22, 0.0  ;;  %v3519_v61 = vadd.f32 %v9701_v49, %v2666_v56  ;;  %3564 = vrot.lane.b32.xlu0 %v3551_v31, %s9026_s16  ;;  %3107 = vst [vmem:[#allocation4 + $0x70] sm:$0xff] %v10103_v59 }
 0x24d   : > { %v3530_v1 = vmax.f32 %v3518_v55, 0.0  ;;  %v3539_v28 = vmul.f32 %v3527_v54, %v9685_v36 }
 0x24e   : > { %v3531_v40 = vmax.f32 %v3519_v61, 0.0  ;;  %v3540_v5 = vmul.f32 %v3528_v60, %v9683_v35 }
 0x24f   : > { %v3542_v4 = vmul.f32 %v3530_v1, %v9685_v36  ;;  %3469 = vrot.lane.b32.xlu1 %v3455_v62, %s9026_s16 }
 0x250   : > { %v3543_v10 = vmul.f32 %v3531_v40, %v9683_v35 }
 0x251   : > { %v3553_v13 = vpack.c.bf16 %v3542_v4, %v3539_v28 }
 0x252   : > { %v3554_v41 = vpack.c.bf16 %v3543_v10, %v3540_v5 }
 0x253   : > { %3568 = vrot.lane.b32.xlu0 %v3553_v13, %s9026_s16  ;;  %3473 = vrot.lane.b32.xlu1 %v3457_v46, %s9026_s16 }
 0x257   : > { %3570 = vrot.lane.b32.xlu1 %v3554_v41, %s9026_s16  ;;  %3475 = vrot.lane.b32.xlu0 %v3458_v58, %s9026_s16 }
 0x266   : > { %v3179_v37 = vpop.permute.xlu1 %3178  ;;  %v10127_v38 = vpop.permute.xlu0 %3273 }
 0x267   : > { %v3187_v62 = vsel %vm2960_vm10, %v10064_v39, %v3179_v37  ;;  %3201 = vst.msk [vmem:[#allocation4 + $0x98] sm:$0xff] %vm2960_vm10, %v3179_v37 }
 0x268   : > { %v2703_v12 = vpop.f32.mrb[40].mxu0  ;;  %v2756_v14 = vpop.f32.mrb[40].mxu1  ;;  %3200 = vst [vmem:[#allocation4 + $0x90] sm:$0xff] %v3187_v62 }
 0x269   : > { %v3511_v51 = vadd.f32 %v9680_v34, %v2703_v12  ;;  %v3607_v3 = vadd.f32 %v9680_v34, %v2756_v14  ;;  %v2705_v46 = vpop.f32.mrb[41].mxu0  ;;  %v2758_v16 = vpop.f32.mrb[41].mxu1 }
 0x26a   : > { %v3606_v24 = vadd.f32 %v9680_v34, %v2705_v46  ;;  %v3608_v53 = vadd.f32 %v9680_v34, %v2758_v16  ;;  %v2760_v58 = vpop.f32.mrb[42].mxu1  ;;  %v2707_v17 = vpop.f32.mrb[42].mxu0 }
 0x26b   : > { %v3523_v18 = vmax.f32 %v3511_v51, 0.0  ;;  %v3619_v19 = vmax.f32 %v3607_v3, 0.0  ;;  %v3610_v39 = vadd.f32 %v9678_v33, %v2760_v58  ;;  %v3514_v21 = vadd.f32 %v9678_v33, %v2707_v17  ;;  %v2709_v50 = vpop.f32.mrb[43].mxu0  ;;  %v2762_v45 = vpop.f32.mrb[43].mxu1 }
 0x26c   : > { %v3618_v47 = vmax.f32 %v3606_v24, 0.0  ;;  %v3620_v48 = vmax.f32 %v3608_v53, 0.0  ;;  %v3609_v26 = vadd.f32 %v9678_v33, %v2709_v50  ;;  %v3611_v27 = vadd.f32 %v9678_v33, %v2762_v45  ;;  %v3272_v29 = vpop.permute.xlu1 %3271 }
 0x26d   : > { %v3622_v31 = vmax.f32 %v3610_v39, 0.0  ;;  %v3526_v22 = vmax.f32 %v3514_v21, 0.0  ;;  %3295 = vst.msk [vmem:[#allocation4 + $0xc0] sm:$0xff] %vm3003_vm12, %v3272_v29  ;;  %v3535_v34 = vmul.f32 %v3523_v18, %v9729_v8  ;;  %v3631_v43 = vmul.f32 %v3619_v19, %v9683_v35 }
 0x26e   : > { %v3621_v2 = vmax.f32 %v3609_v26, 0.0  ;;  %v3623_v42 = vmax.f32 %v3611_v27, 0.0  ;;  %v3185_v54 = vpop.permute.xlu0 %3184  ;;  %v3283_v60 = vsel %vm2960_vm10, %v3272_v29, %v10127_v38  ;;  %v3630_v61 = vmul.f32 %v3618_v47, %v9685_v36 }
 0x26f   : > { %v3634_v55 = vmul.f32 %v3622_v31, %v9683_v35  ;;  %v3538_v56 = vmul.f32 %v3526_v22, %v9729_v8  ;;  %v10149_v33 = vsel %vm2960_vm10, %v10095_v30, %v3185_v54  ;;  %3205 = vst.msk [vmem:[#allocation4 + $0xb8] sm:$0xff] %vm2960_vm10, %v3185_v54  ;;  %v3632_v1 = vmul.f32 %v3620_v48, %v9729_v8 }
 0x270   : > { %v3633_v40 = vmul.f32 %v3621_v2, %v9685_v36  ;;  %v3635_v28 = vmul.f32 %v3623_v42, %v9729_v8  ;;  %v2713_v4 = vpop.f32.mrb[44].mxu0  ;;  %v2766_v5 = vpop.f32.mrb[44].mxu1  ;;  %3296 = vst [vmem:[#allocation4 + $0xc8] sm:$0xff] %v3283_v60  ;;  %3204 = vst [vmem:[#allocation4 + $0xb0] sm:$0xff] %v10149_v33 }
 0x271   : > { %v3648_v10 = vpack.c.bf16 %v3634_v55, %v3631_v43  ;;  %v3552_v13 = vpack.c.bf16 %v3538_v56, %v3535_v34  ;;  %v3517_v30 = vadd.f32 %v9699_v25, %v2713_v4  ;;  %v3613_v41 = vadd.f32 %v9699_v25, %v2766_v5  ;;  %v2715_v37 = vpop.f32.mrb[45].mxu0  ;;  %v2768_v62 = vpop.f32.mrb[45].mxu1 }
 0x272   : > { %v3647_v12 = vpack.c.bf16 %v3633_v40, %v3630_v61  ;;  %v3649_v14 = vpack.c.bf16 %v3635_v28, %v3632_v1  ;;  %v3612_v51 = vadd.f32 %v9699_v25, %v2715_v37  ;;  %v3614_v3 = vadd.f32 %v9699_v25, %v2768_v62  ;;  %v2770_v46 = vpop.f32.mrb[46].mxu1  ;;  %v2717_v16 = vpop.f32.mrb[46].mxu0 }
 0x273   : > { %v3529_v24 = vmax.f32 %v3517_v30, 0.0  ;;  %v3625_v53 = vmax.f32 %v3613_v41, 0.0  ;;  %v3616_v58 = vadd.f32 %v9701_v49, %v2770_v46  ;;  %v3520_v17 = vadd.f32 %v9701_v49, %v2717_v16  ;;  %v2772_v18 = vpop.f32.mrb[47].mxu1  ;;  %3661 = vrot.lane.b32.xlu0 %v3648_v10, %s9026_s16  ;;  %3566 = vrot.lane.b32.xlu1 %v3552_v13, %s9026_s16  ;;  %v2719_v19 = vpop.f32.mrb[47].mxu0  ;;  %v3706_v10 = vld [vmem:[#allocation4 + $0x18] sm:$0xff] }
 0x274   : > { %v3624_v39 = vmax.f32 %v3612_v51, 0.0  ;;  %v3626_v21 = vmax.f32 %v3614_v3, 0.0  ;;  %v3617_v50 = vadd.f32 %v9701_v49, %v2772_v18  ;;  %v3615_v25 = vadd.f32 %v9701_v49, %v2719_v19  ;;  %v3276_v45 = vpop.permute.xlu1 %3275  ;;  %v3278_v47 = vpop.permute.xlu0 %3277  ;;  %v3710_v19 = vld [vmem:[#allocation4 + $0x38] sm:$0xff] }
 0x275   : > { %v3628_v48 = vmax.f32 %v3616_v58, 0.0  ;;  %v3532_v26 = vmax.f32 %v3520_v17, 0.0  ;;  %3298 = vst.msk [vmem:[#allocation4 + $0xd8] sm:$0xff] %vm2960_vm10, %v3276_v45  ;;  %v3541_v27 = vmul.f32 %v3529_v24, %v9729_v8  ;;  %v3637_v22 = vmul.f32 %v3625_v53, %v9683_v35 }
 0x276   : > { %3299 = vst.msk [vmem:[#allocation4 + $0xe0] sm:$0xff] %vm3003_vm12, %v3278_v47  ;;  %v3629_v29 = vmax.f32 %v3617_v50, 0.0  ;;  %v3627_v31 = vmax.f32 %v3615_v25, 0.0  ;;  %v3284_v49 = vsel %vm2960_vm10, %v10127_v38, %v3276_v45  ;;  %v3636_v2 = vmul.f32 %v3624_v39, %v9685_v36 }
 0x277   : > { %v3640_v34 = vmul.f32 %v3628_v48, %v9683_v35  ;;  %v3544_v43 = vmul.f32 %v3532_v26, %v9729_v8  ;;  %3659 = vrot.lane.b32.xlu1 %v3647_v12, %s9026_s16  ;;  %v3638_v42 = vmul.f32 %v3626_v21, %v9729_v8  ;;  %3297 = vst [vmem:[#allocation4 + $0xd0] sm:$0xff] %v3284_v49 }
 0x278   : > { %v3641_v54 = vmul.f32 %v3629_v29, %v9729_v8  ;;  %v3639_v55 = vmul.f32 %v3627_v31, %v9685_v36  ;;  %v3280_v56 = vpop.permute.xlu1 %3279  ;;  %v3282_v60 = vpop.permute.xlu0 %3281 }
 0x279   : > { %v3651_v61 = vpack.c.bf16 %v3640_v34, %v3637_v22  ;;  %v3555_v35 = vpack.c.bf16 %v3544_v43, %v3541_v27  ;;  %v3285_v1 = vsel %vm2960_vm10, %v3278_v47, %v3280_v56  ;;  %v3286_v40 = vsel %vm2960_vm10, %v3280_v56, %v3282_v60  ;;  %3302 = vst.msk [vmem:[#allocation4 + $0xf8] sm:$0xff] %vm2960_vm10, %v3282_v60 }
 0x27a   : > { %v3652_v38 = vpack.c.bf16 %v3641_v54, %v3638_v42  ;;  %v3650_v28 = vpack.c.bf16 %v3639_v55, %v3636_v2  ;;  %3300 = vst [vmem:[#allocation4 + $0xe8] sm:$0xff] %v3285_v1  ;;  %3301 = vst [vmem:[#allocation4 + $0xf0] sm:$0xff] %v3286_v40 }
 0x27b   : > { %3663 = vrot.lane.b32.xlu1 %v3649_v14, %s9026_s16  ;;  %3572 = vrot.lane.b32.xlu0 %v3555_v35, %s9026_s16 }
 0x27d   : > { %v3369_v36 = vpop.permute.xlu1 %3368 }
 0x27e   : > { %3392 = vst.msk [vmem:[#allocation4 + $0x100] sm:$0xff] %vm3003_vm12, %v3369_v36  ;;  %v3371_v8 = vpop.permute.xlu0 %3370 }
 0x27f   : > { %3667 = vrot.lane.b32.xlu1 %v3651_v61, %s9026_s16  ;;  %3665 = vrot.lane.b32.xlu0 %v3650_v28, %s9026_s16  ;;  %v3380_v4 = vsel %vm2960_vm10, %v3369_v36, %v3371_v8  ;;  %v10360_v36 = vld [vmem:[#allocation4 + $0x58] sm:$0xff] }
 0x280   : > { %3393 = vst [vmem:[#allocation4 + $0x108] sm:$0xff] %v3380_v4 }
 0x283   : > { %3719 = vrot.lane.b32.xlu1 %v9962_v57, %s9018_s29  ;;  %3669 = vrot.lane.b32.xlu0 %v3652_v38, %s9026_s16 }
 0x285   : > { %v3375_v5 = vpop.permute.xlu0 %3374 }
 0x286   : > { %3396 = vst.msk [vmem:[#allocation4 + $0x120] sm:$0xff] %vm3003_vm12, %v3375_v5 }
 0x287   : > { %3769 = vrot.lane.b32.xlu1 %v9962_v57, %s9017_s28  ;;  %3725 = vrot.lane.b32.xlu0 %v3706_v10, %s9018_s29 }
 0x28b   : > { %3819 = vrot.lane.b32.xlu1 %v9962_v57, %s9019_s30  ;;  %3775 = vrot.lane.b32.xlu0 %v3706_v10, %s9017_s28 }
 0x28f   : > { %3869 = vrot.lane.b32.xlu1 %v9962_v57, %s9020_s7  ;;  %3825 = vrot.lane.b32.xlu0 %v3706_v10, %s9019_s30 }
 0x293   : > { %3919 = vrot.lane.b32.xlu1 %v9962_v57, %s9021_s8  ;;  %3875 = vrot.lane.b32.xlu0 %v3706_v10, %s9020_s7 }
 0x297   : > { %3969 = vrot.lane.b32.xlu1 %v9962_v57, %s9022_s9  ;;  %3925 = vrot.lane.b32.xlu0 %v3706_v10, %s9021_s8 }
 0x29b   : > { %4019 = vrot.lane.b32.xlu1 %v9962_v57, %s9023_s10  ;;  %3975 = vrot.lane.b32.xlu0 %v3706_v10, %s9022_s9 }
 0x29f   : > { %4069 = vrot.lane.b32.xlu1 %v9962_v57, %s9024_s11  ;;  %4025 = vrot.lane.b32.xlu0 %v3706_v10, %s9023_s10 }
 0x2a3   : > { %4131 = vrot.lane.b32.xlu1 %v10013_v23, %s9018_s29  ;;  %4075 = vrot.lane.b32.xlu0 %v3706_v10, %s9024_s11 }
 0x2a6   : > { %v3373_v13 = vpop.permute.xlu1 %3372 }
 0x2a7   : > { %v3381_v30 = vsel %vm2960_vm10, %v3371_v8, %v3373_v13  ;;  %3395 = vst.msk [vmem:[#allocation4 + $0x118] sm:$0xff] %vm2960_vm10, %v3373_v13  ;;  %4181 = vrot.lane.b32.xlu1 %v10013_v23, %s9017_s28  ;;  %3721 = vrot.lane.b32.xlu0 %v9952_v9, %s9018_s29 }
 0x2a8   : > { %3394 = vst [vmem:[#allocation4 + $0x110] sm:$0xff] %v3381_v30 }
 0x2aa   : > { %v3466_v57 = vpop.permute.xlu1 %3465 }
 0x2ab   : > { %3489 = vst.msk [vmem:[#allocation4 + $0x140] sm:$0xff] %vm3003_vm12, %v3466_v57  ;;  %4231 = vrot.lane.b32.xlu1 %v10013_v23, %s9019_s30  ;;  %3771 = vrot.lane.b32.xlu0 %v9952_v9, %s9017_s28 }
 0x2ae   : > { %v3379_v41 = vpop.permute.xlu0 %3378  ;;  %v3377_v37 = vpop.permute.xlu1 %3376 }
 0x2af   : > { %3399 = vst.msk [vmem:[#allocation4 + $0x138] sm:$0xff] %vm2960_vm10, %v3379_v41  ;;  %v3382_v62 = vsel %vm2960_vm10, %v3375_v5, %v3377_v37  ;;  %v3383_v12 = vsel %vm2960_vm10, %v3377_v37, %v3379_v41  ;;  %3723 = vrot.lane.b32.xlu1 %v9966_v11, %s9018_s29  ;;  %3821 = vrot.lane.b32.xlu0 %v9952_v9, %s9019_s30  ;;  %v9027_v41 = vmov 1983009808  }
 0x2b0   : > { %3397 = vst [vmem:[#allocation4 + $0x128] sm:$0xff] %v3382_v62  ;;  %3398 = vst [vmem:[#allocation4 + $0x130] sm:$0xff] %v3383_v12  ;;  %v7429_v37 = vunpack.c.l.s4 %v9027_v41 }
 0x2b2   : > { %v3472_v14 = vpop.permute.xlu0 %3471  ;;  %v7430_v62 = vunpack.c.0.s8 %v7429_v37 }
 0x2b3   : > { %3493 = vst.msk [vmem:[#allocation4 + $0x160] sm:$0xff] %vm3003_vm12, %v3472_v14  ;;  %3773 = vrot.lane.b32.xlu1 %v9966_v11, %s9017_s28  ;;  %3871 = vrot.lane.b32.xlu0 %v9952_v9, %s9020_s7 }
 0x2b6   : > { %v3468_v51 = vpop.permute.xlu0 %3467 }
 0x2b7   : > { %v3477_v3 = vsel %vm2960_vm10, %v3466_v57, %v3468_v51  ;;  %3823 = vrot.lane.b32.xlu1 %v9966_v11, %s9019_s30  ;;  %3921 = vrot.lane.b32.xlu0 %v9952_v9, %s9021_s8 }
 0x2b8   : > { %3490 = vst [vmem:[#allocation4 + $0x148] sm:$0xff] %v3477_v3 }
 0x2bb   : > { %3873 = vrot.lane.b32.xlu1 %v9966_v11, %s9020_s7  ;;  %3971 = vrot.lane.b32.xlu0 %v9952_v9, %s9022_s9 }
 0x2bd   : > { %v3563_v46 = vpop.permute.xlu1 %3562 }
 0x2be   : > { %3586 = vst.msk [vmem:[#allocation4 + $0x180] sm:$0xff] %vm3003_vm12, %v3563_v46  ;;  %v3565_v16 = vpop.permute.xlu0 %3564 }
 0x2bf   : > { %3923 = vrot.lane.b32.xlu1 %v9966_v11, %s9021_s8  ;;  %4021 = vrot.lane.b32.xlu0 %v9952_v9, %s9023_s10  ;;  %v3574_v24 = vsel %vm2960_vm10, %v3563_v46, %v3565_v16 }
 0x2c0   : > { %3587 = vst [vmem:[#allocation4 + $0x188] sm:$0xff] %v3574_v24  ;;  %v10414_v24 = vld [vmem:[#allocation4 + $0x78] sm:$0xff] }
 0x2c1   : > { %v3470_v53 = vpop.permute.xlu1 %3469 }
 0x2c2   : > { %v3478_v58 = vsel %vm2960_vm10, %v3468_v51, %v3470_v53  ;;  %3492 = vst.msk [vmem:[#allocation4 + $0x158] sm:$0xff] %vm2960_vm10, %v3470_v53  ;;  %v6987_v51 = vld [vmem:[%s12508_s2] sm:$0x3f] }
 0x2c3   : > { %3973 = vrot.lane.b32.xlu1 %v9966_v11, %s9022_s9  ;;  %4071 = vrot.lane.b32.xlu0 %v9952_v9, %s9024_s11  ;;  %3491 = vst [vmem:[#allocation4 + $0x150] sm:$0xff] %v3478_v58 }
 0x2c5   : > { %v3569_v17 = vpop.permute.xlu0 %3568  ;;  %v3474_v18 = vpop.permute.xlu1 %3473 }
 0x2c6   : > { %3590 = vst.msk [vmem:[#allocation4 + $0x1a0] sm:$0xff] %vm3003_vm12, %v3569_v17  ;;  %v3479_v39 = vsel %vm2960_vm10, %v3472_v14, %v3474_v18 }
 0x2c7   : > { %4023 = vrot.lane.b32.xlu1 %v9966_v11, %s9023_s10  ;;  %3733 = vrot.lane.b32.xlu0 %v3710_v19, %s9018_s29  ;;  %3494 = vst [vmem:[#allocation4 + $0x168] sm:$0xff] %v3479_v39 }
 0x2c9   : > { %v3571_v21 = vpop.permute.xlu1 %3570  ;;  %v3476_v50 = vpop.permute.xlu0 %3475 }
 0x2ca   : > { %v3576_v25 = vsel %vm2960_vm10, %v3569_v17, %v3571_v21  ;;  %v3480_v9 = vsel %vm2960_vm10, %v3474_v18, %v3476_v50  ;;  %3496 = vst.msk [vmem:[#allocation4 + $0x178] sm:$0xff] %vm2960_vm10, %v3476_v50 }
 0x2cb   : > { %4073 = vrot.lane.b32.xlu1 %v9966_v11, %s9024_s11  ;;  %3783 = vrot.lane.b32.xlu0 %v3710_v19, %s9017_s28  ;;  %3591 = vst [vmem:[#allocation4 + $0x1a8] sm:$0xff] %v3576_v25  ;;  %3495 = vst [vmem:[#allocation4 + $0x170] sm:$0xff] %v3480_v9  ;;  %v7427_v25 = vcombine.high %v6987_v51, %v6987_v51 }
 0x2cf   : > { %3727 = vrot.lane.b32.xlu1 %v10023_v32, %s9018_s29  ;;  %3833 = vrot.lane.b32.xlu0 %v3710_v19, %s9019_s30 }
 0x2d3   : > { %3777 = vrot.lane.b32.xlu1 %v10023_v32, %s9017_s28  ;;  %3883 = vrot.lane.b32.xlu0 %v3710_v19, %s9020_s7 }
 0x2d7   : > { %3827 = vrot.lane.b32.xlu1 %v10023_v32, %s9019_s30  ;;  %3933 = vrot.lane.b32.xlu0 %v3710_v19, %s9021_s8 }
 0x2db   : > { %3877 = vrot.lane.b32.xlu1 %v10023_v32, %s9020_s7  ;;  %3983 = vrot.lane.b32.xlu0 %v3710_v19, %s9022_s9 }
 0x2df   : > { %3927 = vrot.lane.b32.xlu1 %v10023_v32, %s9021_s8  ;;  %4033 = vrot.lane.b32.xlu0 %v3710_v19, %s9023_s10 }
 0x2e3   : > { %3977 = vrot.lane.b32.xlu1 %v10023_v32, %s9022_s9  ;;  %4083 = vrot.lane.b32.xlu0 %v3710_v19, %s9024_s11 }
 0x2e5   : > { %v3567_v11 = vpop.permute.xlu1 %3566  ;;  %v3662_v47 = vpop.permute.xlu0 %3661 }
 0x2e6   : > { %v3575_v45 = vsel %vm2960_vm10, %v3565_v16, %v3567_v11  ;;  %3589 = vst.msk [vmem:[#allocation4 + $0x198] sm:$0xff] %vm2960_vm10, %v3567_v11 }
 0x2e7   : > { %3588 = vst [vmem:[#allocation4 + $0x190] sm:$0xff] %v3575_v45  ;;  %4027 = vrot.lane.b32.xlu1 %v10023_v32, %s9023_s10  ;;  %3729 = vrot.lane.b32.xlu0 %v10032_v63, %s9018_s29 }
 0x2e9   : > { %v3660_v48 = vpop.permute.xlu1 %3659 }
 0x2ea   : > { %v3671_v26 = vsel %vm2960_vm10, %v3660_v48, %v3662_v47  ;;  %3683 = vst.msk [vmem:[#allocation4 + $0x1c0] sm:$0xff] %vm3003_vm12, %v3660_v48 }
 0x2eb   : > { %3684 = vst [vmem:[#allocation4 + $0x1c8] sm:$0xff] %v3671_v26  ;;  %4077 = vrot.lane.b32.xlu1 %v10023_v32, %s9024_s11  ;;  %3779 = vrot.lane.b32.xlu0 %v10032_v63, %s9017_s28 }
 0x2ed   : > { %v3664_v27 = vpop.permute.xlu1 %3663  ;;  %v3573_v29 = vpop.permute.xlu0 %3572 }
 0x2ee   : > { %v3672_v31 = vsel %vm2960_vm10, %v3662_v47, %v3664_v27  ;;  %3686 = vst.msk [vmem:[#allocation4 + $0x1d8] sm:$0xff] %vm2960_vm10, %v3664_v27  ;;  %v3577_v22 = vsel %vm2960_vm10, %v3571_v21, %v3573_v29  ;;  %3593 = vst.msk [vmem:[#allocation4 + $0x1b8] sm:$0xff] %vm2960_vm10, %v3573_v29 }
 0x2ef   : > { %3685 = vst [vmem:[#allocation4 + $0x1d0] sm:$0xff] %v3672_v31  ;;  %3592 = vst [vmem:[#allocation4 + $0x1b0] sm:$0xff] %v3577_v22  ;;  %4139 = vrot.lane.b32.xlu1 %v10061_v52, %s9018_s29  ;;  %3829 = vrot.lane.b32.xlu0 %v10032_v63, %s9019_s30 }
 0x2f1   : > { %v3668_v32 = vpop.permute.xlu1 %3667  ;;  %v3666_v34 = vpop.permute.xlu0 %3665 }
 0x2f2   : > { %v3673_v43 = vsel %vm2960_vm10, %v3666_v34, %v3668_v32  ;;  %3687 = vst.msk [vmem:[#allocation4 + $0x1e0] sm:$0xff] %vm3003_vm12, %v3666_v34 }
 0x2f3   : > { %3688 = vst [vmem:[#allocation4 + $0x1e8] sm:$0xff] %v3673_v43  ;;  %4189 = vrot.lane.b32.xlu1 %v10061_v52, %s9017_s28  ;;  %3879 = vrot.lane.b32.xlu0 %v10032_v63, %s9020_s7 }
 0x2f5   : > { %v10316_v49 = vpop.permute.xlu1 %3719  ;;  %v3670_v2 = vpop.permute.xlu0 %3669 }
 0x2f6   : > { %v3674_v42 = vsel %vm2960_vm10, %v3668_v32, %v3670_v2  ;;  %3690 = vst.msk [vmem:[#allocation4 + $0x1f8] sm:$0xff] %vm2960_vm10, %v3670_v2 }
 0x2f7   : > { %3689 = vst [vmem:[#allocation4 + $0x1f0] sm:$0xff] %v3674_v42  ;;  %4239 = vrot.lane.b32.xlu1 %v10061_v52, %s9019_s30  ;;  %3929 = vrot.lane.b32.xlu0 %v10032_v63, %s9021_s8 }
 0x2f9   : > { %v10324_v54 = vpop.permute.xlu1 %3769  ;;  %v10326_v55 = vpop.permute.xlu0 %3725 }
 0x2fb   : > { %3731 = vrot.lane.b32.xlu1 %v10035_v0, %s9018_s29  ;;  %3979 = vrot.lane.b32.xlu0 %v10032_v63, %s9022_s9 }
 0x2fd   : > { %v10332_v56 = vpop.permute.xlu1 %3819  ;;  %v10334_v60 = vpop.permute.xlu0 %3775 }
 0x2ff   : > { %3781 = vrot.lane.b32.xlu1 %v10035_v0, %s9017_s28  ;;  %4029 = vrot.lane.b32.xlu0 %v10032_v63, %s9023_s10 }
 0x301   : > { %v10340_v61 = vpop.permute.xlu1 %3869  ;;  %v10342_v35 = vpop.permute.xlu0 %3825 }
 0x303   : > { %3831 = vrot.lane.b32.xlu1 %v10035_v0, %s9019_s30  ;;  %4079 = vrot.lane.b32.xlu0 %v10032_v63, %s9024_s11 }
 0x305   : > { %v10348_v1 = vpop.permute.xlu1 %3919  ;;  %v10350_v40 = vpop.permute.xlu0 %3875 }
 0x307   : > { %3881 = vrot.lane.b32.xlu1 %v10035_v0, %s9020_s7  ;;  %4133 = vrot.lane.b32.xlu0 %v10050_v44, %s9018_s29 }
 0x309   : > { %v10356_v38 = vpop.permute.xlu1 %3969  ;;  %v10358_v28 = vpop.permute.xlu0 %3925 }
 0x30a   : > { %12517 = vst [vmem:[#allocation6_spill] sm:$0xff] %v10358_v28 }
 0x30b   : > { %3931 = vrot.lane.b32.xlu1 %v10035_v0, %s9021_s8  ;;  %4137 = vrot.lane.b32.xlu0 %v10360_v36, %s9018_s29 }
 0x30d   : > { %v10366_v63 = vpop.permute.xlu1 %4019  ;;  %v10368_v8 = vpop.permute.xlu0 %3975 }
 0x30e   : > { %12518 = vst [vmem:[#allocation7_spill] sm:$0xff] %v10368_v8 }
 0x30f   : > { %3981 = vrot.lane.b32.xlu1 %v10035_v0, %s9022_s9  ;;  %4183 = vrot.lane.b32.xlu0 %v10050_v44, %s9017_s28 }
 0x311   : > { %v10374_v4 = vpop.permute.xlu1 %4069  ;;  %v10376_v5 = vpop.permute.xlu0 %4025 }
 0x312   : > { %12519 = vst [vmem:[#allocation8_spill] sm:$0xff] %v10376_v5 }
 0x313   : > { %4031 = vrot.lane.b32.xlu1 %v10035_v0, %s9023_s10  ;;  %4187 = vrot.lane.b32.xlu0 %v10360_v36, %s9017_s28 }
 0x315   : > { %v10382_v10 = vpop.permute.xlu1 %4131  ;;  %v10384_v13 = vpop.permute.xlu0 %4075 }
 0x316   : > { %12520 = vst [vmem:[#allocation9_spill] sm:$0xff] %v10384_v13 }
 0x317   : > { %4081 = vrot.lane.b32.xlu1 %v10035_v0, %s9024_s11  ;;  %4233 = vrot.lane.b32.xlu0 %v10050_v44, %s9019_s30  ;;  %v7433_v0 = vsub.s32 %v7430_v62, %v9667_v20 }
 0x319   : > { %v10390_v30 = vpop.permute.xlu1 %4181  ;;  %v3722_v57 = vpop.permute.xlu0 %3721  ;;  %v10408_v3 = vrot.slane %v6987_v51, %v7433_v0  ;;  %v10454_v9 = vrot.slane %v7427_v25, %v7433_v0 }
 0x31a   : > { %v3735_v58 = vsel %vm277_vm2, %v10316_v49, %v3722_v57 }
 0x31b   : > { %4135 = vrot.lane.b32.xlu1 %v10074_v6, %s9018_s29  ;;  %4237 = vrot.lane.b32.xlu0 %v10360_v36, %s9019_s30  ;;  %v10420_v53 = vcombine.high %v10408_v3, %v10408_v3 }
 0x31d   : > { %v10396_v12 = vpop.permute.xlu1 %4231  ;;  %v10398_v14 = vpop.permute.xlu0 %3771  ;;  %12521 = vst [vmem:[#allocation10_spill] sm:$0xff] %v10420_v53  ;;  %7481 = vmatprep.mubr.bf16.mxu0 %v10420_v53  ;;  %7563 = vmatprep.mubr.bf16.mxu1 %v10420_v53 }
 0x31f   : > { %4185 = vrot.lane.b32.xlu1 %v10074_v6, %s9017_s28  ;;  %4141 = vrot.lane.b32.xlu0 %v10087_v15, %s9018_s29 }
 0x321   : > { %v10410_v46 = vpop.permute.xlu1 %3723  ;;  %v10412_v16 = vpop.permute.xlu0 %3821 }
 0x322   : > { %v3736_v20 = vsel %vm277_vm2, %v3722_v57, %v10410_v46 }
 0x323   : > { %4235 = vrot.lane.b32.xlu1 %v10074_v6, %s9019_s30  ;;  %4145 = vrot.lane.b32.xlu0 %v10414_v24, %s9018_s29 }
 0x324   : > { %7453 = vmatprep.subr.bf16.mxu0 %v3736_v20 }
 0x325   : > { %7454 = vmatpush1.bf16.msra.mxu0 %v3735_v58  ;;  %v10429_v17 = vpop.permute.xlu1 %3773  ;;  %v10431_v18 = vpop.permute.xlu0 %3871 }
 0x327   : > { %4143 = vrot.lane.b32.xlu1 %v10103_v59, %s9018_s29  ;;  %4191 = vrot.lane.b32.xlu0 %v10087_v15, %s9017_s28 }
 0x329   : > { %v10438_v19 = vpop.permute.xlu1 %3823  ;;  %v10440_v39 = vpop.permute.xlu0 %3921 }
 0x32b   : > { %4193 = vrot.lane.b32.xlu1 %v10103_v59, %s9017_s28  ;;  %4195 = vrot.lane.b32.xlu0 %v10414_v24, %s9017_s28 }
 0x32d   : > { %v10446_v21 = vpop.permute.xlu1 %3873  ;;  %v10448_v50 = vpop.permute.xlu0 %3971 }
 0x32f   : > { %4243 = vrot.lane.b32.xlu1 %v10103_v59, %s9019_s30  ;;  %4241 = vrot.lane.b32.xlu0 %v10087_v15, %s9019_s30 }
 0x331   : > { %v10456_v11 = vpop.permute.xlu1 %3923  ;;  %v10458_v45 = vpop.permute.xlu0 %4021 }
 0x333   : > { %4281 = vrot.lane.b32.xlu1 %v10013_v23, %s9020_s7  ;;  %4245 = vrot.lane.b32.xlu0 %v10414_v24, %s9019_s30 }
 0x335   : > { %v10464_v47 = vpop.permute.xlu1 %3973  ;;  %v10466_v48 = vpop.permute.xlu0 %4071 }
 0x337   : > { %4285 = vrot.lane.b32.xlu1 %v10074_v6, %s9020_s7  ;;  %4283 = vrot.lane.b32.xlu0 %v10050_v44, %s9020_s7 }
 0x339   : > { %v10472_v26 = vpop.permute.xlu1 %4023  ;;  %v10474_v27 = vpop.permute.xlu0 %3733 }
 0x33b   : > { %4289 = vrot.lane.b32.xlu1 %v10061_v52, %s9020_s7  ;;  %4287 = vrot.lane.b32.xlu0 %v10360_v36, %s9020_s7 }
 0x33d   : > { %v10480_v29 = vpop.permute.xlu1 %4073  ;;  %v10482_v31 = vpop.permute.xlu0 %3783 }
 0x33f   : > { %4293 = vrot.lane.b32.xlu1 %v10103_v59, %s9020_s7  ;;  %4291 = vrot.lane.b32.xlu0 %v10087_v15, %s9020_s7 }
 0x341   : > { %v3728_v22 = vpop.permute.xlu1 %3727  ;;  %v10488_v32 = vpop.permute.xlu0 %3833 }
 0x343   : > { %4331 = vrot.lane.b32.xlu1 %v10013_v23, %s9021_s8  ;;  %4295 = vrot.lane.b32.xlu0 %v10414_v24, %s9020_s7 }
 0x345   : > { %v10494_v34 = vpop.permute.xlu1 %3777  ;;  %v10496_v43 = vpop.permute.xlu0 %3883 }
 0x346   : > { %12522 = vst [vmem:[#allocation11_spill] sm:$0xff] %v10496_v43  ;;  %v3786_v43 = vsel %vm295_vm1, %v10398_v14, %v10429_v17 }
 0x347   : > { %4335 = vrot.lane.b32.xlu1 %v10074_v6, %s9021_s8  ;;  %4333 = vrot.lane.b32.xlu0 %v10050_v44, %s9021_s8 }
 0x349   : > { %v10502_v49 = vpop.permute.xlu1 %3827  ;;  %v10504_v2 = vpop.permute.xlu0 %3933 }
 0x34a   : > { %12523 = vst [vmem:[#allocation12_spill] sm:$0xff] %v10504_v2 }
 0x34b   : > { %4339 = vrot.lane.b32.xlu1 %v10061_v52, %s9021_s8  ;;  %4337 = vrot.lane.b32.xlu0 %v10360_v36, %s9021_s8 }
 0x34d   : > { %v10510_v42 = vpop.permute.xlu1 %3877  ;;  %v10512_v57 = vpop.permute.xlu0 %3983 }
 0x34e   : > { %12524 = vst [vmem:[#allocation13_spill] sm:$0xff] %v10512_v57 }
 0x34f   : > { %4343 = vrot.lane.b32.xlu1 %v10103_v59, %s9021_s8  ;;  %4341 = vrot.lane.b32.xlu0 %v10087_v15, %s9021_s8 }
 0x351   : > { %v10518_v41 = vpop.permute.xlu1 %3927  ;;  %v10520_v37 = vpop.permute.xlu0 %4033 }
 0x352   : > { %12525 = vst [vmem:[#allocation14_spill] sm:$0xff] %v10520_v37 }
 0x353   : > { %4381 = vrot.lane.b32.xlu1 %v10013_v23, %s9022_s9  ;;  %4345 = vrot.lane.b32.xlu0 %v10414_v24, %s9021_s8 }
 0x355   : > { %v10526_v62 = vpop.permute.xlu1 %3977  ;;  %v10528_v0 = vpop.permute.xlu0 %4083 }
 0x356   : > { %12526 = vst [vmem:[#allocation15_spill] sm:$0xff] %v10528_v0 }
 0x357   : > { %4385 = vrot.lane.b32.xlu1 %v10074_v6, %s9022_s9  ;;  %4383 = vrot.lane.b32.xlu0 %v10050_v44, %s9022_s9 }
 0x359   : > { %v10534_v51 = vpop.permute.xlu1 %4027  ;;  %v3730_v20 = vpop.permute.xlu0 %3729 }
 0x35b   : > { %4389 = vrot.lane.b32.xlu1 %v10061_v52, %s9022_s9  ;;  %4387 = vrot.lane.b32.xlu0 %v10360_v36, %s9022_s9 }
 0x35d   : > { %v10540_v58 = vpop.permute.xlu1 %4077  ;;  %v3780_v25 = vpop.permute.xlu0 %3779 }
 0x35f   : > { %4393 = vrot.lane.b32.xlu1 %v10103_v59, %s9022_s9  ;;  %4391 = vrot.lane.b32.xlu0 %v10087_v15, %s9022_s9 }
 0x361   : > { %v10546_v7 = vpop.permute.xlu1 %4139  ;;  %v3830_v0 = vpop.permute.xlu0 %3829 }
 0x363   : > { %4431 = vrot.lane.b32.xlu1 %v10013_v23, %s9023_s10  ;;  %4395 = vrot.lane.b32.xlu0 %v10414_v24, %s9022_s9 }
 0x365   : > { %v10552_v13 = vpop.permute.xlu1 %4189  ;;  %v10554_v37 = vpop.permute.xlu0 %3879 }
 0x367   : > { %4435 = vrot.lane.b32.xlu1 %v10074_v6, %s9023_s10  ;;  %4433 = vrot.lane.b32.xlu0 %v10050_v44, %s9023_s10  ;;  %v3738_v44 = vsel %vm277_vm2, %v3728_v22, %v3730_v20 }
 0x369   : > { %v10560_v5 = vpop.permute.xlu1 %4239  ;;  %v10562_v57 = vpop.permute.xlu0 %3929 }
 0x36b   : > { %4439 = vrot.lane.b32.xlu1 %v10061_v52, %s9023_s10  ;;  %4437 = vrot.lane.b32.xlu0 %v10360_v36, %s9023_s10 }
 0x36d   : > { %v10568_v8 = vpop.permute.xlu1 %3731  ;;  %v10570_v2 = vpop.permute.xlu0 %3979 }
 0x36e   : > { %v3739_v6 = vsel %vm277_vm2, %v3730_v20, %v10568_v8 }
 0x36f   : > { %4443 = vrot.lane.b32.xlu1 %v10103_v59, %s9023_s10  ;;  %4441 = vrot.lane.b32.xlu0 %v10087_v15, %s9023_s10  ;;  %v3785_v15 = vsel %vm295_vm1, %v10324_v54, %v10398_v14  ;;  %v3836_v14 = vsel %vm313_vm3, %v10412_v16, %v10438_v19 }
 0x370   : > { %7455 = vmatprep.subr.bf16.mxu0 %v3739_v6  ;;  %v10601_v6 = vld [vmem:[#allocation4 + $0x48] sm:$0xff] }
 0x371   : > { %7456 = vmatpush1.bf16.msra.mxu0 %v3738_v44  ;;  %v10579_v28 = vpop.permute.xlu1 %3781  ;;  %v10584_v53 = vpop.permute.xlu0 %4029 }
 0x372   : > { %7457 = vmatprep.subr.bf16.mxu0 %v3786_v43  ;;  %v3789_v22 = vsel %vm295_vm1, %v3780_v25, %v10579_v28  ;;  %v10599_v43 = vld [vmem:[#allocation4 + $0x50] sm:$0xff] }
 0x373   : > { %4481 = vrot.lane.b32.xlu1 %v10013_v23, %s9024_s11  ;;  %4445 = vrot.lane.b32.xlu0 %v10414_v24, %s9023_s10  ;;  %v3788_v23 = vsel %vm295_vm1, %v10494_v34, %v3780_v25  ;;  %v3835_v34 = vsel %vm313_vm3, %v10332_v56, %v10412_v16  ;;  %v3737_v25 = vsel %vm277_vm2, %v10410_v46, %v10326_v55 }
 0x374   : > { %v3838_v55 = vsel %vm313_vm3, %v10502_v49, %v3830_v0  ;;  %v3886_v46 = vsel %vm331_vm4, %v10431_v18, %v10446_v21  ;;  %v3885_v49 = vsel %vm331_vm4, %v10340_v61, %v10431_v18  ;;  %v3888_v61 = vsel %vm331_vm4, %v10510_v42, %v10554_v37 }
 0x375   : > { %7458 = vmatpush1.bf16.msra.mxu0 %v3785_v15  ;;  %v10593_v59 = vpop.permute.xlu1 %3831  ;;  %v10597_v20 = vpop.permute.xlu0 %4079  ;;  %v3936_v18 = vsel %vm349_vm5, %v10440_v39, %v10456_v11  ;;  %v3935_v42 = vsel %vm349_vm5, %v10348_v1, %v10440_v39  ;;  %v3938_v1 = vsel %vm349_vm5, %v10518_v41, %v10562_v57  ;;  %v3740_v41 = vsel %vm277_vm2, %v10568_v8, %v10474_v27 }
 0x376   : > { %7459 = vmatprep.subr.bf16.mxu0 %v3789_v22  ;;  %v3787_v8 = vsel %vm295_vm1, %v10429_v17, %v10334_v60  ;;  %v4035_v60 = vsel %vm385_vm7, %v10366_v63, %v10458_v45  ;;  %v3790_v17 = vsel %vm295_vm1, %v10579_v28, %v10482_v31  ;;  %v10785_v63 = vld [vmem:[#allocation4 + $0xb0] sm:$0xff]  ;;  %v4038_v28 = vsel %vm385_vm7, %v10534_v51, %v10584_v53 }
 0x377   : > { %4485 = vrot.lane.b32.xlu1 %v10599_v43, %s9024_s11  ;;  %4483 = vrot.lane.b32.xlu0 %v10601_v6, %s9024_s11  ;;  %v4086_v31 = vsel %vm403_vm8, %v10466_v48, %v10480_v29 }
 0x379   : > { %7460 = vmatpush1.bf16.msra.mxu0 %v3788_v23  ;;  %v10609_v54 = vpop.permute.xlu1 %3881  ;;  %v10614_v44 = vpop.permute.xlu0 %4133  ;;  %v10637_v23 = vld [vmem:[#allocation4 + $0x68] sm:$0xff] }
 0x37a   : > { %7461 = vmatprep.subr.bf16.mxu0 %v3836_v14  ;;  %v4147_v15 = vsel %vm277_vm2, %v10382_v10, %v10614_v44  ;;  %v3839_v10 = vsel %vm313_vm3, %v3830_v0, %v10593_v59  ;;  %v10652_v14 = vld [vmem:[#allocation4 + $0x80] sm:$0xff] }
 0x37b   : > { %4489 = vrot.lane.b32.xlu1 %v10061_v52, %s9024_s11  ;;  %4487 = vrot.lane.b32.xlu0 %v10360_v36, %s9024_s11  ;;  %v10635_v36 = vld [vmem:[#allocation4 + $0x70] sm:$0xff] }
 0x37c   : > { %7535 = vmatprep.subr.bf16.mxu1 %v4147_v15  ;;  %v3889_v15 = vsel %vm331_vm4, %v10554_v37, %v10609_v54 }
 0x37d   : > { %7462 = vmatpush1.bf16.msra.mxu0 %v3835_v34  ;;  %7536 = vmatpush1.bf16.msra.mxu1 %v3737_v25  ;;  %v10629_v22 = vpop.permute.xlu1 %3931  ;;  %v10633_v52 = vpop.permute.xlu0 %4137  ;;  %v10668_v25 = vld [vmem:[#allocation4 + $0x90] sm:$0xff] }
 0x37e   : > { %7463 = vmatprep.subr.bf16.mxu0 %v3839_v10  ;;  %v10670_v10 = vld [vmem:[#allocation4 + $0x88] sm:$0xff] }
 0x37f   : > { %4493 = vrot.lane.b32.xlu1 %v10635_v36, %s9024_s11  ;;  %4491 = vrot.lane.b32.xlu0 %v10637_v23, %s9024_s11 }
 0x381   : > { %7464 = vmatpush1.bf16.msra.mxu0 %v3838_v55  ;;  %v10645_v56 = vpop.permute.xlu1 %3981  ;;  %v10650_v16 = vpop.permute.xlu0 %4183 }
 0x382   : > { %7465 = vmatprep.subr.bf16.mxu0 %v3886_v46  ;;  %v10686_v46 = vld [vmem:[#allocation4 + $0xa0] sm:$0xff] }
 0x383   : > { %4543 = vrot.lane.b32.xlu1 %v10652_v14, %s9018_s29  ;;  %4495 = vrot.lane.b32.xlu0 %v10414_v24, %s9024_s11 }
 0x385   : > { %7466 = vmatpush1.bf16.msra.mxu0 %v3885_v49  ;;  %v10661_v0 = vpop.permute.xlu1 %4031  ;;  %v10666_v34 = vpop.permute.xlu0 %4187  ;;  %v10688_v49 = vld [vmem:[#allocation4 + $0x98] sm:$0xff] }
 0x386   : > { %7467 = vmatprep.subr.bf16.mxu0 %v3889_v15  ;;  %v3939_v15 = vsel %vm349_vm5, %v10562_v57, %v10629_v22  ;;  %v3985_v57 = vsel %vm367_vm6, %v10356_v38, %v10448_v50  ;;  %v3988_v38 = vsel %vm367_vm6, %v10526_v62, %v10570_v2 }
 0x387   : > { %4547 = vrot.lane.b32.xlu1 %v10668_v25, %s9018_s29  ;;  %4545 = vrot.lane.b32.xlu0 %v10670_v10, %s9018_s29 }
 0x389   : > { %7468 = vmatpush1.bf16.msra.mxu0 %v3888_v61  ;;  %v10679_v24 = vpop.permute.xlu1 %4081  ;;  %v10684_v55 = vpop.permute.xlu0 %4233 }
 0x38a   : > { %7469 = vmatprep.subr.bf16.mxu0 %v3936_v18  ;;  %v10704_v18 = vld [vmem:[#allocation4 + $0xa8] sm:$0xff]  ;;  %v4247_v62 = vsel %vm313_vm3, %v10396_v12, %v10684_v55  ;;  %v3837_v12 = vsel %vm313_vm3, %v10438_v19, %v10342_v35  ;;  %v4085_v35 = vsel %vm403_vm8, %v10374_v4, %v10466_v48  ;;  %v4089_v19 = vsel %vm403_vm8, %v10597_v20, %v10679_v24 }
 0x38b   : > { %4551 = vrot.lane.b32.xlu1 %v10686_v46, %s9018_s29  ;;  %4549 = vrot.lane.b32.xlu0 %v10688_v49, %s9018_s29  ;;  %v4088_v4 = vsel %vm403_vm8, %v10540_v58, %v10597_v20  ;;  %v3887_v58 = vsel %vm331_vm4, %v10446_v21, %v10350_v40  ;;  %v12529_v40 = vld [vmem:[#allocation10_spill] sm:$0xff] }
 0x38d   : > { %7470 = vmatpush1.bf16.msra.mxu0 %v3935_v42  ;;  %v10697_v37 = vpop.permute.xlu1 %4135  ;;  %v10702_v61 = vpop.permute.xlu0 %4237  ;;  %v3986_v42 = vsel %vm367_vm6, %v10448_v50, %v10464_v47  ;;  %v4036_v50 = vsel %vm385_vm7, %v10458_v45, %v10472_v26 }
 0x38e   : > { %12527 = vst [vmem:[#allocation16_spill] sm:$0xff] %v10702_v61  ;;  %7471 = vmatprep.subr.bf16.mxu0 %v3939_v15  ;;  %v10720_v61 = vld [vmem:[#allocation4 + $0xb8] sm:$0xff] }
 0x38f   : > { %4555 = vrot.lane.b32.xlu1 %v10149_v33, %s9018_s29  ;;  %4553 = vrot.lane.b32.xlu0 %v10704_v18, %s9018_s29 }
 0x391   : > { %7472 = vmatpush1.bf16.msra.mxu0 %v3938_v1  ;;  %v10713_v39 = vpop.permute.xlu1 %4185  ;;  %v10718_v15 = vpop.permute.xlu0 %4141 }
 0x392   : > { %7473 = vmatprep.subr.bf16.mxu0 %v3986_v42  ;;  %v4150_v33 = vsel %vm277_vm2, %v10546_v7, %v10718_v15  ;;  %v3989_v7 = vsel %vm367_vm6, %v10570_v2, %v10645_v56  ;;  %v4197_v42 = vsel %vm295_vm1, %v10390_v30, %v10650_v16 }
 0x393   : > { %4593 = vrot.lane.b32.xlu1 %v10652_v14, %s9017_s28  ;;  %4557 = vrot.lane.b32.xlu0 %v10720_v61, %s9018_s29 }
 0x394   : > { %7537 = vmatprep.subr.bf16.mxu1 %v4150_v33 }
 0x395   : > { %7474 = vmatpush1.bf16.msra.mxu0 %v3985_v57  ;;  %7538 = vmatpush1.bf16.msra.mxu1 %v3740_v41  ;;  %v10735_v1 = vpop.permute.xlu1 %4235  ;;  %v10743_v33 = vpop.permute.xlu0 %4145 }
 0x396   : > { %7475 = vmatprep.subr.bf16.mxu0 %v3989_v7  ;;  %7539 = vmatprep.subr.bf16.mxu1 %v4197_v42 }
 0x397   : > { %4597 = vrot.lane.b32.xlu1 %v10668_v25, %s9017_s28  ;;  %4595 = vrot.lane.b32.xlu0 %v10670_v10, %s9017_s28 }
 0x399   : > { %7476 = vmatpush1.bf16.msra.mxu0 %v3988_v38  ;;  %7540 = vmatpush1.bf16.msra.mxu1 %v3787_v8  ;;  %v10755_v30 = vpop.permute.xlu1 %4143  ;;  %v10760_v27 = vpop.permute.xlu0 %4191  ;;  %v12528_v38 = vmov 0  }
 0x39a   : > { %7477 = vmatprep.subr.bf16.mxu0 %v4036_v50  ;;  %v4200_v57 = vsel %vm295_vm1, %v10552_v13, %v10760_v27  ;;  %v4039_v13 = vsel %vm385_vm7, %v10584_v53, %v10661_v0  ;;  %v3840_v53 = vsel %vm313_vm3, %v10593_v59, %v10488_v32 }
 0x39b   : > { %4601 = vrot.lane.b32.xlu1 %v10686_v46, %s9017_s28  ;;  %4599 = vrot.lane.b32.xlu0 %v10688_v49, %s9017_s28 }
 0x39c   : > { %7541 = vmatprep.subr.bf16.mxu1 %v4200_v57  ;;  %v12530_v57 = vld [vmem:[#allocation11_spill] sm:$0xff] }
 0x39d   : > { %7478 = vmatpush1.bf16.msra.mxu0 %v4035_v60  ;;  %7542 = vmatpush1.bf16.msra.mxu1 %v3790_v17  ;;  %v10775_v2 = vpop.permute.xlu1 %4193  ;;  %v10783_v41 = vpop.permute.xlu0 %4195 }
 0x39e   : > { %7479 = vmatprep.subr.bf16.mxu0 %v4039_v13  ;;  %7543 = vmatprep.subr.bf16.mxu1 %v4247_v62 }
 0x39f   : > { %4605 = vrot.lane.b32.xlu1 %v10785_v63, %s9017_s28  ;;  %4603 = vrot.lane.b32.xlu0 %v10704_v18, %s9017_s28 }
 0x3a1   : > { %7480 = vmatpush1.bf16.msra.mxu0 %v4038_v28  ;;  %7544 = vmatpush1.bf16.msra.mxu1 %v3837_v12  ;;  %v10797_v45 = vpop.permute.xlu1 %4243  ;;  %v10802_v7 = vpop.permute.xlu0 %4241  ;;  %v4199_v28 = vsel %vm295_vm1, %v10713_v39, %v10666_v34 }
 0x3a2   : > { %7490 = vmatprep.subr.bf16.mxu0 %v4086_v31  ;;  %v4250_v42 = vsel %vm313_vm3, %v10560_v5, %v10802_v7 }
 0x3a3   : > { %4643 = vrot.lane.b32.xlu1 %v10652_v14, %s9019_s30  ;;  %4607 = vrot.lane.b32.xlu0 %v10720_v61, %s9017_s28 }
 0x3a4   : > { %7482 = vmatmul.mubr.bf16.vlgmr.msra.gmra.mrb[48].mxu0 %v10408_v3  ;;  %7545 = vmatprep.subr.bf16.mxu1 %v4250_v42 }
 0x3a5   : > { %7491 = vmatpush1.bf16.msra.mxu0 %v4085_v35  ;;  %7546 = vmatpush1.bf16.msra.mxu1 %v3840_v53  ;;  %v4282_v5 = vpop.permute.xlu1 %4281  ;;  %v10821_v51 = vpop.permute.xlu0 %4245  ;;  %v12533_v35 = vld [vmem:[#allocation16_spill] sm:$0xff] }
 0x3a6   : > { %7492 = vmatprep.subr.bf16.mxu0 %v4089_v19  ;;  %7522 = vmatprep.mubr.bf16.mxu0 %v12528_v38  ;;  %v4249_v53 = vsel %vm313_vm3, %v10735_v1, %v12533_v35 }
 0x3a7   : > { %4647 = vrot.lane.b32.xlu1 %v10668_v25, %s9019_s30  ;;  %4645 = vrot.lane.b32.xlu0 %v10670_v10, %s9019_s30 }
 0x3a9   : > { %7493 = vmatpush1.bf16.msra.mxu0 %v4088_v4  ;;  %v10831_v48 = vpop.permute.xlu1 %4285  ;;  %v10833_v32 = vpop.permute.xlu0 %4283 }
 0x3aa   : > { %7613 = vmatprep.subr.bf16.mxu0 %v10599_v43  ;;  %v4297_v59 = vsel %vm331_vm4, %v4282_v5, %v10833_v32 }
 0x3ab   : > { %4651 = vrot.lane.b32.xlu1 %v10686_v46, %s9019_s30  ;;  %4649 = vrot.lane.b32.xlu0 %v10688_v49, %s9019_s30 }
 0x3ac   : > { %7547 = vmatprep.subr.bf16.mxu1 %v4297_v59 }
 0x3ad   : > { %7548 = vmatpush1.bf16.msra.mxu1 %v3887_v58  ;;  %v4290_v20 = vpop.permute.xlu1 %4289  ;;  %v10845_v8 = vpop.permute.xlu0 %4287 }
 0x3ae   : > { %v4299_v58 = vsel %vm331_vm4, %v10831_v48, %v10845_v8 }
 0x3af   : > { %4655 = vrot.lane.b32.xlu1 %v10785_v63, %s9019_s30  ;;  %4653 = vrot.lane.b32.xlu0 %v10704_v18, %s9019_s30 }
 0x3b0   : > { %8877 = vmatmul.mubr.msk.bf16.vlgmr.msra.gmra.mrb[48].mxu0 %vm7445_vm13, %v10454_v9 }
 0x3b1   : > { %7614 = vmatpush1.bf16.msra.mxu0 %v10601_v6  ;;  %v10854_v43 = vpop.permute.xlu1 %4293  ;;  %v10856_v50 = vpop.permute.xlu0 %4291  ;;  %7645 = vmatprep.mubr.bf16.mxu0 %v12529_v40  ;;  %v3890_v6 = vsel %vm331_vm4, %v10609_v54, %v12530_v57  ;;  %v4148_v54 = vsel %vm277_vm2, %v10614_v44, %v10697_v37  ;;  %v4151_v44 = vsel %vm277_vm2, %v10718_v15, %v10755_v30 }
 0x3b2   : > { %7615 = vmatprep.subr.bf16.mxu0 %v10635_v36  ;;  %v4300_v21 = vsel %vm331_vm4, %v4290_v20, %v10856_v50  ;;  %v4149_v36 = vsel %vm277_vm2, %v10697_v37, %v10633_v52  ;;  %v12531_v37 = vld [vmem:[#allocation6_spill] sm:$0xff]  ;;  %v4198_v15 = vsel %vm295_vm1, %v10650_v16, %v10713_v39  ;;  %v4201_v16 = vsel %vm295_vm1, %v10760_v27, %v10775_v2  ;;  %v12532_v39 = vld [vmem:[#allocation12_spill] sm:$0xff] }
 0x3b3   : > { %4693 = vrot.lane.b32.xlu1 %v10652_v14, %s9020_s7  ;;  %4657 = vrot.lane.b32.xlu0 %v10720_v61, %s9019_s30  ;;  %v4248_v27 = vsel %vm313_vm3, %v10684_v55, %v10735_v1  ;;  %v4251_v55 = vsel %vm313_vm3, %v10802_v7, %v10797_v45  ;;  %v12534_v1 = vld [vmem:[#allocation7_spill] sm:$0xff] }
 0x3b4   : > { %7549 = vmatprep.subr.bf16.mxu1 %v4300_v21 }
 0x3b5   : > { %7616 = vmatpush1.bf16.msra.mxu0 %v10637_v23  ;;  %7550 = vmatpush1.bf16.msra.mxu1 %v3890_v6  ;;  %v4332_v60 = vpop.permute.xlu1 %4331  ;;  %v10873_v17 = vpop.permute.xlu0 %4295  ;;  %v4152_v23 = vsel %vm277_vm2, %v10755_v30, %v10743_v33  ;;  %v3937_v33 = vsel %vm349_vm5, %v10456_v11, %v12531_v37  ;;  %v4202_v11 = vsel %vm295_vm1, %v10775_v2, %v10783_v41 }
 0x3b6   : > { %7617 = vmatprep.subr.bf16.mxu0 %v4149_v36  ;;  %v3940_v41 = vsel %vm349_vm5, %v10629_v22, %v12532_v39  ;;  %v4252_v22 = vsel %vm313_vm3, %v10797_v45, %v10821_v51  ;;  %v3987_v51 = vsel %vm367_vm6, %v10464_v47, %v12534_v1  ;;  %v4298_v45 = vsel %vm331_vm4, %v10833_v32, %v10831_v48  ;;  %v12535_v32 = vld [vmem:[#allocation13_spill] sm:$0xff] }
 0x3b7   : > { %4697 = vrot.lane.b32.xlu1 %v10668_v25, %s9020_s7  ;;  %4695 = vrot.lane.b32.xlu0 %v10670_v10, %s9020_s7  ;;  %v4302_v47 = vsel %vm331_vm4, %v10854_v43, %v10873_v17  ;;  %v4301_v48 = vsel %vm331_vm4, %v10856_v50, %v10854_v43  ;;  %v3990_v6 = vsel %vm367_vm6, %v10645_v56, %v12535_v32 }
 0x3b9   : > { %7618 = vmatpush1.bf16.msra.mxu0 %v4148_v54  ;;  %v10885_v52 = vpop.permute.xlu1 %4335  ;;  %v10887_v13 = vpop.permute.xlu0 %4333 }
 0x3ba   : > { %7619 = vmatprep.subr.bf16.mxu0 %v4152_v23  ;;  %v4347_v62 = vsel %vm349_vm5, %v4332_v60, %v10887_v13  ;;  %v4348_v43 = vsel %vm349_vm5, %v10887_v13, %v10885_v52  ;;  %v12536_v13 = vld [vmem:[#allocation8_spill] sm:$0xff] }
 0x3bb   : > { %4701 = vrot.lane.b32.xlu1 %v10686_v46, %s9020_s7  ;;  %4699 = vrot.lane.b32.xlu0 %v10688_v49, %s9020_s7 }
 0x3bc   : > { %7551 = vmatprep.subr.bf16.mxu1 %v4347_v62  ;;  %v4037_v62 = vsel %vm385_vm7, %v10472_v26, %v12536_v13  ;;  %v11121_v13 = vld [vmem:[#allocation4 + $0xf0] sm:$0xff] }
 0x3bd   : > { %7620 = vmatpush1.bf16.msra.mxu0 %v4151_v44  ;;  %7552 = vmatpush1.bf16.msra.mxu1 %v3937_v33  ;;  %v4340_v12 = vpop.permute.xlu1 %4339  ;;  %v4338_v31 = vpop.permute.xlu0 %4337 }
 0x3be   : > { %7621 = vmatprep.subr.bf16.mxu0 %v4199_v28  ;;  %v4349_v36 = vsel %vm349_vm5, %v10885_v52, %v4338_v31 }
 0x3bf   : > { %4705 = vrot.lane.b32.xlu1 %v10785_v63, %s9020_s7  ;;  %4703 = vrot.lane.b32.xlu0 %v10704_v18, %s9020_s7 }
 0x3c1   : > { %7622 = vmatpush1.bf16.msra.mxu0 %v4198_v15  ;;  %v10914_v30 = vpop.permute.xlu1 %4343  ;;  %v10916_v34 = vpop.permute.xlu0 %4341 }
 0x3c2   : > { %7623 = vmatprep.subr.bf16.mxu0 %v4202_v11  ;;  %v4350_v42 = vsel %vm349_vm5, %v4340_v12, %v10916_v34  ;;  %v4351_v52 = vsel %vm349_vm5, %v10916_v34, %v10914_v30 }
 0x3c3   : > { %4743 = vrot.lane.b32.xlu1 %v10652_v14, %s9021_s8  ;;  %4707 = vrot.lane.b32.xlu0 %v10720_v61, %s9020_s7 }
 0x3c4   : > { %7553 = vmatprep.subr.bf16.mxu1 %v4350_v42 }
 0x3c5   : > { %7624 = vmatpush1.bf16.msra.mxu0 %v4201_v16  ;;  %7554 = vmatpush1.bf16.msra.mxu1 %v3940_v41  ;;  %v4382_v5 = vpop.permute.xlu1 %4381  ;;  %v4346_v19 = vpop.permute.xlu0 %4345 }
 0x3c6   : > { %7625 = vmatprep.subr.bf16.mxu0 %v4249_v53  ;;  %v4352_v56 = vsel %vm349_vm5, %v10914_v30, %v4346_v19  ;;  %v12537_v30 = vld [vmem:[#allocation14_spill] sm:$0xff] }
 0x3c7   : > { %4747 = vrot.lane.b32.xlu1 %v10668_v25, %s9021_s8  ;;  %4745 = vrot.lane.b32.xlu0 %v10670_v10, %s9021_s8  ;;  %v4040_v34 = vsel %vm385_vm7, %v10661_v0, %v12537_v30 }
 0x3c9   : > { %7626 = vmatpush1.bf16.msra.mxu0 %v4248_v27  ;;  %v4386_v2 = vpop.permute.xlu1 %4385  ;;  %v4384_v4 = vpop.permute.xlu0 %4383  ;;  %v12538_v27 = vld [vmem:[#allocation9_spill] sm:$0xff] }
 0x3ca   : > { %7627 = vmatprep.subr.bf16.mxu0 %v4252_v22  ;;  %v4397_v59 = vsel %vm367_vm6, %v4382_v5, %v4384_v4  ;;  %v4398_v28 = vsel %vm367_vm6, %v4384_v4, %v4386_v2  ;;  %v4087_v22 = vsel %vm403_vm8, %v10480_v29, %v12538_v27 }
 0x3cb   : > { %4751 = vrot.lane.b32.xlu1 %v10686_v46, %s9021_s8  ;;  %4749 = vrot.lane.b32.xlu0 %v10688_v49, %s9021_s8 }
 0x3cc   : > { %7555 = vmatprep.subr.bf16.mxu1 %v4397_v59 }
 0x3cd   : > { %7628 = vmatpush1.bf16.msra.mxu0 %v4251_v55  ;;  %7556 = vmatpush1.bf16.msra.mxu1 %v3987_v51  ;;  %v4390_v20 = vpop.permute.xlu1 %4389  ;;  %v4388_v21 = vpop.permute.xlu0 %4387 }
 0x3ce   : > { %7629 = vmatprep.subr.bf16.mxu0 %v4299_v58  ;;  %v4399_v44 = vsel %vm367_vm6, %v4386_v2, %v4388_v21  ;;  %v12539_v58 = vld [vmem:[#allocation15_spill] sm:$0xff] }
 0x3cf   : > { %4755 = vrot.lane.b32.xlu1 %v10785_v63, %s9021_s8  ;;  %4753 = vrot.lane.b32.xlu0 %v10704_v18, %s9021_s8 }
 0x3d1   : > { %7630 = vmatpush1.bf16.msra.mxu0 %v4298_v45  ;;  %v4394_v7 = vpop.permute.xlu1 %4393  ;;  %v4392_v8 = vpop.permute.xlu0 %4391 }
 0x3d2   : > { %7631 = vmatprep.subr.bf16.mxu0 %v4302_v47  ;;  %v4400_v57 = vsel %vm367_vm6, %v4390_v20, %v4392_v8  ;;  %v4401_v11 = vsel %vm367_vm6, %v4392_v8, %v4394_v7  ;;  %v4090_v20 = vsel %vm403_vm8, %v10679_v24, %v12539_v58  ;;  %v11062_v8 = vld [vmem:[#allocation4 + $0xc0] sm:$0xff] }
 0x3d3   : > { %4793 = vrot.lane.b32.xlu1 %v10652_v14, %s9022_s9  ;;  %4757 = vrot.lane.b32.xlu0 %v10720_v61, %s9021_s8 }
 0x3d4   : > { %7557 = vmatprep.subr.bf16.mxu1 %v4400_v57 }
 0x3d5   : > { %7632 = vmatpush1.bf16.msra.mxu0 %v4301_v48  ;;  %7558 = vmatpush1.bf16.msra.mxu1 %v3990_v6  ;;  %v4432_v60 = vpop.permute.xlu1 %4431  ;;  %v4396_v17 = vpop.permute.xlu0 %4395  ;;  %v11077_v48 = vld [vmem:[#allocation4 + $0xe0] sm:$0xff] }
 0x3d6   : > { %7633 = vmatprep.subr.bf16.mxu0 %v4349_v36  ;;  %v4402_v12 = vsel %vm367_vm6, %v4394_v7, %v4396_v17  ;;  %v11102_v17 = vld [vmem:[#allocation4 + $0xc8] sm:$0xff] }
 0x3d7   : > { %4797 = vrot.lane.b32.xlu1 %v10668_v25, %s9022_s9  ;;  %4795 = vrot.lane.b32.xlu0 %v10670_v10, %s9022_s9 }
 0x3d9   : > { %7634 = vmatpush1.bf16.msra.mxu0 %v4348_v43  ;;  %v4436_v50 = vpop.permute.xlu1 %4435  ;;  %v4434_v54 = vpop.permute.xlu0 %4433 }
 0x3da   : > { %7635 = vmatprep.subr.bf16.mxu0 %v4352_v56  ;;  %v4447_v23 = vsel %vm385_vm7, %v4432_v60, %v4434_v54  ;;  %v4448_v35 = vsel %vm385_vm7, %v4434_v54, %v4436_v50 }
 0x3db   : > { %4801 = vrot.lane.b32.xlu1 %v10686_v46, %s9022_s9  ;;  %4799 = vrot.lane.b32.xlu0 %v10688_v49, %s9022_s9 }
 0x3dc   : > { %7559 = vmatprep.subr.bf16.mxu1 %v4447_v23 }
 0x3dd   : > { %7636 = vmatpush1.bf16.msra.mxu0 %v4351_v52  ;;  %7560 = vmatpush1.bf16.msra.mxu1 %v4037_v62  ;;  %v4440_v37 = vpop.permute.xlu1 %4439  ;;  %v4438_v33 = vpop.permute.xlu0 %4437  ;;  %v11123_v62 = vld [vmem:[#allocation4 + $0xe8] sm:$0xff] }
 0x3de   : > { %7637 = vmatprep.subr.bf16.mxu0 %v4399_v44  ;;  %v4449_v42 = vsel %vm385_vm7, %v4436_v50, %v4438_v33  ;;  %v11110_v50 = vld [vmem:[#allocation4 + $0xd8] sm:$0xff] }
 0x3df   : > { %4805 = vrot.lane.b32.xlu1 %v10785_v63, %s9022_s9  ;;  %4803 = vrot.lane.b32.xlu0 %v10704_v18, %s9022_s9  ;;  %v11131_v33 = vld [vmem:[#allocation4 + $0xf8] sm:$0xff] }
 0x3e1   : > { %7638 = vmatpush1.bf16.msra.mxu0 %v4398_v28  ;;  %v4444_v31 = vpop.permute.xlu1 %4443  ;;  %v4442_v26 = vpop.permute.xlu0 %4441 }
 0x3e2   : > { %7639 = vmatprep.subr.bf16.mxu0 %v4402_v12  ;;  %v4450_v15 = vsel %vm385_vm7, %v4440_v37, %v4442_v26  ;;  %v4451_v19 = vsel %vm385_vm7, %v4442_v26, %v4444_v31 }
 0x3e3   : > { %4843 = vrot.lane.b32.xlu1 %v10652_v14, %s9023_s10  ;;  %4807 = vrot.lane.b32.xlu0 %v10720_v61, %s9022_s9 }
 0x3e4   : > { %7561 = vmatprep.subr.bf16.mxu1 %v4450_v15 }
 0x3e5   : > { %7640 = vmatpush1.bf16.msra.mxu0 %v4401_v11  ;;  %7562 = vmatpush1.bf16.msra.mxu1 %v4040_v34  ;;  %v4482_v16 = vpop.permute.xlu1 %4481  ;;  %v4446_v39 = vpop.permute.xlu0 %4445 }
 0x3e6   : > { %7641 = vmatprep.subr.bf16.mxu0 %v4449_v42  ;;  %v4452_v41 = vsel %vm385_vm7, %v4444_v31, %v4446_v39 }
 0x3e7   : > { %4847 = vrot.lane.b32.xlu1 %v10668_v25, %s9023_s10  ;;  %4845 = vrot.lane.b32.xlu0 %v10670_v10, %s9023_s10 }
 0x3e8   : > { %7564 = vmatmul.mubr.bf16.vlgmr.msra.gmra.mrb[48].mxu1 %v10408_v3 }
 0x3e9   : > { %7642 = vmatpush1.bf16.msra.mxu0 %v4448_v35  ;;  %v4486_v0 = vpop.permute.xlu1 %4485  ;;  %v4484_v53 = vpop.permute.xlu0 %4483  ;;  %7604 = vmatprep.mubr.bf16.mxu1 %v12528_v38 }
 0x3ea   : > { %7643 = vmatprep.subr.bf16.mxu0 %v4452_v41  ;;  %v4497_v5 = vsel %vm403_vm8, %v4482_v16, %v4484_v53  ;;  %v4498_v55 = vsel %vm403_vm8, %v4484_v53, %v4486_v0 }
 0x3eb   : > { %4851 = vrot.lane.b32.xlu1 %v10686_v46, %s9023_s10  ;;  %4849 = vrot.lane.b32.xlu0 %v10688_v49, %s9023_s10 }
 0x3ec   : > { %7572 = vmatprep.subr.bf16.mxu1 %v4497_v5 }
 0x3ed   : > { %7644 = vmatpush1.bf16.msra.mxu0 %v4451_v19  ;;  %7573 = vmatpush1.bf16.msra.mxu1 %v4087_v22  ;;  %v4490_v2 = vpop.permute.xlu1 %4489  ;;  %v4488_v4 = vpop.permute.xlu0 %4487 }
 0x3ee   : > { %v4499_v59 = vsel %vm403_vm8, %v4486_v0, %v4488_v4 }
 0x3ef   : > { %4855 = vrot.lane.b32.xlu1 %v10785_v63, %s9023_s10  ;;  %4853 = vrot.lane.b32.xlu0 %v10704_v18, %s9023_s10 }
 0x3f0   : > { %7654 = vmatprep.subr.bf16.mxu0 %v4499_v59  ;;  %7646 = vmatmul.mubr.bf16.vlgmr.msra.gmra.mrb[52].mxu0 %v10408_v3 }
 0x3f1   : > { %7655 = vmatpush1.bf16.msra.mxu0 %v4498_v55  ;;  %v4494_v1 = vpop.permute.xlu1 %4493  ;;  %v4492_v29 = vpop.permute.xlu0 %4491  ;;  %7686 = vmatprep.mubr.bf16.mxu0 %v12528_v38 }
 0x3f2   : > { %v4500_v51 = vsel %vm403_vm8, %v4490_v2, %v4492_v29  ;;  %v4501_v7 = vsel %vm403_vm8, %v4492_v29, %v4494_v1 }
 0x3f3   : > { %4893 = vrot.lane.b32.xlu1 %v10652_v14, %s9024_s11  ;;  %4857 = vrot.lane.b32.xlu0 %v10720_v61, %s9023_s10 }
 0x3f4   : > { %7574 = vmatprep.subr.bf16.mxu1 %v4500_v51 }
 0x3f5   : > { %7575 = vmatpush1.bf16.msra.mxu1 %v4090_v20  ;;  %v4544_v21 = vpop.permute.xlu1 %4543  ;;  %v4496_v45 = vpop.permute.xlu0 %4495 }
 0x3f6   : > { %7695 = vmatprep.subr.bf16.mxu1 %v10670_v10  ;;  %v4502_v47 = vsel %vm403_vm8, %v4494_v1, %v4496_v45 }
 0x3f7   : > { %4897 = vrot.lane.b32.xlu1 %v10668_v25, %s9024_s11  ;;  %4895 = vrot.lane.b32.xlu0 %v10670_v10, %s9024_s11 }
 0x3f8   : > { %7656 = vmatprep.subr.bf16.mxu0 %v4502_v47  ;;  %8878 = vmatmul.mubr.msk.bf16.vlgmr.msra.gmra.mrb[48].mxu1 %vm7445_vm13, %v10454_v9 }
 0x3f9   : > { %7657 = vmatpush1.bf16.msra.mxu0 %v4501_v7  ;;  %7696 = vmatpush1.bf16.msra.mxu1 %v10652_v14  ;;  %v11060_v24 = vpop.permute.xlu1 %4547  ;;  %v4546_v57 = vpop.permute.xlu0 %4545 }
 0x3fa   : > { %7697 = vmatprep.subr.bf16.mxu1 %v10704_v18  ;;  %7777 = vmatprep.subr.bf16.mxu0 %v11062_v8  ;;  %v4560_v10 = vsel %vm277_vm2, %v4546_v57, %v11060_v24 }
 0x3fb   : > { %4901 = vrot.lane.b32.xlu1 %v10686_v46, %s9024_s11  ;;  %4899 = vrot.lane.b32.xlu0 %v10688_v49, %s9024_s11 }
 0x3fc   : > { %8879 = vmatmul.mubr.msk.bf16.vlgmr.msra.gmra.mrb[52].mxu0 %vm7445_vm13, %v10454_v9  ;;  %7727 = vmatprep.mubr.bf16.mxu1 %v12529_v40 }
 0x3fd   : > { %7698 = vmatpush1.bf16.msra.mxu1 %v10686_v46  ;;  %7778 = vmatpush1.bf16.msra.mxu0 %v10668_v25  ;;  %v4552_v14 = vpop.permute.xlu1 %4551  ;;  %v11079_v32 = vpop.permute.xlu0 %4549  ;;  %v4559_v46 = vsel %vm277_vm2, %v4544_v21, %v4546_v57 }
 0x3fe   : > { %7699 = vmatprep.subr.bf16.mxu1 %v4560_v10  ;;  %7779 = vmatprep.subr.bf16.mxu0 %v11077_v48 }
 0x3ff   : > { %4905 = vrot.lane.b32.xlu1 %v10785_v63, %s9024_s11  ;;  %4903 = vrot.lane.b32.xlu0 %v10704_v18, %s9024_s11 }
 0x400   : > { %7809 = vmatprep.mubr.bf16.mxu0 %v12529_v40 }
 0x401   : > { %7700 = vmatpush1.bf16.msra.mxu1 %v4559_v46  ;;  %7780 = vmatpush1.bf16.msra.mxu0 %v10785_v63  ;;  %v11089_v25 = vpop.permute.xlu1 %4555  ;;  %v4554_v49 = vpop.permute.xlu0 %4553  ;;  %v11100_v63 = vld [vmem:[#allocation4 + $0xd0] sm:$0xff] }
 0x402   : > { %v4563_v6 = vsel %vm277_vm2, %v4554_v49, %v11089_v25  ;;  %v4562_v36 = vsel %vm277_vm2, %v4552_v14, %v4554_v49 }
 0x403   : > { %4955 = vrot.lane.b32.xlu1 %v11062_v8, %s9018_s29  ;;  %4907 = vrot.lane.b32.xlu0 %v10720_v61, %s9024_s11 }
 0x404   : > { %7701 = vmatprep.subr.bf16.mxu1 %v4563_v6 }
 0x405   : > { %7702 = vmatpush1.bf16.msra.mxu1 %v4562_v36  ;;  %v4594_v18 = vpop.permute.xlu1 %4593  ;;  %v11098_v60 = vpop.permute.xlu0 %4557 }
 0x407   : > { %4959 = vrot.lane.b32.xlu1 %v11100_v63, %s9018_s29  ;;  %4957 = vrot.lane.b32.xlu0 %v11102_v17, %s9018_s29 }
 0x409   : > { %v11108_v43 = vpop.permute.xlu1 %4597  ;;  %v4596_v56 = vpop.permute.xlu0 %4595 }
 0x40a   : > { %v4610_v61 = vsel %vm295_vm1, %v4596_v56, %v11108_v43  ;;  %v4609_v54 = vsel %vm295_vm1, %v4594_v18, %v4596_v56 }
 0x40b   : > { %4963 = vrot.lane.b32.xlu1 %v11077_v48, %s9018_s29  ;;  %4961 = vrot.lane.b32.xlu0 %v11110_v50, %s9018_s29 }
 0x40c   : > { %7703 = vmatprep.subr.bf16.mxu1 %v4610_v61 }
 0x40d   : > { %7704 = vmatpush1.bf16.msra.mxu1 %v4609_v54  ;;  %v4602_v23 = vpop.permute.xlu1 %4601  ;;  %v11119_v52 = vpop.permute.xlu0 %4599 }
 0x40f   : > { %4967 = vrot.lane.b32.xlu1 %v11121_v13, %s9018_s29  ;;  %4965 = vrot.lane.b32.xlu0 %v11123_v62, %s9018_s29 }
 0x411   : > { %v11129_v44 = vpop.permute.xlu1 %4605  ;;  %v4604_v37 = vpop.permute.xlu0 %4603 }
 0x412   : > { %v4613_v28 = vsel %vm295_vm1, %v4604_v37, %v11129_v44  ;;  %v4612_v12 = vsel %vm295_vm1, %v4602_v23, %v4604_v37 }
 0x413   : > { %5005 = vrot.lane.b32.xlu1 %v11062_v8, %s9017_s28  ;;  %4969 = vrot.lane.b32.xlu0 %v11131_v33, %s9018_s29 }
 0x414   : > { %7705 = vmatprep.subr.bf16.mxu1 %v4613_v28 }
 0x415   : > { %7706 = vmatpush1.bf16.msra.mxu1 %v4612_v12  ;;  %v4644_v31 = vpop.permute.xlu1 %4643  ;;  %v11140_v26 = vpop.permute.xlu0 %4607 }
 0x417   : > { %5009 = vrot.lane.b32.xlu1 %v11100_v63, %s9017_s28  ;;  %5007 = vrot.lane.b32.xlu0 %v11102_v17, %s9017_s28 }
 0x419   : > { %v11146_v15 = vpop.permute.xlu1 %4647  ;;  %v4646_v11 = vpop.permute.xlu0 %4645 }
 0x41a   : > { %v4660_v30 = vsel %vm313_vm3, %v4646_v11, %v11146_v15  ;;  %v4659_v34 = vsel %vm313_vm3, %v4644_v31, %v4646_v11 }
 0x41b   : > { %5013 = vrot.lane.b32.xlu1 %v11077_v48, %s9017_s28  ;;  %5011 = vrot.lane.b32.xlu0 %v11110_v50, %s9017_s28 }
 0x41c   : > { %7707 = vmatprep.subr.bf16.mxu1 %v4660_v30 }
 0x41d   : > { %7708 = vmatpush1.bf16.msra.mxu1 %v4659_v34  ;;  %v4652_v42 = vpop.permute.xlu1 %4651  ;;  %v11155_v16 = vpop.permute.xlu0 %4649 }
 0x41f   : > { %5017 = vrot.lane.b32.xlu1 %v11121_v13, %s9017_s28  ;;  %5015 = vrot.lane.b32.xlu0 %v11123_v62, %s9017_s28 }
 0x421   : > { %v11161_v39 = vpop.permute.xlu1 %4655  ;;  %v4654_v41 = vpop.permute.xlu0 %4653 }
 0x422   : > { %v4663_v35 = vsel %vm313_vm3, %v4654_v41, %v11161_v39  ;;  %v4662_v0 = vsel %vm313_vm3, %v4652_v42, %v4654_v41 }
 0x423   : > { %5055 = vrot.lane.b32.xlu1 %v11062_v8, %s9019_s30  ;;  %5019 = vrot.lane.b32.xlu0 %v11131_v33, %s9017_s28 }
 0x424   : > { %7709 = vmatprep.subr.bf16.mxu1 %v4663_v35 }
 0x425   : > { %7710 = vmatpush1.bf16.msra.mxu1 %v4662_v0  ;;  %v4694_v53 = vpop.permute.xlu1 %4693  ;;  %v11170_v5 = vpop.permute.xlu0 %4657 }
 0x427   : > { %5059 = vrot.lane.b32.xlu1 %v11100_v63, %s9019_s30  ;;  %5057 = vrot.lane.b32.xlu0 %v11102_v17, %s9019_s30 }
 0x429   : > { %v11176_v19 = vpop.permute.xlu1 %4697  ;;  %v4696_v27 = vpop.permute.xlu0 %4695 }
 0x42a   : > { %v4710_v22 = vsel %vm331_vm4, %v4696_v27, %v11176_v19  ;;  %v4709_v2 = vsel %vm331_vm4, %v4694_v53, %v4696_v27 }
 0x42b   : > { %5063 = vrot.lane.b32.xlu1 %v11077_v48, %s9019_s30  ;;  %5061 = vrot.lane.b32.xlu0 %v11110_v50, %s9019_s30 }
 0x42c   : > { %7711 = vmatprep.subr.bf16.mxu1 %v4710_v22 }
 0x42d   : > { %7712 = vmatpush1.bf16.msra.mxu1 %v4709_v2  ;;  %v4702_v4 = vpop.permute.xlu1 %4701  ;;  %v11185_v59 = vpop.permute.xlu0 %4699 }
 0x42f   : > { %5067 = vrot.lane.b32.xlu1 %v11121_v13, %s9019_s30  ;;  %5065 = vrot.lane.b32.xlu0 %v11123_v62, %s9019_s30 }
 0x431   : > { %v11191_v55 = vpop.permute.xlu1 %4705  ;;  %v4704_v1 = vpop.permute.xlu0 %4703 }
 0x432   : > { %v4713_v29 = vsel %vm331_vm4, %v4704_v1, %v11191_v55  ;;  %v4712_v51 = vsel %vm331_vm4, %v4702_v4, %v4704_v1 }
 0x433   : > { %5105 = vrot.lane.b32.xlu1 %v11062_v8, %s9020_s7  ;;  %5069 = vrot.lane.b32.xlu0 %v11131_v33, %s9019_s30 }
 0x434   : > { %7713 = vmatprep.subr.bf16.mxu1 %v4713_v29 }
 0x435   : > { %7714 = vmatpush1.bf16.msra.mxu1 %v4712_v51  ;;  %v4744_v58 = vpop.permute.xlu1 %4743  ;;  %v11200_v20 = vpop.permute.xlu0 %4707 }
 0x437   : > { %5109 = vrot.lane.b32.xlu1 %v11100_v63, %s9020_s7  ;;  %5107 = vrot.lane.b32.xlu0 %v11102_v17, %s9020_s7 }
 0x439   : > { %v11206_v21 = vpop.permute.xlu1 %4747  ;;  %v4746_v45 = vpop.permute.xlu0 %4745 }
 0x43a   : > { %v4760_v47 = vsel %vm349_vm5, %v4746_v45, %v11206_v21  ;;  %v4759_v7 = vsel %vm349_vm5, %v4744_v58, %v4746_v45 }
 0x43b   : > { %5113 = vrot.lane.b32.xlu1 %v11077_v48, %s9020_s7  ;;  %5111 = vrot.lane.b32.xlu0 %v11110_v50, %s9020_s7 }
 0x43c   : > { %7715 = vmatprep.subr.bf16.mxu1 %v4760_v47 }
 0x43d   : > { %7716 = vmatpush1.bf16.msra.mxu1 %v4759_v7  ;;  %v4752_v57 = vpop.permute.xlu1 %4751  ;;  %v11215_v14 = vpop.permute.xlu0 %4749 }
 0x43f   : > { %5117 = vrot.lane.b32.xlu1 %v11121_v13, %s9020_s7  ;;  %5115 = vrot.lane.b32.xlu0 %v11123_v62, %s9020_s7 }
 0x441   : > { %v11221_v10 = vpop.permute.xlu1 %4755  ;;  %v4754_v46 = vpop.permute.xlu0 %4753 }
 0x442   : > { %v4763_v49 = vsel %vm349_vm5, %v4754_v46, %v11221_v10  ;;  %v4762_v6 = vsel %vm349_vm5, %v4752_v57, %v4754_v46 }
 0x443   : > { %5155 = vrot.lane.b32.xlu1 %v11062_v8, %s9021_s8  ;;  %5119 = vrot.lane.b32.xlu0 %v11131_v33, %s9020_s7 }
 0x444   : > { %7717 = vmatprep.subr.bf16.mxu1 %v4763_v49 }
 0x445   : > { %7718 = vmatpush1.bf16.msra.mxu1 %v4762_v6  ;;  %v4794_v36 = vpop.permute.xlu1 %4793  ;;  %v11230_v18 = vpop.permute.xlu0 %4757 }
 0x447   : > { %5159 = vrot.lane.b32.xlu1 %v11100_v63, %s9021_s8  ;;  %5157 = vrot.lane.b32.xlu0 %v11102_v17, %s9021_s8 }
 0x449   : > { %v11236_v56 = vpop.permute.xlu1 %4797  ;;  %v4796_v61 = vpop.permute.xlu0 %4795 }
 0x44a   : > { %v4810_v54 = vsel %vm367_vm6, %v4796_v61, %v11236_v56  ;;  %v4809_v23 = vsel %vm367_vm6, %v4794_v36, %v4796_v61 }
 0x44b   : > { %5163 = vrot.lane.b32.xlu1 %v11077_v48, %s9021_s8  ;;  %5161 = vrot.lane.b32.xlu0 %v11110_v50, %s9021_s8 }
 0x44c   : > { %7719 = vmatprep.subr.bf16.mxu1 %v4810_v54 }
 0x44d   : > { %7720 = vmatpush1.bf16.msra.mxu1 %v4809_v23  ;;  %v4802_v37 = vpop.permute.xlu1 %4801  ;;  %v11245_v28 = vpop.permute.xlu0 %4799 }
 0x44f   : > { %5167 = vrot.lane.b32.xlu1 %v11121_v13, %s9021_s8  ;;  %5165 = vrot.lane.b32.xlu0 %v11123_v62, %s9021_s8 }
 0x451   : > { %v11251_v12 = vpop.permute.xlu1 %4805  ;;  %v4804_v31 = vpop.permute.xlu0 %4803 }
 0x452   : > { %v4813_v11 = vsel %vm367_vm6, %v4804_v31, %v11251_v12  ;;  %v4812_v30 = vsel %vm367_vm6, %v4802_v37, %v4804_v31 }
 0x453   : > { %5205 = vrot.lane.b32.xlu1 %v11062_v8, %s9022_s9  ;;  %5169 = vrot.lane.b32.xlu0 %v11131_v33, %s9021_s8 }
 0x454   : > { %7721 = vmatprep.subr.bf16.mxu1 %v4813_v11 }
 0x455   : > { %7722 = vmatpush1.bf16.msra.mxu1 %v4812_v30  ;;  %v4844_v34 = vpop.permute.xlu1 %4843  ;;  %v11260_v42 = vpop.permute.xlu0 %4807 }
 0x457   : > { %5209 = vrot.lane.b32.xlu1 %v11100_v63, %s9022_s9  ;;  %5207 = vrot.lane.b32.xlu0 %v11102_v17, %s9022_s9 }
 0x459   : > { %v11266_v41 = vpop.permute.xlu1 %4847  ;;  %v4846_v35 = vpop.permute.xlu0 %4845 }
 0x45a   : > { %v4860_v0 = vsel %vm385_vm7, %v4846_v35, %v11266_v41  ;;  %v4859_v53 = vsel %vm385_vm7, %v4844_v34, %v4846_v35 }
 0x45b   : > { %5213 = vrot.lane.b32.xlu1 %v11077_v48, %s9022_s9  ;;  %5211 = vrot.lane.b32.xlu0 %v11110_v50, %s9022_s9 }
 0x45c   : > { %7723 = vmatprep.subr.bf16.mxu1 %v4860_v0 }
 0x45d   : > { %7724 = vmatpush1.bf16.msra.mxu1 %v4859_v53  ;;  %v4852_v27 = vpop.permute.xlu1 %4851  ;;  %v11275_v22 = vpop.permute.xlu0 %4849  ;;  %v11359_v53 = vld [vmem:[#allocation4 + $0x110] sm:$0xff] }
 0x45f   : > { %5217 = vrot.lane.b32.xlu1 %v11121_v13, %s9022_s9  ;;  %5215 = vrot.lane.b32.xlu0 %v11123_v62, %s9022_s9 }
 0x461   : > { %v11281_v2 = vpop.permute.xlu1 %4855  ;;  %v4854_v4 = vpop.permute.xlu0 %4853 }
 0x462   : > { %v4863_v1 = vsel %vm385_vm7, %v4854_v4, %v11281_v2  ;;  %v4862_v29 = vsel %vm385_vm7, %v4852_v27, %v4854_v4  ;;  %v11361_v27 = vld [vmem:[#allocation4 + $0x108] sm:$0xff] }
 0x463   : > { %5255 = vrot.lane.b32.xlu1 %v11062_v8, %s9023_s10  ;;  %5219 = vrot.lane.b32.xlu0 %v11131_v33, %s9022_s9 }
 0x464   : > { %7725 = vmatprep.subr.bf16.mxu1 %v4863_v1  ;;  %v11369_v1 = vld [vmem:[#allocation4 + $0x120] sm:$0xff] }
 0x465   : > { %7726 = vmatpush1.bf16.msra.mxu1 %v4862_v29  ;;  %v4894_v51 = vpop.permute.xlu1 %4893  ;;  %v11290_v58 = vpop.permute.xlu0 %4857  ;;  %v11371_v29 = vld [vmem:[#allocation4 + $0x118] sm:$0xff] }
 0x467   : > { %5259 = vrot.lane.b32.xlu1 %v11100_v63, %s9023_s10  ;;  %5257 = vrot.lane.b32.xlu0 %v11102_v17, %s9023_s10 }
 0x468   : > { %7728 = vmatmul.mubr.bf16.vlgmr.msra.gmra.mrb[52].mxu1 %v10408_v3 }
 0x469   : > { %v11297_v45 = vpop.permute.xlu1 %4897  ;;  %v4896_v47 = vpop.permute.xlu0 %4895  ;;  %7768 = vmatprep.mubr.bf16.mxu1 %v12528_v38 }
 0x46a   : > { %v4910_v7 = vsel %vm403_vm8, %v4896_v47, %v11297_v45  ;;  %v4909_v57 = vsel %vm403_vm8, %v4894_v51, %v4896_v47  ;;  %v4611_v47 = vsel %vm295_vm1, %v11108_v43, %v11119_v52 }
 0x46b   : > { %5263 = vrot.lane.b32.xlu1 %v11077_v48, %s9023_s10  ;;  %5261 = vrot.lane.b32.xlu0 %v11110_v50, %s9023_s10 }
 0x46c   : > { %7736 = vmatprep.subr.bf16.mxu1 %v4910_v7 }
 0x46d   : > { %7737 = vmatpush1.bf16.msra.mxu1 %v4909_v57  ;;  %v4902_v46 = vpop.permute.xlu1 %4901  ;;  %v11307_v49 = vpop.permute.xlu0 %4899 }
 0x46f   : > { %5267 = vrot.lane.b32.xlu1 %v11121_v13, %s9023_s10  ;;  %5265 = vrot.lane.b32.xlu0 %v11123_v62, %s9023_s10 }
 0x471   : > { %v11313_v6 = vpop.permute.xlu1 %4905  ;;  %v4904_v36 = vpop.permute.xlu0 %4903 }
 0x472   : > { %v4913_v61 = vsel %vm403_vm8, %v4904_v36, %v11313_v6  ;;  %v4912_v54 = vsel %vm403_vm8, %v4902_v46, %v4904_v36  ;;  %v11381_v46 = vld [vmem:[#allocation4 + $0x130] sm:$0xff]  ;;  %v11383_v36 = vld [vmem:[#allocation4 + $0x128] sm:$0xff] }
 0x473   : > { %5305 = vrot.lane.b32.xlu1 %v11062_v8, %s9024_s11  ;;  %5269 = vrot.lane.b32.xlu0 %v11131_v33, %s9023_s10 }
 0x474   : > { %7738 = vmatprep.subr.bf16.mxu1 %v4913_v61 }
 0x475   : > { %7739 = vmatpush1.bf16.msra.mxu1 %v4912_v54  ;;  %v4956_v23 = vpop.permute.xlu1 %4955  ;;  %v11322_v37 = vpop.permute.xlu0 %4907 }
 0x476   : > { %7859 = vmatprep.subr.bf16.mxu1 %v11100_v63 }
 0x477   : > { %5309 = vrot.lane.b32.xlu1 %v11100_v63, %s9024_s11  ;;  %5307 = vrot.lane.b32.xlu0 %v11102_v17, %s9024_s11  ;;  %v4561_v63 = vsel %vm277_vm2, %v11060_v24, %v11079_v32  ;;  %v11349_v32 = vld [vmem:[#allocation4 + $0x100] sm:$0xff] }
 0x478   : > { %8880 = vmatmul.mubr.msk.bf16.vlgmr.msra.gmra.mrb[52].mxu1 %vm7445_vm13, %v10454_v9 }
 0x479   : > { %7860 = vmatpush1.bf16.msra.mxu1 %v11102_v17  ;;  %v4960_v8 = vpop.permute.xlu1 %4959  ;;  %v4958_v31 = vpop.permute.xlu0 %4957  ;;  %7891 = vmatprep.mubr.bf16.mxu1 %v12529_v40 }
 0x47a   : > { %7861 = vmatprep.subr.bf16.mxu1 %v11121_v13  ;;  %v4971_v11 = vsel %vm277_vm2, %v4956_v23, %v4958_v31  ;;  %v11391_v23 = vld [vmem:[#allocation4 + $0x138] sm:$0xff] }
 0x47b   : > { %5313 = vrot.lane.b32.xlu1 %v11077_v48, %s9024_s11  ;;  %5311 = vrot.lane.b32.xlu0 %v11110_v50, %s9024_s11  ;;  %v4972_v48 = vsel %vm277_vm2, %v4958_v31, %v4960_v8  ;;  %v4614_v31 = vsel %vm295_vm1, %v11129_v44, %v11140_v26  ;;  %v11409_v44 = vld [vmem:[#allocation4 + $0x140] sm:$0xff] }
 0x47c   : > { %7781 = vmatprep.subr.bf16.mxu0 %v4971_v11 }
 0x47d   : > { %7782 = vmatpush1.bf16.msra.mxu0 %v4561_v63  ;;  %7862 = vmatpush1.bf16.msra.mxu1 %v11123_v62  ;;  %v4964_v17 = vpop.permute.xlu1 %4963  ;;  %v4962_v30 = vpop.permute.xlu0 %4961 }
 0x47e   : > { %v4973_v34 = vsel %vm277_vm2, %v4960_v8, %v4962_v30 }
 0x47f   : > { %5317 = vrot.lane.b32.xlu1 %v11121_v13, %s9024_s11  ;;  %5315 = vrot.lane.b32.xlu0 %v11123_v62, %s9024_s11  ;;  %v4564_v13 = vsel %vm277_vm2, %v11089_v25, %v11098_v60 }
 0x480   : > { %7863 = vmatprep.subr.bf16.mxu1 %v4973_v34 }
 0x481   : > { %7864 = vmatpush1.bf16.msra.mxu1 %v4972_v48  ;;  %v4968_v50 = vpop.permute.xlu1 %4967  ;;  %v4966_v24 = vpop.permute.xlu0 %4965 }
 0x482   : > { %v4974_v35 = vsel %vm277_vm2, %v4964_v17, %v4966_v24 }
 0x483   : > { %5367 = vrot.lane.b32.xlu1 %v11349_v32, %s9018_s29  ;;  %5319 = vrot.lane.b32.xlu0 %v11131_v33, %s9024_s11  ;;  %v4975_v33 = vsel %vm277_vm2, %v4966_v24, %v4968_v50  ;;  %v4661_v24 = vsel %vm313_vm3, %v11146_v15, %v11155_v16 }
 0x484   : > { %7783 = vmatprep.subr.bf16.mxu0 %v4974_v35 }
 0x485   : > { %7784 = vmatpush1.bf16.msra.mxu0 %v4564_v13  ;;  %v5006_v62 = vpop.permute.xlu1 %5005  ;;  %v4970_v0 = vpop.permute.xlu0 %4969 }
 0x486   : > { %v4976_v4 = vsel %vm277_vm2, %v4968_v50, %v4970_v0  ;;  %v11407_v50 = vld [vmem:[#allocation4 + $0x148] sm:$0xff]  ;;  %v11421_v0 = vld [vmem:[#allocation4 + $0x160] sm:$0xff] }
 0x487   : > { %5371 = vrot.lane.b32.xlu1 %v11359_v53, %s9018_s29  ;;  %5369 = vrot.lane.b32.xlu0 %v11361_v27, %s9018_s29 }
 0x488   : > { %7865 = vmatprep.subr.bf16.mxu1 %v4976_v4 }
 0x489   : > { %7866 = vmatpush1.bf16.msra.mxu1 %v4975_v33  ;;  %v5010_v25 = vpop.permute.xlu1 %5009  ;;  %v5008_v60 = vpop.permute.xlu0 %5007 }
 0x48a   : > { %v5021_v51 = vsel %vm295_vm1, %v5006_v62, %v5008_v60  ;;  %v5022_v54 = vsel %vm295_vm1, %v5008_v60, %v5010_v25  ;;  %v11419_v62 = vld [vmem:[#allocation4 + $0x168] sm:$0xff]  ;;  %v4664_v60 = vsel %vm313_vm3, %v11161_v39, %v11170_v5  ;;  %v4711_v5 = vsel %vm331_vm4, %v11176_v19, %v11185_v59 }
 0x48b   : > { %5375 = vrot.lane.b32.xlu1 %v11369_v1, %s9018_s29  ;;  %5373 = vrot.lane.b32.xlu0 %v11371_v29, %s9018_s29  ;;  %v4714_v59 = vsel %vm331_vm4, %v11191_v55, %v11200_v20  ;;  %v4761_v20 = vsel %vm349_vm5, %v11206_v21, %v11215_v14  ;;  %v4764_v14 = vsel %vm349_vm5, %v11221_v10, %v11230_v18 }
 0x48c   : > { %7785 = vmatprep.subr.bf16.mxu0 %v5021_v51  ;;  %v4811_v18 = vsel %vm367_vm6, %v11236_v56, %v11245_v28  ;;  %v4814_v28 = vsel %vm367_vm6, %v11251_v12, %v11260_v42  ;;  %v4861_v42 = vsel %vm385_vm7, %v11266_v41, %v11275_v22  ;;  %v4864_v22 = vsel %vm385_vm7, %v11281_v2, %v11290_v58 }
 0x48d   : > { %7786 = vmatpush1.bf16.msra.mxu0 %v4611_v47  ;;  %v5014_v7 = vpop.permute.xlu1 %5013  ;;  %v5012_v57 = vpop.permute.xlu0 %5011 }
 0x48e   : > { %v5023_v61 = vsel %vm295_vm1, %v5010_v25, %v5012_v57 }
 0x48f   : > { %5379 = vrot.lane.b32.xlu1 %v11381_v46, %s9018_s29  ;;  %5377 = vrot.lane.b32.xlu0 %v11383_v36, %s9018_s29 }
 0x490   : > { %7867 = vmatprep.subr.bf16.mxu1 %v5023_v61 }
 0x491   : > { %7868 = vmatpush1.bf16.msra.mxu1 %v5022_v54  ;;  %v5018_v43 = vpop.permute.xlu1 %5017  ;;  %v5016_v52 = vpop.permute.xlu0 %5015 }
 0x492   : > { %v5024_v8 = vsel %vm295_vm1, %v5014_v7, %v5016_v52  ;;  %v5025_v30 = vsel %vm295_vm1, %v5016_v52, %v5018_v43 }
 0x493   : > { %5417 = vrot.lane.b32.xlu1 %v11349_v32, %s9017_s28  ;;  %5381 = vrot.lane.b32.xlu0 %v11391_v23, %s9018_s29 }
 0x494   : > { %7787 = vmatprep.subr.bf16.mxu0 %v5024_v8 }
 0x495   : > { %7788 = vmatpush1.bf16.msra.mxu0 %v4614_v31  ;;  %v5056_v11 = vpop.permute.xlu1 %5055  ;;  %v5020_v63 = vpop.permute.xlu0 %5019 }
 0x496   : > { %v5026_v17 = vsel %vm295_vm1, %v5018_v43, %v5020_v63 }
 0x497   : > { %5421 = vrot.lane.b32.xlu1 %v11359_v53, %s9017_s28  ;;  %5419 = vrot.lane.b32.xlu0 %v11361_v27, %s9017_s28 }
 0x498   : > { %7869 = vmatprep.subr.bf16.mxu1 %v5026_v17 }
 0x499   : > { %7870 = vmatpush1.bf16.msra.mxu1 %v5025_v30  ;;  %v5060_v34 = vpop.permute.xlu1 %5059  ;;  %v5058_v48 = vpop.permute.xlu0 %5057 }
 0x49a   : > { %v5071_v26 = vsel %vm313_vm3, %v5056_v11, %v5058_v48  ;;  %v5072_v33 = vsel %vm313_vm3, %v5058_v48, %v5060_v34 }
 0x49b   : > { %5781 = vrot.lane.b32.xlu1 %v11407_v50, %s9018_s29  ;;  %5779 = vrot.lane.b32.xlu0 %v11409_v44, %s9018_s29 }
 0x49c   : > { %7789 = vmatprep.subr.bf16.mxu0 %v5071_v26 }
 0x49d   : > { %7790 = vmatpush1.bf16.msra.mxu0 %v4661_v24  ;;  %v5064_v35 = vpop.permute.xlu1 %5063  ;;  %v5062_v13 = vpop.permute.xlu0 %5061 }
 0x49e   : > { %v5073_v4 = vsel %vm313_vm3, %v5060_v34, %v5062_v13 }
 0x49f   : > { %5789 = vrot.lane.b32.xlu1 %v11419_v62, %s9018_s29  ;;  %5787 = vrot.lane.b32.xlu0 %v11421_v0, %s9018_s29 }
 0x4a0   : > { %7871 = vmatprep.subr.bf16.mxu1 %v5073_v4 }
 0x4a1   : > { %7872 = vmatpush1.bf16.msra.mxu1 %v5072_v33  ;;  %v5068_v15 = vpop.permute.xlu1 %5067  ;;  %v5066_v16 = vpop.permute.xlu0 %5065 }
 0x4a2   : > { %v5074_v25 = vsel %vm313_vm3, %v5064_v35, %v5066_v16  ;;  %v5075_v57 = vsel %vm313_vm3, %v5066_v16, %v5068_v15 }
 0x4a3   : > { %5831 = vrot.lane.b32.xlu1 %v11407_v50, %s9017_s28  ;;  %5829 = vrot.lane.b32.xlu0 %v11409_v44, %s9017_s28 }
 0x4a4   : > { %7791 = vmatprep.subr.bf16.mxu0 %v5074_v25 }
 0x4a5   : > { %7792 = vmatpush1.bf16.msra.mxu0 %v4664_v60  ;;  %v5106_v51 = vpop.permute.xlu1 %5105  ;;  %v5070_v47 = vpop.permute.xlu0 %5069 }
 0x4a6   : > { %v5076_v7 = vsel %vm313_vm3, %v5068_v15, %v5070_v47 }
 0x4a7   : > { %5427 = vrot.lane.b32.xlu1 %v11383_v36, %s9017_s28  ;;  %5423 = vrot.lane.b32.xlu0 %v11371_v29, %s9017_s28 }
 0x4a8   : > { %7873 = vmatprep.subr.bf16.mxu1 %v5076_v7 }
 0x4a9   : > { %7874 = vmatpush1.bf16.msra.mxu1 %v5075_v57  ;;  %v5110_v61 = vpop.permute.xlu1 %5109  ;;  %v5108_v54 = vpop.permute.xlu0 %5107 }
 0x4aa   : > { %v5121_v39 = vsel %vm331_vm4, %v5106_v51, %v5108_v54  ;;  %v5122_v31 = vsel %vm331_vm4, %v5108_v54, %v5110_v61 }
 0x4ab   : > { %5837 = vrot.lane.b32.xlu1 %v11421_v0, %s9017_s28  ;;  %5429 = vrot.lane.b32.xlu0 %v11381_v46, %s9017_s28 }
 0x4ac   : > { %7793 = vmatprep.subr.bf16.mxu0 %v5121_v39 }
 0x4ad   : > { %7794 = vmatpush1.bf16.msra.mxu0 %v4711_v5  ;;  %v5114_v43 = vpop.permute.xlu1 %5113  ;;  %v5112_v52 = vpop.permute.xlu0 %5111 }
 0x4ae   : > { %v5123_v8 = vsel %vm331_vm4, %v5110_v61, %v5112_v52 }
 0x4af   : > { %5425 = vrot.lane.b32.xlu1 %v11369_v1, %s9017_s28  ;;  %5839 = vrot.lane.b32.xlu0 %v11419_v62, %s9017_s28 }
 0x4b0   : > { %7875 = vmatprep.subr.bf16.mxu1 %v5123_v8 }
 0x4b1   : > { %7876 = vmatpush1.bf16.msra.mxu1 %v5122_v31  ;;  %v5118_v11 = vpop.permute.xlu1 %5117  ;;  %v5116_v63 = vpop.permute.xlu0 %5115 }
 0x4b2   : > { %v5124_v19 = vsel %vm331_vm4, %v5114_v43, %v5116_v63  ;;  %v5125_v48 = vsel %vm331_vm4, %v5116_v63, %v5118_v11 }
 0x4b3   : > { %5469 = vrot.lane.b32.xlu1 %v11361_v27, %s9019_s30  ;;  %5431 = vrot.lane.b32.xlu0 %v11391_v23, %s9017_s28 }
 0x4b4   : > { %7795 = vmatprep.subr.bf16.mxu0 %v5124_v19 }
 0x4b5   : > { %7796 = vmatpush1.bf16.msra.mxu0 %v4714_v59  ;;  %v5156_v17 = vpop.permute.xlu1 %5155  ;;  %v5120_v30 = vpop.permute.xlu0 %5119 }
 0x4b6   : > { %v5126_v34 = vsel %vm331_vm4, %v5118_v11, %v5120_v30 }
 0x4b7   : > { %5879 = vrot.lane.b32.xlu1 %v11409_v44, %s9019_s30  ;;  %5471 = vrot.lane.b32.xlu0 %v11359_v53, %s9019_s30 }
 0x4b8   : > { %7877 = vmatprep.subr.bf16.mxu1 %v5126_v34 }
 0x4b9   : > { %7878 = vmatpush1.bf16.msra.mxu1 %v5125_v48  ;;  %v5160_v26 = vpop.permute.xlu1 %5159  ;;  %v5158_v24 = vpop.permute.xlu0 %5157 }
 0x4ba   : > { %v5171_v55 = vsel %vm349_vm5, %v5156_v17, %v5158_v24  ;;  %v5172_v33 = vsel %vm349_vm5, %v5158_v24, %v5160_v26 }
 0x4bb   : > { %5467 = vrot.lane.b32.xlu1 %v11349_v32, %s9019_s30  ;;  %5881 = vrot.lane.b32.xlu0 %v11407_v50, %s9019_s30 }
 0x4bc   : > { %7797 = vmatprep.subr.bf16.mxu0 %v5171_v55 }
 0x4bd   : > { %7798 = vmatpush1.bf16.msra.mxu0 %v4761_v20  ;;  %v5164_v35 = vpop.permute.xlu1 %5163  ;;  %v5162_v13 = vpop.permute.xlu0 %5161 }
 0x4be   : > { %v5173_v4 = vsel %vm349_vm5, %v5160_v26, %v5162_v13 }
 0x4bf   : > { %5477 = vrot.lane.b32.xlu1 %v11383_v36, %s9019_s30  ;;  %5473 = vrot.lane.b32.xlu0 %v11371_v29, %s9019_s30 }
 0x4c0   : > { %7879 = vmatprep.subr.bf16.mxu1 %v5173_v4 }
 0x4c1   : > { %7880 = vmatpush1.bf16.msra.mxu1 %v5172_v33  ;;  %v5168_v15 = vpop.permute.xlu1 %5167  ;;  %v5166_v16 = vpop.permute.xlu0 %5165  ;;  %v4911_v33 = vsel %vm403_vm8, %v11297_v45, %v11307_v49 }
 0x4c2   : > { %v5174_v21 = vsel %vm349_vm5, %v5164_v35, %v5166_v16  ;;  %v5175_v47 = vsel %vm349_vm5, %v5166_v16, %v5168_v15 }
 0x4c3   : > { %5887 = vrot.lane.b32.xlu1 %v11421_v0, %s9019_s30  ;;  %5479 = vrot.lane.b32.xlu0 %v11381_v46, %s9019_s30 }
 0x4c4   : > { %7799 = vmatprep.subr.bf16.mxu0 %v5174_v21 }
 0x4c5   : > { %7800 = vmatpush1.bf16.msra.mxu0 %v4764_v14  ;;  %v5206_v25 = vpop.permute.xlu1 %5205  ;;  %v5170_v60 = vpop.permute.xlu0 %5169 }
 0x4c6   : > { %v5176_v51 = vsel %vm349_vm5, %v5168_v15, %v5170_v60  ;;  %v4914_v60 = vsel %vm403_vm8, %v11313_v6, %v11322_v37 }
 0x4c7   : > { %5475 = vrot.lane.b32.xlu1 %v11369_v1, %s9019_s30  ;;  %5889 = vrot.lane.b32.xlu0 %v11419_v62, %s9019_s30 }
 0x4c8   : > { %7881 = vmatprep.subr.bf16.mxu1 %v5176_v51 }
 0x4c9   : > { %7882 = vmatpush1.bf16.msra.mxu1 %v5175_v47  ;;  %v5210_v7 = vpop.permute.xlu1 %5209  ;;  %v5208_v57 = vpop.permute.xlu0 %5207 }
 0x4ca   : > { %v5221_v10 = vsel %vm367_vm6, %v5206_v25, %v5208_v57  ;;  %v5222_v5 = vsel %vm367_vm6, %v5208_v57, %v5210_v7 }
 0x4cb   : > { %5519 = vrot.lane.b32.xlu1 %v11361_v27, %s9020_s7  ;;  %5481 = vrot.lane.b32.xlu0 %v11391_v23, %s9019_s30 }
 0x4cc   : > { %7801 = vmatprep.subr.bf16.mxu0 %v5221_v10 }
 0x4cd   : > { %7802 = vmatpush1.bf16.msra.mxu0 %v4811_v18  ;;  %v5214_v61 = vpop.permute.xlu1 %5213  ;;  %v5212_v54 = vpop.permute.xlu0 %5211 }
 0x4ce   : > { %v5223_v39 = vsel %vm367_vm6, %v5210_v7, %v5212_v54 }
 0x4cf   : > { %5929 = vrot.lane.b32.xlu1 %v11409_v44, %s9020_s7  ;;  %5521 = vrot.lane.b32.xlu0 %v11359_v53, %s9020_s7 }
 0x4d0   : > { %7883 = vmatprep.subr.bf16.mxu1 %v5223_v39 }
 0x4d1   : > { %7884 = vmatpush1.bf16.msra.mxu1 %v5222_v5  ;;  %v5218_v43 = vpop.permute.xlu1 %5217  ;;  %v5216_v52 = vpop.permute.xlu0 %5215 }
 0x4d2   : > { %v5224_v56 = vsel %vm367_vm6, %v5214_v61, %v5216_v52  ;;  %v5225_v63 = vsel %vm367_vm6, %v5216_v52, %v5218_v43 }
 0x4d3   : > { %5517 = vrot.lane.b32.xlu1 %v11349_v32, %s9020_s7  ;;  %5931 = vrot.lane.b32.xlu0 %v11407_v50, %s9020_s7 }
 0x4d4   : > { %7803 = vmatprep.subr.bf16.mxu0 %v5224_v56 }
 0x4d5   : > { %7804 = vmatpush1.bf16.msra.mxu0 %v4814_v28  ;;  %v5256_v8 = vpop.permute.xlu1 %5255  ;;  %v5220_v31 = vpop.permute.xlu0 %5219 }
 0x4d6   : > { %v5226_v11 = vsel %vm367_vm6, %v5218_v43, %v5220_v31 }
 0x4d7   : > { %5527 = vrot.lane.b32.xlu1 %v11383_v36, %s9020_s7  ;;  %5523 = vrot.lane.b32.xlu0 %v11371_v29, %s9020_s7 }
 0x4d8   : > { %7885 = vmatprep.subr.bf16.mxu1 %v5226_v11 }
 0x4d9   : > { %7886 = vmatpush1.bf16.msra.mxu1 %v5225_v63  ;;  %v5260_v19 = vpop.permute.xlu1 %5259  ;;  %v5258_v59 = vpop.permute.xlu0 %5257 }
 0x4da   : > { %v5271_v12 = vsel %vm385_vm7, %v5256_v8, %v5258_v59  ;;  %v5272_v48 = vsel %vm385_vm7, %v5258_v59, %v5260_v19 }
 0x4db   : > { %5937 = vrot.lane.b32.xlu1 %v11421_v0, %s9020_s7  ;;  %5529 = vrot.lane.b32.xlu0 %v11381_v46, %s9020_s7 }
 0x4dc   : > { %7805 = vmatprep.subr.bf16.mxu0 %v5271_v12 }
 0x4dd   : > { %7806 = vmatpush1.bf16.msra.mxu0 %v4861_v42  ;;  %v5264_v17 = vpop.permute.xlu1 %5263  ;;  %v5262_v30 = vpop.permute.xlu0 %5261 }
 0x4de   : > { %v5273_v34 = vsel %vm385_vm7, %v5260_v19, %v5262_v30 }
 0x4df   : > { %5525 = vrot.lane.b32.xlu1 %v11369_v1, %s9020_s7  ;;  %5939 = vrot.lane.b32.xlu0 %v11419_v62, %s9020_s7 }
 0x4e0   : > { %7887 = vmatprep.subr.bf16.mxu1 %v5273_v34 }
 0x4e1   : > { %7888 = vmatpush1.bf16.msra.mxu1 %v5272_v48  ;;  %v5268_v26 = vpop.permute.xlu1 %5267  ;;  %v5266_v24 = vpop.permute.xlu0 %5265 }
 0x4e2   : > { %v5274_v41 = vsel %vm385_vm7, %v5264_v17, %v5266_v24  ;;  %v5275_v13 = vsel %vm385_vm7, %v5266_v24, %v5268_v26 }
 0x4e3   : > { %5569 = vrot.lane.b32.xlu1 %v11361_v27, %s9021_s8  ;;  %5531 = vrot.lane.b32.xlu0 %v11391_v23, %s9020_s7 }
 0x4e4   : > { %7807 = vmatprep.subr.bf16.mxu0 %v5274_v41 }
 0x4e5   : > { %7808 = vmatpush1.bf16.msra.mxu0 %v4864_v22  ;;  %v5306_v55 = vpop.permute.xlu1 %5305  ;;  %v5270_v20 = vpop.permute.xlu0 %5269 }
 0x4e6   : > { %v5276_v35 = vsel %vm385_vm7, %v5268_v26, %v5270_v20 }
 0x4e7   : > { %5979 = vrot.lane.b32.xlu1 %v11409_v44, %s9021_s8  ;;  %5571 = vrot.lane.b32.xlu0 %v11359_v53, %s9021_s8 }
 0x4e8   : > { %7889 = vmatprep.subr.bf16.mxu1 %v5276_v35  ;;  %7810 = vmatmul.mubr.bf16.vlgmr.msra.gmra.mrb[56].mxu0 %v10408_v3 }
 0x4e9   : > { %7890 = vmatpush1.bf16.msra.mxu1 %v5275_v13  ;;  %v5310_v4 = vpop.permute.xlu1 %5309  ;;  %v5308_v2 = vpop.permute.xlu0 %5307  ;;  %7850 = vmatprep.mubr.bf16.mxu0 %v12528_v38 }
 0x4ea   : > { %v5321_v58 = vsel %vm403_vm8, %v5306_v55, %v5308_v2  ;;  %v5322_v14 = vsel %vm403_vm8, %v5308_v2, %v5310_v4 }
 0x4eb   : > { %5567 = vrot.lane.b32.xlu1 %v11349_v32, %s9021_s8  ;;  %5981 = vrot.lane.b32.xlu0 %v11407_v50, %s9021_s8 }
 0x4ec   : > { %7818 = vmatprep.subr.bf16.mxu0 %v5321_v58  ;;  %7892 = vmatmul.mubr.bf16.vlgmr.msra.gmra.mrb[56].mxu1 %v10408_v3 }
 0x4ed   : > { %7819 = vmatpush1.bf16.msra.mxu0 %v4911_v33  ;;  %v5314_v15 = vpop.permute.xlu1 %5313  ;;  %v5312_v16 = vpop.permute.xlu0 %5311  ;;  %7932 = vmatprep.mubr.bf16.mxu1 %v12528_v38 }
 0x4ee   : > { %v5323_v21 = vsel %vm403_vm8, %v5310_v4, %v5312_v16 }
 0x4ef   : > { %5577 = vrot.lane.b32.xlu1 %v11383_v36, %s9021_s8  ;;  %5573 = vrot.lane.b32.xlu0 %v11371_v29, %s9021_s8 }
 0x4f0   : > { %7900 = vmatprep.subr.bf16.mxu1 %v5323_v21 }
 0x4f1   : > { %7901 = vmatpush1.bf16.msra.mxu1 %v5322_v14  ;;  %v5318_v45 = vpop.permute.xlu1 %5317  ;;  %v5316_v49 = vpop.permute.xlu0 %5315 }
 0x4f2   : > { %v5324_v25 = vsel %vm403_vm8, %v5314_v15, %v5316_v49  ;;  %v5325_v6 = vsel %vm403_vm8, %v5316_v49, %v5318_v45 }
 0x4f3   : > { %5987 = vrot.lane.b32.xlu1 %v11421_v0, %s9021_s8  ;;  %5579 = vrot.lane.b32.xlu0 %v11381_v46, %s9021_s8 }
 0x4f4   : > { %7820 = vmatprep.subr.bf16.mxu0 %v5324_v25 }
 0x4f5   : > { %7821 = vmatpush1.bf16.msra.mxu0 %v4914_v60  ;;  %v5368_v51 = vpop.permute.xlu1 %5367  ;;  %v5320_v47 = vpop.permute.xlu0 %5319 }
 0x4f6   : > { %7941 = vmatprep.subr.bf16.mxu0 %v11361_v27  ;;  %v5326_v7 = vsel %vm403_vm8, %v5318_v45, %v5320_v47 }
 0x4f7   : > { %5575 = vrot.lane.b32.xlu1 %v11369_v1, %s9021_s8  ;;  %5989 = vrot.lane.b32.xlu0 %v11419_v62, %s9021_s8 }
 0x4f8   : > { %7902 = vmatprep.subr.bf16.mxu1 %v5326_v7  ;;  %8881 = vmatmul.mubr.msk.bf16.vlgmr.msra.gmra.mrb[56].mxu0 %vm7445_vm13, %v10454_v9 }
 0x4f9   : > { %7903 = vmatpush1.bf16.msra.mxu1 %v5325_v6  ;;  %7942 = vmatpush1.bf16.msra.mxu0 %v11349_v32  ;;  %v5372_v37 = vpop.permute.xlu1 %5371  ;;  %v5370_v57 = vpop.permute.xlu0 %5369 }
 0x4fa   : > { %7943 = vmatprep.subr.bf16.mxu0 %v11383_v36  ;;  %8023 = vmatprep.subr.bf16.mxu1 %v11409_v44  ;;  %v5384_v18 = vsel %vm277_vm2, %v5370_v57, %v5372_v37  ;;  %v5383_v54 = vsel %vm277_vm2, %v5368_v51, %v5370_v57 }
 0x4fb   : > { %5619 = vrot.lane.b32.xlu1 %v11361_v27, %s9022_s9  ;;  %5581 = vrot.lane.b32.xlu0 %v11391_v23, %s9021_s8 }
 0x4fc   : > { %8882 = vmatmul.mubr.msk.bf16.vlgmr.msra.gmra.mrb[56].mxu1 %vm7445_vm13, %v10454_v9  ;;  %7973 = vmatprep.mubr.bf16.mxu0 %v12529_v40 }
 0x4fd   : > { %7944 = vmatpush1.bf16.msra.mxu0 %v11369_v1  ;;  %8024 = vmatpush1.bf16.msra.mxu1 %v11359_v53  ;;  %v5376_v10 = vpop.permute.xlu1 %5375  ;;  %v5374_v61 = vpop.permute.xlu0 %5373 }
 0x4fe   : > { %7945 = vmatprep.subr.bf16.mxu0 %v5384_v18  ;;  %8025 = vmatprep.subr.bf16.mxu1 %v11421_v0  ;;  %v5385_v42 = vsel %vm277_vm2, %v5372_v37, %v5374_v61 }
 0x4ff   : > { %6029 = vrot.lane.b32.xlu1 %v11409_v44, %s9022_s9  ;;  %5621 = vrot.lane.b32.xlu0 %v11359_v53, %s9022_s9 }
 0x500   : > { %8055 = vmatprep.mubr.bf16.mxu1 %v12529_v40 }
 0x501   : > { %7946 = vmatpush1.bf16.msra.mxu0 %v5383_v54  ;;  %8026 = vmatpush1.bf16.msra.mxu1 %v11381_v46  ;;  %v5380_v39 = vpop.permute.xlu1 %5379  ;;  %v5378_v5 = vpop.permute.xlu0 %5377 }
 0x502   : > { %v5387_v43 = vsel %vm277_vm2, %v5378_v5, %v5380_v39  ;;  %v5386_v52 = vsel %vm277_vm2, %v5376_v10, %v5378_v5  ;;  %v11715_v5 = vld [vmem:[#allocation4 + $0x150] sm:$0xff] }
 0x503   : > { %5617 = vrot.lane.b32.xlu1 %v11349_v32, %s9022_s9  ;;  %6031 = vrot.lane.b32.xlu0 %v11407_v50, %s9022_s9 }
 0x504   : > { %7947 = vmatprep.subr.bf16.mxu0 %v5387_v43 }
 0x505   : > { %7948 = vmatpush1.bf16.msra.mxu0 %v5386_v52  ;;  %v5418_v56 = vpop.permute.xlu1 %5417  ;;  %v5382_v28 = vpop.permute.xlu0 %5381  ;;  %v11727_v52 = vld [vmem:[#allocation4 + $0x158] sm:$0xff] }
 0x506   : > { %v5388_v48 = vsel %vm277_vm2, %v5380_v39, %v5382_v28 }
 0x507   : > { %5627 = vrot.lane.b32.xlu1 %v11383_v36, %s9022_s9  ;;  %5623 = vrot.lane.b32.xlu0 %v11371_v29, %s9022_s9 }
 0x509   : > { %v5422_v8 = vpop.permute.xlu1 %5421  ;;  %v5420_v31 = vpop.permute.xlu0 %5419 }
 0x50a   : > { %v5434_v11 = vsel %vm295_vm1, %v5420_v31, %v5422_v8  ;;  %v5433_v63 = vsel %vm295_vm1, %v5418_v56, %v5420_v31  ;;  %v11736_v31 = vld [vmem:[#allocation4 + $0x180] sm:$0xff] }
 0x50b   : > { %6037 = vrot.lane.b32.xlu1 %v11421_v0, %s9022_s9  ;;  %5629 = vrot.lane.b32.xlu0 %v11381_v46, %s9022_s9 }
 0x50c   : > { %7949 = vmatprep.subr.bf16.mxu0 %v5434_v11  ;;  %v11738_v11 = vld [vmem:[#allocation4 + $0x190] sm:$0xff] }
 0x50d   : > { %7950 = vmatpush1.bf16.msra.mxu0 %v5433_v63  ;;  %v11627_v19 = vpop.permute.xlu1 %5781  ;;  %v5780_v59 = vpop.permute.xlu0 %5779 }
 0x50e   : > { %v5795_v12 = vsel %vm277_vm2, %v5780_v59, %v11627_v19 }
 0x50f   : > { %5625 = vrot.lane.b32.xlu1 %v11369_v1, %s9022_s9  ;;  %6039 = vrot.lane.b32.xlu0 %v11419_v62, %s9022_s9 }
 0x510   : > { %8027 = vmatprep.subr.bf16.mxu1 %v5795_v12  ;;  %v11744_v12 = vld [vmem:[#allocation4 + $0x178] sm:$0xff] }
 0x511   : > { %8028 = vmatpush1.bf16.msra.mxu1 %v5385_v42  ;;  %v11636_v17 = vpop.permute.xlu1 %5789  ;;  %v5788_v30 = vpop.permute.xlu0 %5787  ;;  %v11746_v42 = vld [vmem:[#allocation4 + $0x170] sm:$0xff] }
 0x512   : > { %v5798_v34 = vsel %vm277_vm2, %v5788_v30, %v11636_v17 }
 0x513   : > { %5669 = vrot.lane.b32.xlu1 %v11361_v27, %s9023_s10  ;;  %5631 = vrot.lane.b32.xlu0 %v11391_v23, %s9022_s9 }
 0x514   : > { %8029 = vmatprep.subr.bf16.mxu1 %v5798_v34 }
 0x515   : > { %8030 = vmatpush1.bf16.msra.mxu1 %v5388_v48  ;;  %v11645_v26 = vpop.permute.xlu1 %5831  ;;  %v5830_v24 = vpop.permute.xlu0 %5829 }
 0x516   : > { %v5845_v41 = vsel %vm295_vm1, %v5830_v24, %v11645_v26 }
 0x517   : > { %6079 = vrot.lane.b32.xlu1 %v11409_v44, %s9023_s10  ;;  %5671 = vrot.lane.b32.xlu0 %v11359_v53, %s9023_s10 }
 0x518   : > { %8031 = vmatprep.subr.bf16.mxu1 %v5845_v41  ;;  %v11756_v41 = vld [vmem:[#allocation4 + $0x1b0] sm:$0xff] }
 0x519   : > { %v5428_v22 = vpop.permute.xlu1 %5427  ;;  %v5424_v55 = vpop.permute.xlu0 %5423 }
 0x51a   : > { %v5435_v20 = vsel %vm295_vm1, %v5422_v8, %v5424_v55 }
 0x51b   : > { %5667 = vrot.lane.b32.xlu1 %v11349_v32, %s9023_s10  ;;  %6081 = vrot.lane.b32.xlu0 %v11407_v50, %s9023_s10 }
 0x51c   : > { %8032 = vmatpush1.bf16.msra.mxu1 %v5435_v20 }
 0x51d   : > { %v5838_v35 = vpop.permute.xlu1 %5837  ;;  %v5430_v13 = vpop.permute.xlu0 %5429 }
 0x51e   : > { %v5437_v4 = vsel %vm295_vm1, %v5428_v22, %v5430_v13 }
 0x51f   : > { %5677 = vrot.lane.b32.xlu1 %v11383_v36, %s9023_s10  ;;  %5673 = vrot.lane.b32.xlu0 %v11371_v29, %s9023_s10 }
 0x520   : > { %7951 = vmatprep.subr.bf16.mxu0 %v5437_v4  ;;  %v11767_v4 = vld [vmem:[#allocation4 + $0x1a0] sm:$0xff] }
 0x521   : > { %v5426_v2 = vpop.permute.xlu1 %5425  ;;  %v11663_v58 = vpop.permute.xlu0 %5839 }
 0x522   : > { %v5436_v33 = vsel %vm295_vm1, %v5426_v2, %v5428_v22  ;;  %v5848_v15 = vsel %vm295_vm1, %v5838_v35, %v11663_v58  ;;  %v11758_v22 = vld [vmem:[#allocation4 + $0x1a8] sm:$0xff] }
 0x523   : > { %6087 = vrot.lane.b32.xlu1 %v11421_v0, %s9023_s10  ;;  %5679 = vrot.lane.b32.xlu0 %v11381_v46, %s9023_s10 }
 0x524   : > { %7952 = vmatpush1.bf16.msra.mxu0 %v5436_v33  ;;  %8033 = vmatprep.subr.bf16.mxu1 %v5848_v15 }
 0x525   : > { %v5470_v16 = vpop.permute.xlu1 %5469  ;;  %v5432_v21 = vpop.permute.xlu0 %5431 }
 0x526   : > { %v5438_v14 = vsel %vm295_vm1, %v5430_v13, %v5432_v21 }
 0x527   : > { %5675 = vrot.lane.b32.xlu1 %v11369_v1, %s9023_s10  ;;  %6089 = vrot.lane.b32.xlu0 %v11419_v62, %s9023_s10 }
 0x528   : > { %8034 = vmatpush1.bf16.msra.mxu1 %v5438_v14 }
 0x529   : > { %v5880_v45 = vpop.permute.xlu1 %5879  ;;  %v5472_v49 = vpop.permute.xlu0 %5471 }
 0x52a   : > { %v5484_v25 = vsel %vm313_vm3, %v5470_v16, %v5472_v49 }
 0x52b   : > { %5719 = vrot.lane.b32.xlu1 %v11361_v27, %s9024_s11  ;;  %5681 = vrot.lane.b32.xlu0 %v11391_v23, %s9023_s10 }
 0x52c   : > { %7953 = vmatprep.subr.bf16.mxu0 %v5484_v25 }
 0x52d   : > { %v5468_v60 = vpop.permute.xlu1 %5467  ;;  %v11682_v51 = vpop.permute.xlu0 %5881 }
 0x52e   : > { %v5483_v47 = vsel %vm313_vm3, %v5468_v60, %v5470_v16  ;;  %v5895_v7 = vsel %vm313_vm3, %v5880_v45, %v11682_v51 }
 0x52f   : > { %6129 = vrot.lane.b32.xlu1 %v11409_v44, %s9024_s11  ;;  %5721 = vrot.lane.b32.xlu0 %v11359_v53, %s9024_s11 }
 0x530   : > { %7954 = vmatpush1.bf16.msra.mxu0 %v5483_v47  ;;  %8035 = vmatprep.subr.bf16.mxu1 %v5895_v7 }
 0x531   : > { %v5478_v27 = vpop.permute.xlu1 %5477  ;;  %v5474_v6 = vpop.permute.xlu0 %5473 }
 0x532   : > { %v5485_v37 = vsel %vm313_vm3, %v5472_v49, %v5474_v6 }
 0x533   : > { %5717 = vrot.lane.b32.xlu1 %v11349_v32, %s9024_s11  ;;  %6131 = vrot.lane.b32.xlu0 %v11407_v50, %s9024_s11 }
 0x534   : > { %8036 = vmatpush1.bf16.msra.mxu1 %v5485_v37 }
 0x535   : > { %v5888_v57 = vpop.permute.xlu1 %5887  ;;  %v5480_v10 = vpop.permute.xlu0 %5479 }
 0x536   : > { %v5487_v44 = vsel %vm313_vm3, %v5478_v27, %v5480_v10 }
 0x537   : > { %5727 = vrot.lane.b32.xlu1 %v11383_v36, %s9024_s11  ;;  %5723 = vrot.lane.b32.xlu0 %v11371_v29, %s9024_s11 }
 0x538   : > { %7955 = vmatprep.subr.bf16.mxu0 %v5487_v44 }
 0x539   : > { %v5476_v53 = vpop.permute.xlu1 %5475  ;;  %v11701_v18 = vpop.permute.xlu0 %5889 }
 0x53a   : > { %v5486_v32 = vsel %vm313_vm3, %v5476_v53, %v5478_v27  ;;  %v5898_v50 = vsel %vm313_vm3, %v5888_v57, %v11701_v18 }
 0x53b   : > { %6137 = vrot.lane.b32.xlu1 %v11421_v0, %s9024_s11  ;;  %5729 = vrot.lane.b32.xlu0 %v11381_v46, %s9024_s11 }
 0x53c   : > { %7956 = vmatpush1.bf16.msra.mxu0 %v5486_v32  ;;  %8037 = vmatprep.subr.bf16.mxu1 %v5898_v50 }
 0x53d   : > { %v5520_v36 = vpop.permute.xlu1 %5519  ;;  %v5482_v61 = vpop.permute.xlu0 %5481 }
 0x53e   : > { %v5488_v29 = vsel %vm313_vm3, %v5480_v10, %v5482_v61 }
 0x53f   : > { %5725 = vrot.lane.b32.xlu1 %v11369_v1, %s9024_s11  ;;  %6139 = vrot.lane.b32.xlu0 %v11419_v62, %s9024_s11  ;;  %v11725_v62 = vld [vmem:[#allocation4 + $0x188] sm:$0xff] }
 0x540   : > { %8038 = vmatpush1.bf16.msra.mxu1 %v5488_v29 }
 0x541   : > { %v5930_v54 = vpop.permute.xlu1 %5929  ;;  %v5522_v39 = vpop.permute.xlu0 %5521 }
 0x542   : > { %v5534_v0 = vsel %vm331_vm4, %v5520_v36, %v5522_v39 }
 0x543   : > { %5783 = vrot.lane.b32.xlu1 %v11715_v5, %s9018_s29  ;;  %5731 = vrot.lane.b32.xlu0 %v11391_v23, %s9024_s11 }
 0x544   : > { %7957 = vmatprep.subr.bf16.mxu0 %v5534_v0 }
 0x545   : > { %v5518_v46 = vpop.permute.xlu1 %5517  ;;  %v11722_v43 = vpop.permute.xlu0 %5931 }
 0x546   : > { %v5533_v1 = vsel %vm331_vm4, %v5518_v46, %v5520_v36  ;;  %v5945_v56 = vsel %vm331_vm4, %v5930_v54, %v11722_v43 }
 0x547   : > { %6193 = vrot.lane.b32.xlu1 %v11725_v62, %s9018_s29  ;;  %5785 = vrot.lane.b32.xlu0 %v11727_v52, %s9018_s29 }
 0x548   : > { %7958 = vmatpush1.bf16.msra.mxu0 %v5533_v1  ;;  %8039 = vmatprep.subr.bf16.mxu1 %v5945_v56 }
 0x549   : > { %v5528_v23 = vpop.permute.xlu1 %5527  ;;  %v5524_v28 = vpop.permute.xlu0 %5523 }
 0x54a   : > { %v5535_v8 = vsel %vm331_vm4, %v5522_v39, %v5524_v28 }
 0x54b   : > { %6191 = vrot.lane.b32.xlu1 %v11736_v31, %s9018_s29  ;;  %6195 = vrot.lane.b32.xlu0 %v11738_v11, %s9018_s29 }
 0x54c   : > { %8040 = vmatpush1.bf16.msra.mxu1 %v5535_v8 }
 0x54d   : > { %v5938_v63 = vpop.permute.xlu1 %5937  ;;  %v5530_v59 = vpop.permute.xlu0 %5529 }
 0x54e   : > { %v5537_v30 = vsel %vm331_vm4, %v5528_v23, %v5530_v59 }
 0x54f   : > { %5793 = vrot.lane.b32.xlu1 %v11744_v12, %s9018_s29  ;;  %5791 = vrot.lane.b32.xlu0 %v11746_v42, %s9018_s29 }
 0x550   : > { %7959 = vmatprep.subr.bf16.mxu0 %v5537_v30 }
 0x551   : > { %v5526_v34 = vpop.permute.xlu1 %5525  ;;  %v11753_v48 = vpop.permute.xlu0 %5939 }
 0x552   : > { %v5536_v24 = vsel %vm331_vm4, %v5526_v34, %v5528_v23  ;;  %v5948_v55 = vsel %vm331_vm4, %v5938_v63, %v11753_v48 }
 0x553   : > { %6203 = vrot.lane.b32.xlu1 %v11756_v41, %s9018_s29  ;;  %6201 = vrot.lane.b32.xlu0 %v11758_v22, %s9018_s29 }
 0x554   : > { %7960 = vmatpush1.bf16.msra.mxu0 %v5536_v24  ;;  %8041 = vmatprep.subr.bf16.mxu1 %v5948_v55 }
 0x555   : > { %v5570_v20 = vpop.permute.xlu1 %5569  ;;  %v5532_v35 = vpop.permute.xlu0 %5531 }
 0x556   : > { %v5538_v13 = vsel %vm331_vm4, %v5530_v59, %v5532_v35 }
 0x557   : > { %5833 = vrot.lane.b32.xlu1 %v11715_v5, %s9017_s28  ;;  %6199 = vrot.lane.b32.xlu0 %v11767_v4, %s9018_s29 }
 0x558   : > { %8042 = vmatpush1.bf16.msra.mxu1 %v5538_v13 }
 0x559   : > { %v5980_v2 = vpop.permute.xlu1 %5979  ;;  %v5572_v33 = vpop.permute.xlu0 %5571 }
 0x55a   : > { %v5584_v15 = vsel %vm349_vm5, %v5570_v20, %v5572_v33 }
 0x55b   : > { %6243 = vrot.lane.b32.xlu1 %v11725_v62, %s9017_s28  ;;  %5835 = vrot.lane.b32.xlu0 %v11727_v52, %s9017_s28 }
 0x55c   : > { %7961 = vmatprep.subr.bf16.mxu0 %v5584_v15 }
 0x55d   : > { %v5568_v16 = vpop.permute.xlu1 %5567  ;;  %v11778_v21 = vpop.permute.xlu0 %5981 }
 0x55e   : > { %v5583_v14 = vsel %vm349_vm5, %v5568_v16, %v5570_v20  ;;  %v5995_v45 = vsel %vm349_vm5, %v5980_v2, %v11778_v21 }
 0x55f   : > { %6241 = vrot.lane.b32.xlu1 %v11736_v31, %s9017_s28  ;;  %6245 = vrot.lane.b32.xlu0 %v11738_v11, %s9017_s28 }
 0x560   : > { %7962 = vmatpush1.bf16.msra.mxu0 %v5583_v14  ;;  %8043 = vmatprep.subr.bf16.mxu1 %v5995_v45 }
 0x561   : > { %v5578_v49 = vpop.permute.xlu1 %5577  ;;  %v5574_v25 = vpop.permute.xlu0 %5573 }
 0x562   : > { %v5585_v60 = vsel %vm349_vm5, %v5572_v33, %v5574_v25 }
 0x563   : > { %5843 = vrot.lane.b32.xlu1 %v11744_v12, %s9017_s28  ;;  %5841 = vrot.lane.b32.xlu0 %v11746_v42, %s9017_s28 }
 0x564   : > { %8044 = vmatpush1.bf16.msra.mxu1 %v5585_v60 }
 0x565   : > { %v5988_v47 = vpop.permute.xlu1 %5987  ;;  %v5580_v7 = vpop.permute.xlu0 %5579 }
 0x566   : > { %v5587_v27 = vsel %vm349_vm5, %v5578_v49, %v5580_v7 }
 0x567   : > { %6253 = vrot.lane.b32.xlu1 %v11756_v41, %s9017_s28  ;;  %6251 = vrot.lane.b32.xlu0 %v11758_v22, %s9017_s28 }
 0x568   : > { %7963 = vmatprep.subr.bf16.mxu0 %v5587_v27 }
 0x569   : > { %v5576_v6 = vpop.permute.xlu1 %5575  ;;  %v11797_v37 = vpop.permute.xlu0 %5989 }
 0x56a   : > { %v5586_v57 = vsel %vm349_vm5, %v5576_v6, %v5578_v49  ;;  %v5998_v10 = vsel %vm349_vm5, %v5988_v47, %v11797_v37 }
 0x56b   : > { %5883 = vrot.lane.b32.xlu1 %v11715_v5, %s9019_s30  ;;  %6249 = vrot.lane.b32.xlu0 %v11767_v4, %s9017_s28 }
 0x56c   : > { %7964 = vmatpush1.bf16.msra.mxu0 %v5586_v57  ;;  %8045 = vmatprep.subr.bf16.mxu1 %v5998_v10 }
 0x56d   : > { %v5620_v44 = vpop.permute.xlu1 %5619  ;;  %v5582_v53 = vpop.permute.xlu0 %5581 }
 0x56e   : > { %v5588_v32 = vsel %vm349_vm5, %v5580_v7, %v5582_v53 }
 0x56f   : > { %6293 = vrot.lane.b32.xlu1 %v11725_v62, %s9019_s30  ;;  %5885 = vrot.lane.b32.xlu0 %v11727_v52, %s9019_s30 }
 0x570   : > { %8046 = vmatpush1.bf16.msra.mxu1 %v5588_v32 }
 0x571   : > { %v6030_v50 = vpop.permute.xlu1 %6029  ;;  %v5622_v36 = vpop.permute.xlu0 %5621 }
 0x572   : > { %v5634_v61 = vsel %vm367_vm6, %v5620_v44, %v5622_v36 }
 0x573   : > { %6291 = vrot.lane.b32.xlu1 %v11736_v31, %s9019_s30  ;;  %6295 = vrot.lane.b32.xlu0 %v11738_v11, %s9019_s30 }
 0x574   : > { %7965 = vmatprep.subr.bf16.mxu0 %v5634_v61 }
 0x575   : > { %v5618_v29 = vpop.permute.xlu1 %5617  ;;  %v11816_v54 = vpop.permute.xlu0 %6031 }
 0x576   : > { %v5633_v39 = vsel %vm367_vm6, %v5618_v29, %v5620_v44  ;;  %v6045_v0 = vsel %vm367_vm6, %v6030_v50, %v11816_v54 }
 0x577   : > { %5893 = vrot.lane.b32.xlu1 %v11744_v12, %s9019_s30  ;;  %5891 = vrot.lane.b32.xlu0 %v11746_v42, %s9019_s30 }
 0x578   : > { %7966 = vmatpush1.bf16.msra.mxu0 %v5633_v39  ;;  %8047 = vmatprep.subr.bf16.mxu1 %v6045_v0 }
 0x579   : > { %v5628_v46 = vpop.permute.xlu1 %5627  ;;  %v5624_v1 = vpop.permute.xlu0 %5623 }
 0x57a   : > { %v5635_v56 = vsel %vm367_vm6, %v5622_v36, %v5624_v1 }
 0x57b   : > { %6303 = vrot.lane.b32.xlu1 %v11756_v41, %s9019_s30  ;;  %6301 = vrot.lane.b32.xlu0 %v11758_v22, %s9019_s30 }
 0x57c   : > { %8048 = vmatpush1.bf16.msra.mxu1 %v5635_v56 }
 0x57d   : > { %v6038_v23 = vpop.permute.xlu1 %6037  ;;  %v5630_v28 = vpop.permute.xlu0 %5629 }
 0x57e   : > { %v5637_v8 = vsel %vm367_vm6, %v5628_v46, %v5630_v28 }
 0x57f   : > { %5933 = vrot.lane.b32.xlu1 %v11715_v5, %s9020_s7  ;;  %6299 = vrot.lane.b32.xlu0 %v11767_v4, %s9019_s30 }
 0x580   : > { %7967 = vmatprep.subr.bf16.mxu0 %v5637_v8 }
 0x581   : > { %v5626_v63 = vpop.permute.xlu1 %5625  ;;  %v11835_v59 = vpop.permute.xlu0 %6039 }
 0x582   : > { %v5636_v30 = vsel %vm367_vm6, %v5626_v63, %v5628_v46  ;;  %v6048_v34 = vsel %vm367_vm6, %v6038_v23, %v11835_v59 }
 0x583   : > { %6343 = vrot.lane.b32.xlu1 %v11725_v62, %s9020_s7  ;;  %5935 = vrot.lane.b32.xlu0 %v11727_v52, %s9020_s7 }
 0x584   : > { %7968 = vmatpush1.bf16.msra.mxu0 %v5636_v30  ;;  %8049 = vmatprep.subr.bf16.mxu1 %v6048_v34 }
 0x585   : > { %v5670_v24 = vpop.permute.xlu1 %5669  ;;  %v5632_v55 = vpop.permute.xlu0 %5631 }
 0x586   : > { %v5638_v20 = vsel %vm367_vm6, %v5630_v28, %v5632_v55 }
 0x587   : > { %6341 = vrot.lane.b32.xlu1 %v11736_v31, %s9020_s7  ;;  %6345 = vrot.lane.b32.xlu0 %v11738_v11, %s9020_s7 }
 0x588   : > { %8050 = vmatpush1.bf16.msra.mxu1 %v5638_v20 }
 0x589   : > { %v6080_v35 = vpop.permute.xlu1 %6079  ;;  %v5672_v13 = vpop.permute.xlu0 %5671 }
 0x58a   : > { %v5684_v2 = vsel %vm385_vm7, %v5670_v24, %v5672_v13 }
 0x58b   : > { %5943 = vrot.lane.b32.xlu1 %v11744_v12, %s9020_s7  ;;  %5941 = vrot.lane.b32.xlu0 %v11746_v42, %s9020_s7 }
 0x58c   : > { %7969 = vmatprep.subr.bf16.mxu0 %v5684_v2  ;;  %v5752_v2 = vld [vmem:[#allocation4 + $0x148] sm:$0xff] }
 0x58d   : > { %v5668_v33 = vpop.permute.xlu1 %5667  ;;  %v11854_v15 = vpop.permute.xlu0 %6081 }
 0x58e   : > { %v5683_v16 = vsel %vm385_vm7, %v5668_v33, %v5670_v24  ;;  %v6095_v14 = vsel %vm385_vm7, %v6080_v35, %v11854_v15 }
 0x58f   : > { %6353 = vrot.lane.b32.xlu1 %v11756_v41, %s9020_s7  ;;  %6351 = vrot.lane.b32.xlu0 %v11758_v22, %s9020_s7 }
 0x590   : > { %7970 = vmatpush1.bf16.msra.mxu0 %v5683_v16  ;;  %8051 = vmatprep.subr.bf16.mxu1 %v6095_v14 }
 0x591   : > { %v5678_v45 = vpop.permute.xlu1 %5677  ;;  %v5674_v49 = vpop.permute.xlu0 %5673 }
 0x592   : > { %v5685_v25 = vsel %vm385_vm7, %v5672_v13, %v5674_v49 }
 0x593   : > { %5983 = vrot.lane.b32.xlu1 %v11715_v5, %s9021_s8  ;;  %6349 = vrot.lane.b32.xlu0 %v11767_v4, %s9020_s7 }
 0x594   : > { %8052 = vmatpush1.bf16.msra.mxu1 %v5685_v25 }
 0x595   : > { %v6088_v60 = vpop.permute.xlu1 %6087  ;;  %v5680_v47 = vpop.permute.xlu0 %5679 }
 0x596   : > { %v5687_v7 = vsel %vm385_vm7, %v5678_v45, %v5680_v47 }
 0x597   : > { %6393 = vrot.lane.b32.xlu1 %v11725_v62, %s9021_s8  ;;  %5985 = vrot.lane.b32.xlu0 %v11727_v52, %s9021_s8 }
 0x598   : > { %7971 = vmatprep.subr.bf16.mxu0 %v5687_v7 }
 0x599   : > { %v5676_v27 = vpop.permute.xlu1 %5675  ;;  %v11873_v6 = vpop.permute.xlu0 %6089 }
 0x59a   : > { %v5686_v57 = vsel %vm385_vm7, %v5676_v27, %v5678_v45  ;;  %v6098_v10 = vsel %vm385_vm7, %v6088_v60, %v11873_v6  ;;  %v5755_v45 = vld [vmem:[#allocation4 + $0x168] sm:$0xff] }
 0x59b   : > { %6391 = vrot.lane.b32.xlu1 %v11736_v31, %s9021_s8  ;;  %6395 = vrot.lane.b32.xlu0 %v11738_v11, %s9021_s8 }
 0x59c   : > { %7972 = vmatpush1.bf16.msra.mxu0 %v5686_v57  ;;  %8053 = vmatprep.subr.bf16.mxu1 %v6098_v10 }
 0x59d   : > { %v5720_v44 = vpop.permute.xlu1 %5719  ;;  %v5682_v53 = vpop.permute.xlu0 %5681 }
 0x59e   : > { %v5688_v32 = vsel %vm385_vm7, %v5680_v47, %v5682_v53 }
 0x59f   : > { %5993 = vrot.lane.b32.xlu1 %v11744_v12, %s9021_s8  ;;  %5991 = vrot.lane.b32.xlu0 %v11746_v42, %s9021_s8 }
 0x5a0   : > { %8054 = vmatpush1.bf16.msra.mxu1 %v5688_v32  ;;  %7974 = vmatmul.mubr.bf16.vlgmr.msra.gmra.mrb[60].mxu0 %v10408_v3 }
 0x5a1   : > { %v6130_v50 = vpop.permute.xlu1 %6129  ;;  %v5722_v36 = vpop.permute.xlu0 %5721  ;;  %8014 = vmatprep.mubr.bf16.mxu0 %v12528_v38 }
 0x5a2   : > { %v5734_v61 = vsel %vm403_vm8, %v5720_v44, %v5722_v36 }
 0x5a3   : > { %6403 = vrot.lane.b32.xlu1 %v11756_v41, %s9021_s8  ;;  %6401 = vrot.lane.b32.xlu0 %v11758_v22, %s9021_s8 }
 0x5a4   : > { %7982 = vmatprep.subr.bf16.mxu0 %v5734_v61  ;;  %8056 = vmatmul.mubr.bf16.vlgmr.msra.gmra.mrb[60].mxu1 %v10408_v3  ;;  %v11973_v61 = vpop.f32.mrb[48].mxu0 }
 0x5a5   : > { %v5718_v29 = vpop.permute.xlu1 %5717  ;;  %v11895_v39 = vpop.permute.xlu0 %6131  ;;  %8096 = vmatprep.mubr.bf16.mxu1 %v12528_v38 }
 0x5a6   : > { %v5733_v0 = vsel %vm403_vm8, %v5718_v29, %v5720_v44  ;;  %v6145_v46 = vsel %vm403_vm8, %v6130_v50, %v11895_v39  ;;  %v11975_v29 = vpop.f32.mrb[48].mxu1 }
 0x5a7   : > { %6033 = vrot.lane.b32.xlu1 %v11715_v5, %s9022_s9  ;;  %6399 = vrot.lane.b32.xlu0 %v11767_v4, %s9021_s8 }
 0x5a8   : > { %7983 = vmatpush1.bf16.msra.mxu0 %v5733_v0  ;;  %8064 = vmatprep.subr.bf16.mxu1 %v6145_v46  ;;  %v11981_v0 = vpop.f32.mrb[49].mxu0  ;;  %v11983_v46 = vpop.f32.mrb[49].mxu1 }
 0x5a9   : > { %v5728_v1 = vpop.permute.xlu1 %5727  ;;  %v5724_v56 = vpop.permute.xlu0 %5723 }
 0x5aa   : > { %v5735_v23 = vsel %vm403_vm8, %v5722_v36, %v5724_v56  ;;  %v7610_v56 = vpop.f32.mrb[50].mxu1 }
 0x5ab   : > { %6443 = vrot.lane.b32.xlu1 %v11725_v62, %s9022_s9  ;;  %6035 = vrot.lane.b32.xlu0 %v11727_v52, %s9022_s9 }
 0x5ac   : > { %8065 = vmatpush1.bf16.msra.mxu1 %v5735_v23 }
 0x5ad   : > { %v6138_v28 = vpop.permute.xlu1 %6137  ;;  %v5730_v8 = vpop.permute.xlu0 %5729 }
 0x5ae   : > { %v5737_v63 = vsel %vm403_vm8, %v5728_v1, %v5730_v8 }
 0x5af   : > { %6441 = vrot.lane.b32.xlu1 %v11736_v31, %s9022_s9  ;;  %6445 = vrot.lane.b32.xlu0 %v11738_v11, %s9022_s9 }
 0x5b0   : > { %7984 = vmatprep.subr.bf16.mxu0 %v5737_v63 }
 0x5b1   : > { %v5726_v30 = vpop.permute.xlu1 %5725  ;;  %v11915_v34 = vpop.permute.xlu0 %6139 }
 0x5b2   : > { %v5736_v24 = vsel %vm403_vm8, %v5726_v30, %v5728_v1  ;;  %v6148_v55 = vsel %vm403_vm8, %v6138_v28, %v11915_v34  ;;  %v7528_v1 = vpop.f32.mrb[50].mxu0  ;;  %v7611_v30 = vpop.f32.mrb[51].mxu1 }
 0x5b3   : > { %6043 = vrot.lane.b32.xlu1 %v11744_v12, %s9022_s9  ;;  %6041 = vrot.lane.b32.xlu0 %v11746_v42, %s9022_s9  ;;  %v7529_v63 = vpop.f32.mrb[51].mxu0 }
 0x5b4   : > { %7985 = vmatpush1.bf16.msra.mxu0 %v5736_v24  ;;  %8066 = vmatprep.subr.bf16.mxu1 %v6148_v55 }
 0x5b5   : > { %8105 = vmatprep.subr.bf16.mxu0 %v11715_v5  ;;  %v5784_v20 = vpop.permute.xlu1 %5783  ;;  %v5732_v35 = vpop.permute.xlu0 %5731 }
 0x5b6   : > { %v5738_v13 = vsel %vm403_vm8, %v5730_v8, %v5732_v35  ;;  %v5796_v47 = vsel %vm277_vm2, %v11627_v19, %v5784_v20 }
 0x5b7   : > { %6453 = vrot.lane.b32.xlu1 %v11756_v41, %s9022_s9  ;;  %6451 = vrot.lane.b32.xlu0 %v11758_v22, %s9022_s9 }
 0x5b8   : > { %8883 = vmatmul.mubr.msk.bf16.vlgmr.msra.gmra.mrb[60].mxu0 %vm7445_vm13, %v10454_v9  ;;  %8067 = vmatpush1.bf16.msra.mxu1 %v5738_v13 }
 0x5b9   : > { %8106 = vmatpush1.bf16.msra.mxu0 %v5752_v2  ;;  %8187 = vmatprep.subr.bf16.mxu1 %v11725_v62  ;;  %v6194_v33 = vpop.permute.xlu1 %6193  ;;  %v5786_v16 = vpop.permute.xlu0 %5785 }
 0x5ba   : > { %8107 = vmatprep.subr.bf16.mxu0 %v11746_v42  ;;  %8137 = vmatprep.mubr.bf16.mxu0 %v12529_v40  ;;  %v5797_v14 = vsel %vm277_vm2, %v5784_v20, %v5786_v16 }
 0x5bb   : > { %6083 = vrot.lane.b32.xlu1 %v11715_v5, %s9023_s10  ;;  %6449 = vrot.lane.b32.xlu0 %v11767_v4, %s9022_s9 }
 0x5bc   : > { %8884 = vmatmul.mubr.msk.bf16.vlgmr.msra.gmra.mrb[60].mxu1 %vm7445_vm13, %v10454_v9 }
 0x5bd   : > { %8108 = vmatpush1.bf16.msra.mxu0 %v5755_v45  ;;  %8188 = vmatpush1.bf16.msra.mxu1 %v11736_v31  ;;  %v6192_v49 = vpop.permute.xlu1 %6191  ;;  %v11943_v25 = vpop.permute.xlu0 %6195 }
 0x5be   : > { %8109 = vmatprep.subr.bf16.mxu0 %v5797_v14  ;;  %8189 = vmatprep.subr.bf16.mxu1 %v11758_v22  ;;  %v6208_v60 = vsel %vm277_vm2, %v6194_v33, %v11943_v25  ;;  %v6207_v19 = vsel %vm277_vm2, %v6192_v49, %v6194_v33  ;;  %v12021_v49 = vld [vmem:[#allocation4 + $0x1c0] sm:$0xff] }
 0x5bf   : > { %6493 = vrot.lane.b32.xlu1 %v11725_v62, %s9023_s10  ;;  %6085 = vrot.lane.b32.xlu0 %v11727_v52, %s9023_s10 }
 0x5c0   : > { %8219 = vmatprep.mubr.bf16.mxu1 %v12529_v40 }
 0x5c1   : > { %8110 = vmatpush1.bf16.msra.mxu0 %v5796_v47  ;;  %8190 = vmatpush1.bf16.msra.mxu1 %v11767_v4  ;;  %v5794_v7 = vpop.permute.xlu1 %5793  ;;  %v5792_v27 = vpop.permute.xlu0 %5791  ;;  %v12033_v47 = vld [vmem:[#allocation4 + $0x1d0] sm:$0xff] }
 0x5c2   : > { %8191 = vmatprep.subr.bf16.mxu1 %v6208_v60  ;;  %v5800_v57 = vsel %vm277_vm2, %v5792_v27, %v5794_v7  ;;  %v5799_v10 = vsel %vm277_vm2, %v11636_v17, %v5792_v27  ;;  %v12035_v7 = vld [vmem:[#allocation4 + $0x1c8] sm:$0xff] }
 0x5c3   : > { %6491 = vrot.lane.b32.xlu1 %v11736_v31, %s9023_s10  ;;  %6495 = vrot.lane.b32.xlu0 %v11738_v11, %s9023_s10 }
 0x5c4   : > { %8111 = vmatprep.subr.bf16.mxu0 %v5800_v57  ;;  %v12043_v57 = vld [vmem:[#allocation4 + $0x198] sm:$0xff] }
 0x5c5   : > { %8192 = vmatpush1.bf16.msra.mxu1 %v6207_v19  ;;  %8112 = vmatpush1.bf16.msra.mxu0 %v5799_v10  ;;  %v11964_v44 = vpop.permute.xlu1 %6203  ;;  %v6202_v53 = vpop.permute.xlu0 %6201  ;;  %v12045_v10 = vld [vmem:[#allocation4 + $0x1d8] sm:$0xff] }
 0x5c6   : > { %v6211_v32 = vsel %vm277_vm2, %v6202_v53, %v11964_v44 }
 0x5c7   : > { %6093 = vrot.lane.b32.xlu1 %v11744_v12, %s9023_s10  ;;  %6091 = vrot.lane.b32.xlu0 %v11746_v42, %s9023_s10 }
 0x5c8   : > { %8193 = vmatprep.subr.bf16.mxu1 %v6211_v32 }
 0x5c9   : > { %v5834_v17 = vpop.permute.xlu1 %5833  ;;  %v6200_v50 = vpop.permute.xlu0 %6199 }
 0x5ca   : > { %v6210_v36 = vsel %vm277_vm2, %v6200_v50, %v6202_v53  ;;  %v5846_v24 = vsel %vm295_vm1, %v11645_v26, %v5834_v17  ;;  %v12056_v50 = vld [vmem:[#allocation4 + $0x1e8] sm:$0xff] }
 0x5cb   : > { %6503 = vrot.lane.b32.xlu1 %v11756_v41, %s9023_s10  ;;  %6501 = vrot.lane.b32.xlu0 %v11758_v22, %s9023_s10 }
 0x5cc   : > { %8194 = vmatpush1.bf16.msra.mxu1 %v6210_v36  ;;  %v12058_v36 = vld [vmem:[#allocation4 + $0x1e0] sm:$0xff] }
 0x5cd   : > { %v6244_v23 = vpop.permute.xlu1 %6243  ;;  %v5836_v28 = vpop.permute.xlu0 %5835 }
 0x5ce   : > { %v5847_v8 = vsel %vm295_vm1, %v5834_v17, %v5836_v28  ;;  %v12067_v28 = vld [vmem:[#allocation4 + $0x1f8] sm:$0xff] }
 0x5cf   : > { %6133 = vrot.lane.b32.xlu1 %v11715_v5, %s9024_s11  ;;  %6499 = vrot.lane.b32.xlu0 %v11767_v4, %s9023_s10 }
 0x5d0   : > { %8113 = vmatprep.subr.bf16.mxu0 %v5847_v8  ;;  %v12069_v8 = vld [vmem:[#allocation4 + $0x1f0] sm:$0xff] }
 0x5d1   : > { %8114 = vmatpush1.bf16.msra.mxu0 %v5846_v24  ;;  %v6242_v55 = vpop.permute.xlu1 %6241  ;;  %v11992_v20 = vpop.permute.xlu0 %6245  ;;  %v12075_v24 = vld [vmem:[#allocation4 + $0x1b8] sm:$0xff] }
 0x5d2   : > { %v6257_v35 = vsel %vm295_vm1, %v6242_v55, %v6244_v23  ;;  %v6258_v13 = vsel %vm295_vm1, %v6244_v23, %v11992_v20 }
 0x5d3   : > { %6543 = vrot.lane.b32.xlu1 %v11725_v62, %s9024_s11  ;;  %6135 = vrot.lane.b32.xlu0 %v11727_v52, %s9024_s11 }
 0x5d4   : > { %8195 = vmatprep.subr.bf16.mxu1 %v6258_v13 }
 0x5d5   : > { %8196 = vmatpush1.bf16.msra.mxu1 %v6257_v35  ;;  %v5844_v5 = vpop.permute.xlu1 %5843  ;;  %v5842_v2 = vpop.permute.xlu0 %5841 }
 0x5d6   : > { %v5850_v26 = vsel %vm295_vm1, %v5842_v2, %v5844_v5  ;;  %v5849_v33 = vsel %vm295_vm1, %v11663_v58, %v5842_v2 }
 0x5d7   : > { %6541 = vrot.lane.b32.xlu1 %v11736_v31, %s9024_s11  ;;  %6545 = vrot.lane.b32.xlu0 %v11738_v11, %s9024_s11 }
 0x5d8   : > { %8115 = vmatprep.subr.bf16.mxu0 %v5850_v26 }
 0x5d9   : > { %8116 = vmatpush1.bf16.msra.mxu0 %v5849_v33  ;;  %v12008_v62 = vpop.permute.xlu1 %6253  ;;  %v6252_v52 = vpop.permute.xlu0 %6251 }
 0x5da   : > { %v6261_v16 = vsel %vm295_vm1, %v6252_v52, %v12008_v62 }
 0x5db   : > { %6143 = vrot.lane.b32.xlu1 %v11744_v12, %s9024_s11  ;;  %6141 = vrot.lane.b32.xlu0 %v11746_v42, %s9024_s11 }
 0x5dc   : > { %8197 = vmatprep.subr.bf16.mxu1 %v6261_v16 }
 0x5dd   : > { %v5884_v58 = vpop.permute.xlu1 %5883  ;;  %v6250_v31 = vpop.permute.xlu0 %6249 }
 0x5de   : > { %v6260_v14 = vsel %vm295_vm1, %v6250_v31, %v6252_v52  ;;  %v5896_v42 = vsel %vm313_vm3, %v11682_v51, %v5884_v58 }
 0x5df   : > { %6553 = vrot.lane.b32.xlu1 %v11756_v41, %s9024_s11  ;;  %6551 = vrot.lane.b32.xlu0 %v11758_v22, %s9024_s11 }
 0x5e0   : > { %8198 = vmatpush1.bf16.msra.mxu1 %v6260_v14 }
 0x5e1   : > { %v6294_v11 = vpop.permute.xlu1 %6293  ;;  %v5886_v45 = vpop.permute.xlu0 %5885 }
 0x5e2   : > { %v5897_v12 = vsel %vm313_vm3, %v5884_v58, %v5886_v45 }
 0x5e3   : > { %6603 = vrot.lane.b32.xlu1 %v12021_v49, %s9018_s29  ;;  %6549 = vrot.lane.b32.xlu0 %v11767_v4, %s9024_s11 }
 0x5e4   : > { %8117 = vmatprep.subr.bf16.mxu0 %v5897_v12 }
 0x5e5   : > { %8118 = vmatpush1.bf16.msra.mxu0 %v5896_v42  ;;  %v6292_v41 = vpop.permute.xlu1 %6291  ;;  %v12030_v22 = vpop.permute.xlu0 %6295 }
 0x5e6   : > { %v6307_v60 = vsel %vm313_vm3, %v6292_v41, %v6294_v11  ;;  %v6308_v27 = vsel %vm313_vm3, %v6294_v11, %v12030_v22 }
 0x5e7   : > { %6607 = vrot.lane.b32.xlu1 %v12033_v47, %s9018_s29  ;;  %6605 = vrot.lane.b32.xlu0 %v12035_v7, %s9018_s29 }
 0x5e8   : > { %8199 = vmatprep.subr.bf16.mxu1 %v6308_v27 }
 0x5e9   : > { %8200 = vmatpush1.bf16.msra.mxu1 %v6307_v60  ;;  %v5894_v51 = vpop.permute.xlu1 %5893  ;;  %v5892_v4 = vpop.permute.xlu0 %5891 }
 0x5ea   : > { %v5900_v19 = vsel %vm313_vm3, %v5892_v4, %v5894_v51  ;;  %v5899_v53 = vsel %vm313_vm3, %v11701_v18, %v5892_v4 }
 0x5eb   : > { %6197 = vrot.lane.b32.xlu1 %v12043_v57, %s9018_s29  ;;  %6609 = vrot.lane.b32.xlu0 %v12045_v10, %s9018_s29 }
 0x5ec   : > { %8119 = vmatprep.subr.bf16.mxu0 %v5900_v19 }
 0x5ed   : > { %8120 = vmatpush1.bf16.msra.mxu0 %v5899_v53  ;;  %v12054_v32 = vpop.permute.xlu1 %6303  ;;  %v6302_v17 = vpop.permute.xlu0 %6301 }
 0x5ee   : > { %v6311_v1 = vsel %vm313_vm3, %v6302_v17, %v12054_v32 }
 0x5ef   : > { %6613 = vrot.lane.b32.xlu1 %v12056_v50, %s9018_s29  ;;  %6611 = vrot.lane.b32.xlu0 %v12058_v36, %s9018_s29 }
 0x5f0   : > { %8201 = vmatprep.subr.bf16.mxu1 %v6311_v1 }
 0x5f1   : > { %v5934_v18 = vpop.permute.xlu1 %5933  ;;  %v6300_v56 = vpop.permute.xlu0 %6299 }
 0x5f2   : > { %v6310_v23 = vsel %vm313_vm3, %v6300_v56, %v6302_v17  ;;  %v5946_v35 = vsel %vm331_vm4, %v11722_v43, %v5934_v18  ;;  %v12138_v56 = vpop.f32.mrb[52].mxu1 }
 0x5f3   : > { %6617 = vrot.lane.b32.xlu1 %v12067_v28, %s9018_s29  ;;  %6615 = vrot.lane.b32.xlu0 %v12069_v8, %s9018_s29 }
 0x5f4   : > { %8202 = vmatpush1.bf16.msra.mxu1 %v6310_v23 }
 0x5f5   : > { %v6344_v63 = vpop.permute.xlu1 %6343  ;;  %v5936_v30 = vpop.permute.xlu0 %5935 }
 0x5f6   : > { %v5947_v55 = vsel %vm331_vm4, %v5934_v18, %v5936_v30  ;;  %v12136_v18 = vpop.f32.mrb[52].mxu0 }
 0x5f7   : > { %6653 = vrot.lane.b32.xlu1 %v12021_v49, %s9017_s28  ;;  %6205 = vrot.lane.b32.xlu0 %v12075_v24, %s9018_s29 }
 0x5f8   : > { %8121 = vmatprep.subr.bf16.mxu0 %v5947_v55  ;;  %v12144_v55 = vpop.f32.mrb[53].mxu0 }
 0x5f9   : > { %8122 = vmatpush1.bf16.msra.mxu0 %v5946_v35  ;;  %v6342_v13 = vpop.permute.xlu1 %6341  ;;  %v12084_v5 = vpop.permute.xlu0 %6345 }
 0x5fa   : > { %v6357_v2 = vsel %vm331_vm4, %v6342_v13, %v6344_v63  ;;  %v6358_v26 = vsel %vm331_vm4, %v6344_v63, %v12084_v5  ;;  %v7692_v35 = vpop.f32.mrb[54].mxu0 }
 0x5fb   : > { %6657 = vrot.lane.b32.xlu1 %v12033_v47, %s9017_s28  ;;  %6655 = vrot.lane.b32.xlu0 %v12035_v7, %s9017_s28 }
 0x5fc   : > { %8203 = vmatprep.subr.bf16.mxu1 %v6358_v26 }
 0x5fd   : > { %8204 = vmatpush1.bf16.msra.mxu1 %v6357_v2  ;;  %v5944_v33 = vpop.permute.xlu1 %5943  ;;  %v5942_v52 = vpop.permute.xlu0 %5941 }
 0x5fe   : > { %v5950_v43 = vsel %vm331_vm4, %v5942_v52, %v5944_v33  ;;  %v5949_v16 = vsel %vm331_vm4, %v11753_v48, %v5942_v52  ;;  %v7693_v2 = vpop.f32.mrb[55].mxu0 }
 0x5ff   : > { %6247 = vrot.lane.b32.xlu1 %v12043_v57, %s9017_s28  ;;  %6659 = vrot.lane.b32.xlu0 %v12045_v10, %s9017_s28 }
 0x600   : > { %8123 = vmatprep.subr.bf16.mxu0 %v5950_v43 }
 0x601   : > { %8124 = vmatpush1.bf16.msra.mxu0 %v5949_v16  ;;  %v12100_v58 = vpop.permute.xlu1 %6353  ;;  %v6352_v31 = vpop.permute.xlu0 %6351 }
 0x602   : > { %v6361_v14 = vsel %vm331_vm4, %v6352_v31, %v12100_v58 }
 0x603   : > { %6663 = vrot.lane.b32.xlu1 %v12056_v50, %s9017_s28  ;;  %6661 = vrot.lane.b32.xlu0 %v12058_v36, %s9017_s28 }
 0x604   : > { %8205 = vmatprep.subr.bf16.mxu1 %v6361_v14 }
 0x605   : > { %v5984_v48 = vpop.permute.xlu1 %5983  ;;  %v6350_v11 = vpop.permute.xlu0 %6349 }
 0x606   : > { %v6360_v45 = vsel %vm331_vm4, %v6350_v11, %v6352_v31  ;;  %v5996_v60 = vsel %vm349_vm5, %v11778_v21, %v5984_v48 }
 0x607   : > { %6667 = vrot.lane.b32.xlu1 %v12067_v28, %s9017_s28  ;;  %6665 = vrot.lane.b32.xlu0 %v12069_v8, %s9017_s28 }
 0x608   : > { %8206 = vmatpush1.bf16.msra.mxu1 %v6360_v45 }
 0x609   : > { %v6394_v12 = vpop.permute.xlu1 %6393  ;;  %v5986_v42 = vpop.permute.xlu0 %5985 }
 0x60a   : > { %v5997_v41 = vsel %vm349_vm5, %v5984_v48, %v5986_v42 }
 0x60b   : > { %6703 = vrot.lane.b32.xlu1 %v12021_v49, %s9019_s30  ;;  %6255 = vrot.lane.b32.xlu0 %v12075_v24, %s9017_s28 }
 0x60c   : > { %8125 = vmatprep.subr.bf16.mxu0 %v5997_v41 }
 0x60d   : > { %8126 = vmatpush1.bf16.msra.mxu0 %v5996_v60  ;;  %v6392_v27 = vpop.permute.xlu1 %6391  ;;  %v12120_v51 = vpop.permute.xlu0 %6395 }
 0x60e   : > { %v6407_v4 = vsel %vm349_vm5, %v6392_v27, %v6394_v12  ;;  %v6408_v19 = vsel %vm349_vm5, %v6394_v12, %v12120_v51 }
 0x60f   : > { %6707 = vrot.lane.b32.xlu1 %v12033_v47, %s9019_s30  ;;  %6705 = vrot.lane.b32.xlu0 %v12035_v7, %s9019_s30 }
 0x610   : > { %8207 = vmatprep.subr.bf16.mxu1 %v6408_v19 }
 0x611   : > { %8208 = vmatpush1.bf16.msra.mxu1 %v6407_v4  ;;  %v5994_v53 = vpop.permute.xlu1 %5993  ;;  %v5992_v17 = vpop.permute.xlu0 %5991 }
 0x612   : > { %v6000_v21 = vsel %vm349_vm5, %v5992_v17, %v5994_v53  ;;  %v5999_v1 = vsel %vm349_vm5, %v11797_v37, %v5992_v17  ;;  %v12146_v37 = vpop.f32.mrb[53].mxu1 }
 0x613   : > { %6297 = vrot.lane.b32.xlu1 %v12043_v57, %s9019_s30  ;;  %6709 = vrot.lane.b32.xlu0 %v12045_v10, %s9019_s30  ;;  %v7774_v13 = vpop.f32.mrb[54].mxu1 }
 0x614   : > { %8127 = vmatprep.subr.bf16.mxu0 %v6000_v21  ;;  %v7775_v26 = vpop.f32.mrb[55].mxu1 }
 0x615   : > { %8128 = vmatpush1.bf16.msra.mxu0 %v5999_v1  ;;  %v12140_v23 = vpop.permute.xlu1 %6403  ;;  %v6402_v63 = vpop.permute.xlu0 %6401 }
 0x616   : > { %v6411_v30 = vsel %vm349_vm5, %v6402_v63, %v12140_v23 }
 0x617   : > { %6713 = vrot.lane.b32.xlu1 %v12056_v50, %s9019_s30  ;;  %6711 = vrot.lane.b32.xlu0 %v12058_v36, %s9019_s30 }
 0x618   : > { %8209 = vmatprep.subr.bf16.mxu1 %v6411_v30 }
 0x619   : > { %v6034_v33 = vpop.permute.xlu1 %6033  ;;  %v6400_v52 = vpop.permute.xlu0 %6399 }
 0x61a   : > { %v6410_v43 = vsel %vm349_vm5, %v6400_v52, %v6402_v63  ;;  %v6046_v48 = vsel %vm367_vm6, %v11816_v54, %v6034_v33 }
 0x61b   : > { %6717 = vrot.lane.b32.xlu1 %v12067_v28, %s9019_s30  ;;  %6715 = vrot.lane.b32.xlu0 %v12069_v8, %s9019_s30 }
 0x61c   : > { %8210 = vmatpush1.bf16.msra.mxu1 %v6410_v43 }
 0x61d   : > { %v6444_v16 = vpop.permute.xlu1 %6443  ;;  %v6036_v31 = vpop.permute.xlu0 %6035 }
 0x61e   : > { %v6047_v14 = vsel %vm367_vm6, %v6034_v33, %v6036_v31 }
 0x61f   : > { %6753 = vrot.lane.b32.xlu1 %v12021_v49, %s9020_s7  ;;  %6305 = vrot.lane.b32.xlu0 %v12075_v24, %s9019_s30  ;;  %s253_s30 = smul.u32 3, %s8584_s22 }
 0x620   : > { %8129 = vmatprep.subr.bf16.mxu0 %v6047_v14 }
 0x621   : > { %8130 = vmatpush1.bf16.msra.mxu0 %v6046_v48  ;;  %v6442_v11 = vpop.permute.xlu1 %6441  ;;  %v12164_v45 = vpop.permute.xlu0 %6445  ;;  %p254_p4 = scmp.lt.s32.totalorder %s253_s30, 5 }
 0x622   : > { %v6457_v12 = vsel %vm367_vm6, %v6442_v11, %v6444_v16  ;;  %v6458_v42 = vsel %vm367_vm6, %v6444_v16, %v12164_v45 }
 0x623   : > { %6757 = vrot.lane.b32.xlu1 %v12033_v47, %s9020_s7  ;;  %6755 = vrot.lane.b32.xlu0 %v12035_v7, %s9020_s7  ;;  %s12543_s30 = smov (!%p254_p4, %s253_s30), 5 }
 0x624   : > { %8211 = vmatprep.subr.bf16.mxu1 %v6458_v42  ;;  %s8964_s22 = smul.u32 24, %s12543_s30 }
 0x625   : > { %8212 = vmatpush1.bf16.msra.mxu1 %v6457_v12  ;;  %v6044_v41 = vpop.permute.xlu1 %6043  ;;  %v6042_v60 = vpop.permute.xlu0 %6041 }
 0x626   : > { %v6050_v54 = vsel %vm367_vm6, %v6042_v60, %v6044_v41  ;;  %v6049_v27 = vsel %vm367_vm6, %v11835_v59, %v6042_v60 }
 0x627   : > { %6347 = vrot.lane.b32.xlu1 %v12043_v57, %s9020_s7  ;;  %6759 = vrot.lane.b32.xlu0 %v12045_v10, %s9020_s7 }
 0x628   : > { %8131 = vmatprep.subr.bf16.mxu0 %v6050_v54 }
 0x629   : > { %8132 = vmatpush1.bf16.msra.mxu0 %v6049_v27  ;;  %v12180_v4 = vpop.permute.xlu1 %6453  ;;  %v6452_v19 = vpop.permute.xlu0 %6451 }
 0x62a   : > { %v6461_v53 = vsel %vm367_vm6, %v6452_v19, %v12180_v4 }
 0x62b   : > { %6763 = vrot.lane.b32.xlu1 %v12056_v50, %s9020_s7  ;;  %6761 = vrot.lane.b32.xlu0 %v12058_v36, %s9020_s7 }
 0x62c   : > { %8213 = vmatprep.subr.bf16.mxu1 %v6461_v53 }
 0x62d   : > { %v6084_v59 = vpop.permute.xlu1 %6083  ;;  %v6450_v17 = vpop.permute.xlu0 %6449 }
 0x62e   : > { %v6460_v21 = vsel %vm367_vm6, %v6450_v17, %v6452_v19  ;;  %v6096_v35 = vsel %vm385_vm7, %v11854_v15, %v6084_v59 }
 0x62f   : > { %6767 = vrot.lane.b32.xlu1 %v12067_v28, %s9020_s7  ;;  %6765 = vrot.lane.b32.xlu0 %v12069_v8, %s9020_s7 }
 0x630   : > { %8214 = vmatpush1.bf16.msra.mxu1 %v6460_v21 }
 0x631   : > { %v6494_v1 = vpop.permute.xlu1 %6493  ;;  %v6086_v63 = vpop.permute.xlu0 %6085 }
 0x632   : > { %v6097_v30 = vsel %vm385_vm7, %v6084_v59, %v6086_v63 }
 0x633   : > { %6803 = vrot.lane.b32.xlu1 %v12021_v49, %s9021_s8  ;;  %6355 = vrot.lane.b32.xlu0 %v12075_v24, %s9020_s7 }
 0x634   : > { %8133 = vmatprep.subr.bf16.mxu0 %v6097_v30 }
 0x635   : > { %8134 = vmatpush1.bf16.msra.mxu0 %v6096_v35  ;;  %v6492_v13 = vpop.permute.xlu1 %6491  ;;  %v12200_v2 = vpop.permute.xlu0 %6495 }
 0x636   : > { %v6507_v26 = vsel %vm385_vm7, %v6492_v13, %v6494_v1  ;;  %v6508_v33 = vsel %vm385_vm7, %v6494_v1, %v12200_v2 }
 0x637   : > { %6807 = vrot.lane.b32.xlu1 %v12033_v47, %s9021_s8  ;;  %6805 = vrot.lane.b32.xlu0 %v12035_v7, %s9021_s8 }
 0x638   : > { %8215 = vmatprep.subr.bf16.mxu1 %v6508_v33 }
 0x639   : > { %8216 = vmatpush1.bf16.msra.mxu1 %v6507_v26  ;;  %v6094_v52 = vpop.permute.xlu1 %6093  ;;  %v6092_v43 = vpop.permute.xlu0 %6091 }
 0x63a   : > { %v6099_v15 = vsel %vm385_vm7, %v11873_v6, %v6092_v43  ;;  %v6100_v16 = vsel %vm385_vm7, %v6092_v43, %v6094_v52  ;;  %v6168_v52 = vld [vmem:[#allocation4 + $0x1b0] sm:$0xff] }
 0x63b   : > { %6397 = vrot.lane.b32.xlu1 %v12043_v57, %s9021_s8  ;;  %6809 = vrot.lane.b32.xlu0 %v12045_v10, %s9021_s8 }
 0x63c   : > { %8135 = vmatprep.subr.bf16.mxu0 %v6100_v16 }
 0x63d   : > { %8136 = vmatpush1.bf16.msra.mxu0 %v6099_v15  ;;  %v12216_v31 = vpop.permute.xlu1 %6503  ;;  %v6502_v14 = vpop.permute.xlu0 %6501 }
 0x63e   : > { %v6511_v48 = vsel %vm385_vm7, %v6502_v14, %v12216_v31 }
 0x63f   : > { %6813 = vrot.lane.b32.xlu1 %v12056_v50, %s9021_s8  ;;  %6811 = vrot.lane.b32.xlu0 %v12058_v36, %s9021_s8 }
 0x640   : > { %8217 = vmatprep.subr.bf16.mxu1 %v6511_v48  ;;  %8138 = vmatmul.mubr.bf16.vlgmr.msra.gmra.mrb[64].mxu0 %v10408_v3 }
 0x641   : > { %v6134_v6 = vpop.permute.xlu1 %6133  ;;  %v6500_v11 = vpop.permute.xlu0 %6499  ;;  %8178 = vmatprep.mubr.bf16.mxu0 %v12528_v38 }
 0x642   : > { %v6510_v12 = vsel %vm385_vm7, %v6500_v11, %v6502_v14  ;;  %v6146_v54 = vsel %vm403_vm8, %v11895_v39, %v6134_v6 }
 0x643   : > { %6817 = vrot.lane.b32.xlu1 %v12067_v28, %s9021_s8  ;;  %6815 = vrot.lane.b32.xlu0 %v12069_v8, %s9021_s8 }
 0x644   : > { %8218 = vmatpush1.bf16.msra.mxu1 %v6510_v12  ;;  %v12290_v12 = vpop.f32.mrb[56].mxu0 }
 0x645   : > { %v6544_v42 = vpop.permute.xlu1 %6543  ;;  %v6136_v41 = vpop.permute.xlu0 %6135 }
 0x646   : > { %v6147_v60 = vsel %vm403_vm8, %v6134_v6, %v6136_v41  ;;  %v12296_v41 = vpop.f32.mrb[57].mxu0 }
 0x647   : > { %6853 = vrot.lane.b32.xlu1 %v12021_v49, %s9022_s9  ;;  %6405 = vrot.lane.b32.xlu0 %v12075_v24, %s9021_s8 }
 0x648   : > { %8146 = vmatprep.subr.bf16.mxu0 %v6147_v60  ;;  %8220 = vmatmul.mubr.bf16.vlgmr.msra.gmra.mrb[64].mxu1 %v10408_v3 }
 0x649   : > { %8147 = vmatpush1.bf16.msra.mxu0 %v6146_v54  ;;  %v6542_v27 = vpop.permute.xlu1 %6541  ;;  %v12239_v19 = vpop.permute.xlu0 %6545  ;;  %8260 = vmatprep.mubr.bf16.mxu1 %v12528_v38 }
 0x64a   : > { %v6557_v53 = vsel %vm403_vm8, %v6542_v27, %v6544_v42  ;;  %v6558_v59 = vsel %vm403_vm8, %v6544_v42, %v12239_v19  ;;  %v12292_v42 = vpop.f32.mrb[56].mxu1  ;;  %v7856_v27 = vpop.f32.mrb[58].mxu0 }
 0x64b   : > { %6857 = vrot.lane.b32.xlu1 %v12033_v47, %s9022_s9  ;;  %6855 = vrot.lane.b32.xlu0 %v12035_v7, %s9022_s9 }
 0x64c   : > { %8228 = vmatprep.subr.bf16.mxu1 %v6558_v59  ;;  %v7857_v59 = vpop.f32.mrb[59].mxu0 }
 0x64d   : > { %8229 = vmatpush1.bf16.msra.mxu1 %v6557_v53  ;;  %v6144_v39 = vpop.permute.xlu1 %6143  ;;  %v6142_v17 = vpop.permute.xlu0 %6141 }
 0x64e   : > { %v6149_v21 = vsel %vm403_vm8, %v11915_v34, %v6142_v17  ;;  %v6150_v1 = vsel %vm403_vm8, %v6142_v17, %v6144_v39  ;;  %v6165_v34 = vld [vmem:[#allocation4 + $0x190] sm:$0xff] }
 0x64f   : > { %6447 = vrot.lane.b32.xlu1 %v12043_v57, %s9022_s9  ;;  %6859 = vrot.lane.b32.xlu0 %v12045_v10, %s9022_s9 }
 0x650   : > { %8148 = vmatprep.subr.bf16.mxu0 %v6150_v1 }
 0x651   : > { %8149 = vmatpush1.bf16.msra.mxu0 %v6149_v21  ;;  %v12256_v63 = vpop.permute.xlu1 %6553  ;;  %v6552_v30 = vpop.permute.xlu0 %6551 }
 0x652   : > { %8269 = vmatprep.subr.bf16.mxu0 %v12021_v49  ;;  %v6561_v35 = vsel %vm403_vm8, %v6552_v30, %v12256_v63 }
 0x653   : > { %6863 = vrot.lane.b32.xlu1 %v12056_v50, %s9022_s9  ;;  %6861 = vrot.lane.b32.xlu0 %v12058_v36, %s9022_s9 }
 0x654   : > { %8885 = vmatmul.mubr.msk.bf16.vlgmr.msra.gmra.mrb[64].mxu0 %vm7445_vm13, %v10454_v9  ;;  %8230 = vmatprep.subr.bf16.mxu1 %v6561_v35 }
 0x655   : > { %8270 = vmatpush1.bf16.msra.mxu0 %v6165_v34  ;;  %v6604_v13 = vpop.permute.xlu1 %6603  ;;  %v6550_v26 = vpop.permute.xlu0 %6549  ;;  %8301 = vmatprep.mubr.bf16.mxu0 %v12529_v40 }
 0x656   : > { %8271 = vmatprep.subr.bf16.mxu0 %v12058_v36  ;;  %v6560_v33 = vsel %vm403_vm8, %v6550_v26, %v6552_v30 }
 0x657   : > { %6867 = vrot.lane.b32.xlu1 %v12067_v28, %s9022_s9  ;;  %6865 = vrot.lane.b32.xlu0 %v12069_v8, %s9022_s9 }
 0x658   : > { %8231 = vmatpush1.bf16.msra.mxu1 %v6560_v33 }
 0x659   : > { %8272 = vmatpush1.bf16.msra.mxu0 %v6168_v52  ;;  %8351 = vmatprep.subr.bf16.mxu1 %v12033_v47  ;;  %v6608_v43 = vpop.permute.xlu1 %6607  ;;  %v6606_v15 = vpop.permute.xlu0 %6605 }
 0x65a   : > { %v6619_v16 = vsel %vm277_vm2, %v6604_v13, %v6606_v15  ;;  %v6620_v17 = vsel %vm277_vm2, %v6606_v15, %v6608_v43 }
 0x65b   : > { %8886 = vmatmul.mubr.msk.bf16.vlgmr.msra.gmra.mrb[64].mxu1 %vm7445_vm13, %v10454_v9  ;;  %6903 = vrot.lane.b32.xlu1 %v12021_v49, %s9023_s10 }
 0x65c   : > { %6455 = vrot.lane.b32.xlu0 %v12075_v24, %s9022_s9  ;;  %8273 = vmatprep.subr.bf16.mxu0 %v6619_v16  ;;  %s12435_s9 = scalar_lea.vmem %s12512_s6, %s8964_s22 }
 0x65d   : > { %8352 = vmatpush1.bf16.msra.mxu1 %v12035_v7  ;;  %v6198_v14 = vpop.permute.xlu1 %6197  ;;  %v6610_v48 = vpop.permute.xlu0 %6609  ;;  %8383 = vmatprep.mubr.bf16.mxu1 %v12529_v40 }
 0x65e   : > { %8353 = vmatprep.subr.bf16.mxu1 %v12069_v8  ;;  %v6209_v6 = vsel %vm277_vm2, %v11943_v25, %v6198_v14  ;;  %v6621_v11 = vsel %vm277_vm2, %v6608_v43, %v6610_v48  ;;  %v12298_v40 = vpop.f32.mrb[57].mxu1 }
 0x65f   : > { %6907 = vrot.lane.b32.xlu1 %v12033_v47, %s9023_s10  ;;  %8274 = vmatpush1.bf16.msra.mxu0 %v6209_v6  ;;  %v7938_v53 = vpop.f32.mrb[58].mxu1 }
 0x660   : > { %6905 = vrot.lane.b32.xlu0 %v12035_v7, %s9023_s10  ;;  %v7939_v39 = vpop.f32.mrb[59].mxu1 }
 0x661   : > { %8354 = vmatpush1.bf16.msra.mxu1 %v12056_v50  ;;  %v6614_v25 = vpop.permute.xlu1 %6613  ;;  %v6612_v60 = vpop.permute.xlu0 %6611 }
 0x662   : > { %8355 = vmatprep.subr.bf16.mxu1 %v6621_v11  ;;  %v6622_v54 = vsel %vm277_vm2, %v6612_v60, %v6614_v25 }
 0x663   : > { %6497 = vrot.lane.b32.xlu1 %v12043_v57, %s9023_s10  ;;  %8275 = vmatprep.subr.bf16.mxu0 %v6622_v54 }
 0x664   : > { %6909 = vrot.lane.b32.xlu0 %v12045_v10, %s9023_s10 }
 0x665   : > { %8356 = vmatpush1.bf16.msra.mxu1 %v6620_v17  ;;  %v6618_v21 = vpop.permute.xlu1 %6617  ;;  %v6616_v1 = vpop.permute.xlu0 %6615 }
 0x666   : > { %v6623_v30 = vsel %vm277_vm2, %v6614_v25, %v6616_v1  ;;  %v6624_v35 = vsel %vm277_vm2, %v6616_v1, %v6618_v21 }
 0x667   : > { %6913 = vrot.lane.b32.xlu1 %v12056_v50, %s9023_s10  ;;  %8357 = vmatprep.subr.bf16.mxu1 %v6624_v35 }
 0x668   : > { %6911 = vrot.lane.b32.xlu0 %v12058_v36, %s9023_s10 }
 0x669   : > { %8358 = vmatpush1.bf16.msra.mxu1 %v6623_v30  ;;  %v6654_v34 = vpop.permute.xlu1 %6653  ;;  %v6206_v13 = vpop.permute.xlu0 %6205 }
 0x66a   : > { %v6212_v26 = vsel %vm277_vm2, %v11964_v44, %v6206_v13 }
 0x66b   : > { %6917 = vrot.lane.b32.xlu1 %v12067_v28, %s9023_s10  ;;  %8276 = vmatpush1.bf16.msra.mxu0 %v6212_v26 }
 0x66c   : > { %6915 = vrot.lane.b32.xlu0 %v12069_v8, %s9023_s10 }
 0x66d   : > { %v6658_v33 = vpop.permute.xlu1 %6657  ;;  %v6656_v52 = vpop.permute.xlu0 %6655 }
 0x66e   : > { %v6669_v43 = vsel %vm295_vm1, %v6654_v34, %v6656_v52  ;;  %v6670_v48 = vsel %vm295_vm1, %v6656_v52, %v6658_v33 }
 0x66f   : > { %6953 = vrot.lane.b32.xlu1 %v12021_v49, %s9024_s11  ;;  %8277 = vmatprep.subr.bf16.mxu0 %v6669_v43 }
 0x670   : > { %6505 = vrot.lane.b32.xlu0 %v12075_v24, %s9023_s10 }
 0x671   : > { %v6248_v15 = vpop.permute.xlu1 %6247  ;;  %v6660_v44 = vpop.permute.xlu0 %6659 }
 0x672   : > { %v6259_v16 = vsel %vm295_vm1, %v11992_v20, %v6248_v15  ;;  %v6671_v14 = vsel %vm295_vm1, %v6658_v33, %v6660_v44 }
 0x673   : > { %6957 = vrot.lane.b32.xlu1 %v12033_v47, %s9024_s11  ;;  %8278 = vmatpush1.bf16.msra.mxu0 %v6259_v16 }
 0x674   : > { %6955 = vrot.lane.b32.xlu0 %v12035_v7, %s9024_s11  ;;  %8359 = vmatprep.subr.bf16.mxu1 %v6671_v14 }
 0x675   : > { %8360 = vmatpush1.bf16.msra.mxu1 %v6670_v48  ;;  %v6664_v49 = vpop.permute.xlu1 %6663  ;;  %v6662_v6 = vpop.permute.xlu0 %6661 }
 0x676   : > { %v6672_v11 = vsel %vm295_vm1, %v6662_v6, %v6664_v49 }
 0x677   : > { %6547 = vrot.lane.b32.xlu1 %v12043_v57, %s9024_s11  ;;  %8279 = vmatprep.subr.bf16.mxu0 %v6672_v11 }
 0x678   : > { %6959 = vrot.lane.b32.xlu0 %v12045_v10, %s9024_s11  ;;  %v7420_v10 = vld [vmem:[%s12510_s4] sm:$0x7] }
 0x679   : > { %v6668_v20 = vpop.permute.xlu1 %6667  ;;  %v6666_v47 = vpop.permute.xlu0 %6665 }
 0x67a   : > { %v6673_v25 = vsel %vm295_vm1, %v6664_v49, %v6666_v47  ;;  %v6674_v60 = vsel %vm295_vm1, %v6666_v47, %v6668_v20 }
 0x67b   : > { %6963 = vrot.lane.b32.xlu1 %v12056_v50, %s9024_s11  ;;  %8361 = vmatprep.subr.bf16.mxu1 %v6674_v60 }
 0x67c   : > { %6961 = vrot.lane.b32.xlu0 %v12058_v36, %s9024_s11  ;;  %8362 = vmatpush1.bf16.msra.mxu1 %v6673_v25 }
 0x67d   : > { %v6704_v7 = vpop.permute.xlu1 %6703  ;;  %v6256_v57 = vpop.permute.xlu0 %6255 }
 0x67e   : > { %v6262_v54 = vsel %vm295_vm1, %v12008_v62, %v6256_v57 }
 0x67f   : > { %6967 = vrot.lane.b32.xlu1 %v12067_v28, %s9024_s11  ;;  %8280 = vmatpush1.bf16.msra.mxu0 %v6262_v54 }
 0x680   : > { %6965 = vrot.lane.b32.xlu0 %v12069_v8, %s9024_s11 }
 0x681   : > { %v6708_v50 = vpop.permute.xlu1 %6707  ;;  %v6706_v27 = vpop.permute.xlu0 %6705 }
 0x682   : > { %v6719_v36 = vsel %vm313_vm3, %v6704_v7, %v6706_v27  ;;  %v6720_v59 = vsel %vm313_vm3, %v6706_v27, %v6708_v50 }
 0x683   : > { %7423 = vperm.xlu1 %8985, %v7420_v10   ;;  %8281 = vmatprep.subr.bf16.mxu0 %v6719_v36 }
 0x684   : > { %6555 = vrot.lane.b32.xlu0 %v12075_v24, %s9024_s11 }
 0x685   : > { %v6298_v62 = vpop.permute.xlu1 %6297  ;;  %v6710_v53 = vpop.permute.xlu0 %6709 }
 0x686   : > { %v6309_v28 = vsel %vm313_vm3, %v12030_v22, %v6298_v62  ;;  %v6721_v8 = vsel %vm313_vm3, %v6708_v50, %v6710_v53 }
 0x687   : > { %8282 = vmatpush1.bf16.msra.mxu0 %v6309_v28  ;;  %8363 = vmatprep.subr.bf16.mxu1 %v6721_v8 }
 0x688   : > { %8364 = vmatpush1.bf16.msra.mxu1 %v6720_v59 }
 0x689   : > { %v6714_v39 = vpop.permute.xlu1 %6713  ;;  %v6712_v17 = vpop.permute.xlu0 %6711 }
 0x68a   : > { %v6722_v21 = vsel %vm313_vm3, %v6712_v17, %v6714_v39 }
 0x68b   : > { %8283 = vmatprep.subr.bf16.mxu0 %v6722_v21  ;;  %v12360_v1 = vpop.f32.mrb[60].mxu0 }
 0x68c   : > { %v12362_v24 = vpop.f32.mrb[61].mxu0 }
 0x68d   : > { %v6718_v30 = vpop.permute.xlu1 %6717  ;;  %v6716_v35 = vpop.permute.xlu0 %6715 }
 0x68e   : > { %v6723_v22 = vsel %vm313_vm3, %v6714_v39, %v6716_v35  ;;  %v6724_v34 = vsel %vm313_vm3, %v6716_v35, %v6718_v30  ;;  %v8020_v13 = vpop.f32.mrb[62].mxu0 }
 0x68f   : > { %8365 = vmatprep.subr.bf16.mxu1 %v6724_v34  ;;  %v12366_v26 = vpop.f32.mrb[60].mxu1  ;;  %v8021_v33 = vpop.f32.mrb[63].mxu0 }
 0x690   : > { %8366 = vmatpush1.bf16.msra.mxu1 %v6723_v22  ;;  %v12368_v52 = vpop.f32.mrb[61].mxu1 }
 0x691   : > { %v6754_v43 = vpop.permute.xlu1 %6753  ;;  %v6306_v15 = vpop.permute.xlu0 %6305 }
 0x692   : > { %v6312_v44 = vsel %vm313_vm3, %v12054_v32, %v6306_v15  ;;  %v8102_v16 = vpop.f32.mrb[62].mxu1 }
 0x693   : > { %8284 = vmatpush1.bf16.msra.mxu0 %v6312_v44  ;;  %v8103_v14 = vpop.f32.mrb[63].mxu1 }
 0x695   : > { %v6758_v48 = vpop.permute.xlu1 %6757  ;;  %v6756_v49 = vpop.permute.xlu0 %6755 }
 0x696   : > { %v6769_v6 = vsel %vm331_vm4, %v6754_v43, %v6756_v49  ;;  %v6770_v60 = vsel %vm331_vm4, %v6756_v49, %v6758_v48 }
 0x697   : > { %8285 = vmatprep.subr.bf16.mxu0 %v6769_v6 }
 0x699   : > { %v6348_v11 = vpop.permute.xlu1 %6347  ;;  %v6760_v20 = vpop.permute.xlu0 %6759 }
 0x69a   : > { %v6359_v47 = vsel %vm331_vm4, %v12084_v5, %v6348_v11  ;;  %v6771_v25 = vsel %vm331_vm4, %v6758_v48, %v6760_v20 }
 0x69b   : > { %8286 = vmatpush1.bf16.msra.mxu0 %v6359_v47  ;;  %8367 = vmatprep.subr.bf16.mxu1 %v6771_v25 }
 0x69c   : > { %8368 = vmatpush1.bf16.msra.mxu1 %v6770_v60 }
 0x69d   : > { %v6764_v32 = vpop.permute.xlu1 %6763  ;;  %v6762_v7 = vpop.permute.xlu0 %6761 }
 0x69e   : > { %v6772_v57 = vsel %vm331_vm4, %v6762_v7, %v6764_v32 }
 0x69f   : > { %8287 = vmatprep.subr.bf16.mxu0 %v6772_v57 }
 0x6a1   : > { %v6768_v54 = vpop.permute.xlu1 %6767  ;;  %v6766_v10 = vpop.permute.xlu0 %6765 }
 0x6a2   : > { %v6773_v50 = vsel %vm331_vm4, %v6764_v32, %v6766_v10  ;;  %v6774_v27 = vsel %vm331_vm4, %v6766_v10, %v6768_v54 }
 0x6a3   : > { %8369 = vmatprep.subr.bf16.mxu1 %v6774_v27 }
 0x6a4   : > { %8370 = vmatpush1.bf16.msra.mxu1 %v6773_v50 }
 0x6a5   : > { %v6804_v5 = vpop.permute.xlu1 %6803  ;;  %v6356_v36 = vpop.permute.xlu0 %6355 }
 0x6a6   : > { %v6362_v62 = vsel %vm331_vm4, %v12100_v58, %v6356_v36 }
 0x6a7   : > { %8288 = vmatpush1.bf16.msra.mxu0 %v6362_v62 }
 0x6a9   : > { %v6808_v53 = vpop.permute.xlu1 %6807  ;;  %v6806_v28 = vpop.permute.xlu0 %6805 }
 0x6aa   : > { %v6819_v8 = vsel %vm349_vm5, %v6804_v5, %v6806_v28  ;;  %v6820_v30 = vsel %vm349_vm5, %v6806_v28, %v6808_v53 }
 0x6ab   : > { %8289 = vmatprep.subr.bf16.mxu0 %v6819_v8 }
 0x6ad   : > { %v6398_v59 = vpop.permute.xlu1 %6397  ;;  %v6810_v39 = vpop.permute.xlu0 %6809 }
 0x6ae   : > { %v6409_v17 = vsel %vm349_vm5, %v12120_v51, %v6398_v59  ;;  %v6821_v21 = vsel %vm349_vm5, %v6808_v53, %v6810_v39 }
 0x6af   : > { %8290 = vmatpush1.bf16.msra.mxu0 %v6409_v17  ;;  %8371 = vmatprep.subr.bf16.mxu1 %v6821_v21 }
 0x6b0   : > { %8372 = vmatpush1.bf16.msra.mxu1 %v6820_v30 }
 0x6b1   : > { %v6814_v35 = vpop.permute.xlu1 %6813  ;;  %v6812_v58 = vpop.permute.xlu0 %6811 }
 0x6b2   : > { %v6822_v22 = vsel %vm349_vm5, %v6812_v58, %v6814_v35 }
 0x6b3   : > { %8291 = vmatprep.subr.bf16.mxu0 %v6822_v22 }
 0x6b5   : > { %v6818_v34 = vpop.permute.xlu1 %6817  ;;  %v6816_v13 = vpop.permute.xlu0 %6815 }
 0x6b6   : > { %v6823_v33 = vsel %vm349_vm5, %v6814_v35, %v6816_v13  ;;  %v6824_v43 = vsel %vm349_vm5, %v6816_v13, %v6818_v34 }
 0x6b7   : > { %8373 = vmatprep.subr.bf16.mxu1 %v6824_v43 }
 0x6b8   : > { %8374 = vmatpush1.bf16.msra.mxu1 %v6823_v33 }
 0x6b9   : > { %v6854_v51 = vpop.permute.xlu1 %6853  ;;  %v6406_v15 = vpop.permute.xlu0 %6405 }
 0x6ba   : > { %v6412_v44 = vsel %vm349_vm5, %v12140_v23, %v6406_v15 }
 0x6bb   : > { %8292 = vmatpush1.bf16.msra.mxu0 %v6412_v44 }
 0x6bd   : > { %v6858_v16 = vpop.permute.xlu1 %6857  ;;  %v6856_v14 = vpop.permute.xlu0 %6855 }
 0x6be   : > { %v6869_v48 = vsel %vm367_vm6, %v6854_v51, %v6856_v14  ;;  %v6870_v47 = vsel %vm367_vm6, %v6856_v14, %v6858_v16 }
 0x6bf   : > { %8293 = vmatprep.subr.bf16.mxu0 %v6869_v48 }
 0x6c1   : > { %v6448_v49 = vpop.permute.xlu1 %6447  ;;  %v6860_v6 = vpop.permute.xlu0 %6859 }
 0x6c2   : > { %v6459_v11 = vsel %vm367_vm6, %v12164_v45, %v6448_v49  ;;  %v6871_v20 = vsel %vm367_vm6, %v6858_v16, %v6860_v6 }
 0x6c3   : > { %8294 = vmatpush1.bf16.msra.mxu0 %v6459_v11  ;;  %8375 = vmatprep.subr.bf16.mxu1 %v6871_v20 }
 0x6c4   : > { %8376 = vmatpush1.bf16.msra.mxu1 %v6870_v47 }
 0x6c5   : > { %v6864_v25 = vpop.permute.xlu1 %6863  ;;  %v6862_v23 = vpop.permute.xlu0 %6861 }
 0x6c6   : > { %v6872_v60 = vsel %vm367_vm6, %v6862_v23, %v6864_v25 }
 0x6c7   : > { %8295 = vmatprep.subr.bf16.mxu0 %v6872_v60 }
 0x6c9   : > { %v6868_v32 = vpop.permute.xlu1 %6867  ;;  %v6866_v7 = vpop.permute.xlu0 %6865 }
 0x6ca   : > { %v6873_v57 = vsel %vm367_vm6, %v6864_v25, %v6866_v7  ;;  %v6874_v54 = vsel %vm367_vm6, %v6866_v7, %v6868_v32 }
 0x6cb   : > { %8377 = vmatprep.subr.bf16.mxu1 %v6874_v54 }
 0x6cc   : > { %8378 = vmatpush1.bf16.msra.mxu1 %v6873_v57 }
 0x6cd   : > { %v6904_v45 = vpop.permute.xlu1 %6903 }
 0x6ce   : > { %v6456_v10 = vpop.permute.xlu0 %6455 }
 0x6cf   : > { %v6462_v50 = vsel %vm367_vm6, %v12180_v4, %v6456_v10 }
 0x6d0   : > { %8296 = vmatpush1.bf16.msra.mxu0 %v6462_v50 }
 0x6d1   : > { %v6908_v27 = vpop.permute.xlu1 %6907 }
 0x6d2   : > { %v6906_v5 = vpop.permute.xlu0 %6905 }
 0x6d3   : > { %v6919_v36 = vsel %vm385_vm7, %v6904_v45, %v6906_v5  ;;  %v6920_v59 = vsel %vm385_vm7, %v6906_v5, %v6908_v27 }
 0x6d4   : > { %8297 = vmatprep.subr.bf16.mxu0 %v6919_v36 }
 0x6d5   : > { %v6498_v62 = vpop.permute.xlu1 %6497 }
 0x6d6   : > { %v6509_v53 = vsel %vm385_vm7, %v12200_v2, %v6498_v62  ;;  %v6910_v28 = vpop.permute.xlu0 %6909 }
 0x6d7   : > { %8298 = vmatpush1.bf16.msra.mxu0 %v6509_v53  ;;  %v6921_v8 = vsel %vm385_vm7, %v6908_v27, %v6910_v28 }
 0x6d8   : > { %8379 = vmatprep.subr.bf16.mxu1 %v6921_v8 }
 0x6d9   : > { %8380 = vmatpush1.bf16.msra.mxu1 %v6920_v59  ;;  %v6914_v39 = vpop.permute.xlu1 %6913 }
 0x6da   : > { %v6912_v4 = vpop.permute.xlu0 %6911 }
 0x6db   : > { %v6922_v17 = vsel %vm385_vm7, %v6912_v4, %v6914_v39 }
 0x6dc   : > { %8299 = vmatprep.subr.bf16.mxu0 %v6922_v17 }
 0x6dd   : > { %v6918_v21 = vpop.permute.xlu1 %6917 }
 0x6de   : > { %v6916_v30 = vpop.permute.xlu0 %6915 }
 0x6df   : > { %v6923_v35 = vsel %vm385_vm7, %v6914_v39, %v6916_v30  ;;  %v6924_v58 = vsel %vm385_vm7, %v6916_v30, %v6918_v21 }
 0x6e0   : > { %8381 = vmatprep.subr.bf16.mxu1 %v6924_v58 }
 0x6e1   : > { %8382 = vmatpush1.bf16.msra.mxu1 %v6923_v35  ;;  %v6954_v2 = vpop.permute.xlu1 %6953 }
 0x6e2   : > { %v6506_v22 = vpop.permute.xlu0 %6505 }
 0x6e3   : > { %v6512_v34 = vsel %vm385_vm7, %v12216_v31, %v6506_v22 }
 0x6e4   : > { %8300 = vmatpush1.bf16.msra.mxu0 %v6512_v34  ;;  %8384 = vmatmul.mubr.bf16.vlgmr.msra.gmra.mrb[68].mxu1 %v10408_v3 }
 0x6e5   : > { %v6958_v13 = vpop.permute.xlu1 %6957  ;;  %8424 = vmatprep.mubr.bf16.mxu1 %v12528_v38 }
 0x6e6   : > { %v6956_v33 = vpop.permute.xlu0 %6955 }
 0x6e7   : > { %v6969_v43 = vsel %vm403_vm8, %v6954_v2, %v6956_v33  ;;  %8302 = vmatmul.mubr.bf16.vlgmr.msra.gmra.mrb[68].mxu0 %v10408_v3  ;;  %v6970_v16 = vsel %vm403_vm8, %v6956_v33, %v6958_v13 }
 0x6e8   : > { %8310 = vmatprep.subr.bf16.mxu0 %v6969_v43  ;;  %8342 = vmatprep.mubr.bf16.mxu0 %v12528_v38 }
 0x6e9   : > { %v6548_v51 = vpop.permute.xlu1 %6547 }
 0x6ea   : > { %v6559_v15 = vsel %vm403_vm8, %v12239_v19, %v6548_v51  ;;  %v6960_v31 = vpop.permute.xlu0 %6959 }
 0x6eb   : > { %8311 = vmatpush1.bf16.msra.mxu0 %v6559_v15  ;;  %v6971_v44 = vsel %vm403_vm8, %v6958_v13, %v6960_v31 }
 0x6ec   : > { %8392 = vmatprep.subr.bf16.mxu1 %v6971_v44 }
 0x6ed   : > { %8393 = vmatpush1.bf16.msra.mxu1 %v6970_v16  ;;  %v6964_v14 = vpop.permute.xlu1 %6963 }
 0x6ee   : > { %v6962_v48 = vpop.permute.xlu0 %6961 }
 0x6ef   : > { %v6972_v3 = vsel %vm403_vm8, %v6962_v48, %v6964_v14 }
 0x6f0   : > { %8312 = vmatprep.subr.bf16.mxu0 %v6972_v3 }
 0x6f1   : > { %v6968_v49 = vpop.permute.xlu1 %6967 }
 0x6f2   : > { %v6966_v6 = vpop.permute.xlu0 %6965 }
 0x6f3   : > { %v6973_v38 = vsel %vm403_vm8, %v6964_v14, %v6966_v6  ;;  %v6974_v19 = vsel %vm403_vm8, %v6966_v6, %v6968_v49 }
 0x6f4   : > { %8394 = vmatprep.subr.bf16.mxu1 %v6974_v19 }
 0x6f5   : > { %8395 = vmatpush1.bf16.msra.mxu1 %v6973_v38 }
 0x6f6   : > { %v6556_v11 = vpop.permute.xlu0 %6555 }
 0x6f7   : > { %v6562_v20 = vsel %vm403_vm8, %v12256_v63, %v6556_v11 }
 0x6f8   : > { %8313 = vmatpush1.bf16.msra.mxu0 %v6562_v20  ;;  %8888 = vmatmul.mubr.msk.bf16.vlgmr.msra.gmra.mrb[68].mxu1 %vm7445_vm13, %v10454_v9 }
 0x6fb   : > { %8887 = vmatmul.mubr.msk.bf16.vlgmr.msra.gmra.mrb[68].mxu0 %vm7445_vm13, %v10454_v9 }
 0x702   : > { %v12437_v47 = vpop.permute.xlu1 %7423 }
 0x703   : > { %v8892_v63 = vadd.f32 %v11973_v61, %v12437_v47  ;;  %v8893_v25 = vadd.f32 %v11981_v0, %v12437_v47  ;;  %v8894_v9 = vadd.f32 %v11975_v29, %v12437_v47  ;;  %v8895_v23 = vadd.f32 %v11983_v46, %v12437_v47 }
 0x704   : > { %v8896_v60 = vadd.f32 %v12136_v18, %v12437_v47  ;;  %v8897_v32 = vadd.f32 %v12144_v55, %v12437_v47  ;;  %v8898_v7 = vadd.f32 %v12138_v56, %v12437_v47  ;;  %v8899_v61 = vadd.f32 %v12146_v37, %v12437_v47 }
 0x705   : > { %v8900_v0 = vadd.f32 %v12290_v12, %v12437_v47  ;;  %v8901_v29 = vadd.f32 %v12296_v41, %v12437_v47  ;;  %v8902_v46 = vadd.f32 %v12292_v42, %v12437_v47  ;;  %v8903_v18 = vadd.f32 %v12298_v40, %v12437_v47  ;;  %8433 = vst [vmem:[%s12435_s9] sm:$0x7] %v8892_v63 }
 0x706   : > { %8434 = vst [vmem:[%s12435_s9 + $0x8] sm:$0x7] %v8893_v25  ;;  %8435 = vst [vmem:[%s12435_s9 + $0x10] sm:$0x7] %v8894_v9  ;;  %v8904_v56 = vadd.f32 %v12360_v1, %v12437_v47  ;;  %v8906_v55 = vadd.f32 %v12366_v26, %v12437_v47  ;;  %v8439_v37 = vrot.slane %v8895_v23, 5  ;;  %v8440_v12 = vrot.slane %v8896_v60, 5 }
 0x707   : > { %v8441_v41 = vrot.slane %v8897_v32, 5  ;;  %v8451_v42 = vrot.slane %v8898_v7, 2  ;;  %v8452_v57 = vrot.slane %v8899_v61, 2  ;;  %v8453_v40 = vrot.slane %v8900_v0, 2 }
 0x708   : > { %8445 = vst [vmem:[%s12435_s9] sm:$0x38] %v8439_v37  ;;  %8446 = vst [vmem:[%s12435_s9 + $0x8] sm:$0x38] %v8440_v12  ;;  %v8466_v54 = vrot.slane %v8901_v29, 7  ;;  %v8467_v1 = vrot.slane %v8902_v46, 7  ;;  %v8468_v45 = vrot.slane %v8903_v18, 7  ;;  %v8905_v50 = vadd.f32 %v12362_v24, %v12437_v47 }
 0x709   : > { %v8478_v10 = vrot.slane %v8904_v56, 4  ;;  %8447 = vst [vmem:[%s12435_s9 + $0x10] sm:$0x38] %v8441_v41  ;;  %8457 = vst [vmem:[%s12435_s9 + $0x18] ss:$-20 sps:$4 sm:$0xc1] %v8451_v42   ;;  %v8907_v27 = vadd.f32 %v12368_v52, %v12437_v47 }
 0x70a   : > { %8458 = vst [vmem:[%s12435_s9 + $0x20] ss:$-20 sps:$4 sm:$0xc1] %v8452_v57   ;;  %8459 = vst [vmem:[%s12435_s9 + $0x28] ss:$-20 sps:$4 sm:$0xc1] %v8453_v40  }
 0x70b   : > { %v8480_v26 = vrot.slane %v8906_v55, 4  ;;  %8472 = vst [vmem:[%s12435_s9 + $0x18] sm:$0xe] %v8466_v54  ;;  %8473 = vst [vmem:[%s12435_s9 + $0x20] sm:$0xe] %v8467_v1  ;;  %v8479_v5 = vrot.slane %v8905_v50, 4 }
 0x70c   : > { %8474 = vst [vmem:[%s12435_s9 + $0x28] sm:$0xe] %v8468_v45  ;;  %8484 = vst [vmem:[%s12435_s9 + $0x18] sm:$0x70] %v8478_v10  ;;  %v8490_v36 = vrot.slane %v8907_v27, 1 }
 0x70d   : > { %8486 = vst [vmem:[%s12435_s9 + $0x28] sm:$0x70] %v8480_v26  ;;  %8485 = vst [vmem:[%s12435_s9 + $0x20] sm:$0x70] %v8479_v5 }
 0x70e   : > { %8496 = vst [vmem:[%s12435_s9 + $0x30] ss:$-20 sps:$4 sm:$0x83] %v8490_v36  }
 0x727   : > { %v8180_v62 = vpop.f32.mrb[64].mxu0 }
 0x728   : > { %v8908_v53 = vadd.f32 %v8180_v62, %v12437_v47  ;;  %v8182_v28 = vpop.f32.mrb[65].mxu0 }
 0x729   : > { %v8909_v24 = vadd.f32 %v8182_v28, %v12437_v47  ;;  %v8184_v52 = vpop.f32.mrb[66].mxu0 }
 0x72a   : > { %v8491_v8 = vrot.slane %v8908_v53, 1  ;;  %v8185_v59 = vpop.f32.mrb[67].mxu0 }
 0x72b   : > { %v8492_v39 = vrot.slane %v8909_v24, 1 }
 0x72c   : > { %8497 = vst [vmem:[%s12435_s9 + $0x38] ss:$-20 sps:$4 sm:$0x83] %v8491_v8  }
 0x72d   : > { %8498 = vst [vmem:[%s12435_s9 + $0x40] ss:$-20 sps:$4 sm:$0x83] %v8492_v39  }
 0x72e   : > { %v8262_v4 = vpop.f32.mrb[64].mxu1 }
 0x72f   : > { %v8910_v17 = vadd.f32 %v8262_v4, %v12437_v47  ;;  %v8264_v21 = vpop.f32.mrb[65].mxu1 }
 0x730   : > { %v8911_v30 = vadd.f32 %v8264_v21, %v12437_v47  ;;  %v8266_v35 = vpop.f32.mrb[66].mxu1 }
 0x731   : > { %v8505_v58 = vrot.slane %v8910_v17, 6  ;;  %v8267_v2 = vpop.f32.mrb[67].mxu1 }
 0x732   : > { %v8506_v22 = vrot.slane %v8911_v30, 6 }
 0x733   : > { %8511 = vst [vmem:[%s12435_s9 + $0x30] sm:$0x1c] %v8505_v58 }
 0x734   : > { %8512 = vst [vmem:[%s12435_s9 + $0x38] sm:$0x1c] %v8506_v22 }
 0x7cb   : > { %v8426_v34 = vpop.f32.mrb[68].mxu1 }
 0x7cc   : > { %v8914_v13 = vadd.f32 %v8426_v34, %v12437_v47  ;;  %v8428_v33 = vpop.f32.mrb[69].mxu1 }
 0x7cd   : > { %v8915_v43 = vadd.f32 %v8428_v33, %v12437_v47  ;;  %v8430_v51 = vpop.f32.mrb[70].mxu1 }
 0x7ce   : > { %v8518_v15 = vrot.slane %v8914_v13, 3  ;;  %v8344_v31 = vpop.f32.mrb[68].mxu0  ;;  %v8431_v44 = vpop.f32.mrb[71].mxu1 }
 0x7cf   : > { %v8519_v16 = vrot.slane %v8915_v43, 3  ;;  %v8912_v14 = vadd.f32 %v8344_v31, %v12437_v47  ;;  %v8346_v48 = vpop.f32.mrb[69].mxu0 }
 0x7d0   : > { %8524 = vst [vmem:[%s12435_s9 + $0x38] sm:$0xe0] %v8518_v15  ;;  %v8913_v3 = vadd.f32 %v8346_v48, %v12437_v47  ;;  %v8348_v49 = vpop.f32.mrb[70].mxu0 }
 0x7d1   : > { %8525 = vst [vmem:[%s12435_s9 + $0x40] sm:$0xe0] %v8519_v16  ;;  %v8507_v6 = vrot.slane %v8912_v14, 6  ;;  %v8349_v38 = vpop.f32.mrb[71].mxu0 }
 0x7d2   : > { %v8517_v19 = vrot.slane %v8913_v3, 3 }
 0x7d3   : > { %8513 = vst [vmem:[%s12435_s9 + $0x40] sm:$0x1c] %v8507_v6 }
 0x7d4   : > { %8523 = vst [vmem:[%s12435_s9 + $0x30] sm:$0xe0] %v8517_v19 }
 0x7d5 PF: > { %s16_s21 = sadd.s32 1, %s9015_s21  }
 0x7d6   : > { %p13_p5 = scmp.ge.s32.totalorder %s16_s21, 4  }
 0x7d8   :  { %15 = sbr.rel (!%p13_p5) target bundleno = 1 (0x1), region = 88 }

</bundles_post_ra>
